<compile_context>
chip_gen: v7x
topology: tpu7x:2x2x1
jax: 0.10.0
libtpu: 0.0.40
codegen_flags: <defaults>
</compile_context>

<pallas_src>
import jax
import jax.numpy as jnp
from jax import lax
from jax.experimental import pallas as pl
from jax.experimental.pallas import tpu as pltpu

EPS = 1e-5
NEG_SLOPE = 0.2


# ---------------------------------------------------------------------------
# wrapper-side layout plumbing (plain XLA, runs once per call)
# ---------------------------------------------------------------------------
def _out_size(n, stride):
    # kernel=3, padding=1
    return (n - 1) // stride + 1


def _pack_input(x_nchw):
    """NCHW -> parity-grouped (padded_plane, batch) x ((W+2)*C) layout."""
    n, c, h, w = x_nchw.shape
    x = jnp.transpose(x_nchw, (0, 2, 3, 1))                    # NHWC
    x = jnp.pad(x, ((0, 0), (1, 1), (1, 1), (0, 0)))           # (N, H+2, W+2, C)
    x = jnp.transpose(x, (1, 0, 2, 3)).reshape(h + 2, n, (w + 2) * c)
    x = jnp.concatenate([x[0::2], x[1::2]], axis=0)            # even planes, then odd
    return x.reshape((h + 2) * n, (w + 2) * c)


def _lower_conv_weight_tiled(w, wt):
    """Fold kw taps + stride-2 W subsampling of ONE W-tile into the weight.

    w: (3, 3, Cin, Cout) HWIO.  Returns (3, (2*wt+1)*Cin, wt*Cout) with
      out[kh, dw*Cin+ci, j*Cout+co] = w[kh, kw, ci, co]  iff dw == 2*j + kw.
    The block is shared by every tile; tile t reads padded cols [2*t*wt, 2*t*wt+2*wt].
    """
    _, _, cin, cout = w.shape
    dwin = 2 * wt + 1
    dw = jnp.arange(dwin)[:, None, None]
    kw = jnp.arange(3)[None, :, None]
    j = jnp.arange(wt)[None, None, :]
    onehot = (dw == 2 * j + kw).astype(w.dtype)                # (dwin, 3, wt)
    big = jnp.einsum('dkj,hkcq->hdcjq', onehot, w)             # (3, dwin, Cin, wt, Cout)
    return big.reshape(3, dwin * cin, wt * cout)


def _lower_small_weight(w, s):
    """3x3 conv on an s x s input (s in {1,2}, padding 1, single output pixel):
    only the taps hitting real pixels survive -> (s*s*Cin, Cout)."""
    _, _, cin, cout = w.shape
    sub = w[1:1 + s, 1:1 + s]                                  # (s, s, Cin, Cout)
    return sub.reshape(s * s * cin, cout)


# ---------------------------------------------------------------------------
# fused Pallas kernel
# ---------------------------------------------------------------------------
def _make_kernel(n, cfgs, n_row, cdt):
    n_layers = len(cfgs)
    n_pref = n_layers - 1          # layer-0 weight arrives through a VMEM input
    n_act = n_row - 1              # VMEM buffers for row-layout activations

    def rs(plane, hp):
        # row of (padded plane, batch 0) in the parity-grouped layout
        e = (hp + 1) // 2
        return ((plane % 2) * e + plane // 2) * n

    def kernel(*refs):
        it = iter(refs)
        x_ref = next(it)
        w0_ref = next(it)
        w_hbm = [next(it) for _ in range(n_pref)]
        gb = [next(it) for _ in range(n_layers)]
        wout_ref = next(it)
        bout_ref = next(it)
        out_ref = next(it)
        acts = [next(it) for _ in range(n_act)]
        w_vm = [next(it) for _ in range(n_pref)]
        sem = next(it)

        # Kick off every weight prefetch (HBM -> VMEM) immediately; each layer
        # waits right before first use so the DMA overlaps earlier compute.
        copies = [pltpu.make_async_copy(w_hbm[i], w_vm[i], sem.at[i])
                  for i in range(n_pref)]
        for cp in copies:
            cp.start()

        def layer_weight(li):
            if li == 0:
                return w0_ref
            copies[li - 1].wait()
            return w_vm[li - 1]

        def bn_lrelu(acc, gb_ref, cnt, wo, cout):
            # training-mode BatchNorm (biased var, eps=1e-5) + LeakyReLU(0.2).
            # (conv bias omitted upstream: it cancels exactly against the mean.)
            s1 = jnp.sum(acc, axis=0, keepdims=True)
            s2 = jnp.sum(acc * acc, axis=0, keepdims=True)
            sh = cout                         # butterfly all-reduce over Wo lane groups
            while sh < wo * cout:
                s1 = s1 + pltpu.roll(s1, shift=sh, axis=1)
                s2 = s2 + pltpu.roll(s2, shift=sh, axis=1)
                sh *= 2
            inv = 1.0 / float(cnt)
            mean = s1 * inv
            var = s2 * inv - mean * mean
            scale = gb_ref[0:1, :] * lax.rsqrt(var + EPS)
            shift = gb_ref[1:2, :] - mean * scale
            yn = acc * scale + shift
            return jnp.where(yn >= 0, yn, NEG_SLOPE * yn)

        cur = x_ref
        hp_cur = cfgs[0]['Hin'] + 2
        z = None
        # ---- row-layout stride-2 conv+BN layers -------------------------------
        for li in range(n_row):
            cfg = cfgs[li]
            ho, wo = cfg['Ho'], cfg['Wo']
            cin, cout = cfg['Cin'], cfg['Cout']
            wt = cfg['Wt']
            tiles = wo // wt
            kwin = (2 * wt + 1) * cin
            rows = ho * n
            fuse = (li == n_row - 1)          # tiny rows: fold 3 kh taps into one dot
            w_l = layer_weight(li)

            touts = []
            for t in range(tiles):
                l0 = 2 * t * wt * cin
                if fuse:
                    lhs = jnp.concatenate(
                        [cur[rs(kh, hp_cur):rs(kh, hp_cur) + rows, l0:l0 + kwin]
                         for kh in range(3)], axis=-1).astype(cdt)
                    y = jnp.dot(lhs, w_l[...], preferred_element_type=jnp.float32)
                else:
                    y = None
                    for kh in range(3):
                        lhs = cur[rs(kh, hp_cur):rs(kh, hp_cur) + rows,
                                  l0:l0 + kwin].astype(cdt)
                        yk = jnp.dot(lhs, w_l[kh],
                                     preferred_element_type=jnp.float32)
                        y = yk if y is None else y + yk
                touts.append(y)
            acc = touts[0] if tiles == 1 else jnp.concatenate(touts, axis=-1)
            yn = bn_lrelu(acc, gb[li], n * ho * wo, wo, cout)

            if li < n_row - 1:
                # scatter into the next layer's zero-padded, parity-grouped buffer
                # (full-width, lane-0-aligned 8-row stores; only pad planes zeroed)
                nxt = acts[li]
                wpc = (wo + 2) * cout
                padc = jnp.zeros((rows, cout), dtype=yn.dtype)
                ynp = jnp.concatenate([padc, yn, padc], axis=-1)
                zrow = jnp.zeros((n, wpc), dtype=yn.dtype)
                nxt[0:n, :] = zrow                               # top pad plane
                nxt[(ho + 1) * n:(ho + 2) * n, :] = zrow         # bottom pad plane
                for hh in range(ho):
                    r = rs(hh + 1, ho + 2)
                    nxt[r:r + n, :] = ynp[hh * n:(hh + 1) * n, :]
                cur = nxt
                hp_cur = ho + 2
            else:
                # switch to spatial-in-lanes layout (N, Ho*Wo*Cout) for the tail
                z = jnp.concatenate(
                    [yn[hh * n:(hh + 1) * n, :] for hh in range(ho)], axis=-1)

        # ---- tail BN layers (input spatial <= 2x2) -> one fused matmul each ----
        for li in range(n_row, n_layers):
            w_l = layer_weight(li)
            acc = jnp.dot(z.astype(cdt), w_l[...],
                          preferred_element_type=jnp.float32)
            z = bn_lrelu(acc, gb[li], n, 1, cfgs[li]['Cout'])

        # ---- final 3x3/s1 conv on 1x1 input = center tap + bias + sigmoid ------
        logit = jnp.dot(z.astype(cdt), wout_ref[...],
                        preferred_element_type=jnp.float32) + bout_ref[...]
        out_ref[...] = 1.0 / (1.0 + jnp.exp(-logit))

    return kernel


# ---------------------------------------------------------------------------
# forward pass (matches D_net.forward, NCHW in / NCHW out)
# ---------------------------------------------------------------------------
def d_net_forward(x_nchw, params, out_params, compute_dtype=jnp.bfloat16):
    n, c_in, h, w = x_nchw.shape
    assert h == w, "square inputs expected"
    cdt = compute_dtype

    # static per-layer configuration
    cfgs = []
    hh, ww, cc = h, w, c_in
    for (wgt, _b, _g, _bt) in params:
        cout = wgt.shape[-1]
        ho, wo = _out_size(hh, 2), _out_size(ww, 2)
        cfgs.append(dict(Hin=hh, Win=ww, Cin=cc, Cout=cout, Ho=ho, Wo=wo))
        hh, ww, cc = ho, wo, cout
    n_layers = len(cfgs)
    # layers with input >= 4 wide run in the (plane,batch)x(W*C) row layout;
    # the remaining tiny layers (input <= 2x2) fold their spatial dims into lanes.
    n_row = sum(1 for c in cfgs if c['Win'] >= 4)
    assert 1 <= n_row < n_layers
    assert cfgs[n_row - 1]['Ho'] * cfgs[n_row - 1]['Wo'] <= 4
    for c in cfgs[n_row:]:
        assert c['Win'] <= 2 and c['Hin'] == c['Win'] and c['Ho'] == 1 and c['Wo'] == 1
    assert hh == 1 and ww == 1
    for c in cfgs[:n_row]:
        c['Wt'] = max(1, c['Wo'] // 2)        # two W tiles per layer (one if Wo == 1)

    w_out, b_out = out_params

    # ---- operands (one-time layout plumbing; MXU operands cast to compute dtype)
    x_pk = _pack_input(x_nchw).astype(cdt)
    row_w = []
    for li in range(n_row):
        wl = _lower_conv_weight_tiled(params[li][0], cfgs[li]['Wt'])
        if li == n_row - 1:                   # kh-fused 2-D form for the tiny layer
            wl = wl.reshape(-1, wl.shape[-1])
        row_w.append(wl.astype(cdt))
    tail_w = [_lower_small_weight(params[li][0], cfgs[li]['Win']).astype(cdt)
              for li in range(n_row, n_layers)]
    wout = _lower_small_weight(w_out, 1).astype(cdt)
    gbs = []
    for li in range(n_layers):
        gt = jnp.tile(params[li][2].reshape(1, -1), (1, cfgs[li]['Wo']))
        bt = jnp.tile(params[li][3].reshape(1, -1), (1, cfgs[li]['Wo']))
        gbs.append(jnp.concatenate([gt, bt], axis=0).astype(jnp.float32))
    bout = b_out.reshape(1, 1).astype(jnp.float32)

    pref_w = row_w[1:] + tail_w               # kept in HBM, prefetched in-kernel
    ops = [x_pk, row_w[0]] + pref_w + gbs + [wout, bout]

    vmem = pl.BlockSpec(memory_space=pltpu.MemorySpace.VMEM)
    hbm = pl.BlockSpec(memory_space=pl.ANY)
    in_specs = ([vmem, vmem] + [hbm] * len(pref_w)
                + [vmem] * n_layers + [vmem, vmem])

    scratch = []
    for li in range(n_row - 1):               # padded activations of layers 0..n_row-2
        cfg = cfgs[li]
        scratch.append(pltpu.VMEM(((cfg['Ho'] + 2) * n,
                                   (cfg['Wo'] + 2) * cfg['Cout']), jnp.float32))
    for wl in pref_w:                         # landing buffers for prefetched weights
        scratch.append(pltpu.VMEM(wl.shape, cdt))
    scratch.append(pltpu.SemaphoreType.DMA((len(pref_w),)))

    out = pl.pallas_call(
        _make_kernel(n, cfgs, n_row, cdt),
        out_shape=jax.ShapeDtypeStruct((n, 1), jnp.float32),
        in_specs=in_specs,
        out_specs=vmem,
        scratch_shapes=scratch,
        compiler_params=pltpu.CompilerParams(vmem_limit_bytes=24 * 1024 * 1024),
    )(*ops)
    return out.reshape(n, 1, 1, 1)


# ---------------------------------------------------------------------------
# Parameters (deterministic, synthetic) — mirrors D_net.__init__ shapes (HWIO).
# ---------------------------------------------------------------------------
def init_params(key, inchannel=3, ndf=32, layer=6):
    params = []
    ic, nf = inchannel, ndf
    for i in range(layer):
        key, k1, k2, k3, k4 = jax.random.split(key, 5)
        wgt = 0.05 * jax.random.normal(k1, (3, 3, ic, nf), jnp.float32)
        b = 0.05 * jax.random.normal(k2, (1, nf), jnp.float32)
        gamma = 1.0 + 0.1 * jax.random.normal(k3, (1, nf), jnp.float32)
        beta = 0.1 * jax.random.normal(k4, (1, nf), jnp.float32)
        params.append((wgt, b, gamma, beta))
        ic = nf
        if i % 2 == 0:
            nf = nf * 2
    key, k1, k2 = jax.random.split(key, 3)
    w_out = 0.05 * jax.random.normal(k1, (3, 3, ic, 1), jnp.float32)
    b_out = 0.05 * jax.random.normal(k2, (1, 1), jnp.float32)
    return params, (w_out, b_out)


# ---------------------------------------------------------------------------
# Pure-JAX reference (mirrors the PyTorch module; compute_dtype only quantizes
# the conv operands — accumulation and BatchNorm stay in f32, like the kernel).
# ---------------------------------------------------------------------------
def d_net_reference(x_nchw, params, out_params, compute_dtype=jnp.float32):
    x = jnp.transpose(x_nchw, (0, 2, 3, 1))
    for (wgt, b, gamma, beta) in params:
        dn = lax.conv_dimension_numbers(x.shape, wgt.shape, ("NHWC", "HWIO", "NHWC"))
        y = lax.conv_general_dilated(
            x.astype(compute_dtype), wgt.astype(compute_dtype), (2, 2),
            ((1, 1), (1, 1)), dimension_numbers=dn,
            preferred_element_type=jnp.float32) + b.reshape(1, 1, 1, -1)
        mean = jnp.mean(y, axis=(0, 1, 2), keepdims=True)
        var = jnp.var(y, axis=(0, 1, 2), keepdims=True)
        yn = (y - mean) * lax.rsqrt(var + EPS) * gamma.reshape(1, 1, 1, -1) \
             + beta.reshape(1, 1, 1, -1)
        x = jnp.where(yn >= 0, yn, NEG_SLOPE * yn)
    w_out, b_out = out_params
    dn = lax.conv_dimension_numbers(x.shape, w_out.shape, ("NHWC", "HWIO", "NHWC"))
    y = lax.conv_general_dilated(
        x.astype(compute_dtype), w_out.astype(compute_dtype), (1, 1),
        ((1, 1), (1, 1)), dimension_numbers=dn,
        preferred_element_type=jnp.float32) + b_out.reshape(1, 1, 1, -1)
    y = 1.0 / (1.0 + jnp.exp(-y))
    return jnp.transpose(y, (0, 3, 1, 2))


if __name__ == "__main__":
    key = jax.random.PRNGKey(0)
    key, pkey, xkey = jax.random.split(key, 3)
    params, out_params = init_params(pkey, inchannel=3, ndf=32, layer=6)

    # NCHW input (batch=8, 3 channels, 32x32): 6 stride-2 convs take 32 -> 1.
    # Batch raised 2 -> 8 per the perf review (amortizes the weight stream,
    # aligned 8-row sublane tiles, 128 MXU rows on layer 0).
    x = jax.random.normal(xkey, (8, 3, 32, 32), jnp.float32)

    fwd_bf16 = jax.jit(lambda a, p, o: d_net_forward(a, p, o, jnp.bfloat16))
    fwd_f32 = jax.jit(lambda a, p, o: d_net_forward(a, p, o, jnp.float32))

    out_bf16 = jax.block_until_ready(fwd_bf16(x, params, out_params))
    out_f32 = jax.block_until_ready(fwd_f32(x, params, out_params))
    assert out_bf16.shape == (8, 1, 1, 1), out_bf16.shape
    assert out_f32.shape == (8, 1, 1, 1), out_f32.shape

    # exact-math check: f32 kernel path vs f32 reference
    ref_f32 = d_net_reference(x, params, out_params, jnp.float32)
    diff_f32 = float(jnp.max(jnp.abs(out_f32 - ref_f32)))
    assert jnp.allclose(out_f32, ref_f32, atol=2e-3, rtol=2e-3), \
        "f32 mismatch vs reference, max abs diff = %e" % diff_f32

    # bf16 fast path vs a reference with the same operand quantization
    # (products are exact in f32; remaining diffs are accumulation-order level).
    ref_bf16 = d_net_reference(x, params, out_params, jnp.bfloat16)
    diff_bf16 = float(jnp.max(jnp.abs(out_bf16 - ref_bf16)))
    assert jnp.allclose(out_bf16, ref_bf16, atol=2e-2, rtol=2e-2), \
        "bf16 mismatch vs reference, max abs diff = %e" % diff_bf16

    print("KERNEL_OK")
</pallas_src>

<mosaic_0001>
module attributes {stable_mosaic.version = 11 : i64} {
  func.func @kernel(%arg0: memref<272x102xbf16, #tpu.memory_space<vmem>>, %arg1: memref<3x51x256xbf16, #tpu.memory_space<vmem>>, %arg2: memref<3x288x256xbf16, #tpu.memory_space<any>>, %arg3: memref<3x320x128xbf16, #tpu.memory_space<any>>, %arg4: memref<576x128xbf16, #tpu.memory_space<any>>, %arg5: memref<512x128xbf16, #tpu.memory_space<any>>, %arg6: memref<128x256xbf16, #tpu.memory_space<any>>, %arg7: memref<2x512xf32, #tpu.memory_space<vmem>>, %arg8: memref<2x512xf32, #tpu.memory_space<vmem>>, %arg9: memref<2x256xf32, #tpu.memory_space<vmem>>, %arg10: memref<2x256xf32, #tpu.memory_space<vmem>>, %arg11: memref<2x128xf32, #tpu.memory_space<vmem>>, %arg12: memref<2x256xf32, #tpu.memory_space<vmem>>, %arg13: memref<256x1xbf16, #tpu.memory_space<vmem>>, %arg14: memref<1x1xf32, #tpu.memory_space<vmem>>, %arg15: memref<8x1xf32, #tpu.memory_space<vmem>>, %arg16: memref<144x576xf32, #tpu.memory_space<vmem>>, %arg17: memref<80x640xf32, #tpu.memory_space<vmem>>, %arg18: memref<48x384xf32, #tpu.memory_space<vmem>>, %arg19: memref<3x288x256xbf16, #tpu.memory_space<vmem>>, %arg20: memref<3x320x128xbf16, #tpu.memory_space<vmem>>, %arg21: memref<576x128xbf16, #tpu.memory_space<vmem>>, %arg22: memref<512x128xbf16, #tpu.memory_space<vmem>>, %arg23: memref<128x256xbf16, #tpu.memory_space<vmem>>, %arg24: memref<5x!tpu.dma_semaphore, #tpu.memory_space<semaphore_mem>>) attributes {dimension_semantics = [], scalar_prefetch = 0 : i64, scratch_operands = 9 : i64, tpu.core_type = #tpu.core_type<tc>} {
    %c0_i32 = arith.constant 0 : i32
    %0 = tpu.memref_slice %arg24[%c0_i32] : memref<5x!tpu.dma_semaphore, #tpu.memory_space<semaphore_mem>> -> memref<1x!tpu.dma_semaphore, #tpu.memory_space<semaphore_mem>>
    %1 = tpu.memref_squeeze %0 : memref<1x!tpu.dma_semaphore, #tpu.memory_space<semaphore_mem>> -> memref<!tpu.dma_semaphore, #tpu.memory_space<semaphore_mem>>
    tpu.enqueue_dma source(%arg2 : memref<3x288x256xbf16, #tpu.memory_space<any>>) target(%arg19 : memref<3x288x256xbf16, #tpu.memory_space<vmem>>) target_semaphore(%1 : memref<!tpu.dma_semaphore, #tpu.memory_space<semaphore_mem>>)
    %c1_i32 = arith.constant 1 : i32
    %2 = tpu.memref_slice %arg24[%c1_i32] : memref<5x!tpu.dma_semaphore, #tpu.memory_space<semaphore_mem>> -> memref<1x!tpu.dma_semaphore, #tpu.memory_space<semaphore_mem>>
    %3 = tpu.memref_squeeze %2 : memref<1x!tpu.dma_semaphore, #tpu.memory_space<semaphore_mem>> -> memref<!tpu.dma_semaphore, #tpu.memory_space<semaphore_mem>>
    tpu.enqueue_dma source(%arg3 : memref<3x320x128xbf16, #tpu.memory_space<any>>) target(%arg20 : memref<3x320x128xbf16, #tpu.memory_space<vmem>>) target_semaphore(%3 : memref<!tpu.dma_semaphore, #tpu.memory_space<semaphore_mem>>)
    %c2_i32 = arith.constant 2 : i32
    %4 = tpu.memref_slice %arg24[%c2_i32] : memref<5x!tpu.dma_semaphore, #tpu.memory_space<semaphore_mem>> -> memref<1x!tpu.dma_semaphore, #tpu.memory_space<semaphore_mem>>
    %5 = tpu.memref_squeeze %4 : memref<1x!tpu.dma_semaphore, #tpu.memory_space<semaphore_mem>> -> memref<!tpu.dma_semaphore, #tpu.memory_space<semaphore_mem>>
    tpu.enqueue_dma source(%arg4 : memref<576x128xbf16, #tpu.memory_space<any>>) target(%arg21 : memref<576x128xbf16, #tpu.memory_space<vmem>>) target_semaphore(%5 : memref<!tpu.dma_semaphore, #tpu.memory_space<semaphore_mem>>)
    %c3_i32 = arith.constant 3 : i32
    %6 = tpu.memref_slice %arg24[%c3_i32] : memref<5x!tpu.dma_semaphore, #tpu.memory_space<semaphore_mem>> -> memref<1x!tpu.dma_semaphore, #tpu.memory_space<semaphore_mem>>
    %7 = tpu.memref_squeeze %6 : memref<1x!tpu.dma_semaphore, #tpu.memory_space<semaphore_mem>> -> memref<!tpu.dma_semaphore, #tpu.memory_space<semaphore_mem>>
    tpu.enqueue_dma source(%arg5 : memref<512x128xbf16, #tpu.memory_space<any>>) target(%arg22 : memref<512x128xbf16, #tpu.memory_space<vmem>>) target_semaphore(%7 : memref<!tpu.dma_semaphore, #tpu.memory_space<semaphore_mem>>)
    %c4_i32 = arith.constant 4 : i32
    %8 = tpu.memref_slice %arg24[%c4_i32] : memref<5x!tpu.dma_semaphore, #tpu.memory_space<semaphore_mem>> -> memref<1x!tpu.dma_semaphore, #tpu.memory_space<semaphore_mem>>
    %9 = tpu.memref_squeeze %8 : memref<1x!tpu.dma_semaphore, #tpu.memory_space<semaphore_mem>> -> memref<!tpu.dma_semaphore, #tpu.memory_space<semaphore_mem>>
    tpu.enqueue_dma source(%arg6 : memref<128x256xbf16, #tpu.memory_space<any>>) target(%arg23 : memref<128x256xbf16, #tpu.memory_space<vmem>>) target_semaphore(%9 : memref<!tpu.dma_semaphore, #tpu.memory_space<semaphore_mem>>)
    %c0 = arith.constant 0 : index
    %c0_0 = arith.constant 0 : index
    %10 = vector.load %arg0[%c0, %c0_0] : memref<272x102xbf16, #tpu.memory_space<vmem>>, vector<128x51xbf16>
    %c0_1 = arith.constant 0 : index
    %c0_2 = arith.constant 0 : index
    %c0_3 = arith.constant 0 : index
    %11 = vector.load %arg1[%c0_1, %c0_2, %c0_3] : memref<3x51x256xbf16, #tpu.memory_space<vmem>>, vector<1x51x256xbf16>
    %12 = vector.shape_cast %11 : vector<1x51x256xbf16> to vector<51x256xbf16>
    %cst = arith.constant dense<0.000000e+00> : vector<128x256xf32>
    %13 = tpu.matmul %10, %12, %cst {dimension_numbers = #tpu.dot_dimension_numbers<[1], [0], [0], [1], [0, 0, 1, 1], [], []>} : vector<128x51xbf16>, vector<51x256xbf16>, vector<128x256xf32> -> vector<128x256xf32>
    %c136 = arith.constant 136 : index
    %c0_4 = arith.constant 0 : index
    %14 = vector.load %arg0[%c136, %c0_4] : memref<272x102xbf16, #tpu.memory_space<vmem>>, vector<128x51xbf16>
    %c1 = arith.constant 1 : index
    %c0_5 = arith.constant 0 : index
    %c0_6 = arith.constant 0 : index
    %15 = vector.load %arg1[%c1, %c0_5, %c0_6] : memref<3x51x256xbf16, #tpu.memory_space<vmem>>, vector<1x51x256xbf16>
    %16 = vector.shape_cast %15 : vector<1x51x256xbf16> to vector<51x256xbf16>
    %cst_7 = arith.constant dense<0.000000e+00> : vector<128x256xf32>
    %17 = tpu.matmul %14, %16, %cst_7 {dimension_numbers = #tpu.dot_dimension_numbers<[1], [0], [0], [1], [0, 0, 1, 1], [], []>} : vector<128x51xbf16>, vector<51x256xbf16>, vector<128x256xf32> -> vector<128x256xf32>
    %18 = arith.addf %13, %17 : vector<128x256xf32>
    %c8 = arith.constant 8 : index
    %c0_8 = arith.constant 0 : index
    %19 = vector.load %arg0[%c8, %c0_8] : memref<272x102xbf16, #tpu.memory_space<vmem>>, vector<128x51xbf16>
    %c2 = arith.constant 2 : index
    %c0_9 = arith.constant 0 : index
    %c0_10 = arith.constant 0 : index
    %20 = vector.load %arg1[%c2, %c0_9, %c0_10] : memref<3x51x256xbf16, #tpu.memory_space<vmem>>, vector<1x51x256xbf16>
    %21 = vector.shape_cast %20 : vector<1x51x256xbf16> to vector<51x256xbf16>
    %cst_11 = arith.constant dense<0.000000e+00> : vector<128x256xf32>
    %22 = tpu.matmul %19, %21, %cst_11 {dimension_numbers = #tpu.dot_dimension_numbers<[1], [0], [0], [1], [0, 0, 1, 1], [], []>} : vector<128x51xbf16>, vector<51x256xbf16>, vector<128x256xf32> -> vector<128x256xf32>
    %23 = arith.addf %18, %22 : vector<128x256xf32>
    %c0_12 = arith.constant 0 : index
    %c48 = arith.constant 48 : index
    %24 = vector.load %arg0[%c0_12, %c48] : memref<272x102xbf16, #tpu.memory_space<vmem>>, vector<128x51xbf16>
    %c0_13 = arith.constant 0 : index
    %c0_14 = arith.constant 0 : index
    %c0_15 = arith.constant 0 : index
    %25 = vector.load %arg1[%c0_13, %c0_14, %c0_15] : memref<3x51x256xbf16, #tpu.memory_space<vmem>>, vector<1x51x256xbf16>
    %26 = vector.shape_cast %25 : vector<1x51x256xbf16> to vector<51x256xbf16>
    %cst_16 = arith.constant dense<0.000000e+00> : vector<128x256xf32>
    %27 = tpu.matmul %24, %26, %cst_16 {dimension_numbers = #tpu.dot_dimension_numbers<[1], [0], [0], [1], [0, 0, 1, 1], [], []>} : vector<128x51xbf16>, vector<51x256xbf16>, vector<128x256xf32> -> vector<128x256xf32>
    %c136_17 = arith.constant 136 : index
    %c48_18 = arith.constant 48 : index
    %28 = vector.load %arg0[%c136_17, %c48_18] : memref<272x102xbf16, #tpu.memory_space<vmem>>, vector<128x51xbf16>
    %c1_19 = arith.constant 1 : index
    %c0_20 = arith.constant 0 : index
    %c0_21 = arith.constant 0 : index
    %29 = vector.load %arg1[%c1_19, %c0_20, %c0_21] : memref<3x51x256xbf16, #tpu.memory_space<vmem>>, vector<1x51x256xbf16>
    %30 = vector.shape_cast %29 : vector<1x51x256xbf16> to vector<51x256xbf16>
    %cst_22 = arith.constant dense<0.000000e+00> : vector<128x256xf32>
    %31 = tpu.matmul %28, %30, %cst_22 {dimension_numbers = #tpu.dot_dimension_numbers<[1], [0], [0], [1], [0, 0, 1, 1], [], []>} : vector<128x51xbf16>, vector<51x256xbf16>, vector<128x256xf32> -> vector<128x256xf32>
    %32 = arith.addf %27, %31 : vector<128x256xf32>
    %c8_23 = arith.constant 8 : index
    %c48_24 = arith.constant 48 : index
    %33 = vector.load %arg0[%c8_23, %c48_24] : memref<272x102xbf16, #tpu.memory_space<vmem>>, vector<128x51xbf16>
    %c2_25 = arith.constant 2 : index
    %c0_26 = arith.constant 0 : index
    %c0_27 = arith.constant 0 : index
    %34 = vector.load %arg1[%c2_25, %c0_26, %c0_27] : memref<3x51x256xbf16, #tpu.memory_space<vmem>>, vector<1x51x256xbf16>
    %35 = vector.shape_cast %34 : vector<1x51x256xbf16> to vector<51x256xbf16>
    %cst_28 = arith.constant dense<0.000000e+00> : vector<128x256xf32>
    %36 = tpu.matmul %33, %35, %cst_28 {dimension_numbers = #tpu.dot_dimension_numbers<[1], [0], [0], [1], [0, 0, 1, 1], [], []>} : vector<128x51xbf16>, vector<51x256xbf16>, vector<128x256xf32> -> vector<128x256xf32>
    %37 = arith.addf %32, %36 : vector<128x256xf32>
    %38 = tpu.concatenate %23, %37 in 1 : vector<128x256xf32>, vector<128x256xf32> -> vector<128x512xf32>
    %cst_29 = arith.constant dense<0.000000e+00> : vector<512xf32>
    %39 = vector.multi_reduction <add>, %38, %cst_29 [0] : vector<128x512xf32> to vector<512xf32>
    %40 = vector.shape_cast %39 : vector<512xf32> to vector<1x512xf32>
    %41 = arith.mulf %38, %38 : vector<128x512xf32>
    %cst_30 = arith.constant dense<0.000000e+00> : vector<512xf32>
    %42 = vector.multi_reduction <add>, %41, %cst_30 [0] : vector<128x512xf32> to vector<512xf32>
    %43 = vector.shape_cast %42 : vector<512xf32> to vector<1x512xf32>
    %c32_i32 = arith.constant 32 : i32
    %44 = tpu.dynamic_rotate %40 by %c32_i32 dim 1 : vector<1x512xf32>, i32 -> vector<1x512xf32>
    %45 = arith.addf %40, %44 : vector<1x512xf32>
    %c32_i32_31 = arith.constant 32 : i32
    %46 = tpu.dynamic_rotate %43 by %c32_i32_31 dim 1 : vector<1x512xf32>, i32 -> vector<1x512xf32>
    %47 = arith.addf %43, %46 : vector<1x512xf32>
    %c64_i32 = arith.constant 64 : i32
    %48 = tpu.dynamic_rotate %45 by %c64_i32 dim 1 : vector<1x512xf32>, i32 -> vector<1x512xf32>
    %49 = arith.addf %45, %48 : vector<1x512xf32>
    %c64_i32_32 = arith.constant 64 : i32
    %50 = tpu.dynamic_rotate %47 by %c64_i32_32 dim 1 : vector<1x512xf32>, i32 -> vector<1x512xf32>
    %51 = arith.addf %47, %50 : vector<1x512xf32>
    %c128_i32 = arith.constant 128 : i32
    %52 = tpu.dynamic_rotate %49 by %c128_i32 dim 1 : vector<1x512xf32>, i32 -> vector<1x512xf32>
    %53 = arith.addf %49, %52 : vector<1x512xf32>
    %c128_i32_33 = arith.constant 128 : i32
    %54 = tpu.dynamic_rotate %51 by %c128_i32_33 dim 1 : vector<1x512xf32>, i32 -> vector<1x512xf32>
    %55 = arith.addf %51, %54 : vector<1x512xf32>
    %c256_i32 = arith.constant 256 : i32
    %56 = tpu.dynamic_rotate %53 by %c256_i32 dim 1 : vector<1x512xf32>, i32 -> vector<1x512xf32>
    %57 = arith.addf %53, %56 : vector<1x512xf32>
    %c256_i32_34 = arith.constant 256 : i32
    %58 = tpu.dynamic_rotate %55 by %c256_i32_34 dim 1 : vector<1x512xf32>, i32 -> vector<1x512xf32>
    %59 = arith.addf %55, %58 : vector<1x512xf32>
    %cst_35 = arith.constant 4.8828125E-4 : f32
    %60 = vector.broadcast %cst_35 : f32 to vector<1x512xf32>
    %61 = arith.mulf %57, %60 : vector<1x512xf32>
    %cst_36 = arith.constant 4.8828125E-4 : f32
    %62 = vector.broadcast %cst_36 : f32 to vector<1x512xf32>
    %63 = arith.mulf %59, %62 : vector<1x512xf32>
    %64 = arith.mulf %61, %61 : vector<1x512xf32>
    %65 = arith.subf %63, %64 : vector<1x512xf32>
    %c0_37 = arith.constant 0 : index
    %c0_38 = arith.constant 0 : index
    %66 = vector.load %arg7[%c0_37, %c0_38] : memref<2x512xf32, #tpu.memory_space<vmem>>, vector<1x512xf32>
    %cst_39 = arith.constant 9.99999974E-6 : f32
    %67 = vector.broadcast %cst_39 : f32 to vector<1x512xf32>
    %68 = arith.addf %65, %67 : vector<1x512xf32>
    %69 = math.rsqrt %68 : vector<1x512xf32>
    %70 = arith.mulf %66, %69 : vector<1x512xf32>
    %c1_40 = arith.constant 1 : index
    %c0_41 = arith.constant 0 : index
    %71 = vector.load %arg7[%c1_40, %c0_41] : memref<2x512xf32, #tpu.memory_space<vmem>>, vector<1x512xf32>
    %72 = arith.mulf %61, %70 : vector<1x512xf32>
    %73 = arith.subf %71, %72 : vector<1x512xf32>
    %74 = vector.broadcast %70 : vector<1x512xf32> to vector<128x512xf32>
    %75 = arith.mulf %38, %74 : vector<128x512xf32>
    %76 = vector.broadcast %73 : vector<1x512xf32> to vector<128x512xf32>
    %77 = arith.addf %75, %76 : vector<128x512xf32>
    %cst_42 = arith.constant 0.000000e+00 : f32
    %78 = vector.broadcast %cst_42 : f32 to vector<128x512xf32>
    %79 = arith.cmpf oge, %77, %78 : vector<128x512xf32>
    %cst_43 = arith.constant 2.000000e-01 : f32
    %80 = vector.broadcast %cst_43 : f32 to vector<128x512xf32>
    %81 = arith.mulf %80, %77 : vector<128x512xf32>
    %82 = arith.select %79, %77, %81 : vector<128x512xi1>, vector<128x512xf32>
    %cst_44 = arith.constant 0.000000e+00 : f32
    %83 = vector.broadcast %cst_44 : f32 to vector<128x32xf32>
    %84 = tpu.concatenate %83, %82, %83 in 1 : vector<128x32xf32>, vector<128x512xf32>, vector<128x32xf32> -> vector<128x576xf32>
    %cst_45 = arith.constant 0.000000e+00 : f32
    %85 = vector.broadcast %cst_45 : f32 to vector<8x576xf32>
    %c0_46 = arith.constant 0 : index
    %c0_47 = arith.constant 0 : index
    %86 = vector.load %arg16[%c0_46, %c0_47] : memref<144x576xf32, #tpu.memory_space<vmem>>, vector<8x576xf32>
    tpu.vector_store %arg16[%c0_46, %c0_47], %85 {strides = array<i32>} : memref<144x576xf32, #tpu.memory_space<vmem>>, vector<8x576xf32>,
    %c136_48 = arith.constant 136 : index
    %c0_49 = arith.constant 0 : index
    %87 = vector.load %arg16[%c136_48, %c0_49] : memref<144x576xf32, #tpu.memory_space<vmem>>, vector<8x576xf32>
    tpu.vector_store %arg16[%c136_48, %c0_49], %85 {strides = array<i32>} : memref<144x576xf32, #tpu.memory_space<vmem>>, vector<8x576xf32>,
    %88 = vector.extract_strided_slice %84 {offsets = [0, 0], sizes = [8, 576], strides = [1, 1]} : vector<128x576xf32> to vector<8x576xf32>
    %c72 = arith.constant 72 : index
    %c0_50 = arith.constant 0 : index
    %89 = vector.load %arg16[%c72, %c0_50] : memref<144x576xf32, #tpu.memory_space<vmem>>, vector<8x576xf32>
    tpu.vector_store %arg16[%c72, %c0_50], %88 {strides = array<i32>} : memref<144x576xf32, #tpu.memory_space<vmem>>, vector<8x576xf32>,
    %90 = vector.extract_strided_slice %84 {offsets = [8, 0], sizes = [8, 576], strides = [1, 1]} : vector<128x576xf32> to vector<8x576xf32>
    %c8_51 = arith.constant 8 : index
    %c0_52 = arith.constant 0 : index
    %91 = vector.load %arg16[%c8_51, %c0_52] : memref<144x576xf32, #tpu.memory_space<vmem>>, vector<8x576xf32>
    tpu.vector_store %arg16[%c8_51, %c0_52], %90 {strides = array<i32>} : memref<144x576xf32, #tpu.memory_space<vmem>>, vector<8x576xf32>,
    %92 = vector.extract_strided_slice %84 {offsets = [16, 0], sizes = [8, 576], strides = [1, 1]} : vector<128x576xf32> to vector<8x576xf32>
    %c80 = arith.constant 80 : index
    %c0_53 = arith.constant 0 : index
    %93 = vector.load %arg16[%c80, %c0_53] : memref<144x576xf32, #tpu.memory_space<vmem>>, vector<8x576xf32>
    tpu.vector_store %arg16[%c80, %c0_53], %92 {strides = array<i32>} : memref<144x576xf32, #tpu.memory_space<vmem>>, vector<8x576xf32>,
    %94 = vector.extract_strided_slice %84 {offsets = [24, 0], sizes = [8, 576], strides = [1, 1]} : vector<128x576xf32> to vector<8x576xf32>
    %c16 = arith.constant 16 : index
    %c0_54 = arith.constant 0 : index
    %95 = vector.load %arg16[%c16, %c0_54] : memref<144x576xf32, #tpu.memory_space<vmem>>, vector<8x576xf32>
    tpu.vector_store %arg16[%c16, %c0_54], %94 {strides = array<i32>} : memref<144x576xf32, #tpu.memory_space<vmem>>, vector<8x576xf32>,
    %96 = vector.extract_strided_slice %84 {offsets = [32, 0], sizes = [8, 576], strides = [1, 1]} : vector<128x576xf32> to vector<8x576xf32>
    %c88 = arith.constant 88 : index
    %c0_55 = arith.constant 0 : index
    %97 = vector.load %arg16[%c88, %c0_55] : memref<144x576xf32, #tpu.memory_space<vmem>>, vector<8x576xf32>
    tpu.vector_store %arg16[%c88, %c0_55], %96 {strides = array<i32>} : memref<144x576xf32, #tpu.memory_space<vmem>>, vector<8x576xf32>,
    %98 = vector.extract_strided_slice %84 {offsets = [40, 0], sizes = [8, 576], strides = [1, 1]} : vector<128x576xf32> to vector<8x576xf32>
    %c24 = arith.constant 24 : index
    %c0_56 = arith.constant 0 : index
    %99 = vector.load %arg16[%c24, %c0_56] : memref<144x576xf32, #tpu.memory_space<vmem>>, vector<8x576xf32>
    tpu.vector_store %arg16[%c24, %c0_56], %98 {strides = array<i32>} : memref<144x576xf32, #tpu.memory_space<vmem>>, vector<8x576xf32>,
    %100 = vector.extract_strided_slice %84 {offsets = [48, 0], sizes = [8, 576], strides = [1, 1]} : vector<128x576xf32> to vector<8x576xf32>
    %c96 = arith.constant 96 : index
    %c0_57 = arith.constant 0 : index
    %101 = vector.load %arg16[%c96, %c0_57] : memref<144x576xf32, #tpu.memory_space<vmem>>, vector<8x576xf32>
    tpu.vector_store %arg16[%c96, %c0_57], %100 {strides = array<i32>} : memref<144x576xf32, #tpu.memory_space<vmem>>, vector<8x576xf32>,
    %102 = vector.extract_strided_slice %84 {offsets = [56, 0], sizes = [8, 576], strides = [1, 1]} : vector<128x576xf32> to vector<8x576xf32>
    %c32 = arith.constant 32 : index
    %c0_58 = arith.constant 0 : index
    %103 = vector.load %arg16[%c32, %c0_58] : memref<144x576xf32, #tpu.memory_space<vmem>>, vector<8x576xf32>
    tpu.vector_store %arg16[%c32, %c0_58], %102 {strides = array<i32>} : memref<144x576xf32, #tpu.memory_space<vmem>>, vector<8x576xf32>,
    %104 = vector.extract_strided_slice %84 {offsets = [64, 0], sizes = [8, 576], strides = [1, 1]} : vector<128x576xf32> to vector<8x576xf32>
    %c104 = arith.constant 104 : index
    %c0_59 = arith.constant 0 : index
    %105 = vector.load %arg16[%c104, %c0_59] : memref<144x576xf32, #tpu.memory_space<vmem>>, vector<8x576xf32>
    tpu.vector_store %arg16[%c104, %c0_59], %104 {strides = array<i32>} : memref<144x576xf32, #tpu.memory_space<vmem>>, vector<8x576xf32>,
    %106 = vector.extract_strided_slice %84 {offsets = [72, 0], sizes = [8, 576], strides = [1, 1]} : vector<128x576xf32> to vector<8x576xf32>
    %c40 = arith.constant 40 : index
    %c0_60 = arith.constant 0 : index
    %107 = vector.load %arg16[%c40, %c0_60] : memref<144x576xf32, #tpu.memory_space<vmem>>, vector<8x576xf32>
    tpu.vector_store %arg16[%c40, %c0_60], %106 {strides = array<i32>} : memref<144x576xf32, #tpu.memory_space<vmem>>, vector<8x576xf32>,
    %108 = vector.extract_strided_slice %84 {offsets = [80, 0], sizes = [8, 576], strides = [1, 1]} : vector<128x576xf32> to vector<8x576xf32>
    %c112 = arith.constant 112 : index
    %c0_61 = arith.constant 0 : index
    %109 = vector.load %arg16[%c112, %c0_61] : memref<144x576xf32, #tpu.memory_space<vmem>>, vector<8x576xf32>
    tpu.vector_store %arg16[%c112, %c0_61], %108 {strides = array<i32>} : memref<144x576xf32, #tpu.memory_space<vmem>>, vector<8x576xf32>,
    %110 = vector.extract_strided_slice %84 {offsets = [88, 0], sizes = [8, 576], strides = [1, 1]} : vector<128x576xf32> to vector<8x576xf32>
    %c48_62 = arith.constant 48 : index
    %c0_63 = arith.constant 0 : index
    %111 = vector.load %arg16[%c48_62, %c0_63] : memref<144x576xf32, #tpu.memory_space<vmem>>, vector<8x576xf32>
    tpu.vector_store %arg16[%c48_62, %c0_63], %110 {strides = array<i32>} : memref<144x576xf32, #tpu.memory_space<vmem>>, vector<8x576xf32>,
    %112 = vector.extract_strided_slice %84 {offsets = [96, 0], sizes = [8, 576], strides = [1, 1]} : vector<128x576xf32> to vector<8x576xf32>
    %c120 = arith.constant 120 : index
    %c0_64 = arith.constant 0 : index
    %113 = vector.load %arg16[%c120, %c0_64] : memref<144x576xf32, #tpu.memory_space<vmem>>, vector<8x576xf32>
    tpu.vector_store %arg16[%c120, %c0_64], %112 {strides = array<i32>} : memref<144x576xf32, #tpu.memory_space<vmem>>, vector<8x576xf32>,
    %114 = vector.extract_strided_slice %84 {offsets = [104, 0], sizes = [8, 576], strides = [1, 1]} : vector<128x576xf32> to vector<8x576xf32>
    %c56 = arith.constant 56 : index
    %c0_65 = arith.constant 0 : index
    %115 = vector.load %arg16[%c56, %c0_65] : memref<144x576xf32, #tpu.memory_space<vmem>>, vector<8x576xf32>
    tpu.vector_store %arg16[%c56, %c0_65], %114 {strides = array<i32>} : memref<144x576xf32, #tpu.memory_space<vmem>>, vector<8x576xf32>,
    %116 = vector.extract_strided_slice %84 {offsets = [112, 0], sizes = [8, 576], strides = [1, 1]} : vector<128x576xf32> to vector<8x576xf32>
    %c128 = arith.constant 128 : index
    %c0_66 = arith.constant 0 : index
    %117 = vector.load %arg16[%c128, %c0_66] : memref<144x576xf32, #tpu.memory_space<vmem>>, vector<8x576xf32>
    tpu.vector_store %arg16[%c128, %c0_66], %116 {strides = array<i32>} : memref<144x576xf32, #tpu.memory_space<vmem>>, vector<8x576xf32>,
    %118 = vector.extract_strided_slice %84 {offsets = [120, 0], sizes = [8, 576], strides = [1, 1]} : vector<128x576xf32> to vector<8x576xf32>
    %c64 = arith.constant 64 : index
    %c0_67 = arith.constant 0 : index
    %119 = vector.load %arg16[%c64, %c0_67] : memref<144x576xf32, #tpu.memory_space<vmem>>, vector<8x576xf32>
    tpu.vector_store %arg16[%c64, %c0_67], %118 {strides = array<i32>} : memref<144x576xf32, #tpu.memory_space<vmem>>, vector<8x576xf32>,
    %c0_i32_68 = arith.constant 0 : i32
    %120 = tpu.memref_slice %arg24[%c0_i32_68] : memref<5x!tpu.dma_semaphore, #tpu.memory_space<semaphore_mem>> -> memref<1x!tpu.dma_semaphore, #tpu.memory_space<semaphore_mem>>
    %121 = tpu.memref_squeeze %120 : memref<1x!tpu.dma_semaphore, #tpu.memory_space<semaphore_mem>> -> memref<!tpu.dma_semaphore, #tpu.memory_space<semaphore_mem>>
    tpu.wait_dma2 semaphore(%121 : memref<!tpu.dma_semaphore, #tpu.memory_space<semaphore_mem>>) src(%arg2 : memref<3x288x256xbf16, #tpu.memory_space<any>>) dst(%arg19 : memref<3x288x256xbf16, #tpu.memory_space<vmem>>)
    %c0_69 = arith.constant 0 : index
    %c0_70 = arith.constant 0 : index
    %122 = vector.load %arg16[%c0_69, %c0_70] : memref<144x576xf32, #tpu.memory_space<vmem>>, vector<64x288xf32>
    %123 = arith.truncf %122 : vector<64x288xf32> to vector<64x288xbf16>
    %c0_71 = arith.constant 0 : index
    %c0_72 = arith.constant 0 : index
    %c0_73 = arith.constant 0 : index
    %124 = vector.load %arg19[%c0_71, %c0_72, %c0_73] : memref<3x288x256xbf16, #tpu.memory_space<vmem>>, vector<1x288x256xbf16>
    %125 = vector.shape_cast %124 : vector<1x288x256xbf16> to vector<288x256xbf16>
    %cst_74 = arith.constant dense<0.000000e+00> : vector<64x256xf32>
    %126 = tpu.matmul %123, %125, %cst_74 {dimension_numbers = #tpu.dot_dimension_numbers<[1], [0], [0], [1], [0, 0, 1, 1], [], []>} : vector<64x288xbf16>, vector<288x256xbf16>, vector<64x256xf32> -> vector<64x256xf32>
    %c72_75 = arith.constant 72 : index
    %c0_76 = arith.constant 0 : index
    %127 = vector.load %arg16[%c72_75, %c0_76] : memref<144x576xf32, #tpu.memory_space<vmem>>, vector<64x288xf32>
    %128 = arith.truncf %127 : vector<64x288xf32> to vector<64x288xbf16>
    %c1_77 = arith.constant 1 : index
    %c0_78 = arith.constant 0 : index
    %c0_79 = arith.constant 0 : index
    %129 = vector.load %arg19[%c1_77, %c0_78, %c0_79] : memref<3x288x256xbf16, #tpu.memory_space<vmem>>, vector<1x288x256xbf16>
    %130 = vector.shape_cast %129 : vector<1x288x256xbf16> to vector<288x256xbf16>
    %cst_80 = arith.constant dense<0.000000e+00> : vector<64x256xf32>
    %131 = tpu.matmul %128, %130, %cst_80 {dimension_numbers = #tpu.dot_dimension_numbers<[1], [0], [0], [1], [0, 0, 1, 1], [], []>} : vector<64x288xbf16>, vector<288x256xbf16>, vector<64x256xf32> -> vector<64x256xf32>
    %132 = arith.addf %126, %131 : vector<64x256xf32>
    %c8_81 = arith.constant 8 : index
    %c0_82 = arith.constant 0 : index
    %133 = vector.load %arg16[%c8_81, %c0_82] : memref<144x576xf32, #tpu.memory_space<vmem>>, vector<64x288xf32>
    %134 = arith.truncf %133 : vector<64x288xf32> to vector<64x288xbf16>
    %c2_83 = arith.constant 2 : index
    %c0_84 = arith.constant 0 : index
    %c0_85 = arith.constant 0 : index
    %135 = vector.load %arg19[%c2_83, %c0_84, %c0_85] : memref<3x288x256xbf16, #tpu.memory_space<vmem>>, vector<1x288x256xbf16>
    %136 = vector.shape_cast %135 : vector<1x288x256xbf16> to vector<288x256xbf16>
    %cst_86 = arith.constant dense<0.000000e+00> : vector<64x256xf32>
    %137 = tpu.matmul %134, %136, %cst_86 {dimension_numbers = #tpu.dot_dimension_numbers<[1], [0], [0], [1], [0, 0, 1, 1], [], []>} : vector<64x288xbf16>, vector<288x256xbf16>, vector<64x256xf32> -> vector<64x256xf32>
    %138 = arith.addf %132, %137 : vector<64x256xf32>
    %c0_87 = arith.constant 0 : index
    %c256 = arith.constant 256 : index
    %139 = vector.load %arg16[%c0_87, %c256] : memref<144x576xf32, #tpu.memory_space<vmem>>, vector<64x288xf32>
    %140 = arith.truncf %139 : vector<64x288xf32> to vector<64x288xbf16>
    %c0_88 = arith.constant 0 : index
    %c0_89 = arith.constant 0 : index
    %c0_90 = arith.constant 0 : index
    %141 = vector.load %arg19[%c0_88, %c0_89, %c0_90] : memref<3x288x256xbf16, #tpu.memory_space<vmem>>, vector<1x288x256xbf16>
    %142 = vector.shape_cast %141 : vector<1x288x256xbf16> to vector<288x256xbf16>
    %cst_91 = arith.constant dense<0.000000e+00> : vector<64x256xf32>
    %143 = tpu.matmul %140, %142, %cst_91 {dimension_numbers = #tpu.dot_dimension_numbers<[1], [0], [0], [1], [0, 0, 1, 1], [], []>} : vector<64x288xbf16>, vector<288x256xbf16>, vector<64x256xf32> -> vector<64x256xf32>
    %c72_92 = arith.constant 72 : index
    %c256_93 = arith.constant 256 : index
    %144 = vector.load %arg16[%c72_92, %c256_93] : memref<144x576xf32, #tpu.memory_space<vmem>>, vector<64x288xf32>
    %145 = arith.truncf %144 : vector<64x288xf32> to vector<64x288xbf16>
    %c1_94 = arith.constant 1 : index
    %c0_95 = arith.constant 0 : index
    %c0_96 = arith.constant 0 : index
    %146 = vector.load %arg19[%c1_94, %c0_95, %c0_96] : memref<3x288x256xbf16, #tpu.memory_space<vmem>>, vector<1x288x256xbf16>
    %147 = vector.shape_cast %146 : vector<1x288x256xbf16> to vector<288x256xbf16>
    %cst_97 = arith.constant dense<0.000000e+00> : vector<64x256xf32>
    %148 = tpu.matmul %145, %147, %cst_97 {dimension_numbers = #tpu.dot_dimension_numbers<[1], [0], [0], [1], [0, 0, 1, 1], [], []>} : vector<64x288xbf16>, vector<288x256xbf16>, vector<64x256xf32> -> vector<64x256xf32>
    %149 = arith.addf %143, %148 : vector<64x256xf32>
    %c8_98 = arith.constant 8 : index
    %c256_99 = arith.constant 256 : index
    %150 = vector.load %arg16[%c8_98, %c256_99] : memref<144x576xf32, #tpu.memory_space<vmem>>, vector<64x288xf32>
    %151 = arith.truncf %150 : vector<64x288xf32> to vector<64x288xbf16>
    %c2_100 = arith.constant 2 : index
    %c0_101 = arith.constant 0 : index
    %c0_102 = arith.constant 0 : index
    %152 = vector.load %arg19[%c2_100, %c0_101, %c0_102] : memref<3x288x256xbf16, #tpu.memory_space<vmem>>, vector<1x288x256xbf16>
    %153 = vector.shape_cast %152 : vector<1x288x256xbf16> to vector<288x256xbf16>
    %cst_103 = arith.constant dense<0.000000e+00> : vector<64x256xf32>
    %154 = tpu.matmul %151, %153, %cst_103 {dimension_numbers = #tpu.dot_dimension_numbers<[1], [0], [0], [1], [0, 0, 1, 1], [], []>} : vector<64x288xbf16>, vector<288x256xbf16>, vector<64x256xf32> -> vector<64x256xf32>
    %155 = arith.addf %149, %154 : vector<64x256xf32>
    %156 = tpu.concatenate %138, %155 in 1 : vector<64x256xf32>, vector<64x256xf32> -> vector<64x512xf32>
    %cst_104 = arith.constant dense<0.000000e+00> : vector<512xf32>
    %157 = vector.multi_reduction <add>, %156, %cst_104 [0] : vector<64x512xf32> to vector<512xf32>
    %158 = vector.shape_cast %157 : vector<512xf32> to vector<1x512xf32>
    %159 = arith.mulf %156, %156 : vector<64x512xf32>
    %cst_105 = arith.constant dense<0.000000e+00> : vector<512xf32>
    %160 = vector.multi_reduction <add>, %159, %cst_105 [0] : vector<64x512xf32> to vector<512xf32>
    %161 = vector.shape_cast %160 : vector<512xf32> to vector<1x512xf32>
    %c64_i32_106 = arith.constant 64 : i32
    %162 = tpu.dynamic_rotate %158 by %c64_i32_106 dim 1 : vector<1x512xf32>, i32 -> vector<1x512xf32>
    %163 = arith.addf %158, %162 : vector<1x512xf32>
    %c64_i32_107 = arith.constant 64 : i32
    %164 = tpu.dynamic_rotate %161 by %c64_i32_107 dim 1 : vector<1x512xf32>, i32 -> vector<1x512xf32>
    %165 = arith.addf %161, %164 : vector<1x512xf32>
    %c128_i32_108 = arith.constant 128 : i32
    %166 = tpu.dynamic_rotate %163 by %c128_i32_108 dim 1 : vector<1x512xf32>, i32 -> vector<1x512xf32>
    %167 = arith.addf %163, %166 : vector<1x512xf32>
    %c128_i32_109 = arith.constant 128 : i32
    %168 = tpu.dynamic_rotate %165 by %c128_i32_109 dim 1 : vector<1x512xf32>, i32 -> vector<1x512xf32>
    %169 = arith.addf %165, %168 : vector<1x512xf32>
    %c256_i32_110 = arith.constant 256 : i32
    %170 = tpu.dynamic_rotate %167 by %c256_i32_110 dim 1 : vector<1x512xf32>, i32 -> vector<1x512xf32>
    %171 = arith.addf %167, %170 : vector<1x512xf32>
    %c256_i32_111 = arith.constant 256 : i32
    %172 = tpu.dynamic_rotate %169 by %c256_i32_111 dim 1 : vector<1x512xf32>, i32 -> vector<1x512xf32>
    %173 = arith.addf %169, %172 : vector<1x512xf32>
    %cst_112 = arith.constant 0.001953125 : f32
    %174 = vector.broadcast %cst_112 : f32 to vector<1x512xf32>
    %175 = arith.mulf %171, %174 : vector<1x512xf32>
    %cst_113 = arith.constant 0.001953125 : f32
    %176 = vector.broadcast %cst_113 : f32 to vector<1x512xf32>
    %177 = arith.mulf %173, %176 : vector<1x512xf32>
    %178 = arith.mulf %175, %175 : vector<1x512xf32>
    %179 = arith.subf %177, %178 : vector<1x512xf32>
    %c0_114 = arith.constant 0 : index
    %c0_115 = arith.constant 0 : index
    %180 = vector.load %arg8[%c0_114, %c0_115] : memref<2x512xf32, #tpu.memory_space<vmem>>, vector<1x512xf32>
    %cst_116 = arith.constant 9.99999974E-6 : f32
    %181 = vector.broadcast %cst_116 : f32 to vector<1x512xf32>
    %182 = arith.addf %179, %181 : vector<1x512xf32>
    %183 = math.rsqrt %182 : vector<1x512xf32>
    %184 = arith.mulf %180, %183 : vector<1x512xf32>
    %c1_117 = arith.constant 1 : index
    %c0_118 = arith.constant 0 : index
    %185 = vector.load %arg8[%c1_117, %c0_118] : memref<2x512xf32, #tpu.memory_space<vmem>>, vector<1x512xf32>
    %186 = arith.mulf %175, %184 : vector<1x512xf32>
    %187 = arith.subf %185, %186 : vector<1x512xf32>
    %188 = vector.broadcast %184 : vector<1x512xf32> to vector<64x512xf32>
    %189 = arith.mulf %156, %188 : vector<64x512xf32>
    %190 = vector.broadcast %187 : vector<1x512xf32> to vector<64x512xf32>
    %191 = arith.addf %189, %190 : vector<64x512xf32>
    %cst_119 = arith.constant 0.000000e+00 : f32
    %192 = vector.broadcast %cst_119 : f32 to vector<64x512xf32>
    %193 = arith.cmpf oge, %191, %192 : vector<64x512xf32>
    %cst_120 = arith.constant 2.000000e-01 : f32
    %194 = vector.broadcast %cst_120 : f32 to vector<64x512xf32>
    %195 = arith.mulf %194, %191 : vector<64x512xf32>
    %196 = arith.select %193, %191, %195 : vector<64x512xi1>, vector<64x512xf32>
    %cst_121 = arith.constant 0.000000e+00 : f32
    %197 = vector.broadcast %cst_121 : f32 to vector<64x64xf32>
    %198 = tpu.concatenate %197, %196, %197 in 1 : vector<64x64xf32>, vector<64x512xf32>, vector<64x64xf32> -> vector<64x640xf32>
    %cst_122 = arith.constant 0.000000e+00 : f32
    %199 = vector.broadcast %cst_122 : f32 to vector<8x640xf32>
    %c0_123 = arith.constant 0 : index
    %c0_124 = arith.constant 0 : index
    %200 = vector.load %arg17[%c0_123, %c0_124] : memref<80x640xf32, #tpu.memory_space<vmem>>, vector<8x640xf32>
    tpu.vector_store %arg17[%c0_123, %c0_124], %199 {strides = array<i32>} : memref<80x640xf32, #tpu.memory_space<vmem>>, vector<8x640xf32>,
    %c72_125 = arith.constant 72 : index
    %c0_126 = arith.constant 0 : index
    %201 = vector.load %arg17[%c72_125, %c0_126] : memref<80x640xf32, #tpu.memory_space<vmem>>, vector<8x640xf32>
    tpu.vector_store %arg17[%c72_125, %c0_126], %199 {strides = array<i32>} : memref<80x640xf32, #tpu.memory_space<vmem>>, vector<8x640xf32>,
    %202 = vector.extract_strided_slice %198 {offsets = [0, 0], sizes = [8, 640], strides = [1, 1]} : vector<64x640xf32> to vector<8x640xf32>
    %c40_127 = arith.constant 40 : index
    %c0_128 = arith.constant 0 : index
    %203 = vector.load %arg17[%c40_127, %c0_128] : memref<80x640xf32, #tpu.memory_space<vmem>>, vector<8x640xf32>
    tpu.vector_store %arg17[%c40_127, %c0_128], %202 {strides = array<i32>} : memref<80x640xf32, #tpu.memory_space<vmem>>, vector<8x640xf32>,
    %204 = vector.extract_strided_slice %198 {offsets = [8, 0], sizes = [8, 640], strides = [1, 1]} : vector<64x640xf32> to vector<8x640xf32>
    %c8_129 = arith.constant 8 : index
    %c0_130 = arith.constant 0 : index
    %205 = vector.load %arg17[%c8_129, %c0_130] : memref<80x640xf32, #tpu.memory_space<vmem>>, vector<8x640xf32>
    tpu.vector_store %arg17[%c8_129, %c0_130], %204 {strides = array<i32>} : memref<80x640xf32, #tpu.memory_space<vmem>>, vector<8x640xf32>,
    %206 = vector.extract_strided_slice %198 {offsets = [16, 0], sizes = [8, 640], strides = [1, 1]} : vector<64x640xf32> to vector<8x640xf32>
    %c48_131 = arith.constant 48 : index
    %c0_132 = arith.constant 0 : index
    %207 = vector.load %arg17[%c48_131, %c0_132] : memref<80x640xf32, #tpu.memory_space<vmem>>, vector<8x640xf32>
    tpu.vector_store %arg17[%c48_131, %c0_132], %206 {strides = array<i32>} : memref<80x640xf32, #tpu.memory_space<vmem>>, vector<8x640xf32>,
    %208 = vector.extract_strided_slice %198 {offsets = [24, 0], sizes = [8, 640], strides = [1, 1]} : vector<64x640xf32> to vector<8x640xf32>
    %c16_133 = arith.constant 16 : index
    %c0_134 = arith.constant 0 : index
    %209 = vector.load %arg17[%c16_133, %c0_134] : memref<80x640xf32, #tpu.memory_space<vmem>>, vector<8x640xf32>
    tpu.vector_store %arg17[%c16_133, %c0_134], %208 {strides = array<i32>} : memref<80x640xf32, #tpu.memory_space<vmem>>, vector<8x640xf32>,
    %210 = vector.extract_strided_slice %198 {offsets = [32, 0], sizes = [8, 640], strides = [1, 1]} : vector<64x640xf32> to vector<8x640xf32>
    %c56_135 = arith.constant 56 : index
    %c0_136 = arith.constant 0 : index
    %211 = vector.load %arg17[%c56_135, %c0_136] : memref<80x640xf32, #tpu.memory_space<vmem>>, vector<8x640xf32>
    tpu.vector_store %arg17[%c56_135, %c0_136], %210 {strides = array<i32>} : memref<80x640xf32, #tpu.memory_space<vmem>>, vector<8x640xf32>,
    %212 = vector.extract_strided_slice %198 {offsets = [40, 0], sizes = [8, 640], strides = [1, 1]} : vector<64x640xf32> to vector<8x640xf32>
    %c24_137 = arith.constant 24 : index
    %c0_138 = arith.constant 0 : index
    %213 = vector.load %arg17[%c24_137, %c0_138] : memref<80x640xf32, #tpu.memory_space<vmem>>, vector<8x640xf32>
    tpu.vector_store %arg17[%c24_137, %c0_138], %212 {strides = array<i32>} : memref<80x640xf32, #tpu.memory_space<vmem>>, vector<8x640xf32>,
    %214 = vector.extract_strided_slice %198 {offsets = [48, 0], sizes = [8, 640], strides = [1, 1]} : vector<64x640xf32> to vector<8x640xf32>
    %c64_139 = arith.constant 64 : index
    %c0_140 = arith.constant 0 : index
    %215 = vector.load %arg17[%c64_139, %c0_140] : memref<80x640xf32, #tpu.memory_space<vmem>>, vector<8x640xf32>
    tpu.vector_store %arg17[%c64_139, %c0_140], %214 {strides = array<i32>} : memref<80x640xf32, #tpu.memory_space<vmem>>, vector<8x640xf32>,
    %216 = vector.extract_strided_slice %198 {offsets = [56, 0], sizes = [8, 640], strides = [1, 1]} : vector<64x640xf32> to vector<8x640xf32>
    %c32_141 = arith.constant 32 : index
    %c0_142 = arith.constant 0 : index
    %217 = vector.load %arg17[%c32_141, %c0_142] : memref<80x640xf32, #tpu.memory_space<vmem>>, vector<8x640xf32>
    tpu.vector_store %arg17[%c32_141, %c0_142], %216 {strides = array<i32>} : memref<80x640xf32, #tpu.memory_space<vmem>>, vector<8x640xf32>,
    %c1_i32_143 = arith.constant 1 : i32
    %218 = tpu.memref_slice %arg24[%c1_i32_143] : memref<5x!tpu.dma_semaphore, #tpu.memory_space<semaphore_mem>> -> memref<1x!tpu.dma_semaphore, #tpu.memory_space<semaphore_mem>>
    %219 = tpu.memref_squeeze %218 : memref<1x!tpu.dma_semaphore, #tpu.memory_space<semaphore_mem>> -> memref<!tpu.dma_semaphore, #tpu.memory_space<semaphore_mem>>
    tpu.wait_dma2 semaphore(%219 : memref<!tpu.dma_semaphore, #tpu.memory_space<semaphore_mem>>) src(%arg3 : memref<3x320x128xbf16, #tpu.memory_space<any>>) dst(%arg20 : memref<3x320x128xbf16, #tpu.memory_space<vmem>>)
    %c0_144 = arith.constant 0 : index
    %c0_145 = arith.constant 0 : index
    %220 = vector.load %arg17[%c0_144, %c0_145] : memref<80x640xf32, #tpu.memory_space<vmem>>, vector<32x320xf32>
    %221 = arith.truncf %220 : vector<32x320xf32> to vector<32x320xbf16>
    %c0_146 = arith.constant 0 : index
    %c0_147 = arith.constant 0 : index
    %c0_148 = arith.constant 0 : index
    %222 = vector.load %arg20[%c0_146, %c0_147, %c0_148] : memref<3x320x128xbf16, #tpu.memory_space<vmem>>, vector<1x320x128xbf16>
    %223 = vector.shape_cast %222 : vector<1x320x128xbf16> to vector<320x128xbf16>
    %cst_149 = arith.constant dense<0.000000e+00> : vector<32x128xf32>
    %224 = tpu.matmul %221, %223, %cst_149 {dimension_numbers = #tpu.dot_dimension_numbers<[1], [0], [0], [1], [0, 0, 1, 1], [], []>} : vector<32x320xbf16>, vector<320x128xbf16>, vector<32x128xf32> -> vector<32x128xf32>
    %c40_150 = arith.constant 40 : index
    %c0_151 = arith.constant 0 : index
    %225 = vector.load %arg17[%c40_150, %c0_151] : memref<80x640xf32, #tpu.memory_space<vmem>>, vector<32x320xf32>
    %226 = arith.truncf %225 : vector<32x320xf32> to vector<32x320xbf16>
    %c1_152 = arith.constant 1 : index
    %c0_153 = arith.constant 0 : index
    %c0_154 = arith.constant 0 : index
    %227 = vector.load %arg20[%c1_152, %c0_153, %c0_154] : memref<3x320x128xbf16, #tpu.memory_space<vmem>>, vector<1x320x128xbf16>
    %228 = vector.shape_cast %227 : vector<1x320x128xbf16> to vector<320x128xbf16>
    %cst_155 = arith.constant dense<0.000000e+00> : vector<32x128xf32>
    %229 = tpu.matmul %226, %228, %cst_155 {dimension_numbers = #tpu.dot_dimension_numbers<[1], [0], [0], [1], [0, 0, 1, 1], [], []>} : vector<32x320xbf16>, vector<320x128xbf16>, vector<32x128xf32> -> vector<32x128xf32>
    %230 = arith.addf %224, %229 : vector<32x128xf32>
    %c8_156 = arith.constant 8 : index
    %c0_157 = arith.constant 0 : index
    %231 = vector.load %arg17[%c8_156, %c0_157] : memref<80x640xf32, #tpu.memory_space<vmem>>, vector<32x320xf32>
    %232 = arith.truncf %231 : vector<32x320xf32> to vector<32x320xbf16>
    %c2_158 = arith.constant 2 : index
    %c0_159 = arith.constant 0 : index
    %c0_160 = arith.constant 0 : index
    %233 = vector.load %arg20[%c2_158, %c0_159, %c0_160] : memref<3x320x128xbf16, #tpu.memory_space<vmem>>, vector<1x320x128xbf16>
    %234 = vector.shape_cast %233 : vector<1x320x128xbf16> to vector<320x128xbf16>
    %cst_161 = arith.constant dense<0.000000e+00> : vector<32x128xf32>
    %235 = tpu.matmul %232, %234, %cst_161 {dimension_numbers = #tpu.dot_dimension_numbers<[1], [0], [0], [1], [0, 0, 1, 1], [], []>} : vector<32x320xbf16>, vector<320x128xbf16>, vector<32x128xf32> -> vector<32x128xf32>
    %236 = arith.addf %230, %235 : vector<32x128xf32>
    %c0_162 = arith.constant 0 : index
    %c256_163 = arith.constant 256 : index
    %237 = vector.load %arg17[%c0_162, %c256_163] : memref<80x640xf32, #tpu.memory_space<vmem>>, vector<32x320xf32>
    %238 = arith.truncf %237 : vector<32x320xf32> to vector<32x320xbf16>
    %c0_164 = arith.constant 0 : index
    %c0_165 = arith.constant 0 : index
    %c0_166 = arith.constant 0 : index
    %239 = vector.load %arg20[%c0_164, %c0_165, %c0_166] : memref<3x320x128xbf16, #tpu.memory_space<vmem>>, vector<1x320x128xbf16>
    %240 = vector.shape_cast %239 : vector<1x320x128xbf16> to vector<320x128xbf16>
    %cst_167 = arith.constant dense<0.000000e+00> : vector<32x128xf32>
    %241 = tpu.matmul %238, %240, %cst_167 {dimension_numbers = #tpu.dot_dimension_numbers<[1], [0], [0], [1], [0, 0, 1, 1], [], []>} : vector<32x320xbf16>, vector<320x128xbf16>, vector<32x128xf32> -> vector<32x128xf32>
    %c40_168 = arith.constant 40 : index
    %c256_169 = arith.constant 256 : index
    %242 = vector.load %arg17[%c40_168, %c256_169] : memref<80x640xf32, #tpu.memory_space<vmem>>, vector<32x320xf32>
    %243 = arith.truncf %242 : vector<32x320xf32> to vector<32x320xbf16>
    %c1_170 = arith.constant 1 : index
    %c0_171 = arith.constant 0 : index
    %c0_172 = arith.constant 0 : index
    %244 = vector.load %arg20[%c1_170, %c0_171, %c0_172] : memref<3x320x128xbf16, #tpu.memory_space<vmem>>, vector<1x320x128xbf16>
    %245 = vector.shape_cast %244 : vector<1x320x128xbf16> to vector<320x128xbf16>
    %cst_173 = arith.constant dense<0.000000e+00> : vector<32x128xf32>
    %246 = tpu.matmul %243, %245, %cst_173 {dimension_numbers = #tpu.dot_dimension_numbers<[1], [0], [0], [1], [0, 0, 1, 1], [], []>} : vector<32x320xbf16>, vector<320x128xbf16>, vector<32x128xf32> -> vector<32x128xf32>
    %247 = arith.addf %241, %246 : vector<32x128xf32>
    %c8_174 = arith.constant 8 : index
    %c256_175 = arith.constant 256 : index
    %248 = vector.load %arg17[%c8_174, %c256_175] : memref<80x640xf32, #tpu.memory_space<vmem>>, vector<32x320xf32>
    %249 = arith.truncf %248 : vector<32x320xf32> to vector<32x320xbf16>
    %c2_176 = arith.constant 2 : index
    %c0_177 = arith.constant 0 : index
    %c0_178 = arith.constant 0 : index
    %250 = vector.load %arg20[%c2_176, %c0_177, %c0_178] : memref<3x320x128xbf16, #tpu.memory_space<vmem>>, vector<1x320x128xbf16>
    %251 = vector.shape_cast %250 : vector<1x320x128xbf16> to vector<320x128xbf16>
    %cst_179 = arith.constant dense<0.000000e+00> : vector<32x128xf32>
    %252 = tpu.matmul %249, %251, %cst_179 {dimension_numbers = #tpu.dot_dimension_numbers<[1], [0], [0], [1], [0, 0, 1, 1], [], []>} : vector<32x320xbf16>, vector<320x128xbf16>, vector<32x128xf32> -> vector<32x128xf32>
    %253 = arith.addf %247, %252 : vector<32x128xf32>
    %254 = tpu.concatenate %236, %253 in 1 : vector<32x128xf32>, vector<32x128xf32> -> vector<32x256xf32>
    %cst_180 = arith.constant dense<0.000000e+00> : vector<256xf32>
    %255 = vector.multi_reduction <add>, %254, %cst_180 [0] : vector<32x256xf32> to vector<256xf32>
    %256 = vector.shape_cast %255 : vector<256xf32> to vector<1x256xf32>
    %257 = arith.mulf %254, %254 : vector<32x256xf32>
    %cst_181 = arith.constant dense<0.000000e+00> : vector<256xf32>
    %258 = vector.multi_reduction <add>, %257, %cst_181 [0] : vector<32x256xf32> to vector<256xf32>
    %259 = vector.shape_cast %258 : vector<256xf32> to vector<1x256xf32>
    %c64_i32_182 = arith.constant 64 : i32
    %260 = tpu.dynamic_rotate %256 by %c64_i32_182 dim 1 : vector<1x256xf32>, i32 -> vector<1x256xf32>
    %261 = arith.addf %256, %260 : vector<1x256xf32>
    %c64_i32_183 = arith.constant 64 : i32
    %262 = tpu.dynamic_rotate %259 by %c64_i32_183 dim 1 : vector<1x256xf32>, i32 -> vector<1x256xf32>
    %263 = arith.addf %259, %262 : vector<1x256xf32>
    %c128_i32_184 = arith.constant 128 : i32
    %264 = tpu.dynamic_rotate %261 by %c128_i32_184 dim 1 : vector<1x256xf32>, i32 -> vector<1x256xf32>
    %265 = arith.addf %261, %264 : vector<1x256xf32>
    %c128_i32_185 = arith.constant 128 : i32
    %266 = tpu.dynamic_rotate %263 by %c128_i32_185 dim 1 : vector<1x256xf32>, i32 -> vector<1x256xf32>
    %267 = arith.addf %263, %266 : vector<1x256xf32>
    %cst_186 = arith.constant 7.812500e-03 : f32
    %268 = vector.broadcast %cst_186 : f32 to vector<1x256xf32>
    %269 = arith.mulf %265, %268 : vector<1x256xf32>
    %cst_187 = arith.constant 7.812500e-03 : f32
    %270 = vector.broadcast %cst_187 : f32 to vector<1x256xf32>
    %271 = arith.mulf %267, %270 : vector<1x256xf32>
    %272 = arith.mulf %269, %269 : vector<1x256xf32>
    %273 = arith.subf %271, %272 : vector<1x256xf32>
    %c0_188 = arith.constant 0 : index
    %c0_189 = arith.constant 0 : index
    %274 = vector.load %arg9[%c0_188, %c0_189] : memref<2x256xf32, #tpu.memory_space<vmem>>, vector<1x256xf32>
    %cst_190 = arith.constant 9.99999974E-6 : f32
    %275 = vector.broadcast %cst_190 : f32 to vector<1x256xf32>
    %276 = arith.addf %273, %275 : vector<1x256xf32>
    %277 = math.rsqrt %276 : vector<1x256xf32>
    %278 = arith.mulf %274, %277 : vector<1x256xf32>
    %c1_191 = arith.constant 1 : index
    %c0_192 = arith.constant 0 : index
    %279 = vector.load %arg9[%c1_191, %c0_192] : memref<2x256xf32, #tpu.memory_space<vmem>>, vector<1x256xf32>
    %280 = arith.mulf %269, %278 : vector<1x256xf32>
    %281 = arith.subf %279, %280 : vector<1x256xf32>
    %282 = vector.broadcast %278 : vector<1x256xf32> to vector<32x256xf32>
    %283 = arith.mulf %254, %282 : vector<32x256xf32>
    %284 = vector.broadcast %281 : vector<1x256xf32> to vector<32x256xf32>
    %285 = arith.addf %283, %284 : vector<32x256xf32>
    %cst_193 = arith.constant 0.000000e+00 : f32
    %286 = vector.broadcast %cst_193 : f32 to vector<32x256xf32>
    %287 = arith.cmpf oge, %285, %286 : vector<32x256xf32>
    %cst_194 = arith.constant 2.000000e-01 : f32
    %288 = vector.broadcast %cst_194 : f32 to vector<32x256xf32>
    %289 = arith.mulf %288, %285 : vector<32x256xf32>
    %290 = arith.select %287, %285, %289 : vector<32x256xi1>, vector<32x256xf32>
    %cst_195 = arith.constant 0.000000e+00 : f32
    %291 = vector.broadcast %cst_195 : f32 to vector<32x64xf32>
    %292 = tpu.concatenate %291, %290, %291 in 1 : vector<32x64xf32>, vector<32x256xf32>, vector<32x64xf32> -> vector<32x384xf32>
    %cst_196 = arith.constant 0.000000e+00 : f32
    %293 = vector.broadcast %cst_196 : f32 to vector<8x384xf32>
    %c0_197 = arith.constant 0 : index
    %c0_198 = arith.constant 0 : index
    %294 = vector.load %arg18[%c0_197, %c0_198] : memref<48x384xf32, #tpu.memory_space<vmem>>, vector<8x384xf32>
    tpu.vector_store %arg18[%c0_197, %c0_198], %293 {strides = array<i32>} : memref<48x384xf32, #tpu.memory_space<vmem>>, vector<8x384xf32>,
    %c40_199 = arith.constant 40 : index
    %c0_200 = arith.constant 0 : index
    %295 = vector.load %arg18[%c40_199, %c0_200] : memref<48x384xf32, #tpu.memory_space<vmem>>, vector<8x384xf32>
    tpu.vector_store %arg18[%c40_199, %c0_200], %293 {strides = array<i32>} : memref<48x384xf32, #tpu.memory_space<vmem>>, vector<8x384xf32>,
    %296 = vector.extract_strided_slice %292 {offsets = [0, 0], sizes = [8, 384], strides = [1, 1]} : vector<32x384xf32> to vector<8x384xf32>
    %c24_201 = arith.constant 24 : index
    %c0_202 = arith.constant 0 : index
    %297 = vector.load %arg18[%c24_201, %c0_202] : memref<48x384xf32, #tpu.memory_space<vmem>>, vector<8x384xf32>
    tpu.vector_store %arg18[%c24_201, %c0_202], %296 {strides = array<i32>} : memref<48x384xf32, #tpu.memory_space<vmem>>, vector<8x384xf32>,
    %298 = vector.extract_strided_slice %292 {offsets = [8, 0], sizes = [8, 384], strides = [1, 1]} : vector<32x384xf32> to vector<8x384xf32>
    %c8_203 = arith.constant 8 : index
    %c0_204 = arith.constant 0 : index
    %299 = vector.load %arg18[%c8_203, %c0_204] : memref<48x384xf32, #tpu.memory_space<vmem>>, vector<8x384xf32>
    tpu.vector_store %arg18[%c8_203, %c0_204], %298 {strides = array<i32>} : memref<48x384xf32, #tpu.memory_space<vmem>>, vector<8x384xf32>,
    %300 = vector.extract_strided_slice %292 {offsets = [16, 0], sizes = [8, 384], strides = [1, 1]} : vector<32x384xf32> to vector<8x384xf32>
    %c32_205 = arith.constant 32 : index
    %c0_206 = arith.constant 0 : index
    %301 = vector.load %arg18[%c32_205, %c0_206] : memref<48x384xf32, #tpu.memory_space<vmem>>, vector<8x384xf32>
    tpu.vector_store %arg18[%c32_205, %c0_206], %300 {strides = array<i32>} : memref<48x384xf32, #tpu.memory_space<vmem>>, vector<8x384xf32>,
    %302 = vector.extract_strided_slice %292 {offsets = [24, 0], sizes = [8, 384], strides = [1, 1]} : vector<32x384xf32> to vector<8x384xf32>
    %c16_207 = arith.constant 16 : index
    %c0_208 = arith.constant 0 : index
    %303 = vector.load %arg18[%c16_207, %c0_208] : memref<48x384xf32, #tpu.memory_space<vmem>>, vector<8x384xf32>
    tpu.vector_store %arg18[%c16_207, %c0_208], %302 {strides = array<i32>} : memref<48x384xf32, #tpu.memory_space<vmem>>, vector<8x384xf32>,
    %c2_i32_209 = arith.constant 2 : i32
    %304 = tpu.memref_slice %arg24[%c2_i32_209] : memref<5x!tpu.dma_semaphore, #tpu.memory_space<semaphore_mem>> -> memref<1x!tpu.dma_semaphore, #tpu.memory_space<semaphore_mem>>
    %305 = tpu.memref_squeeze %304 : memref<1x!tpu.dma_semaphore, #tpu.memory_space<semaphore_mem>> -> memref<!tpu.dma_semaphore, #tpu.memory_space<semaphore_mem>>
    tpu.wait_dma2 semaphore(%305 : memref<!tpu.dma_semaphore, #tpu.memory_space<semaphore_mem>>) src(%arg4 : memref<576x128xbf16, #tpu.memory_space<any>>) dst(%arg21 : memref<576x128xbf16, #tpu.memory_space<vmem>>)
    %c0_210 = arith.constant 0 : index
    %c0_211 = arith.constant 0 : index
    %306 = vector.load %arg18[%c0_210, %c0_211] : memref<48x384xf32, #tpu.memory_space<vmem>>, vector<16x192xf32>
    %c24_212 = arith.constant 24 : index
    %c0_213 = arith.constant 0 : index
    %307 = vector.load %arg18[%c24_212, %c0_213] : memref<48x384xf32, #tpu.memory_space<vmem>>, vector<16x192xf32>
    %c8_214 = arith.constant 8 : index
    %c0_215 = arith.constant 0 : index
    %308 = vector.load %arg18[%c8_214, %c0_215] : memref<48x384xf32, #tpu.memory_space<vmem>>, vector<16x192xf32>
    %309 = tpu.concatenate %306, %307, %308 in 1 : vector<16x192xf32>, vector<16x192xf32>, vector<16x192xf32> -> vector<16x576xf32>
    %310 = arith.truncf %309 : vector<16x576xf32> to vector<16x576xbf16>
    %c0_216 = arith.constant 0 : index
    %c0_217 = arith.constant 0 : index
    %311 = vector.load %arg21[%c0_216, %c0_217] : memref<576x128xbf16, #tpu.memory_space<vmem>>, vector<576x128xbf16>
    %cst_218 = arith.constant dense<0.000000e+00> : vector<16x128xf32>
    %312 = tpu.matmul %310, %311, %cst_218 {dimension_numbers = #tpu.dot_dimension_numbers<[1], [0], [0], [1], [0, 0, 1, 1], [], []>} : vector<16x576xbf16>, vector<576x128xbf16>, vector<16x128xf32> -> vector<16x128xf32>
    %c0_219 = arith.constant 0 : index
    %c128_220 = arith.constant 128 : index
    %313 = vector.load %arg18[%c0_219, %c128_220] : memref<48x384xf32, #tpu.memory_space<vmem>>, vector<16x192xf32>
    %c24_221 = arith.constant 24 : index
    %c128_222 = arith.constant 128 : index
    %314 = vector.load %arg18[%c24_221, %c128_222] : memref<48x384xf32, #tpu.memory_space<vmem>>, vector<16x192xf32>
    %c8_223 = arith.constant 8 : index
    %c128_224 = arith.constant 128 : index
    %315 = vector.load %arg18[%c8_223, %c128_224] : memref<48x384xf32, #tpu.memory_space<vmem>>, vector<16x192xf32>
    %316 = tpu.concatenate %313, %314, %315 in 1 : vector<16x192xf32>, vector<16x192xf32>, vector<16x192xf32> -> vector<16x576xf32>
    %317 = arith.truncf %316 : vector<16x576xf32> to vector<16x576xbf16>
    %c0_225 = arith.constant 0 : index
    %c0_226 = arith.constant 0 : index
    %318 = vector.load %arg21[%c0_225, %c0_226] : memref<576x128xbf16, #tpu.memory_space<vmem>>, vector<576x128xbf16>
    %cst_227 = arith.constant dense<0.000000e+00> : vector<16x128xf32>
    %319 = tpu.matmul %317, %318, %cst_227 {dimension_numbers = #tpu.dot_dimension_numbers<[1], [0], [0], [1], [0, 0, 1, 1], [], []>} : vector<16x576xbf16>, vector<576x128xbf16>, vector<16x128xf32> -> vector<16x128xf32>
    %320 = tpu.concatenate %312, %319 in 1 : vector<16x128xf32>, vector<16x128xf32> -> vector<16x256xf32>
    %cst_228 = arith.constant dense<0.000000e+00> : vector<256xf32>
    %321 = vector.multi_reduction <add>, %320, %cst_228 [0] : vector<16x256xf32> to vector<256xf32>
    %322 = vector.shape_cast %321 : vector<256xf32> to vector<1x256xf32>
    %323 = arith.mulf %320, %320 : vector<16x256xf32>
    %cst_229 = arith.constant dense<0.000000e+00> : vector<256xf32>
    %324 = vector.multi_reduction <add>, %323, %cst_229 [0] : vector<16x256xf32> to vector<256xf32>
    %325 = vector.shape_cast %324 : vector<256xf32> to vector<1x256xf32>
    %c128_i32_230 = arith.constant 128 : i32
    %326 = tpu.dynamic_rotate %322 by %c128_i32_230 dim 1 : vector<1x256xf32>, i32 -> vector<1x256xf32>
    %327 = arith.addf %322, %326 : vector<1x256xf32>
    %c128_i32_231 = arith.constant 128 : i32
    %328 = tpu.dynamic_rotate %325 by %c128_i32_231 dim 1 : vector<1x256xf32>, i32 -> vector<1x256xf32>
    %329 = arith.addf %325, %328 : vector<1x256xf32>
    %cst_232 = arith.constant 3.125000e-02 : f32
    %330 = vector.broadcast %cst_232 : f32 to vector<1x256xf32>
    %331 = arith.mulf %327, %330 : vector<1x256xf32>
    %cst_233 = arith.constant 3.125000e-02 : f32
    %332 = vector.broadcast %cst_233 : f32 to vector<1x256xf32>
    %333 = arith.mulf %329, %332 : vector<1x256xf32>
    %334 = arith.mulf %331, %331 : vector<1x256xf32>
    %335 = arith.subf %333, %334 : vector<1x256xf32>
    %c0_234 = arith.constant 0 : index
    %c0_235 = arith.constant 0 : index
    %336 = vector.load %arg10[%c0_234, %c0_235] : memref<2x256xf32, #tpu.memory_space<vmem>>, vector<1x256xf32>
    %cst_236 = arith.constant 9.99999974E-6 : f32
    %337 = vector.broadcast %cst_236 : f32 to vector<1x256xf32>
    %338 = arith.addf %335, %337 : vector<1x256xf32>
    %339 = math.rsqrt %338 : vector<1x256xf32>
    %340 = arith.mulf %336, %339 : vector<1x256xf32>
    %c1_237 = arith.constant 1 : index
    %c0_238 = arith.constant 0 : index
    %341 = vector.load %arg10[%c1_237, %c0_238] : memref<2x256xf32, #tpu.memory_space<vmem>>, vector<1x256xf32>
    %342 = arith.mulf %331, %340 : vector<1x256xf32>
    %343 = arith.subf %341, %342 : vector<1x256xf32>
    %344 = vector.broadcast %340 : vector<1x256xf32> to vector<16x256xf32>
    %345 = arith.mulf %320, %344 : vector<16x256xf32>
    %346 = vector.broadcast %343 : vector<1x256xf32> to vector<16x256xf32>
    %347 = arith.addf %345, %346 : vector<16x256xf32>
    %cst_239 = arith.constant 0.000000e+00 : f32
    %348 = vector.broadcast %cst_239 : f32 to vector<16x256xf32>
    %349 = arith.cmpf oge, %347, %348 : vector<16x256xf32>
    %cst_240 = arith.constant 2.000000e-01 : f32
    %350 = vector.broadcast %cst_240 : f32 to vector<16x256xf32>
    %351 = arith.mulf %350, %347 : vector<16x256xf32>
    %352 = arith.select %349, %347, %351 : vector<16x256xi1>, vector<16x256xf32>
    %353 = vector.extract_strided_slice %352 {offsets = [0, 0], sizes = [8, 256], strides = [1, 1]} : vector<16x256xf32> to vector<8x256xf32>
    %354 = vector.extract_strided_slice %352 {offsets = [8, 0], sizes = [8, 256], strides = [1, 1]} : vector<16x256xf32> to vector<8x256xf32>
    %355 = tpu.concatenate %353, %354 in 1 : vector<8x256xf32>, vector<8x256xf32> -> vector<8x512xf32>
    %c3_i32_241 = arith.constant 3 : i32
    %356 = tpu.memref_slice %arg24[%c3_i32_241] : memref<5x!tpu.dma_semaphore, #tpu.memory_space<semaphore_mem>> -> memref<1x!tpu.dma_semaphore, #tpu.memory_space<semaphore_mem>>
    %357 = tpu.memref_squeeze %356 : memref<1x!tpu.dma_semaphore, #tpu.memory_space<semaphore_mem>> -> memref<!tpu.dma_semaphore, #tpu.memory_space<semaphore_mem>>
    tpu.wait_dma2 semaphore(%357 : memref<!tpu.dma_semaphore, #tpu.memory_space<semaphore_mem>>) src(%arg5 : memref<512x128xbf16, #tpu.memory_space<any>>) dst(%arg22 : memref<512x128xbf16, #tpu.memory_space<vmem>>)
    %358 = arith.truncf %355 : vector<8x512xf32> to vector<8x512xbf16>
    %c0_242 = arith.constant 0 : index
    %c0_243 = arith.constant 0 : index
    %359 = vector.load %arg22[%c0_242, %c0_243] : memref<512x128xbf16, #tpu.memory_space<vmem>>, vector<512x128xbf16>
    %cst_244 = arith.constant dense<0.000000e+00> : vector<8x128xf32>
    %360 = tpu.matmul %358, %359, %cst_244 {dimension_numbers = #tpu.dot_dimension_numbers<[1], [0], [0], [1], [0, 0, 1, 1], [], []>} : vector<8x512xbf16>, vector<512x128xbf16>, vector<8x128xf32> -> vector<8x128xf32>
    %cst_245 = arith.constant dense<0.000000e+00> : vector<128xf32>
    %361 = vector.multi_reduction <add>, %360, %cst_245 [0] : vector<8x128xf32> to vector<128xf32>
    %362 = vector.shape_cast %361 : vector<128xf32> to vector<1x128xf32>
    %363 = arith.mulf %360, %360 : vector<8x128xf32>
    %cst_246 = arith.constant dense<0.000000e+00> : vector<128xf32>
    %364 = vector.multi_reduction <add>, %363, %cst_246 [0] : vector<8x128xf32> to vector<128xf32>
    %365 = vector.shape_cast %364 : vector<128xf32> to vector<1x128xf32>
    %cst_247 = arith.constant 1.250000e-01 : f32
    %366 = vector.broadcast %cst_247 : f32 to vector<1x128xf32>
    %367 = arith.mulf %362, %366 : vector<1x128xf32>
    %cst_248 = arith.constant 1.250000e-01 : f32
    %368 = vector.broadcast %cst_248 : f32 to vector<1x128xf32>
    %369 = arith.mulf %365, %368 : vector<1x128xf32>
    %370 = arith.mulf %367, %367 : vector<1x128xf32>
    %371 = arith.subf %369, %370 : vector<1x128xf32>
    %c0_249 = arith.constant 0 : index
    %c0_250 = arith.constant 0 : index
    %372 = vector.load %arg11[%c0_249, %c0_250] : memref<2x128xf32, #tpu.memory_space<vmem>>, vector<1x128xf32>
    %cst_251 = arith.constant 9.99999974E-6 : f32
    %373 = vector.broadcast %cst_251 : f32 to vector<1x128xf32>
    %374 = arith.addf %371, %373 : vector<1x128xf32>
    %375 = math.rsqrt %374 : vector<1x128xf32>
    %376 = arith.mulf %372, %375 : vector<1x128xf32>
    %c1_252 = arith.constant 1 : index
    %c0_253 = arith.constant 0 : index
    %377 = vector.load %arg11[%c1_252, %c0_253] : memref<2x128xf32, #tpu.memory_space<vmem>>, vector<1x128xf32>
    %378 = arith.mulf %367, %376 : vector<1x128xf32>
    %379 = arith.subf %377, %378 : vector<1x128xf32>
    %380 = vector.broadcast %376 : vector<1x128xf32> to vector<8x128xf32>
    %381 = arith.mulf %360, %380 : vector<8x128xf32>
    %382 = vector.broadcast %379 : vector<1x128xf32> to vector<8x128xf32>
    %383 = arith.addf %381, %382 : vector<8x128xf32>
    %cst_254 = arith.constant 0.000000e+00 : f32
    %384 = vector.broadcast %cst_254 : f32 to vector<8x128xf32>
    %385 = arith.cmpf oge, %383, %384 : vector<8x128xf32>
    %cst_255 = arith.constant 2.000000e-01 : f32
    %386 = vector.broadcast %cst_255 : f32 to vector<8x128xf32>
    %387 = arith.mulf %386, %383 : vector<8x128xf32>
    %388 = arith.select %385, %383, %387 : vector<8x128xi1>, vector<8x128xf32>
    %c4_i32_256 = arith.constant 4 : i32
    %389 = tpu.memref_slice %arg24[%c4_i32_256] : memref<5x!tpu.dma_semaphore, #tpu.memory_space<semaphore_mem>> -> memref<1x!tpu.dma_semaphore, #tpu.memory_space<semaphore_mem>>
    %390 = tpu.memref_squeeze %389 : memref<1x!tpu.dma_semaphore, #tpu.memory_space<semaphore_mem>> -> memref<!tpu.dma_semaphore, #tpu.memory_space<semaphore_mem>>
    tpu.wait_dma2 semaphore(%390 : memref<!tpu.dma_semaphore, #tpu.memory_space<semaphore_mem>>) src(%arg6 : memref<128x256xbf16, #tpu.memory_space<any>>) dst(%arg23 : memref<128x256xbf16, #tpu.memory_space<vmem>>)
    %391 = arith.truncf %388 : vector<8x128xf32> to vector<8x128xbf16>
    %c0_257 = arith.constant 0 : index
    %c0_258 = arith.constant 0 : index
    %392 = vector.load %arg23[%c0_257, %c0_258] : memref<128x256xbf16, #tpu.memory_space<vmem>>, vector<128x256xbf16>
    %cst_259 = arith.constant dense<0.000000e+00> : vector<8x256xf32>
    %393 = tpu.matmul %391, %392, %cst_259 {dimension_numbers = #tpu.dot_dimension_numbers<[1], [0], [0], [1], [0, 0, 1, 1], [], []>} : vector<8x128xbf16>, vector<128x256xbf16>, vector<8x256xf32> -> vector<8x256xf32>
    %cst_260 = arith.constant dense<0.000000e+00> : vector<256xf32>
    %394 = vector.multi_reduction <add>, %393, %cst_260 [0] : vector<8x256xf32> to vector<256xf32>
    %395 = vector.shape_cast %394 : vector<256xf32> to vector<1x256xf32>
    %396 = arith.mulf %393, %393 : vector<8x256xf32>
    %cst_261 = arith.constant dense<0.000000e+00> : vector<256xf32>
    %397 = vector.multi_reduction <add>, %396, %cst_261 [0] : vector<8x256xf32> to vector<256xf32>
    %398 = vector.shape_cast %397 : vector<256xf32> to vector<1x256xf32>
    %cst_262 = arith.constant 1.250000e-01 : f32
    %399 = vector.broadcast %cst_262 : f32 to vector<1x256xf32>
    %400 = arith.mulf %395, %399 : vector<1x256xf32>
    %cst_263 = arith.constant 1.250000e-01 : f32
    %401 = vector.broadcast %cst_263 : f32 to vector<1x256xf32>
    %402 = arith.mulf %398, %401 : vector<1x256xf32>
    %403 = arith.mulf %400, %400 : vector<1x256xf32>
    %404 = arith.subf %402, %403 : vector<1x256xf32>
    %c0_264 = arith.constant 0 : index
    %c0_265 = arith.constant 0 : index
    %405 = vector.load %arg12[%c0_264, %c0_265] : memref<2x256xf32, #tpu.memory_space<vmem>>, vector<1x256xf32>
    %cst_266 = arith.constant 9.99999974E-6 : f32
    %406 = vector.broadcast %cst_266 : f32 to vector<1x256xf32>
    %407 = arith.addf %404, %406 : vector<1x256xf32>
    %408 = math.rsqrt %407 : vector<1x256xf32>
    %409 = arith.mulf %405, %408 : vector<1x256xf32>
    %c1_267 = arith.constant 1 : index
    %c0_268 = arith.constant 0 : index
    %410 = vector.load %arg12[%c1_267, %c0_268] : memref<2x256xf32, #tpu.memory_space<vmem>>, vector<1x256xf32>
    %411 = arith.mulf %400, %409 : vector<1x256xf32>
    %412 = arith.subf %410, %411 : vector<1x256xf32>
    %413 = vector.broadcast %409 : vector<1x256xf32> to vector<8x256xf32>
    %414 = arith.mulf %393, %413 : vector<8x256xf32>
    %415 = vector.broadcast %412 : vector<1x256xf32> to vector<8x256xf32>
    %416 = arith.addf %414, %415 : vector<8x256xf32>
    %cst_269 = arith.constant 0.000000e+00 : f32
    %417 = vector.broadcast %cst_269 : f32 to vector<8x256xf32>
    %418 = arith.cmpf oge, %416, %417 : vector<8x256xf32>
    %cst_270 = arith.constant 2.000000e-01 : f32
    %419 = vector.broadcast %cst_270 : f32 to vector<8x256xf32>
    %420 = arith.mulf %419, %416 : vector<8x256xf32>
    %421 = arith.select %418, %416, %420 : vector<8x256xi1>, vector<8x256xf32>
    %422 = arith.truncf %421 : vector<8x256xf32> to vector<8x256xbf16>
    %c0_271 = arith.constant 0 : index
    %c0_272 = arith.constant 0 : index
    %423 = vector.load %arg13[%c0_271, %c0_272] : memref<256x1xbf16, #tpu.memory_space<vmem>>, vector<256x1xbf16>
    %cst_273 = arith.constant dense<0.000000e+00> : vector<8x1xf32>
    %424 = tpu.matmul %422, %423, %cst_273 {dimension_numbers = #tpu.dot_dimension_numbers<[1], [0], [0], [1], [0, 0, 1, 1], [], []>} : vector<8x256xbf16>, vector<256x1xbf16>, vector<8x1xf32> -> vector<8x1xf32>
    %c0_274 = arith.constant 0 : index
    %c0_275 = arith.constant 0 : index
    %425 = vector.load %arg14[%c0_274, %c0_275] : memref<1x1xf32, #tpu.memory_space<vmem>>, vector<1x1xf32>
    %426 = vector.broadcast %425 : vector<1x1xf32> to vector<8x1xf32>
    %427 = arith.addf %424, %426 : vector<8x1xf32>
    %cst_276 = arith.constant 0.000000e+00 : f32
    %428 = vector.broadcast %cst_276 : f32 to vector<8x1xf32>
    %429 = arith.subf %428, %427 : vector<8x1xf32>
    %430 = math.exp %429 : vector<8x1xf32>
    %cst_277 = arith.constant 1.000000e+00 : f32
    %431 = vector.broadcast %cst_277 : f32 to vector<8x1xf32>
    %432 = arith.addf %431, %430 : vector<8x1xf32>
    %cst_278 = arith.constant 1.000000e+00 : f32
    %433 = vector.broadcast %cst_278 : f32 to vector<8x1xf32>
    %434 = arith.divf %433, %432 : vector<8x1xf32>
    %c0_279 = arith.constant 0 : index
    %c0_280 = arith.constant 0 : index
    %435 = vector.load %arg15[%c0_279, %c0_280] : memref<8x1xf32, #tpu.memory_space<vmem>>, vector<8x1xf32>
    tpu.vector_store %arg15[%c0_279, %c0_280], %434 {strides = array<i32>} : memref<8x1xf32, #tpu.memory_space<vmem>>, vector<8x1xf32>,
    return
  }
}

</mosaic_0001>

<bundles_post_ra>
// kernel: _lambda_.1
= control target key start
LH: loop header
LB: loop body
LE: loop exit
PB: predicated region body
PF: predicated region fallthrough
CT: control target
= control target key end

     0   :  { %s13220_s0 = inlined_call_operand.vmem [shape: bf16[272,102], index: 0, kind: input, shape index: {}]   ;;  %s13221_s1 = inlined_call_operand.vmem [shape: bf16[3,51,256], index: 1, kind: input, shape index: {}]   ;;  %s13222_s3 = inlined_call_operand.vmem [shape: bf16[3,320,128], index: 3, kind: input, shape index: {}]   ;;  %s13223_s4 = inlined_call_operand.vmem [shape: bf16[576,128], index: 4, kind: input, shape index: {}]   ;;  %s13224_s5 = inlined_call_operand.vmem [shape: bf16[512,128], index: 5, kind: input, shape index: {}]   ;;  %s13225_s6 = inlined_call_operand.vmem [shape: bf16[128,256], index: 6, kind: input, shape index: {}]   ;;  %s13226_s7 = inlined_call_operand.vmem [shape: f32[2,512], index: 7, kind: input, shape index: {}]   ;;  %s13227_s8 = inlined_call_operand.vmem [shape: f32[2,512], index: 8, kind: input, shape index: {}]   ;;  %s13228_s9 = inlined_call_operand.vmem [shape: f32[2,256], index: 9, kind: input, shape index: {}]   ;;  %s13229_s10 = inlined_call_operand.vmem [shape: f32[2,256], index: 10, kind: input, shape index: {}]   ;;  %s13230_s11 = inlined_call_operand.vmem [shape: f32[2,128], index: 11, kind: input, shape index: {}]   ;;  %s13231_s12 = inlined_call_operand.vmem [shape: f32[2,256], index: 12, kind: input, shape index: {}]   ;;  %s13232_s13 = inlined_call_operand.vmem [shape: bf16[256,1], index: 13, kind: input, shape index: {}]   ;;  %s13233_s14 = inlined_call_operand.<no memory space> [shape: f32[1,1], index: 14, kind: input, shape index: {}]   ;;  %s13234_s15 = inlined_call_operand.vmem [shape: f32[8,1], index: 15, kind: output, shape index: {}]   ;;  %s13235_s2 = inlined_call_operand.vmem [shape: bf16[3,288,256], index: 2, kind: input, shape index: {}]  }
   0x1   :  { %v20_v0 = vstv %s13233_s14  ;;  %v60_v1 = vld [vmem:[%s13235_s2] sm:$0xf]  ;;  %v62_v2 = vld [vmem:[%s13235_s2 + $0x8] sm:$0xf]  ;;  %v64_v3 = vld [vmem:[%s13235_s2 + $0x4] sm:$0xf] }
   0x2   :  { %21 = vst [vmem:[#allocation11] sm:$0x1] %v20_v0  ;;  %61 = vst [vmem:[#allocation5] sm:$0xf] %v60_v1  ;;  %v66_v4 = vld [vmem:[%s13235_s2 + $0xc] sm:$0xff]   ;;  %v74_v7 = vld [vmem:[%s13235_s2 + $0x1c] sm:$0xff]  }
   0x3   :  { %63 = vst [vmem:[#allocation5 + $0x4] sm:$0xf] %v62_v2  ;;  %65 = vst [vmem:[#allocation5 + $0x8] sm:$0xf] %v64_v3  ;;  %v70_v5 = vld [vmem:[%s13235_s2 + $0x18] sm:$0xf] }
   0x4   :  { %v72_v6 = vld [vmem:[%s13235_s2 + $0x14] sm:$0xf]  ;;  %67 = vst [vmem:[#allocation5 + $0xc] sm:$0xff] %v66_v4   ;;  %71 = vst [vmem:[#allocation5 + $0x14] sm:$0xf] %v70_v5  ;;  %v82_v10 = vld [vmem:[%s13235_s2 + $0x2c] sm:$0xff]  }
   0x5   :  { %73 = vst [vmem:[#allocation5 + $0x18] sm:$0xf] %v72_v6  ;;  %v78_v8 = vld [vmem:[%s13235_s2 + $0x28] sm:$0xf]  ;;  %v80_v9 = vld [vmem:[%s13235_s2 + $0x24] sm:$0xf] }
   0x6   :  { %75 = vst [vmem:[#allocation5 + $0x1c] sm:$0xff] %v74_v7   ;;  %79 = vst [vmem:[#allocation5 + $0x24] sm:$0xf] %v78_v8  ;;  %v86_v11 = vld [vmem:[%s13235_s2 + $0x38] sm:$0xf]  ;;  %v90_v13 = vld [vmem:[%s13235_s2 + $0x3c] sm:$0xff]  }
   0x7   :  { %81 = vst [vmem:[#allocation5 + $0x28] sm:$0xf] %v80_v9  ;;  %v88_v12 = vld [vmem:[%s13235_s2 + $0x34] sm:$0xf]  ;;  %83 = vst [vmem:[#allocation5 + $0x2c] sm:$0xff] %v82_v10   ;;  %v98_v16 = vld [vmem:[%s13235_s2 + $0x4c] sm:$0xff]  }
   0x8   :  { %87 = vst [vmem:[#allocation5 + $0x34] sm:$0xf] %v86_v11  ;;  %89 = vst [vmem:[#allocation5 + $0x38] sm:$0xf] %v88_v12  ;;  %v94_v14 = vld [vmem:[%s13235_s2 + $0x48] sm:$0xf] }
   0x9   :  { %v96_v15 = vld [vmem:[%s13235_s2 + $0x44] sm:$0xf]  ;;  %91 = vst [vmem:[#allocation5 + $0x3c] sm:$0xff] %v90_v13   ;;  %95 = vst [vmem:[#allocation5 + $0x44] sm:$0xf] %v94_v14  ;;  %v106_v19 = vld [vmem:[%s13235_s2 + $0x5c] sm:$0xff]  }
   0xa   :  { %97 = vst [vmem:[#allocation5 + $0x48] sm:$0xf] %v96_v15  ;;  %v102_v17 = vld [vmem:[%s13235_s2 + $0x58] sm:$0xf]  ;;  %v104_v18 = vld [vmem:[%s13235_s2 + $0x54] sm:$0xf] }
   0xb   :  { %99 = vst [vmem:[#allocation5 + $0x4c] sm:$0xff] %v98_v16   ;;  %103 = vst [vmem:[#allocation5 + $0x54] sm:$0xf] %v102_v17  ;;  %v110_v20 = vld [vmem:[%s13235_s2 + $0x68] sm:$0xf]  ;;  %v114_v22 = vld [vmem:[%s13235_s2 + $0x6c] sm:$0xff]  }
   0xc   :  { %105 = vst [vmem:[#allocation5 + $0x58] sm:$0xf] %v104_v18  ;;  %v112_v21 = vld [vmem:[%s13235_s2 + $0x64] sm:$0xf]  ;;  %107 = vst [vmem:[#allocation5 + $0x5c] sm:$0xff] %v106_v19   ;;  %v122_v25 = vld [vmem:[%s13235_s2 + $0x7c] sm:$0xff]  }
   0xd   :  { %111 = vst [vmem:[#allocation5 + $0x64] sm:$0xf] %v110_v20  ;;  %113 = vst [vmem:[#allocation5 + $0x68] sm:$0xf] %v112_v21  ;;  %v118_v23 = vld [vmem:[%s13235_s2 + $0x78] sm:$0xf] }
   0xe   :  { %v120_v24 = vld [vmem:[%s13235_s2 + $0x74] sm:$0xf]  ;;  %115 = vst [vmem:[#allocation5 + $0x6c] sm:$0xff] %v114_v22   ;;  %119 = vst [vmem:[#allocation5 + $0x74] sm:$0xf] %v118_v23  ;;  %v130_v28 = vld [vmem:[%s13235_s2 + $0x8c] sm:$0xff]  }
   0xf   :  { %121 = vst [vmem:[#allocation5 + $0x78] sm:$0xf] %v120_v24  ;;  %v126_v26 = vld [vmem:[%s13235_s2 + $0x88] sm:$0xf]  ;;  %v128_v27 = vld [vmem:[%s13235_s2 + $0x84] sm:$0xf] }
  0x10   :  { %123 = vst [vmem:[#allocation5 + $0x7c] sm:$0xff] %v122_v25   ;;  %127 = vst [vmem:[#allocation5 + $0x84] sm:$0xf] %v126_v26  ;;  %v134_v29 = vld [vmem:[%s13235_s2 + $0x98] sm:$0xf]  ;;  %v138_v31 = vld [vmem:[%s13235_s2 + $0x9c] sm:$0xff]  }
  0x11   :  { %129 = vst [vmem:[#allocation5 + $0x88] sm:$0xf] %v128_v27  ;;  %v136_v30 = vld [vmem:[%s13235_s2 + $0x94] sm:$0xf]  ;;  %131 = vst [vmem:[#allocation5 + $0x8c] sm:$0xff] %v130_v28   ;;  %v146_v34 = vld [vmem:[%s13235_s2 + $0xac] sm:$0xff]  }
  0x12   :  { %135 = vst [vmem:[#allocation5 + $0x94] sm:$0xf] %v134_v29  ;;  %137 = vst [vmem:[#allocation5 + $0x98] sm:$0xf] %v136_v30  ;;  %v142_v32 = vld [vmem:[%s13235_s2 + $0xa8] sm:$0xf] }
  0x13   :  { %v144_v33 = vld [vmem:[%s13235_s2 + $0xa4] sm:$0xf]  ;;  %139 = vst [vmem:[#allocation5 + $0x9c] sm:$0xff] %v138_v31   ;;  %143 = vst [vmem:[#allocation5 + $0xa4] sm:$0xf] %v142_v32  ;;  %v154_v37 = vld [vmem:[%s13235_s2 + $0xbc] sm:$0xff]  }
  0x14   :  { %145 = vst [vmem:[#allocation5 + $0xa8] sm:$0xf] %v144_v33  ;;  %v150_v35 = vld [vmem:[%s13235_s2 + $0xb8] sm:$0xf]  ;;  %v152_v36 = vld [vmem:[%s13235_s2 + $0xb4] sm:$0xf] }
  0x15   :  { %147 = vst [vmem:[#allocation5 + $0xac] sm:$0xff] %v146_v34   ;;  %151 = vst [vmem:[#allocation5 + $0xb4] sm:$0xf] %v150_v35  ;;  %v158_v38 = vld [vmem:[%s13235_s2 + $0xc8] sm:$0xf]  ;;  %v162_v40 = vld [vmem:[%s13235_s2 + $0xcc] sm:$0xff]  }
  0x16   :  { %153 = vst [vmem:[#allocation5 + $0xb8] sm:$0xf] %v152_v36  ;;  %v160_v39 = vld [vmem:[%s13235_s2 + $0xc4] sm:$0xf]  ;;  %155 = vst [vmem:[#allocation5 + $0xbc] sm:$0xff] %v154_v37   ;;  %v170_v43 = vld [vmem:[%s13235_s2 + $0xdc] sm:$0xff]  }
  0x17   :  { %159 = vst [vmem:[#allocation5 + $0xc4] sm:$0xf] %v158_v38  ;;  %161 = vst [vmem:[#allocation5 + $0xc8] sm:$0xf] %v160_v39  ;;  %v166_v41 = vld [vmem:[%s13235_s2 + $0xd8] sm:$0xf] }
  0x18   :  { %v168_v42 = vld [vmem:[%s13235_s2 + $0xd4] sm:$0xf]  ;;  %163 = vst [vmem:[#allocation5 + $0xcc] sm:$0xff] %v162_v40   ;;  %167 = vst [vmem:[#allocation5 + $0xd4] sm:$0xf] %v166_v41  ;;  %v178_v46 = vld [vmem:[%s13235_s2 + $0xec] sm:$0xff]  }
  0x19   :  { %169 = vst [vmem:[#allocation5 + $0xd8] sm:$0xf] %v168_v42  ;;  %v174_v44 = vld [vmem:[%s13235_s2 + $0xe8] sm:$0xf]  ;;  %v176_v45 = vld [vmem:[%s13235_s2 + $0xe4] sm:$0xf] }
  0x1a   :  { %171 = vst [vmem:[#allocation5 + $0xdc] sm:$0xff] %v170_v43   ;;  %175 = vst [vmem:[#allocation5 + $0xe4] sm:$0xf] %v174_v44  ;;  %v182_v47 = vld [vmem:[%s13235_s2 + $0xf8] sm:$0xf]  ;;  %v186_v49 = vld [vmem:[%s13235_s2 + $0xfc] sm:$0xff]  }
  0x1b   :  { %177 = vst [vmem:[#allocation5 + $0xe8] sm:$0xf] %v176_v45  ;;  %v184_v48 = vld [vmem:[%s13235_s2 + $0xf4] sm:$0xf]  ;;  %179 = vst [vmem:[#allocation5 + $0xec] sm:$0xff] %v178_v46   ;;  %v194_v52 = vld [vmem:[%s13235_s2 + $0x10c] sm:$0xff]  }
  0x1c   :  { %183 = vst [vmem:[#allocation5 + $0xf4] sm:$0xf] %v182_v47  ;;  %185 = vst [vmem:[#allocation5 + $0xf8] sm:$0xf] %v184_v48  ;;  %v190_v50 = vld [vmem:[%s13235_s2 + $0x108] sm:$0xf] }
  0x1d   :  { %v192_v51 = vld [vmem:[%s13235_s2 + $0x104] sm:$0xf]  ;;  %187 = vst [vmem:[#allocation5 + $0xfc] sm:$0xff] %v186_v49   ;;  %191 = vst [vmem:[#allocation5 + $0x104] sm:$0xf] %v190_v50  ;;  %v202_v55 = vld [vmem:[%s13235_s2 + $0x11c] sm:$0xff]  }
  0x1e   :  { %193 = vst [vmem:[#allocation5 + $0x108] sm:$0xf] %v192_v51  ;;  %v198_v53 = vld [vmem:[%s13235_s2 + $0x118] sm:$0xf]  ;;  %v200_v54 = vld [vmem:[%s13235_s2 + $0x114] sm:$0xf] }
  0x1f   :  { %195 = vst [vmem:[#allocation5 + $0x10c] sm:$0xff] %v194_v52   ;;  %199 = vst [vmem:[#allocation5 + $0x114] sm:$0xf] %v198_v53  ;;  %v206_v56 = vld [vmem:[%s13235_s2 + $0x128] sm:$0xf]  ;;  %v210_v58 = vld [vmem:[%s13235_s2 + $0x12c] sm:$0xff]  }
  0x20   :  { %201 = vst [vmem:[#allocation5 + $0x118] sm:$0xf] %v200_v54  ;;  %v208_v57 = vld [vmem:[%s13235_s2 + $0x124] sm:$0xf]  ;;  %203 = vst [vmem:[#allocation5 + $0x11c] sm:$0xff] %v202_v55   ;;  %v218_v61 = vld [vmem:[%s13235_s2 + $0x13c] sm:$0xff]  }
  0x21   :  { %207 = vst [vmem:[#allocation5 + $0x124] sm:$0xf] %v206_v56  ;;  %209 = vst [vmem:[#allocation5 + $0x128] sm:$0xf] %v208_v57  ;;  %v214_v59 = vld [vmem:[%s13235_s2 + $0x138] sm:$0xf] }
  0x22   :  { %v216_v60 = vld [vmem:[%s13235_s2 + $0x134] sm:$0xf]  ;;  %211 = vst [vmem:[#allocation5 + $0x12c] sm:$0xff] %v210_v58   ;;  %215 = vst [vmem:[#allocation5 + $0x134] sm:$0xf] %v214_v59  ;;  %v226_v0 = vld [vmem:[%s13235_s2 + $0x14c] sm:$0xff]  }
  0x23   :  { %217 = vst [vmem:[#allocation5 + $0x138] sm:$0xf] %v216_v60  ;;  %v222_v62 = vld [vmem:[%s13235_s2 + $0x148] sm:$0xf]  ;;  %v224_v63 = vld [vmem:[%s13235_s2 + $0x144] sm:$0xf] }
  0x24   :  { %219 = vst [vmem:[#allocation5 + $0x13c] sm:$0xff] %v218_v61   ;;  %223 = vst [vmem:[#allocation5 + $0x144] sm:$0xf] %v222_v62  ;;  %v230_v1 = vld [vmem:[%s13235_s2 + $0x158] sm:$0xf]  ;;  %v234_v3 = vld [vmem:[%s13235_s2 + $0x15c] sm:$0xff]  }
  0x25   :  { %225 = vst [vmem:[#allocation5 + $0x148] sm:$0xf] %v224_v63  ;;  %v232_v2 = vld [vmem:[%s13235_s2 + $0x154] sm:$0xf]  ;;  %227 = vst [vmem:[#allocation5 + $0x14c] sm:$0xff] %v226_v0   ;;  %v242_v6 = vld [vmem:[%s13235_s2 + $0x16c] sm:$0xff]  }
  0x26   :  { %231 = vst [vmem:[#allocation5 + $0x154] sm:$0xf] %v230_v1  ;;  %233 = vst [vmem:[#allocation5 + $0x158] sm:$0xf] %v232_v2  ;;  %v238_v4 = vld [vmem:[%s13235_s2 + $0x168] sm:$0xf] }
  0x27   :  { %v240_v5 = vld [vmem:[%s13235_s2 + $0x164] sm:$0xf]  ;;  %235 = vst [vmem:[#allocation5 + $0x15c] sm:$0xff] %v234_v3   ;;  %239 = vst [vmem:[#allocation5 + $0x164] sm:$0xf] %v238_v4  ;;  %v250_v9 = vld [vmem:[%s13235_s2 + $0x17c] sm:$0xff]  }
  0x28   :  { %241 = vst [vmem:[#allocation5 + $0x168] sm:$0xf] %v240_v5  ;;  %v246_v7 = vld [vmem:[%s13235_s2 + $0x178] sm:$0xf]  ;;  %v248_v8 = vld [vmem:[%s13235_s2 + $0x174] sm:$0xf] }
  0x29   :  { %243 = vst [vmem:[#allocation5 + $0x16c] sm:$0xff] %v242_v6   ;;  %247 = vst [vmem:[#allocation5 + $0x174] sm:$0xf] %v246_v7  ;;  %v254_v10 = vld [vmem:[%s13235_s2 + $0x188] sm:$0xf]  ;;  %v258_v12 = vld [vmem:[%s13235_s2 + $0x18c] sm:$0xff]  }
  0x2a   :  { %249 = vst [vmem:[#allocation5 + $0x178] sm:$0xf] %v248_v8  ;;  %v256_v11 = vld [vmem:[%s13235_s2 + $0x184] sm:$0xf]  ;;  %251 = vst [vmem:[#allocation5 + $0x17c] sm:$0xff] %v250_v9   ;;  %v266_v15 = vld [vmem:[%s13235_s2 + $0x19c] sm:$0xff]  }
  0x2b   :  { %255 = vst [vmem:[#allocation5 + $0x184] sm:$0xf] %v254_v10  ;;  %257 = vst [vmem:[#allocation5 + $0x188] sm:$0xf] %v256_v11  ;;  %v262_v13 = vld [vmem:[%s13235_s2 + $0x198] sm:$0xf] }
  0x2c   :  { %v264_v14 = vld [vmem:[%s13235_s2 + $0x194] sm:$0xf]  ;;  %259 = vst [vmem:[#allocation5 + $0x18c] sm:$0xff] %v258_v12   ;;  %263 = vst [vmem:[#allocation5 + $0x194] sm:$0xf] %v262_v13  ;;  %v274_v18 = vld [vmem:[%s13235_s2 + $0x1ac] sm:$0xff]  }
  0x2d   :  { %265 = vst [vmem:[#allocation5 + $0x198] sm:$0xf] %v264_v14  ;;  %v270_v16 = vld [vmem:[%s13235_s2 + $0x1a8] sm:$0xf]  ;;  %v272_v17 = vld [vmem:[%s13235_s2 + $0x1a4] sm:$0xf] }
  0x2e   :  { %267 = vst [vmem:[#allocation5 + $0x19c] sm:$0xff] %v266_v15   ;;  %271 = vst [vmem:[#allocation5 + $0x1a4] sm:$0xf] %v270_v16  ;;  %v278_v19 = vld [vmem:[%s13235_s2 + $0x1b8] sm:$0xf]  ;;  %v282_v21 = vld [vmem:[%s13235_s2 + $0x1bc] sm:$0xff]  }
  0x2f   :  { %273 = vst [vmem:[#allocation5 + $0x1a8] sm:$0xf] %v272_v17  ;;  %v280_v20 = vld [vmem:[%s13235_s2 + $0x1b4] sm:$0xf]  ;;  %275 = vst [vmem:[#allocation5 + $0x1ac] sm:$0xff] %v274_v18   ;;  %v290_v24 = vld [vmem:[%s13235_s2 + $0x1cc] sm:$0xff]  }
  0x30   :  { %279 = vst [vmem:[#allocation5 + $0x1b4] sm:$0xf] %v278_v19  ;;  %281 = vst [vmem:[#allocation5 + $0x1b8] sm:$0xf] %v280_v20  ;;  %v286_v22 = vld [vmem:[%s13235_s2 + $0x1c8] sm:$0xf] }
  0x31   :  { %v288_v23 = vld [vmem:[%s13235_s2 + $0x1c4] sm:$0xf]  ;;  %283 = vst [vmem:[#allocation5 + $0x1bc] sm:$0xff] %v282_v21   ;;  %287 = vst [vmem:[#allocation5 + $0x1c4] sm:$0xf] %v286_v22  ;;  %v298_v27 = vld [vmem:[%s13235_s2 + $0x1dc] sm:$0xff]  }
  0x32   :  { %289 = vst [vmem:[#allocation5 + $0x1c8] sm:$0xf] %v288_v23  ;;  %v294_v25 = vld [vmem:[%s13235_s2 + $0x1d8] sm:$0xf]  ;;  %v296_v26 = vld [vmem:[%s13235_s2 + $0x1d4] sm:$0xf] }
  0x33   :  { %291 = vst [vmem:[#allocation5 + $0x1cc] sm:$0xff] %v290_v24   ;;  %295 = vst [vmem:[#allocation5 + $0x1d4] sm:$0xf] %v294_v25  ;;  %v302_v28 = vld [vmem:[%s13235_s2 + $0x1e8] sm:$0xf]  ;;  %v306_v30 = vld [vmem:[%s13235_s2 + $0x1ec] sm:$0xff]  }
  0x34   :  { %297 = vst [vmem:[#allocation5 + $0x1d8] sm:$0xf] %v296_v26  ;;  %v304_v29 = vld [vmem:[%s13235_s2 + $0x1e4] sm:$0xf]  ;;  %299 = vst [vmem:[#allocation5 + $0x1dc] sm:$0xff] %v298_v27   ;;  %v314_v33 = vld [vmem:[%s13235_s2 + $0x1fc] sm:$0xff]  }
  0x35   :  { %303 = vst [vmem:[#allocation5 + $0x1e4] sm:$0xf] %v302_v28  ;;  %305 = vst [vmem:[#allocation5 + $0x1e8] sm:$0xf] %v304_v29  ;;  %v310_v31 = vld [vmem:[%s13235_s2 + $0x1f8] sm:$0xf] }
  0x36   :  { %v312_v32 = vld [vmem:[%s13235_s2 + $0x1f4] sm:$0xf]  ;;  %307 = vst [vmem:[#allocation5 + $0x1ec] sm:$0xff] %v306_v30   ;;  %311 = vst [vmem:[#allocation5 + $0x1f4] sm:$0xf] %v310_v31  ;;  %v322_v36 = vld [vmem:[%s13235_s2 + $0x20c] sm:$0xff]  }
  0x37   :  { %313 = vst [vmem:[#allocation5 + $0x1f8] sm:$0xf] %v312_v32  ;;  %v318_v34 = vld [vmem:[%s13235_s2 + $0x208] sm:$0xf]  ;;  %v320_v35 = vld [vmem:[%s13235_s2 + $0x204] sm:$0xf] }
  0x38   :  { %315 = vst [vmem:[#allocation5 + $0x1fc] sm:$0xff] %v314_v33   ;;  %319 = vst [vmem:[#allocation5 + $0x204] sm:$0xf] %v318_v34  ;;  %v326_v37 = vld [vmem:[%s13235_s2 + $0x218] sm:$0xf]  ;;  %v330_v39 = vld [vmem:[%s13235_s2 + $0x21c] sm:$0xff]  }
  0x39   :  { %321 = vst [vmem:[#allocation5 + $0x208] sm:$0xf] %v320_v35  ;;  %v328_v38 = vld [vmem:[%s13235_s2 + $0x214] sm:$0xf]  ;;  %323 = vst [vmem:[#allocation5 + $0x20c] sm:$0xff] %v322_v36   ;;  %v338_v42 = vld [vmem:[%s13235_s2 + $0x22c] sm:$0xff]  }
  0x3a   :  { %327 = vst [vmem:[#allocation5 + $0x214] sm:$0xf] %v326_v37  ;;  %329 = vst [vmem:[#allocation5 + $0x218] sm:$0xf] %v328_v38  ;;  %v334_v40 = vld [vmem:[%s13235_s2 + $0x228] sm:$0xf] }
  0x3b   :  { %v336_v41 = vld [vmem:[%s13235_s2 + $0x224] sm:$0xf]  ;;  %331 = vst [vmem:[#allocation5 + $0x21c] sm:$0xff] %v330_v39   ;;  %335 = vst [vmem:[#allocation5 + $0x224] sm:$0xf] %v334_v40  ;;  %v346_v45 = vld [vmem:[%s13235_s2 + $0x23c] sm:$0xff]  }
  0x3c   :  { %337 = vst [vmem:[#allocation5 + $0x228] sm:$0xf] %v336_v41  ;;  %v342_v43 = vld [vmem:[%s13235_s2 + $0x238] sm:$0xf]  ;;  %v344_v44 = vld [vmem:[%s13235_s2 + $0x234] sm:$0xf] }
  0x3d   :  { %339 = vst [vmem:[#allocation5 + $0x22c] sm:$0xff] %v338_v42   ;;  %343 = vst [vmem:[#allocation5 + $0x234] sm:$0xf] %v342_v43  ;;  %v350_v46 = vld [vmem:[%s13235_s2 + $0x248] sm:$0xf]  ;;  %v354_v48 = vld [vmem:[%s13235_s2 + $0x24c] sm:$0xff]  }
  0x3e   :  { %345 = vst [vmem:[#allocation5 + $0x238] sm:$0xf] %v344_v44  ;;  %v352_v47 = vld [vmem:[%s13235_s2 + $0x244] sm:$0xf]  ;;  %347 = vst [vmem:[#allocation5 + $0x23c] sm:$0xff] %v346_v45   ;;  %v362_v51 = vld [vmem:[%s13235_s2 + $0x25c] sm:$0xff]  }
  0x3f   :  { %351 = vst [vmem:[#allocation5 + $0x244] sm:$0xf] %v350_v46  ;;  %353 = vst [vmem:[#allocation5 + $0x248] sm:$0xf] %v352_v47  ;;  %v358_v49 = vld [vmem:[%s13235_s2 + $0x258] sm:$0xf] }
  0x40   :  { %v360_v50 = vld [vmem:[%s13235_s2 + $0x254] sm:$0xf]  ;;  %355 = vst [vmem:[#allocation5 + $0x24c] sm:$0xff] %v354_v48   ;;  %359 = vst [vmem:[#allocation5 + $0x254] sm:$0xf] %v358_v49  ;;  %v370_v54 = vld [vmem:[%s13235_s2 + $0x26c] sm:$0xff]  }
  0x41   :  { %361 = vst [vmem:[#allocation5 + $0x258] sm:$0xf] %v360_v50  ;;  %v366_v52 = vld [vmem:[%s13235_s2 + $0x268] sm:$0xf]  ;;  %v368_v53 = vld [vmem:[%s13235_s2 + $0x264] sm:$0xf] }
  0x42   :  { %363 = vst [vmem:[#allocation5 + $0x25c] sm:$0xff] %v362_v51   ;;  %367 = vst [vmem:[#allocation5 + $0x264] sm:$0xf] %v366_v52  ;;  %v374_v55 = vld [vmem:[%s13235_s2 + $0x278] sm:$0xf]  ;;  %v378_v57 = vld [vmem:[%s13235_s2 + $0x27c] sm:$0xff]  }
  0x43   :  { %369 = vst [vmem:[#allocation5 + $0x268] sm:$0xf] %v368_v53  ;;  %v376_v56 = vld [vmem:[%s13235_s2 + $0x274] sm:$0xf]  ;;  %371 = vst [vmem:[#allocation5 + $0x26c] sm:$0xff] %v370_v54   ;;  %v386_v60 = vld [vmem:[%s13235_s2 + $0x28c] sm:$0xff]  }
  0x44   :  { %375 = vst [vmem:[#allocation5 + $0x274] sm:$0xf] %v374_v55  ;;  %377 = vst [vmem:[#allocation5 + $0x278] sm:$0xf] %v376_v56  ;;  %v382_v58 = vld [vmem:[%s13235_s2 + $0x288] sm:$0xf] }
  0x45   :  { %v384_v59 = vld [vmem:[%s13235_s2 + $0x284] sm:$0xf]  ;;  %379 = vst [vmem:[#allocation5 + $0x27c] sm:$0xff] %v378_v57   ;;  %383 = vst [vmem:[#allocation5 + $0x284] sm:$0xf] %v382_v58  ;;  %v394_v63 = vld [vmem:[%s13235_s2 + $0x29c] sm:$0xff]  }
  0x46   :  { %385 = vst [vmem:[#allocation5 + $0x288] sm:$0xf] %v384_v59  ;;  %v390_v61 = vld [vmem:[%s13235_s2 + $0x298] sm:$0xf]  ;;  %v392_v62 = vld [vmem:[%s13235_s2 + $0x294] sm:$0xf] }
  0x47   :  { %387 = vst [vmem:[#allocation5 + $0x28c] sm:$0xff] %v386_v60   ;;  %391 = vst [vmem:[#allocation5 + $0x294] sm:$0xf] %v390_v61  ;;  %v398_v0 = vld [vmem:[%s13235_s2 + $0x2a8] sm:$0xf]  ;;  %v402_v2 = vld [vmem:[%s13235_s2 + $0x2ac] sm:$0xff]  }
  0x48   :  { %393 = vst [vmem:[#allocation5 + $0x298] sm:$0xf] %v392_v62  ;;  %v400_v1 = vld [vmem:[%s13235_s2 + $0x2a4] sm:$0xf]  ;;  %395 = vst [vmem:[#allocation5 + $0x29c] sm:$0xff] %v394_v63   ;;  %v410_v5 = vld [vmem:[%s13235_s2 + $0x2bc] sm:$0xff]  }
  0x49   :  { %399 = vst [vmem:[#allocation5 + $0x2a4] sm:$0xf] %v398_v0  ;;  %401 = vst [vmem:[#allocation5 + $0x2a8] sm:$0xf] %v400_v1  ;;  %v406_v3 = vld [vmem:[%s13235_s2 + $0x2b8] sm:$0xf] }
  0x4a   :  { %v408_v4 = vld [vmem:[%s13235_s2 + $0x2b4] sm:$0xf]  ;;  %403 = vst [vmem:[#allocation5 + $0x2ac] sm:$0xff] %v402_v2   ;;  %407 = vst [vmem:[#allocation5 + $0x2b4] sm:$0xf] %v406_v3  ;;  %v418_v8 = vld [vmem:[%s13235_s2 + $0x2cc] sm:$0xff]  }
  0x4b   :  { %409 = vst [vmem:[#allocation5 + $0x2b8] sm:$0xf] %v408_v4  ;;  %v414_v6 = vld [vmem:[%s13235_s2 + $0x2c8] sm:$0xf]  ;;  %v416_v7 = vld [vmem:[%s13235_s2 + $0x2c4] sm:$0xf] }
  0x4c   :  { %411 = vst [vmem:[#allocation5 + $0x2bc] sm:$0xff] %v410_v5   ;;  %415 = vst [vmem:[#allocation5 + $0x2c4] sm:$0xf] %v414_v6  ;;  %v422_v9 = vld [vmem:[%s13235_s2 + $0x2d8] sm:$0xf]  ;;  %v426_v11 = vld [vmem:[%s13235_s2 + $0x2dc] sm:$0xff]  }
  0x4d   :  { %417 = vst [vmem:[#allocation5 + $0x2c8] sm:$0xf] %v416_v7  ;;  %v424_v10 = vld [vmem:[%s13235_s2 + $0x2d4] sm:$0xf]  ;;  %419 = vst [vmem:[#allocation5 + $0x2cc] sm:$0xff] %v418_v8   ;;  %v434_v14 = vld [vmem:[%s13235_s2 + $0x2ec] sm:$0xff]  }
  0x4e   :  { %423 = vst [vmem:[#allocation5 + $0x2d4] sm:$0xf] %v422_v9  ;;  %425 = vst [vmem:[#allocation5 + $0x2d8] sm:$0xf] %v424_v10  ;;  %v430_v12 = vld [vmem:[%s13235_s2 + $0x2e8] sm:$0xf] }
  0x4f   :  { %v432_v13 = vld [vmem:[%s13235_s2 + $0x2e4] sm:$0xf]  ;;  %427 = vst [vmem:[#allocation5 + $0x2dc] sm:$0xff] %v426_v11   ;;  %431 = vst [vmem:[#allocation5 + $0x2e4] sm:$0xf] %v430_v12  ;;  %v442_v17 = vld [vmem:[%s13235_s2 + $0x2fc] sm:$0xff]  }
  0x50   :  { %433 = vst [vmem:[#allocation5 + $0x2e8] sm:$0xf] %v432_v13  ;;  %v438_v15 = vld [vmem:[%s13235_s2 + $0x2f8] sm:$0xf]  ;;  %v440_v16 = vld [vmem:[%s13235_s2 + $0x2f4] sm:$0xf] }
  0x51   :  { %435 = vst [vmem:[#allocation5 + $0x2ec] sm:$0xff] %v434_v14   ;;  %439 = vst [vmem:[#allocation5 + $0x2f4] sm:$0xf] %v438_v15  ;;  %v446_v18 = vld [vmem:[%s13235_s2 + $0x308] sm:$0xf]  ;;  %v450_v20 = vld [vmem:[%s13235_s2 + $0x30c] sm:$0xff]  }
  0x52   :  { %441 = vst [vmem:[#allocation5 + $0x2f8] sm:$0xf] %v440_v16  ;;  %v448_v19 = vld [vmem:[%s13235_s2 + $0x304] sm:$0xf]  ;;  %443 = vst [vmem:[#allocation5 + $0x2fc] sm:$0xff] %v442_v17   ;;  %v458_v23 = vld [vmem:[%s13235_s2 + $0x31c] sm:$0xff]  }
  0x53   :  { %447 = vst [vmem:[#allocation5 + $0x304] sm:$0xf] %v446_v18  ;;  %449 = vst [vmem:[#allocation5 + $0x308] sm:$0xf] %v448_v19  ;;  %v454_v21 = vld [vmem:[%s13235_s2 + $0x318] sm:$0xf] }
  0x54   :  { %v456_v22 = vld [vmem:[%s13235_s2 + $0x314] sm:$0xf]  ;;  %451 = vst [vmem:[#allocation5 + $0x30c] sm:$0xff] %v450_v20   ;;  %455 = vst [vmem:[#allocation5 + $0x314] sm:$0xf] %v454_v21  ;;  %v466_v26 = vld [vmem:[%s13235_s2 + $0x32c] sm:$0xff]  }
  0x55   :  { %457 = vst [vmem:[#allocation5 + $0x318] sm:$0xf] %v456_v22  ;;  %v462_v24 = vld [vmem:[%s13235_s2 + $0x328] sm:$0xf]  ;;  %v464_v25 = vld [vmem:[%s13235_s2 + $0x324] sm:$0xf] }
  0x56   :  { %459 = vst [vmem:[#allocation5 + $0x31c] sm:$0xff] %v458_v23   ;;  %463 = vst [vmem:[#allocation5 + $0x324] sm:$0xf] %v462_v24  ;;  %v470_v27 = vld [vmem:[%s13235_s2 + $0x338] sm:$0xf]  ;;  %v474_v29 = vld [vmem:[%s13235_s2 + $0x33c] sm:$0xff]  }
  0x57   :  { %465 = vst [vmem:[#allocation5 + $0x328] sm:$0xf] %v464_v25  ;;  %v472_v28 = vld [vmem:[%s13235_s2 + $0x334] sm:$0xf]  ;;  %467 = vst [vmem:[#allocation5 + $0x32c] sm:$0xff] %v466_v26   ;;  %v482_v32 = vld [vmem:[%s13235_s2 + $0x34c] sm:$0xff]  }
  0x58   :  { %471 = vst [vmem:[#allocation5 + $0x334] sm:$0xf] %v470_v27  ;;  %473 = vst [vmem:[#allocation5 + $0x338] sm:$0xf] %v472_v28  ;;  %v478_v30 = vld [vmem:[%s13235_s2 + $0x348] sm:$0xf] }
  0x59   :  { %v480_v31 = vld [vmem:[%s13235_s2 + $0x344] sm:$0xf]  ;;  %475 = vst [vmem:[#allocation5 + $0x33c] sm:$0xff] %v474_v29   ;;  %479 = vst [vmem:[#allocation5 + $0x344] sm:$0xf] %v478_v30 }
  0x5a   :  { %481 = vst [vmem:[#allocation5 + $0x348] sm:$0xf] %v480_v31  ;;  %v486_v33 = vld [vmem:[%s13235_s2 + $0x358] sm:$0xf]  ;;  %v488_v34 = vld [vmem:[%s13235_s2 + $0x354] sm:$0xf] }
  0x5b   :  { %483 = vst [vmem:[#allocation5 + $0x34c] sm:$0xff] %v482_v32   ;;  %487 = vst [vmem:[#allocation5 + $0x354] sm:$0xf] %v486_v33  ;;  %v490_v35 = vld [vmem:[%s13235_s2 + $0x35c] sm:$0xf] }
  0x5c   :  { %489 = vst [vmem:[#allocation5 + $0x358] sm:$0xf] %v488_v34  ;;  %491 = vst [vmem:[#allocation5 + $0x35c] sm:$0xf] %v490_v35 }
  0x5d   :  { %954 = vsyncadd [#allocation10], 13824  ;;  %v9892_v36 = vld [vmem:[%s13222_s3] sm:$0xff]  ;;  %v9897_v37 = vld [vmem:[%s13222_s3 + $0x8] sm:$0xff] }
  0x5e   :  { %13401 = vst [vmem:[#allocation22_spill] sm:$0xff] %v9892_v36  ;;  %13402 = vst [vmem:[#allocation23_spill] sm:$0xff] %v9897_v37  ;;  %v9902_v38 = vld [vmem:[%s13222_s3 + $0x10] sm:$0xff]  ;;  %v9907_v39 = vld [vmem:[%s13222_s3 + $0x18] sm:$0xff] }
  0x5f   :  { %13403 = vst [vmem:[#allocation24_spill] sm:$0xff] %v9902_v38  ;;  %13404 = vst [vmem:[#allocation25_spill] sm:$0xff] %v9907_v39  ;;  %v9912_v40 = vld [vmem:[%s13222_s3 + $0x20] sm:$0xff]  ;;  %v9917_v41 = vld [vmem:[%s13222_s3 + $0x28] sm:$0xff] }
  0x60   :  { %13405 = vst [vmem:[#allocation26_spill] sm:$0xff] %v9912_v40  ;;  %13406 = vst [vmem:[#allocation27_spill] sm:$0xff] %v9917_v41  ;;  %v9922_v42 = vld [vmem:[%s13222_s3 + $0x30] sm:$0xff]  ;;  %v9927_v43 = vld [vmem:[%s13222_s3 + $0x38] sm:$0xff] }
  0x61   :  { %13407 = vst [vmem:[#allocation28_spill] sm:$0xff] %v9922_v42  ;;  %13408 = vst [vmem:[#allocation29_spill] sm:$0xff] %v9927_v43  ;;  %v9932_v44 = vld [vmem:[%s13222_s3 + $0x40] sm:$0xff]  ;;  %v9937_v45 = vld [vmem:[%s13222_s3 + $0x48] sm:$0xff] }
  0x62   :  { %13409 = vst [vmem:[#allocation30_spill] sm:$0xff] %v9932_v44  ;;  %13410 = vst [vmem:[#allocation31_spill] sm:$0xff] %v9937_v45  ;;  %v9942_v46 = vld [vmem:[%s13222_s3 + $0x50] sm:$0xff]  ;;  %v9947_v47 = vld [vmem:[%s13222_s3 + $0x58] sm:$0xff] }
  0x63   :  { %13411 = vst [vmem:[#allocation32_spill] sm:$0xff] %v9942_v46  ;;  %13412 = vst [vmem:[#allocation33_spill] sm:$0xff] %v9947_v47  ;;  %v9952_v48 = vld [vmem:[%s13222_s3 + $0x60] sm:$0xff]  ;;  %v9957_v49 = vld [vmem:[%s13222_s3 + $0x68] sm:$0xff] }
  0x64   :  { %13413 = vst [vmem:[#allocation34_spill] sm:$0xff] %v9952_v48  ;;  %13414 = vst [vmem:[#allocation35_spill] sm:$0xff] %v9957_v49  ;;  %v9962_v50 = vld [vmem:[%s13222_s3 + $0x70] sm:$0xff]  ;;  %v9967_v51 = vld [vmem:[%s13222_s3 + $0x78] sm:$0xff] }
  0x65   :  { %13415 = vst [vmem:[#allocation36_spill] sm:$0xff] %v9962_v50  ;;  %13416 = vst [vmem:[#allocation37_spill] sm:$0xff] %v9967_v51  ;;  %v9972_v52 = vld [vmem:[%s13222_s3 + $0x80] sm:$0xff]  ;;  %v9977_v53 = vld [vmem:[%s13222_s3 + $0x88] sm:$0xff] }
  0x66   :  { %13417 = vst [vmem:[#allocation38_spill] sm:$0xff] %v9972_v52  ;;  %13418 = vst [vmem:[#allocation39_spill] sm:$0xff] %v9977_v53  ;;  %v9982_v54 = vld [vmem:[%s13222_s3 + $0x90] sm:$0xff]  ;;  %v9987_v55 = vld [vmem:[%s13222_s3 + $0x98] sm:$0xff] }
  0x67   :  { %13419 = vst [vmem:[#allocation40_spill] sm:$0xff] %v9982_v54  ;;  %13420 = vst [vmem:[#allocation41_spill] sm:$0xff] %v9987_v55  ;;  %v9992_v56 = vld [vmem:[%s13222_s3 + $0xa0] sm:$0xff]  ;;  %v9997_v57 = vld [vmem:[%s13222_s3 + $0xa8] sm:$0xff] }
  0x68   :  { %13421 = vst [vmem:[#allocation42_spill] sm:$0xff] %v9992_v56  ;;  %13422 = vst [vmem:[#allocation43_spill] sm:$0xff] %v9997_v57  ;;  %v10002_v58 = vld [vmem:[%s13222_s3 + $0xb0] sm:$0xff]  ;;  %v10007_v59 = vld [vmem:[%s13222_s3 + $0xb8] sm:$0xff] }
  0x69   :  { %13423 = vst [vmem:[#allocation44_spill] sm:$0xff] %v10002_v58  ;;  %13424 = vst [vmem:[#allocation45_spill] sm:$0xff] %v10007_v59  ;;  %v10012_v60 = vld [vmem:[%s13222_s3 + $0xc0] sm:$0xff]  ;;  %v10017_v61 = vld [vmem:[%s13222_s3 + $0xc8] sm:$0xff] }
  0x6a   :  { %13425 = vst [vmem:[#allocation46_spill] sm:$0xff] %v10012_v60  ;;  %13426 = vst [vmem:[#allocation47_spill] sm:$0xff] %v10017_v61  ;;  %v10022_v62 = vld [vmem:[%s13222_s3 + $0xd0] sm:$0xff]  ;;  %v10027_v63 = vld [vmem:[%s13222_s3 + $0xd8] sm:$0xff] }
  0x6b   :  { %13427 = vst [vmem:[#allocation48_spill] sm:$0xff] %v10022_v62  ;;  %13428 = vst [vmem:[#allocation49_spill] sm:$0xff] %v10027_v63  ;;  %v10032_v0 = vld [vmem:[%s13222_s3 + $0xe0] sm:$0xff]  ;;  %v10037_v1 = vld [vmem:[%s13222_s3 + $0xe8] sm:$0xff] }
  0x6c   :  { %13429 = vst [vmem:[#allocation50_spill] sm:$0xff] %v10032_v0  ;;  %13430 = vst [vmem:[#allocation51_spill] sm:$0xff] %v10037_v1  ;;  %v10042_v2 = vld [vmem:[%s13222_s3 + $0xf0] sm:$0xff]  ;;  %v10047_v3 = vld [vmem:[%s13222_s3 + $0xf8] sm:$0xff] }
  0x6d   :  { %13431 = vst [vmem:[#allocation52_spill] sm:$0xff] %v10042_v2  ;;  %13432 = vst [vmem:[#allocation53_spill] sm:$0xff] %v10047_v3  ;;  %v10052_v4 = vld [vmem:[%s13222_s3 + $0x100] sm:$0xff]  ;;  %v10057_v5 = vld [vmem:[%s13222_s3 + $0x108] sm:$0xff] }
  0x6e   :  { %13433 = vst [vmem:[#allocation54_spill] sm:$0xff] %v10052_v4  ;;  %13434 = vst [vmem:[#allocation55_spill] sm:$0xff] %v10057_v5  ;;  %v10062_v6 = vld [vmem:[%s13222_s3 + $0x110] sm:$0xff]  ;;  %v10067_v7 = vld [vmem:[%s13222_s3 + $0x118] sm:$0xff] }
  0x6f   :  { %13435 = vst [vmem:[#allocation56_spill] sm:$0xff] %v10062_v6  ;;  %13436 = vst [vmem:[#allocation57_spill] sm:$0xff] %v10067_v7  ;;  %v10072_v8 = vld [vmem:[%s13222_s3 + $0x120] sm:$0xff]  ;;  %v10077_v9 = vld [vmem:[%s13222_s3 + $0x128] sm:$0xff] }
  0x70   :  { %13437 = vst [vmem:[#allocation58_spill] sm:$0xff] %v10072_v8  ;;  %13438 = vst [vmem:[#allocation59_spill] sm:$0xff] %v10077_v9  ;;  %v10082_v10 = vld [vmem:[%s13222_s3 + $0x130] sm:$0xff]  ;;  %v10087_v11 = vld [vmem:[%s13222_s3 + $0x138] sm:$0xff] }
  0x71   :  { %13439 = vst [vmem:[#allocation60_spill] sm:$0xff] %v10082_v10  ;;  %13440 = vst [vmem:[#allocation61_spill] sm:$0xff] %v10087_v11  ;;  %v10092_v12 = vld [vmem:[%s13222_s3 + $0x140] sm:$0xff]  ;;  %v10097_v13 = vld [vmem:[%s13222_s3 + $0x148] sm:$0xff] }
  0x72   :  { %13441 = vst [vmem:[#allocation62_spill] sm:$0xff] %v10092_v12  ;;  %13442 = vst [vmem:[#allocation63_spill] sm:$0xff] %v10097_v13  ;;  %v10102_v14 = vld [vmem:[%s13222_s3 + $0x150] sm:$0xff]  ;;  %v10107_v15 = vld [vmem:[%s13222_s3 + $0x158] sm:$0xff] }
  0x73   :  { %13443 = vst [vmem:[#allocation64_spill] sm:$0xff] %v10102_v14  ;;  %13444 = vst [vmem:[#allocation65_spill] sm:$0xff] %v10107_v15  ;;  %v10112_v16 = vld [vmem:[%s13222_s3 + $0x160] sm:$0xff]  ;;  %v10117_v17 = vld [vmem:[%s13222_s3 + $0x168] sm:$0xff] }
  0x74   :  { %13445 = vst [vmem:[#allocation66_spill] sm:$0xff] %v10112_v16  ;;  %13446 = vst [vmem:[#allocation67_spill] sm:$0xff] %v10117_v17  ;;  %v10122_v18 = vld [vmem:[%s13222_s3 + $0x170] sm:$0xff]  ;;  %v10127_v19 = vld [vmem:[%s13222_s3 + $0x178] sm:$0xff] }
  0x75   :  { %13447 = vst [vmem:[#allocation68_spill] sm:$0xff] %v10122_v18  ;;  %13448 = vst [vmem:[#allocation69_spill] sm:$0xff] %v10127_v19  ;;  %v10132_v20 = vld [vmem:[%s13222_s3 + $0x180] sm:$0xff]  ;;  %v10137_v21 = vld [vmem:[%s13222_s3 + $0x188] sm:$0xff] }
  0x76   :  { %13449 = vst [vmem:[#allocation70_spill] sm:$0xff] %v10132_v20  ;;  %13450 = vst [vmem:[#allocation71_spill] sm:$0xff] %v10137_v21  ;;  %v10142_v22 = vld [vmem:[%s13222_s3 + $0x190] sm:$0xff]  ;;  %v10147_v23 = vld [vmem:[%s13222_s3 + $0x198] sm:$0xff] }
  0x77   :  { %13451 = vst [vmem:[#allocation72_spill] sm:$0xff] %v10142_v22  ;;  %13452 = vst [vmem:[#allocation73_spill] sm:$0xff] %v10147_v23  ;;  %v10152_v24 = vld [vmem:[%s13222_s3 + $0x1a0] sm:$0xff]  ;;  %v10157_v25 = vld [vmem:[%s13222_s3 + $0x1a8] sm:$0xff] }
  0x78   :  { %13453 = vst [vmem:[#allocation74_spill] sm:$0xff] %v10152_v24  ;;  %13454 = vst [vmem:[#allocation75_spill] sm:$0xff] %v10157_v25  ;;  %v10162_v26 = vld [vmem:[%s13222_s3 + $0x1b0] sm:$0xff]  ;;  %v10167_v27 = vld [vmem:[%s13222_s3 + $0x1b8] sm:$0xff] }
  0x79   :  { %13455 = vst [vmem:[#allocation76_spill] sm:$0xff] %v10162_v26  ;;  %13456 = vst [vmem:[#allocation77_spill] sm:$0xff] %v10167_v27  ;;  %v10172_v28 = vld [vmem:[%s13222_s3 + $0x1c0] sm:$0xff]  ;;  %v10177_v29 = vld [vmem:[%s13222_s3 + $0x1c8] sm:$0xff] }
  0x7a   :  { %13457 = vst [vmem:[#allocation78_spill] sm:$0xff] %v10172_v28  ;;  %13458 = vst [vmem:[#allocation79_spill] sm:$0xff] %v10177_v29  ;;  %v10182_v30 = vld [vmem:[%s13222_s3 + $0x1d0] sm:$0xff]  ;;  %v10187_v31 = vld [vmem:[%s13222_s3 + $0x1d8] sm:$0xff] }
  0x7b   :  { %13459 = vst [vmem:[#allocation80_spill] sm:$0xff] %v10182_v30  ;;  %13460 = vst [vmem:[#allocation81_spill] sm:$0xff] %v10187_v31 }
  0x7c   :  { %1115 = vsyncadd [#allocation10 + $0x1], 7680  ;;  %v10192_v32 = vld [vmem:[%s13223_s4] sm:$0xff]  ;;  %v10197_v33 = vld [vmem:[%s13223_s4 + $0x8] sm:$0xff] }
  0x7d   :  { %13461 = vst [vmem:[#allocation82_spill] sm:$0xff] %v10192_v32  ;;  %13462 = vst [vmem:[#allocation83_spill] sm:$0xff] %v10197_v33  ;;  %v10202_v34 = vld [vmem:[%s13223_s4 + $0x10] sm:$0xff]  ;;  %v10207_v35 = vld [vmem:[%s13223_s4 + $0x18] sm:$0xff] }
  0x7e   :  { %13463 = vst [vmem:[#allocation84_spill] sm:$0xff] %v10202_v34  ;;  %13464 = vst [vmem:[#allocation85_spill] sm:$0xff] %v10207_v35  ;;  %v10212_v31 = vld [vmem:[%s13223_s4 + $0x20] sm:$0xff]  ;;  %v10217_v32 = vld [vmem:[%s13223_s4 + $0x28] sm:$0xff] }
  0x7f   :  { %13465 = vst [vmem:[#allocation86_spill] sm:$0xff] %v10212_v31  ;;  %13466 = vst [vmem:[#allocation87_spill] sm:$0xff] %v10217_v32  ;;  %v10222_v33 = vld [vmem:[%s13223_s4 + $0x30] sm:$0xff]  ;;  %v10227_v34 = vld [vmem:[%s13223_s4 + $0x38] sm:$0xff] }
  0x80   :  { %13467 = vst [vmem:[#allocation88_spill] sm:$0xff] %v10222_v33  ;;  %13468 = vst [vmem:[#allocation89_spill] sm:$0xff] %v10227_v34  ;;  %v10232_v35 = vld [vmem:[%s13223_s4 + $0x40] sm:$0xff]  ;;  %v10237_v31 = vld [vmem:[%s13223_s4 + $0x48] sm:$0xff] }
  0x81   :  { %13469 = vst [vmem:[#allocation90_spill] sm:$0xff] %v10232_v35  ;;  %13470 = vst [vmem:[#allocation91_spill] sm:$0xff] %v10237_v31  ;;  %v10242_v32 = vld [vmem:[%s13223_s4 + $0x50] sm:$0xff]  ;;  %v10247_v33 = vld [vmem:[%s13223_s4 + $0x58] sm:$0xff] }
  0x82   :  { %13471 = vst [vmem:[#allocation92_spill] sm:$0xff] %v10242_v32  ;;  %13472 = vst [vmem:[#allocation93_spill] sm:$0xff] %v10247_v33  ;;  %v10252_v34 = vld [vmem:[%s13223_s4 + $0x60] sm:$0xff]  ;;  %v10257_v35 = vld [vmem:[%s13223_s4 + $0x68] sm:$0xff] }
  0x83   :  { %13473 = vst [vmem:[#allocation94_spill] sm:$0xff] %v10252_v34  ;;  %13474 = vst [vmem:[#allocation95_spill] sm:$0xff] %v10257_v35  ;;  %v10262_v31 = vld [vmem:[%s13223_s4 + $0x70] sm:$0xff]  ;;  %v10267_v32 = vld [vmem:[%s13223_s4 + $0x78] sm:$0xff] }
  0x84   :  { %13475 = vst [vmem:[#allocation96_spill] sm:$0xff] %v10262_v31  ;;  %13476 = vst [vmem:[#allocation97_spill] sm:$0xff] %v10267_v32  ;;  %v10272_v33 = vld [vmem:[%s13223_s4 + $0x80] sm:$0xff]  ;;  %v10277_v34 = vld [vmem:[%s13223_s4 + $0x88] sm:$0xff] }
  0x85   :  { %13477 = vst [vmem:[#allocation98_spill] sm:$0xff] %v10272_v33  ;;  %13478 = vst [vmem:[#allocation99_spill] sm:$0xff] %v10277_v34  ;;  %v10282_v35 = vld [vmem:[%s13223_s4 + $0x90] sm:$0xff]  ;;  %v10287_v31 = vld [vmem:[%s13223_s4 + $0x98] sm:$0xff] }
  0x86   :  { %13479 = vst [vmem:[#allocation100_spill] sm:$0xff] %v10282_v35  ;;  %13480 = vst [vmem:[#allocation101_spill] sm:$0xff] %v10287_v31  ;;  %v10292_v32 = vld [vmem:[%s13223_s4 + $0xa0] sm:$0xff]  ;;  %v10297_v33 = vld [vmem:[%s13223_s4 + $0xa8] sm:$0xff] }
  0x87   :  { %13481 = vst [vmem:[#allocation102_spill] sm:$0xff] %v10292_v32  ;;  %13482 = vst [vmem:[#allocation103_spill] sm:$0xff] %v10297_v33  ;;  %v10302_v34 = vld [vmem:[%s13223_s4 + $0xb0] sm:$0xff]  ;;  %v10307_v35 = vld [vmem:[%s13223_s4 + $0xb8] sm:$0xff] }
  0x88   :  { %13483 = vst [vmem:[#allocation104_spill] sm:$0xff] %v10302_v34  ;;  %13484 = vst [vmem:[#allocation105_spill] sm:$0xff] %v10307_v35  ;;  %v10312_v31 = vld [vmem:[%s13223_s4 + $0xc0] sm:$0xff]  ;;  %v10317_v32 = vld [vmem:[%s13223_s4 + $0xc8] sm:$0xff] }
  0x89   :  { %13485 = vst [vmem:[#allocation106_spill] sm:$0xff] %v10312_v31  ;;  %13486 = vst [vmem:[#allocation107_spill] sm:$0xff] %v10317_v32  ;;  %v10322_v33 = vld [vmem:[%s13223_s4 + $0xd0] sm:$0xff]  ;;  %v10327_v34 = vld [vmem:[%s13223_s4 + $0xd8] sm:$0xff] }
  0x8a   :  { %13487 = vst [vmem:[#allocation108_spill] sm:$0xff] %v10322_v33  ;;  %13488 = vst [vmem:[#allocation109_spill] sm:$0xff] %v10327_v34  ;;  %v10332_v35 = vld [vmem:[%s13223_s4 + $0xe0] sm:$0xff]  ;;  %v10337_v31 = vld [vmem:[%s13223_s4 + $0xe8] sm:$0xff] }
  0x8b   :  { %13489 = vst [vmem:[#allocation110_spill] sm:$0xff] %v10332_v35  ;;  %13490 = vst [vmem:[#allocation111_spill] sm:$0xff] %v10337_v31  ;;  %v10342_v32 = vld [vmem:[%s13223_s4 + $0xf0] sm:$0xff]  ;;  %v10347_v33 = vld [vmem:[%s13223_s4 + $0xf8] sm:$0xff] }
  0x8c   :  { %13491 = vst [vmem:[#allocation112_spill] sm:$0xff] %v10342_v32  ;;  %13492 = vst [vmem:[#allocation113_spill] sm:$0xff] %v10347_v33  ;;  %v10352_v34 = vld [vmem:[%s13223_s4 + $0x100] sm:$0xff]  ;;  %v10357_v35 = vld [vmem:[%s13223_s4 + $0x108] sm:$0xff] }
  0x8d   :  { %13493 = vst [vmem:[#allocation114_spill] sm:$0xff] %v10352_v34  ;;  %13494 = vst [vmem:[#allocation115_spill] sm:$0xff] %v10357_v35  ;;  %v10362_v31 = vld [vmem:[%s13223_s4 + $0x110] sm:$0xff]  ;;  %v10367_v32 = vld [vmem:[%s13223_s4 + $0x118] sm:$0xff] }
  0x8e   :  { %13495 = vst [vmem:[#allocation116_spill] sm:$0xff] %v10362_v31  ;;  %13496 = vst [vmem:[#allocation117_spill] sm:$0xff] %v10367_v32 }
  0x8f   :  { %1228 = vsyncadd [#allocation10 + $0x2], 4608  ;;  %v10372_v33 = vld [vmem:[%s13224_s5] sm:$0xff]  ;;  %v10377_v35 = vld [vmem:[%s13224_s5 + $0x8] sm:$0xff] }
  0x90   :  { %13497 = vst [vmem:[#allocation118_spill] sm:$0xff] %v10372_v33  ;;  %13498 = vst [vmem:[#allocation119_spill] sm:$0xff] %v10377_v35  ;;  %v10382_v31 = vld [vmem:[%s13224_s5 + $0x10] sm:$0xff]  ;;  %v10387_v32 = vld [vmem:[%s13224_s5 + $0x18] sm:$0xff] }
  0x91   :  { %13499 = vst [vmem:[#allocation120_spill] sm:$0xff] %v10382_v31  ;;  %13500 = vst [vmem:[#allocation121_spill] sm:$0xff] %v10387_v32  ;;  %v10392_v34 = vld [vmem:[%s13224_s5 + $0x20] sm:$0xff]  ;;  %v10397_v33 = vld [vmem:[%s13224_s5 + $0x28] sm:$0xff] }
  0x92   :  { %13501 = vst [vmem:[#allocation122_spill] sm:$0xff] %v10392_v34  ;;  %13502 = vst [vmem:[#allocation123_spill] sm:$0xff] %v10397_v33  ;;  %v10402_v35 = vld [vmem:[%s13224_s5 + $0x30] sm:$0xff]  ;;  %v10407_v31 = vld [vmem:[%s13224_s5 + $0x38] sm:$0xff] }
  0x93   :  { %13503 = vst [vmem:[#allocation124_spill] sm:$0xff] %v10402_v35  ;;  %13504 = vst [vmem:[#allocation125_spill] sm:$0xff] %v10407_v31  ;;  %v10412_v32 = vld [vmem:[%s13224_s5 + $0x40] sm:$0xff]  ;;  %v10417_v34 = vld [vmem:[%s13224_s5 + $0x48] sm:$0xff] }
  0x94   :  { %13505 = vst [vmem:[#allocation126_spill] sm:$0xff] %v10412_v32  ;;  %13506 = vst [vmem:[#allocation127_spill] sm:$0xff] %v10417_v34  ;;  %v10422_v33 = vld [vmem:[%s13224_s5 + $0x50] sm:$0xff]  ;;  %v10427_v35 = vld [vmem:[%s13224_s5 + $0x58] sm:$0xff] }
  0x95   :  { %13507 = vst [vmem:[#allocation128_spill] sm:$0xff] %v10422_v33  ;;  %13508 = vst [vmem:[#allocation129_spill] sm:$0xff] %v10427_v35  ;;  %v10432_v31 = vld [vmem:[%s13224_s5 + $0x60] sm:$0xff]  ;;  %v10437_v32 = vld [vmem:[%s13224_s5 + $0x68] sm:$0xff] }
  0x96   :  { %13509 = vst [vmem:[#allocation130_spill] sm:$0xff] %v10432_v31  ;;  %13510 = vst [vmem:[#allocation131_spill] sm:$0xff] %v10437_v32  ;;  %v10442_v34 = vld [vmem:[%s13224_s5 + $0x70] sm:$0xff]  ;;  %v10447_v33 = vld [vmem:[%s13224_s5 + $0x78] sm:$0xff] }
  0x97   :  { %13511 = vst [vmem:[#allocation132_spill] sm:$0xff] %v10442_v34  ;;  %13512 = vst [vmem:[#allocation133_spill] sm:$0xff] %v10447_v33  ;;  %v10452_v35 = vld [vmem:[%s13224_s5 + $0x80] sm:$0xff]  ;;  %v10457_v31 = vld [vmem:[%s13224_s5 + $0x88] sm:$0xff] }
  0x98   :  { %13513 = vst [vmem:[#allocation134_spill] sm:$0xff] %v10452_v35  ;;  %13514 = vst [vmem:[#allocation135_spill] sm:$0xff] %v10457_v31  ;;  %v10462_v32 = vld [vmem:[%s13224_s5 + $0x90] sm:$0xff]  ;;  %v10467_v34 = vld [vmem:[%s13224_s5 + $0x98] sm:$0xff] }
  0x99   :  { %13515 = vst [vmem:[#allocation136_spill] sm:$0xff] %v10462_v32  ;;  %13516 = vst [vmem:[#allocation137_spill] sm:$0xff] %v10467_v34  ;;  %v10472_v33 = vld [vmem:[%s13224_s5 + $0xa0] sm:$0xff]  ;;  %v10477_v35 = vld [vmem:[%s13224_s5 + $0xa8] sm:$0xff] }
  0x9a   :  { %13517 = vst [vmem:[#allocation138_spill] sm:$0xff] %v10472_v33  ;;  %13518 = vst [vmem:[#allocation139_spill] sm:$0xff] %v10477_v35  ;;  %v10482_v31 = vld [vmem:[%s13224_s5 + $0xb0] sm:$0xff]  ;;  %v10487_v32 = vld [vmem:[%s13224_s5 + $0xb8] sm:$0xff] }
  0x9b   :  { %13519 = vst [vmem:[#allocation140_spill] sm:$0xff] %v10482_v31  ;;  %13520 = vst [vmem:[#allocation141_spill] sm:$0xff] %v10487_v32  ;;  %v10492_v34 = vld [vmem:[%s13224_s5 + $0xc0] sm:$0xff]  ;;  %v10497_v33 = vld [vmem:[%s13224_s5 + $0xc8] sm:$0xff] }
  0x9c   :  { %13521 = vst [vmem:[#allocation142_spill] sm:$0xff] %v10492_v34  ;;  %13522 = vst [vmem:[#allocation143_spill] sm:$0xff] %v10497_v33  ;;  %v10502_v35 = vld [vmem:[%s13224_s5 + $0xd0] sm:$0xff]  ;;  %v10507_v31 = vld [vmem:[%s13224_s5 + $0xd8] sm:$0xff] }
  0x9d   :  { %13523 = vst [vmem:[#allocation144_spill] sm:$0xff] %v10502_v35  ;;  %13524 = vst [vmem:[#allocation145_spill] sm:$0xff] %v10507_v31  ;;  %v10512_v32 = vld [vmem:[%s13224_s5 + $0xe0] sm:$0xff]  ;;  %v10517_v34 = vld [vmem:[%s13224_s5 + $0xe8] sm:$0xff] }
  0x9e   :  { %13525 = vst [vmem:[#allocation146_spill] sm:$0xff] %v10512_v32  ;;  %13526 = vst [vmem:[#allocation147_spill] sm:$0xff] %v10517_v34  ;;  %v10522_v33 = vld [vmem:[%s13224_s5 + $0xf0] sm:$0xff]  ;;  %v10527_v35 = vld [vmem:[%s13224_s5 + $0xf8] sm:$0xff] }
  0x9f   :  { %13527 = vst [vmem:[#allocation148_spill] sm:$0xff] %v10522_v33  ;;  %13528 = vst [vmem:[#allocation149_spill] sm:$0xff] %v10527_v35 }
  0xa0   :  { %1333 = vsyncadd [#allocation10 + $0x3], 4096  ;;  %v1352_v32 = vld [vmem:[%s13225_s6] sm:$0xf]  ;;  %v1354_v31 = vld [vmem:[%s13225_s6 + $0x8] sm:$0xf] }
  0xa1   :  { %1353 = vst [vmem:[#allocation9] sm:$0xf] %v1352_v32  ;;  %1355 = vst [vmem:[#allocation9 + $0x4] sm:$0xf] %v1354_v31  ;;  %v1356_v33 = vld [vmem:[%s13225_s6 + $0x4] sm:$0xf] }
  0xa2   :  { %v1358_v34 = vld [vmem:[%s13225_s6 + $0xc] sm:$0xff]   ;;  %v1362_v35 = vld [vmem:[%s13225_s6 + $0x18] sm:$0xf]  ;;  %1357 = vst [vmem:[#allocation9 + $0x8] sm:$0xf] %v1356_v33  ;;  %v1366_v31 = vld [vmem:[%s13225_s6 + $0x1c] sm:$0xff]  }
  0xa3   :  { %1359 = vst [vmem:[#allocation9 + $0xc] sm:$0xff] %v1358_v34   ;;  %1363 = vst [vmem:[#allocation9 + $0x14] sm:$0xf] %v1362_v35  ;;  %v1364_v32 = vld [vmem:[%s13225_s6 + $0x14] sm:$0xf]  ;;  %v1374_v34 = vld [vmem:[%s13225_s6 + $0x2c] sm:$0xff]  }
  0xa4   :  { %v1370_v30 = vld [vmem:[%s13225_s6 + $0x28] sm:$0xf]  ;;  %1365 = vst [vmem:[#allocation9 + $0x18] sm:$0xf] %v1364_v32  ;;  %1367 = vst [vmem:[#allocation9 + $0x1c] sm:$0xff] %v1366_v31  }
  0xa5   :  { %1371 = vst [vmem:[#allocation9 + $0x24] sm:$0xf] %v1370_v30  ;;  %v1372_v33 = vld [vmem:[%s13225_s6 + $0x24] sm:$0xf]  ;;  %v1378_v35 = vld [vmem:[%s13225_s6 + $0x38] sm:$0xf] }
  0xa6   :  { %1373 = vst [vmem:[#allocation9 + $0x28] sm:$0xf] %v1372_v33  ;;  %1375 = vst [vmem:[#allocation9 + $0x2c] sm:$0xff] %v1374_v34   ;;  %v1380_v32 = vld [vmem:[%s13225_s6 + $0x34] sm:$0xf]  ;;  %v1382_v30 = vld [vmem:[%s13225_s6 + $0x3c] sm:$0xff]  }
  0xa7   :  { %1379 = vst [vmem:[#allocation9 + $0x34] sm:$0xf] %v1378_v35  ;;  %v1386_v31 = vld [vmem:[%s13225_s6 + $0x48] sm:$0xf]  ;;  %1381 = vst [vmem:[#allocation9 + $0x38] sm:$0xf] %v1380_v32 }
  0xa8   :  { %1383 = vst [vmem:[#allocation9 + $0x3c] sm:$0xff] %v1382_v30   ;;  %1387 = vst [vmem:[#allocation9 + $0x44] sm:$0xf] %v1386_v31  ;;  %v1388_v33 = vld [vmem:[%s13225_s6 + $0x44] sm:$0xf]  ;;  %v1390_v34 = vld [vmem:[%s13225_s6 + $0x4c] sm:$0xff]  }
  0xa9   :  { %v1394_v35 = vld [vmem:[%s13225_s6 + $0x58] sm:$0xf]  ;;  %1389 = vst [vmem:[#allocation9 + $0x48] sm:$0xf] %v1388_v33  ;;  %1391 = vst [vmem:[#allocation9 + $0x4c] sm:$0xff] %v1390_v34   ;;  %v1398_v30 = vld [vmem:[%s13225_s6 + $0x5c] sm:$0xff]  }
  0xaa   :  { %1395 = vst [vmem:[#allocation9 + $0x54] sm:$0xf] %v1394_v35  ;;  %v1396_v32 = vld [vmem:[%s13225_s6 + $0x54] sm:$0xf]  ;;  %v1402_v31 = vld [vmem:[%s13225_s6 + $0x68] sm:$0xf] }
  0xab   :  { %1397 = vst [vmem:[#allocation9 + $0x58] sm:$0xf] %v1396_v32  ;;  %1399 = vst [vmem:[#allocation9 + $0x5c] sm:$0xff] %v1398_v30   ;;  %v1404_v33 = vld [vmem:[%s13225_s6 + $0x64] sm:$0xf]  ;;  %v1406_v34 = vld [vmem:[%s13225_s6 + $0x6c] sm:$0xff]  }
  0xac   :  { %1403 = vst [vmem:[#allocation9 + $0x64] sm:$0xf] %v1402_v31  ;;  %v1410_v35 = vld [vmem:[%s13225_s6 + $0x78] sm:$0xf]  ;;  %1405 = vst [vmem:[#allocation9 + $0x68] sm:$0xf] %v1404_v33 }
  0xad   :  { %1407 = vst [vmem:[#allocation9 + $0x6c] sm:$0xff] %v1406_v34   ;;  %1411 = vst [vmem:[#allocation9 + $0x74] sm:$0xf] %v1410_v35  ;;  %v1412_v32 = vld [vmem:[%s13225_s6 + $0x74] sm:$0xf] }
  0xae   :  { %v1414_v30 = vld [vmem:[%s13225_s6 + $0x7c] sm:$0xf]  ;;  %1413 = vst [vmem:[#allocation9 + $0x78] sm:$0xf] %v1412_v32 }
  0xaf   :  { %1415 = vst [vmem:[#allocation9 + $0x7c] sm:$0xf] %v1414_v30 }
  0xb0   :  { %1510 = vsyncadd [#allocation10 + $0x4], 2048  ;;  %vm1658_vm0 = vcmask 1040384   ;;  %v9098_v31 = vld [vmem:[%s13221_s1 + $0x3c] ss:$8 sps:$4 sm:$0xff]   ;;  %vm1659_vm1 = vcmask 1041408  }
  0xb1   :  { %v9100_v33 = vld [vmem:[%s13220_s0 + $0x44] sm:$0xff]   ;;  %v9101_v34 = vld [vmem:[%s13221_s1 + $0x38] ss:$8 sps:$4 sm:$0xff]   ;;  %1668 = vmatprep.subr.bf16.mxu0 %v9098_v31  ;;  %v9102_v35 = vld [vmem:[%s13221_s1 + $0x4c] ss:$8 sps:$4 sm:$0xff]   ;;  %v9308_v30 = vmov 65535   ;;  %2313 = vmatprep.subr.bf16.mxu1 %v9098_v31 }
  0xb2   :  { %v9104_v32 = vld [vmem:[%s13221_s1 + $0x48] ss:$8 sps:$4 sm:$0xff]   ;;  %v1660_v29 = vsel %vm1658_vm0, 4294967295, %v9308_v30  ;;  %s9309_s17 = smov 80   ;;  %1669 = vmatpush1.bf16.msra.mxu0 %v9101_v34  ;;  %v9105_v28 = vld [vmem:[%s13221_s1 + $0x5c] ss:$8 sps:$4 sm:$0xff]   ;;  %2314 = vmatpush1.bf16.msra.mxu1 %v9101_v34 }
  0xb3   :  { %2273 = vrot.lane.b32.xlu0 %v9100_v33, %s9309_s17  ;;  %1670 = vmatprep.subr.bf16.mxu0 %v9102_v35  ;;  %v10626_v19 = vld [vmem:[%s13220_s0 + $0x4c] sm:$0xff]   ;;  %v10628_v43 = vsel %vm1659_vm1, %v1660_v29, 0  ;;  %v13282_v27 = vmov 0   ;;  %v9108_v31 = vld [vmem:[%s13221_s1 + $0x58] ss:$8 sps:$4 sm:$0xff]   ;;  %vm1633_vm2 = vcmask 416768  }
  0xb4   :  { %1700 = vmatprep.mubr.bf16.mxu0 %v13282_v27  ;;  %v8082_v30 = vld [vmem:[%s13221_s1 + $0x68] sm:$0x33]  ;;  %2345 = vmatprep.mubr.bf16.mxu1 %v13282_v27  ;;  %v10641_v29 = vld [vmem:[%s13220_s0 + $0x54] sm:$0xff]   ;;  %v10648_v42 = vld [vmem:[%s13220_s0 + $0x5c] sm:$0xff]   ;;  %v13529_v17 = vmov 0   ;;  %s9312_s30 = smov 64  }
  0xb5   :  { %v8098_v51 = vcombine.high %v8082_v30, %v8082_v30  ;;  %2315 = vmatprep.subr.bf16.mxu1 %v9102_v35  ;;  %v8097_v18 = vcombine.low %v8082_v30, %v8082_v30  ;;  %2277 = vrot.lane.b32.xlu1 %v10641_v29, %s9309_s17  ;;  %v10656_v35 = vld [vmem:[%s13220_s0 + $0x64] sm:$0xff]   ;;  %v10688_v27 = vld [vmem:[%s13220_s0 + $0x7c] sm:$0xff]   ;;  %v10704_v26 = vld [vmem:[%s13221_s1 + $0x10] ss:$8 sps:$4 sm:$0xff]  }
  0xb6   :  { %1671 = vmatpush1.bf16.msra.mxu0 %v9104_v32  ;;  %2316 = vmatpush1.bf16.msra.mxu1 %v9104_v32  ;;  %v10671_v32 = vld [vmem:[%s13220_s0 + $0x6c] sm:$0xff]   ;;  %v10734_v25 = vld [vmem:[%s13221_s1 + $0x20] ss:$8 sps:$4 sm:$0xff]   ;;  %v10749_v40 = vld [vmem:[%s13220_s0 + $0x18] sm:$0xff]  }
  0xb7   :  { %2275 = vrot.lane.b32.xlu0 %v10626_v19, %s9309_s17  ;;  %1672 = vmatprep.subr.bf16.mxu0 %v9105_v28  ;;  %v1666_v34 = vand.u32 %v8098_v51, %v10628_v43  ;;  %v1663_v30 = vand.u32 %v8097_v18, %v10628_v43  ;;  %v10664_v51 = vld [vmem:[%s13220_s0 + $0x74] sm:$0xff]   ;;  %v9119_v18 = vld [vmem:[%s13221_s1 + $0x4] ss:$8 sps:$4 sm:$0xff]   ;;  %v10827_v47 = vld [vmem:[%s13220_s0 + $0x1c] sm:$0xff]  }
  0xb8   :  { %2317 = vmatprep.subr.bf16.mxu1 %v9105_v28  ;;  %v10681_v28 = vld [vmem:[%s13220_s0] sm:$0xff]   ;;  %v1533_v50 = vld [vmem:[%s13221_s1 + $0x30] sm:$0x33]  ;;  %v10795_v15 = vld [vmem:[%s13220_s0 + $0x38] sm:$0xff]  }
  0xb9   :  { %2279 = vrot.lane.b32.xlu1 %v10648_v42, %s9309_s17  ;;  %v8122_v41 = vcombine.high %v1533_v50, %v1533_v50  ;;  %v10741_v49 = vld [vmem:[%s13220_s0 + $0x20] sm:$0xff]   ;;  %v8121_v16 = vcombine.low %v1533_v50, %v1533_v50  ;;  %v10763_v50 = vld [vmem:[%s13220_s0 + $0x30] sm:$0xff]  }
  0xba   :  { %1673 = vmatpush1.bf16.msra.mxu0 %v9108_v31  ;;  %2318 = vmatpush1.bf16.msra.mxu1 %v9108_v31  ;;  %v10693_v31 = vld [vmem:[%s13221_s1] ss:$8 sps:$4 sm:$0xff]   ;;  %v10806_v39 = vld [vmem:[%s13220_s0 + $0x14] sm:$0xff]   ;;  %v10813_v23 = vld [vmem:[%s13220_s0 + $0xc] sm:$0xff]  }
  0xbb   :  { %2281 = vrot.lane.b32.xlu0 %v10656_v35, %s9309_s17  ;;  %1674 = vmatprep.subr.bf16.mxu0 %v1666_v34  ;;  %v10753_v24 = vand.u32 %v8122_v41, %v10628_v43  ;;  %v10767_v48 = vand.u32 %v8121_v16, %v10628_v43  ;;  %v10774_v41 = vld [vmem:[%s13220_s0 + $0x28] sm:$0xff]   ;;  %v10844_v38 = vld [vmem:[%s13220_s0 + $0x34] sm:$0xff]  }
  0xbc   :  { %2319 = vmatprep.subr.bf16.mxu1 %v1666_v34  ;;  %v10698_v34 = vld [vmem:[%s13221_s1 + $0x14] ss:$8 sps:$4 sm:$0xff]   ;;  %v10787_v16 = vld [vmem:[%s13220_s0 + $0x4] sm:$0xff]   ;;  %v10839_v14 = vld [vmem:[%s13220_s0 + $0x2c] sm:$0xff]  }
  0xbd   :  { %2283 = vrot.lane.b32.xlu1 %v10671_v32, %s9309_s17  ;;  %v10895_v22 = vld [vmem:[%s13221_s1 + $0x94] ss:$8 sps:$4 sm:$0xff]  }
  0xbe   :  { %1675 = vmatpush1.bf16.msra.mxu0 %v1663_v30  ;;  %2320 = vmatpush1.bf16.msra.mxu1 %v1663_v30  ;;  %v10715_v30 = vld [vmem:[%s13220_s0 + $0x10] sm:$0xff]  }
  0xbf   :  { %2285 = vrot.lane.b32.xlu0 %v10664_v51, %s9309_s17  ;;  %1886 = vmatprep.subr.bf16.mxu0 %v9119_v18 }
  0xc0   :  { %2466 = vmatprep.subr.bf16.mxu1 %v9119_v18  ;;  %v10729_v18 = vld [vmem:[%s13221_s1 + $0x24] ss:$8 sps:$4 sm:$0xff]  }
  0xc1   :  { %8099 = vmatmul.mubr.msk.bf16.vlgmr.msra.gmra.mrb[0].mxu0 %vm1633_vm2, %v9100_v33  ;;  %2287 = vrot.lane.b32.xlu1 %v10688_v27, %s9309_s17  ;;  %v10723_v33 = vld [vmem:[%s13220_s0 + $0x8] sm:$0xff]  }
  0xc2   :  { %1710 = vmatprep.mubr.bf16.mxu0 %v13529_v17  ;;  %1887 = vmatpush1.bf16.msra.mxu0 %v10693_v31 }
  0xc3   :  { %2426 = vrot.lane.b32.xlu0 %v10681_v28, %s9309_s17  ;;  %1888 = vmatprep.subr.bf16.mxu0 %v10698_v34 }
  0xc5   :  { %2428 = vrot.lane.b32.xlu1 %v10723_v33, %s9309_s17 }
  0xc6   :  { %1889 = vmatpush1.bf16.msra.mxu0 %v10704_v26 }
  0xc7   :  { %2430 = vrot.lane.b32.xlu0 %v10715_v30, %s9309_s17  ;;  %1890 = vmatprep.subr.bf16.mxu0 %v10729_v18 }
  0xc9   :  { %8100 = vmatmul.mubr.msk.bf16.gmra.mrb[4].mxu0 %vm1633_vm2, %v10626_v19  ;;  %2432 = vrot.lane.b32.xlu1 %v10749_v40, %s9309_s17  ;;  %v10780_v19 = vld [vmem:[%s13221_s1 + $0x74] ss:$8 sps:$4 sm:$0xff]  }
  0xca   :  { %1720 = vmatprep.mubr.bf16.mxu0 %v13529_v17  ;;  %1891 = vmatpush1.bf16.msra.mxu0 %v10734_v25 }
  0xcb   :  { %2434 = vrot.lane.b32.xlu0 %v10741_v49, %s9309_s17  ;;  %1892 = vmatprep.subr.bf16.mxu0 %v10753_v24 }
  0xcd   :  { %2436 = vrot.lane.b32.xlu1 %v10774_v41, %s9309_s17 }
  0xce   :  { %1893 = vmatpush1.bf16.msra.mxu0 %v10767_v48 }
  0xcf   :  { %2438 = vrot.lane.b32.xlu0 %v10763_v50, %s9309_s17  ;;  %2128 = vmatprep.subr.bf16.mxu0 %v10780_v19 }
  0xd1   :  { %8101 = vmatmul.mubr.msk.bf16.gmra.mrb[8].mxu0 %vm1633_vm2, %v10641_v29  ;;  %2440 = vrot.lane.b32.xlu1 %v10795_v15, %s9309_s17  ;;  %v10820_v29 = vld [vmem:[%s13220_s0 + $0x24] sm:$0xff]  }
  0xd2   :  { %1730 = vmatprep.mubr.bf16.mxu0 %v13529_v17 }
  0xd3   :  { %2579 = vrot.lane.b32.xlu0 %v10787_v16, %s9309_s17 }
  0xd5   :  { %2581 = vrot.lane.b32.xlu1 %v10813_v23, %s9309_s17 }
  0xd7   :  { %2583 = vrot.lane.b32.xlu0 %v10806_v39, %s9309_s17 }
  0xd9   :  { %8102 = vmatmul.mubr.msk.bf16.gmra.mrb[12].mxu0 %vm1633_vm2, %v10648_v42  ;;  %2585 = vrot.lane.b32.xlu1 %v10827_v47, %s9309_s17  ;;  %v10856_v42 = vld [vmem:[%s13220_s0 + $0x3c] sm:$0xff]  }
  0xda   :  { %1740 = vmatprep.mubr.bf16.mxu0 %v13529_v17 }
  0xdb   :  { %2587 = vrot.lane.b32.xlu0 %v10820_v29, %s9309_s17 }
  0xdd   :  { %2589 = vrot.lane.b32.xlu1 %v10839_v14, %s9309_s17 }
  0xdf   :  { %2591 = vrot.lane.b32.xlu0 %v10844_v38, %s9309_s17 }
  0xe1   :  { %8103 = vmatmul.mubr.msk.bf16.gmra.mrb[16].mxu0 %vm1633_vm2, %v10656_v35  ;;  %2593 = vrot.lane.b32.xlu1 %v10856_v42, %s9309_s17  ;;  %v10872_v35 = vld [vmem:[%s13221_s1 + $0x70] ss:$8 sps:$4 sm:$0xff]  }
  0xe2   :  { %1750 = vmatprep.mubr.bf16.mxu0 %v13529_v17 }
  0xe9   :  { %8104 = vmatmul.mubr.msk.bf16.gmra.mrb[20].mxu0 %vm1633_vm2, %v10671_v32  ;;  %v10877_v32 = vld [vmem:[%s13221_s1 + $0x84] ss:$8 sps:$4 sm:$0xff]  }
  0xea   :  { %1760 = vmatprep.mubr.bf16.mxu0 %v13529_v17 }
  0xf1   :  { %8105 = vmatmul.mubr.msk.bf16.gmra.mrb[24].mxu0 %vm1633_vm2, %v10664_v51  ;;  %v8137_v51 = vld [vmem:[%s13221_s1 + $0xa0] sm:$0x33] }
  0xf2   :  { %1770 = vmatprep.mubr.bf16.mxu0 %v13529_v17  ;;  %v8153_v46 = vcombine.high %v8137_v51, %v8137_v51  ;;  %v8152_v13 = vcombine.low %v8137_v51, %v8137_v51 }
  0xf4   :  { %v10905_v37 = vand.u32 %v8153_v46, %v10628_v43  ;;  %v10912_v21 = vand.u32 %v8152_v13, %v10628_v43 }
  0xf9   :  { %8106 = vmatmul.mubr.msk.bf16.gmra.mrb[28].mxu0 %vm1633_vm2, %v10688_v27  ;;  %v10889_v27 = vld [vmem:[%s13221_s1 + $0x80] ss:$8 sps:$4 sm:$0xff]  }
  0xfa   :  { %1918 = vmatprep.mubr.bf16.mxu0 %v13529_v17 }
 0x101   :  { %8123 = vmatmul.mubr.msk.bf16.vlgmr.msra.gmra.mrb[0].mxu0 %vm1633_vm2, %v10681_v28  ;;  %v10901_v28 = vld [vmem:[%s13221_s1 + $0x90] ss:$8 sps:$4 sm:$0xff]   ;;  %s9311_s1 = smov 32  }
 0x102   :  { %1928 = vmatprep.mubr.bf16.mxu0 %v13529_v17  ;;  %2129 = vmatpush1.bf16.msra.mxu0 %v10872_v35 }
 0x103   :  { %2130 = vmatprep.subr.bf16.mxu0 %v10877_v32 }
 0x106   :  { %2131 = vmatpush1.bf16.msra.mxu0 %v10889_v27 }
 0x107   :  { %2132 = vmatprep.subr.bf16.mxu0 %v10895_v22 }
 0x109   :  { %8124 = vmatmul.mubr.msk.bf16.gmra.mrb[4].mxu0 %vm1633_vm2, %v10723_v33 }
 0x10a   :  { %1938 = vmatprep.mubr.bf16.mxu0 %v13529_v17  ;;  %2133 = vmatpush1.bf16.msra.mxu0 %v10901_v28 }
 0x10b   :  { %2134 = vmatprep.subr.bf16.mxu0 %v10905_v37 }
 0x10e   :  { %2135 = vmatpush1.bf16.msra.mxu0 %v10912_v21 }
 0x111   :  { %8125 = vmatmul.mubr.msk.bf16.gmra.mrb[8].mxu0 %vm1633_vm2, %v10715_v30 }
 0x112   :  { %1948 = vmatprep.mubr.bf16.mxu0 %v13529_v17 }
 0x119   :  { %8126 = vmatmul.mubr.msk.bf16.gmra.mrb[12].mxu0 %vm1633_vm2, %v10749_v40 }
 0x11a   :  { %1958 = vmatprep.mubr.bf16.mxu0 %v13529_v17 }
 0x121   :  { %8127 = vmatmul.mubr.msk.bf16.gmra.mrb[16].mxu0 %vm1633_vm2, %v10741_v49 }
 0x122   :  { %1968 = vmatprep.mubr.bf16.mxu0 %v13529_v17 }
 0x125   :  { %v2274_v43 = vpop.permute.xlu0 %2273 }
 0x126   :  { %8162 = vmatmul.mubr.msk.bf16.vlgmr.msra.gmra.mrb[0].mxu1 %vm1633_vm2, %v2274_v43 }
 0x127   :  { %2467 = vmatpush1.bf16.msra.mxu1 %v10693_v31  ;;  %2355 = vmatprep.mubr.bf16.mxu1 %v13529_v17  ;;  %v2278_v46 = vpop.permute.xlu1 %2277 }
 0x128   :  { %2468 = vmatprep.subr.bf16.mxu1 %v10698_v34 }
 0x129   :  { %8128 = vmatmul.mubr.msk.bf16.gmra.mrb[20].mxu0 %vm1633_vm2, %v10774_v41  ;;  %v2276_v40 = vpop.permute.xlu0 %2275 }
 0x12a   :  { %1978 = vmatprep.mubr.bf16.mxu0 %v13529_v17 }
 0x12b   :  { %2469 = vmatpush1.bf16.msra.mxu1 %v10704_v26  ;;  %v2280_v49 = vpop.permute.xlu1 %2279 }
 0x12c   :  { %2470 = vmatprep.subr.bf16.mxu1 %v10729_v18 }
 0x12e   :  { %8163 = vmatmul.mubr.msk.bf16.gmra.mrb[4].mxu1 %vm1633_vm2, %v2276_v40 }
 0x12f   :  { %2365 = vmatprep.mubr.bf16.mxu1 %v13529_v17  ;;  %2471 = vmatpush1.bf16.msra.mxu1 %v10734_v25  ;;  %v2284_v13 = vpop.permute.xlu1 %2283 }
 0x130   :  { %2472 = vmatprep.subr.bf16.mxu1 %v10753_v24 }
 0x131   :  { %8129 = vmatmul.mubr.msk.bf16.gmra.mrb[24].mxu0 %vm1633_vm2, %v10763_v50 }
 0x132   :  { %1988 = vmatprep.mubr.bf16.mxu0 %v13529_v17 }
 0x133   :  { %2473 = vmatpush1.bf16.msra.mxu1 %v10767_v48  ;;  %v2282_v48 = vpop.permute.xlu0 %2281 }
 0x134   :  { %2619 = vmatprep.subr.bf16.mxu1 %v10780_v19 }
 0x136   :  { %8164 = vmatmul.mubr.msk.bf16.gmra.mrb[8].mxu1 %vm1633_vm2, %v2278_v46 }
 0x137   :  { %2375 = vmatprep.mubr.bf16.mxu1 %v13529_v17 }
 0x139   :  { %8130 = vmatmul.mubr.msk.bf16.gmra.mrb[28].mxu0 %vm1633_vm2, %v10795_v15  ;;  %v2286_v15 = vpop.permute.xlu0 %2285 }
 0x13a   :  { %2160 = vmatprep.mubr.bf16.mxu0 %v13529_v17 }
 0x13e   :  { %8165 = vmatmul.mubr.msk.bf16.gmra.mrb[12].mxu1 %vm1633_vm2, %v2280_v49 }
 0x13f   :  { %2385 = vmatprep.mubr.bf16.mxu1 %v13529_v17 }
 0x141   :  { %8154 = vmatmul.mubr.msk.bf16.vlgmr.msra.gmra.mrb[0].mxu0 %vm1633_vm2, %v10787_v16 }
 0x142   :  { %2170 = vmatprep.mubr.bf16.mxu0 %v13529_v17 }
 0x146   :  { %8166 = vmatmul.mubr.msk.bf16.gmra.mrb[16].mxu1 %vm1633_vm2, %v2282_v48 }
 0x147   :  { %2395 = vmatprep.mubr.bf16.mxu1 %v13529_v17 }
 0x149   :  { %8155 = vmatmul.mubr.msk.bf16.gmra.mrb[4].mxu0 %vm1633_vm2, %v10813_v23  ;;  %v2288_v23 = vpop.permute.xlu1 %2287 }
 0x14a   :  { %2180 = vmatprep.mubr.bf16.mxu0 %v13529_v17 }
 0x14e   :  { %8167 = vmatmul.mubr.msk.bf16.gmra.mrb[20].mxu1 %vm1633_vm2, %v2284_v13 }
 0x14f   :  { %2405 = vmatprep.mubr.bf16.mxu1 %v13529_v17 }
 0x151   :  { %8156 = vmatmul.mubr.msk.bf16.gmra.mrb[8].mxu0 %vm1633_vm2, %v10806_v39  ;;  %v2427_v39 = vpop.permute.xlu0 %2426 }
 0x152   :  { %2190 = vmatprep.mubr.bf16.mxu0 %v13529_v17 }
 0x155   :  { %v2431_v24 = vpop.permute.xlu0 %2430 }
 0x156   :  { %8168 = vmatmul.mubr.msk.bf16.gmra.mrb[24].mxu1 %vm1633_vm2, %v2286_v15 }
 0x157   :  { %2415 = vmatprep.mubr.bf16.mxu1 %v13529_v17 }
 0x159   :  { %8157 = vmatmul.mubr.msk.bf16.gmra.mrb[12].mxu0 %vm1633_vm2, %v10827_v47  ;;  %v2429_v47 = vpop.permute.xlu1 %2428 }
 0x15a   :  { %2200 = vmatprep.mubr.bf16.mxu0 %v13529_v17 }
 0x15e   :  { %8169 = vmatmul.mubr.msk.bf16.gmra.mrb[28].mxu1 %vm1633_vm2, %v2288_v23 }
 0x15f   :  { %2498 = vmatprep.mubr.bf16.mxu1 %v13529_v17 }
 0x161   :  { %8158 = vmatmul.mubr.msk.bf16.gmra.mrb[16].mxu0 %vm1633_vm2, %v10820_v29 }
 0x162   :  { %2210 = vmatprep.mubr.bf16.mxu0 %v13529_v17 }
 0x166   :  { %8170 = vmatmul.mubr.msk.bf16.vlgmr.msra.gmra.mrb[0].mxu1 %vm1633_vm2, %v2427_v39 }
 0x167   :  { %2620 = vmatpush1.bf16.msra.mxu1 %v10872_v35  ;;  %2508 = vmatprep.mubr.bf16.mxu1 %v13529_v17 }
 0x168   :  { %2621 = vmatprep.subr.bf16.mxu1 %v10877_v32 }
 0x169   :  { %8159 = vmatmul.mubr.msk.bf16.gmra.mrb[20].mxu0 %vm1633_vm2, %v10839_v14  ;;  %v2433_v14 = vpop.permute.xlu1 %2432 }
 0x16a   :  { %2220 = vmatprep.mubr.bf16.mxu0 %v13529_v17 }
 0x16b   :  { %2622 = vmatpush1.bf16.msra.mxu1 %v10889_v27 }
 0x16c   :  { %2623 = vmatprep.subr.bf16.mxu1 %v10895_v22 }
 0x16e   :  { %8171 = vmatmul.mubr.msk.bf16.gmra.mrb[4].mxu1 %vm1633_vm2, %v2429_v47 }
 0x16f   :  { %2518 = vmatprep.mubr.bf16.mxu1 %v13529_v17  ;;  %2624 = vmatpush1.bf16.msra.mxu1 %v10901_v28 }
 0x170   :  { %2625 = vmatprep.subr.bf16.mxu1 %v10905_v37  ;;  %v2435_v37 = vpop.permute.xlu0 %2434 }
 0x171   :  { %8160 = vmatmul.mubr.msk.bf16.gmra.mrb[24].mxu0 %vm1633_vm2, %v10844_v38  ;;  %v2437_v38 = vpop.permute.xlu1 %2436 }
 0x172   :  { %2230 = vmatprep.mubr.bf16.mxu0 %v13529_v17 }
 0x173   :  { %2626 = vmatpush1.bf16.msra.mxu1 %v10912_v21 }
 0x174   :  { %v2439_v21 = vpop.permute.xlu0 %2438 }
 0x175   :  { %v2441_v22 = vpop.permute.xlu1 %2440 }
 0x176   :  { %8172 = vmatmul.mubr.msk.bf16.gmra.mrb[8].mxu1 %vm1633_vm2, %v2431_v24 }
 0x177   :  { %2528 = vmatprep.mubr.bf16.mxu1 %v13529_v17 }
 0x178   :  { %v2580_v25 = vpop.permute.xlu0 %2579 }
 0x179   :  { %8161 = vmatmul.mubr.msk.bf16.gmra.mrb[28].mxu0 %vm1633_vm2, %v10856_v42  ;;  %v2582_v26 = vpop.permute.xlu1 %2581 }
 0x17c   :  { %v2584_v31 = vpop.permute.xlu0 %2583 }
 0x17d   :  { %v2586_v34 = vpop.permute.xlu1 %2585 }
 0x17e   :  { %8173 = vmatmul.mubr.msk.bf16.gmra.mrb[12].mxu1 %vm1633_vm2, %v2433_v14 }
 0x17f   :  { %2538 = vmatprep.mubr.bf16.mxu1 %v13529_v17 }
 0x180   :  { %v2588_v30 = vpop.permute.xlu0 %2587 }
 0x181   :  { %v2590_v33 = vpop.permute.xlu1 %2589 }
 0x184   :  { %v2592_v18 = vpop.permute.xlu0 %2591 }
 0x185   :  { %v2594_v50 = vpop.permute.xlu1 %2593 }
 0x186   :  { %8174 = vmatmul.mubr.msk.bf16.gmra.mrb[16].mxu1 %vm1633_vm2, %v2435_v37 }
 0x187   :  { %2548 = vmatprep.mubr.bf16.mxu1 %v13529_v17 }
 0x18e   :  { %8175 = vmatmul.mubr.msk.bf16.gmra.mrb[20].mxu1 %vm1633_vm2, %v2437_v38 }
 0x18f   :  { %2558 = vmatprep.mubr.bf16.mxu1 %v13529_v17 }
 0x196   :  { %8176 = vmatmul.mubr.msk.bf16.gmra.mrb[24].mxu1 %vm1633_vm2, %v2439_v21 }
 0x197   :  { %2568 = vmatprep.mubr.bf16.mxu1 %v13529_v17 }
 0x19e   :  { %8177 = vmatmul.mubr.msk.bf16.gmra.mrb[28].mxu1 %vm1633_vm2, %v2441_v22 }
 0x19f   :  { %2651 = vmatprep.mubr.bf16.mxu1 %v13529_v17 }
 0x1a6   :  { %8178 = vmatmul.mubr.msk.bf16.vlgmr.msra.gmra.mrb[0].mxu1 %vm1633_vm2, %v2580_v25 }
 0x1a7   :  { %2661 = vmatprep.mubr.bf16.mxu1 %v13529_v17 }
 0x1ae   :  { %8179 = vmatmul.mubr.msk.bf16.gmra.mrb[4].mxu1 %vm1633_vm2, %v2582_v26 }
 0x1af   :  { %2671 = vmatprep.mubr.bf16.mxu1 %v13529_v17 }
 0x1b6   :  { %8180 = vmatmul.mubr.msk.bf16.gmra.mrb[8].mxu1 %vm1633_vm2, %v2584_v31 }
 0x1b7   :  { %2681 = vmatprep.mubr.bf16.mxu1 %v13529_v17 }
 0x1be   :  { %8181 = vmatmul.mubr.msk.bf16.gmra.mrb[12].mxu1 %vm1633_vm2, %v2586_v34 }
 0x1bf   :  { %2691 = vmatprep.mubr.bf16.mxu1 %v13529_v17 }
 0x1c6   :  { %8182 = vmatmul.mubr.msk.bf16.gmra.mrb[16].mxu1 %vm1633_vm2, %v2588_v30 }
 0x1c7   :  { %2701 = vmatprep.mubr.bf16.mxu1 %v13529_v17 }
 0x1ce   :  { %8183 = vmatmul.mubr.msk.bf16.gmra.mrb[20].mxu1 %vm1633_vm2, %v2590_v33 }
 0x1cf   :  { %2711 = vmatprep.mubr.bf16.mxu1 %v13529_v17 }
 0x1d6   :  { %8184 = vmatmul.mubr.msk.bf16.gmra.mrb[24].mxu1 %vm1633_vm2, %v2592_v18 }
 0x1d7   :  { %2721 = vmatprep.mubr.bf16.mxu1 %v13529_v17 }
 0x1de   :  { %8185 = vmatmul.mubr.msk.bf16.gmra.mrb[28].mxu1 %vm1633_vm2, %v2594_v50 }
 0x214   :  { %v11019_v41 = vpop.f32.mrb[0].mxu0 }
 0x215   :  { %v11021_v19 = vpop.f32.mrb[1].mxu0  ;;  %v2848_v29 = vmul.f32 %v11019_v41, %v11019_v41 }
 0x216   :  { %v11023_v16 = vpop.f32.mrb[2].mxu0  ;;  %v2849_v51 = vmul.f32 %v11021_v19, %v11021_v19 }
 0x217   :  { %v2764_v42 = vadd.f32 %v11023_v16, %v11019_v41  ;;  %v2852_v35 = vmul.f32 %v11023_v16, %v11023_v16  ;;  %v11031_v32 = vpop.f32.mrb[3].mxu0 }
 0x218   :  { %v2785_v27 = vadd.f32 %v11031_v32, %v11021_v19  ;;  %v2853_v28 = vmul.f32 %v11031_v32, %v11031_v32 }
 0x219   :  { %v2912_v43 = vadd.f32 %v2852_v35, %v2848_v29 }
 0x21a   :  { %v2933_v40 = vadd.f32 %v2853_v28, %v2849_v51 }
 0x21c   :  { %v11039_v46 = vpop.f32.mrb[4].mxu0 }
 0x21d   :  { %v2765_v49 = vadd.f32 %v2764_v42, %v11039_v46  ;;  %v2856_v48 = vmul.f32 %v11039_v46, %v11039_v46  ;;  %v11044_v13 = vpop.f32.mrb[5].mxu0 }
 0x21e   :  { %v2786_v15 = vadd.f32 %v2785_v27, %v11044_v13  ;;  %v2857_v23 = vmul.f32 %v11044_v13, %v11044_v13  ;;  %v11049_v39 = vpop.f32.mrb[6].mxu0 }
 0x21f   :  { %v2913_v47 = vadd.f32 %v2912_v43, %v2856_v48  ;;  %v2766_v24 = vadd.f32 %v2765_v49, %v11049_v39  ;;  %v2860_v14 = vmul.f32 %v11049_v39, %v11049_v39  ;;  %v11054_v37 = vpop.f32.mrb[7].mxu0 }
 0x220   :  { %v2934_v38 = vadd.f32 %v2933_v40, %v2857_v23  ;;  %v2787_v21 = vadd.f32 %v2786_v15, %v11054_v37  ;;  %v2861_v22 = vmul.f32 %v11054_v37, %v11054_v37 }
 0x221   :  { %v2914_v25 = vadd.f32 %v2913_v47, %v2860_v14 }
 0x222   :  { %v2935_v26 = vadd.f32 %v2934_v38, %v2861_v22 }
 0x224   :  { %v11059_v31 = vpop.f32.mrb[8].mxu0 }
 0x225   :  { %v2767_v34 = vadd.f32 %v2766_v24, %v11059_v31  ;;  %v2864_v30 = vmul.f32 %v11059_v31, %v11059_v31  ;;  %v11064_v33 = vpop.f32.mrb[9].mxu0 }
 0x226   :  { %v2788_v18 = vadd.f32 %v2787_v21, %v11064_v33  ;;  %v2865_v50 = vmul.f32 %v11064_v33, %v11064_v33  ;;  %v11069_v29 = vpop.f32.mrb[10].mxu0 }
 0x227   :  { %v2915_v42 = vadd.f32 %v2914_v25, %v2864_v30  ;;  %v2768_v35 = vadd.f32 %v2767_v34, %v11069_v29  ;;  %v2868_v51 = vmul.f32 %v11069_v29, %v11069_v29  ;;  %v11074_v27 = vpop.f32.mrb[11].mxu0 }
 0x228   :  { %v2936_v28 = vadd.f32 %v2935_v26, %v2865_v50  ;;  %v2789_v43 = vadd.f32 %v2788_v18, %v11074_v27  ;;  %v2869_v40 = vmul.f32 %v11074_v27, %v11074_v27 }
 0x229   :  { %v2916_v49 = vadd.f32 %v2915_v42, %v2868_v51 }
 0x22a   :  { %v2937_v48 = vadd.f32 %v2936_v28, %v2869_v40 }
 0x22c   :  { %v11079_v15 = vpop.f32.mrb[12].mxu0 }
 0x22d   :  { %v2769_v23 = vadd.f32 %v2768_v35, %v11079_v15  ;;  %v2872_v47 = vmul.f32 %v11079_v15, %v11079_v15  ;;  %v11084_v24 = vpop.f32.mrb[13].mxu0 }
 0x22e   :  { %v2790_v14 = vadd.f32 %v2789_v43, %v11084_v24  ;;  %v2873_v38 = vmul.f32 %v11084_v24, %v11084_v24  ;;  %v11089_v21 = vpop.f32.mrb[14].mxu0 }
 0x22f   :  { %13530 = vst [vmem:[#allocation150_spill] sm:$0xff] %v11089_v21  ;;  %v2917_v22 = vadd.f32 %v2916_v49, %v2872_v47  ;;  %v2770_v25 = vadd.f32 %v2769_v23, %v11089_v21  ;;  %v2876_v26 = vmul.f32 %v11089_v21, %v11089_v21  ;;  %v11094_v34 = vpop.f32.mrb[15].mxu0 }
 0x230   :  { %v2938_v30 = vadd.f32 %v2937_v48, %v2873_v38  ;;  %v2791_v18 = vadd.f32 %v2790_v14, %v11094_v34  ;;  %v2877_v50 = vmul.f32 %v11094_v34, %v11094_v34 }
 0x231   :  { %v2918_v42 = vadd.f32 %v2917_v22, %v2876_v26 }
 0x232   :  { %v2939_v35 = vadd.f32 %v2938_v30, %v2877_v50 }
 0x234   :  { %v11099_v51 = vpop.f32.mrb[16].mxu0 }
 0x235   :  { %13531 = vst [vmem:[#allocation151_spill] sm:$0xff] %v11099_v51  ;;  %v2771_v28 = vadd.f32 %v2770_v25, %v11099_v51  ;;  %v2880_v43 = vmul.f32 %v11099_v51, %v11099_v51  ;;  %v11104_v40 = vpop.f32.mrb[17].mxu0 }
 0x236   :  { %v2792_v49 = vadd.f32 %v2791_v18, %v11104_v40  ;;  %v2881_v48 = vmul.f32 %v11104_v40, %v11104_v40  ;;  %v11109_v23 = vpop.f32.mrb[18].mxu0 }
 0x237   :  { %13532 = vst [vmem:[#allocation152_spill] sm:$0xff] %v11109_v23  ;;  %v2919_v47 = vadd.f32 %v2918_v42, %v2880_v43  ;;  %v2772_v14 = vadd.f32 %v2771_v28, %v11109_v23  ;;  %v2884_v38 = vmul.f32 %v11109_v23, %v11109_v23  ;;  %v11114_v22 = vpop.f32.mrb[19].mxu0 }
 0x238   :  { %v2940_v25 = vadd.f32 %v2939_v35, %v2881_v48  ;;  %v2793_v26 = vadd.f32 %v2792_v49, %v11114_v22  ;;  %v2885_v30 = vmul.f32 %v11114_v22, %v11114_v22 }
 0x239   :  { %v2920_v18 = vadd.f32 %v2919_v47, %v2884_v38 }
 0x23a   :  { %v2941_v50 = vadd.f32 %v2940_v25, %v2885_v30 }
 0x23c   :  { %v11119_v45 = vpop.f32.mrb[20].mxu0 }
 0x23d   :  { %13533 = vst [vmem:[#allocation153_spill] sm:$0xff] %v11119_v45  ;;  %v2773_v12 = vadd.f32 %v2772_v14, %v11119_v45  ;;  %v2888_v42 = vmul.f32 %v11119_v45, %v11119_v45  ;;  %v11124_v28 = vpop.f32.mrb[21].mxu0 }
 0x23e   :  { %v2794_v43 = vadd.f32 %v2793_v26, %v11124_v28  ;;  %v2889_v35 = vmul.f32 %v11124_v28, %v11124_v28  ;;  %v11129_v49 = vpop.f32.mrb[22].mxu0 }
 0x23f   :  { %13534 = vst [vmem:[#allocation154_spill] sm:$0xff] %v11129_v49  ;;  %v2921_v48 = vadd.f32 %v2920_v18, %v2888_v42  ;;  %v2774_v47 = vadd.f32 %v2773_v12, %v11129_v49  ;;  %v2892_v38 = vmul.f32 %v11129_v49, %v11129_v49  ;;  %v11134_v25 = vpop.f32.mrb[23].mxu0 }
 0x240   :  { %v2942_v14 = vadd.f32 %v2941_v50, %v2889_v35  ;;  %v2795_v30 = vadd.f32 %v2794_v43, %v11134_v25  ;;  %v2893_v36 = vmul.f32 %v11134_v25, %v11134_v25 }
 0x241   :  { %v2922_v26 = vadd.f32 %v2921_v48, %v2892_v38 }
 0x242   :  { %v2943_v20 = vadd.f32 %v2942_v14, %v2893_v36 }
 0x244   :  { %v11139_v44 = vpop.f32.mrb[24].mxu0 }
 0x245   :  { %13535 = vst [vmem:[#allocation155_spill] sm:$0xff] %v11139_v44  ;;  %v2775_v63 = vadd.f32 %v2774_v47, %v11139_v44  ;;  %v2896_v12 = vmul.f32 %v11139_v44, %v11139_v44  ;;  %v11144_v18 = vpop.f32.mrb[25].mxu0 }
 0x246   :  { %13536 = vst [vmem:[#allocation156_spill] sm:$0xff] %v11144_v18  ;;  %v2796_v42 = vadd.f32 %v2795_v30, %v11144_v18  ;;  %v2897_v50 = vmul.f32 %v11144_v18, %v11144_v18  ;;  %v11149_v43 = vpop.f32.mrb[26].mxu0 }
 0x247   :  { %13537 = vst [vmem:[#allocation157_spill] sm:$0xff] %v11149_v43  ;;  %v2923_v35 = vadd.f32 %v2922_v26, %v2896_v12  ;;  %v2776_v48 = vadd.f32 %v2775_v63, %v11149_v43  ;;  %v2900_v36 = vmul.f32 %v11149_v43, %v11149_v43  ;;  %v11154_v38 = vpop.f32.mrb[27].mxu0 }
 0x248   :  { %13538 = vst [vmem:[#allocation158_spill] sm:$0xff] %v11154_v38  ;;  %v2944_v47 = vadd.f32 %v2943_v20, %v2897_v50  ;;  %v2797_v14 = vadd.f32 %v2796_v42, %v11154_v38  ;;  %v2901_v55 = vmul.f32 %v11154_v38, %v11154_v38 }
 0x249   :  { %v2924_v30 = vadd.f32 %v2923_v35, %v2900_v36 }
 0x24a   :  { %v2945_v7 = vadd.f32 %v2944_v47, %v2901_v55 }
 0x24c   :  { %v11159_v62 = vpop.f32.mrb[28].mxu0 }
 0x24d   :  { %13539 = vst [vmem:[#allocation159_spill] sm:$0xff] %v11159_v62  ;;  %v2777_v54 = vadd.f32 %v2776_v48, %v11159_v62  ;;  %v2904_v63 = vmul.f32 %v11159_v62, %v11159_v62  ;;  %v11164_v26 = vpop.f32.mrb[29].mxu0 }
 0x24e   :  { %13540 = vst [vmem:[#allocation160_spill] sm:$0xff] %v11164_v26  ;;  %v2798_v12 = vadd.f32 %v2797_v14, %v11164_v26  ;;  %v2905_v20 = vmul.f32 %v11164_v26, %v11164_v26  ;;  %v11169_v42 = vpop.f32.mrb[30].mxu0 }
 0x24f   :  { %13541 = vst [vmem:[#allocation161_spill] sm:$0xff] %v11169_v42  ;;  %v2925_v50 = vadd.f32 %v2924_v30, %v2904_v63  ;;  %v2778_v35 = vadd.f32 %v2777_v54, %v11169_v42  ;;  %v2908_v55 = vmul.f32 %v11169_v42, %v11169_v42  ;;  %v11174_v36 = vpop.f32.mrb[31].mxu0 }
 0x250   :  { %13542 = vst [vmem:[#allocation162_spill] sm:$0xff] %v11174_v36  ;;  %v2946_v48 = vadd.f32 %v2945_v7, %v2905_v20  ;;  %v2799_v47 = vadd.f32 %v2798_v12, %v11174_v36  ;;  %v2909_v6 = vmul.f32 %v11174_v36, %v11174_v36 }
 0x251   :  { %v2779_v14 = vrot.slane %v2778_v35, 4  ;;  %v2926_v61 = vadd.f32 %v2925_v50, %v2908_v55 }
 0x252   :  { %v2800_v53 = vrot.slane %v2799_v47, 4  ;;  %v2947_v5 = vadd.f32 %v2946_v48, %v2909_v6 }
 0x253   :  { %v2780_v60 = vadd.f32 %v2779_v14, %v2778_v35  ;;  %v2927_v52 = vrot.slane %v2926_v61, 4 }
 0x254   :  { %v2801_v30 = vadd.f32 %v2800_v53, %v2799_v47  ;;  %v2948_v63 = vrot.slane %v2947_v5, 4 }
 0x255   :  { %v2781_v54 = vrot.slane %v2780_v60, 2  ;;  %v2928_v4 = vadd.f32 %v2927_v52, %v2926_v61 }
 0x256   :  { %v2802_v59 = vrot.slane %v2801_v30, 2  ;;  %v2949_v11 = vadd.f32 %v2948_v63, %v2947_v5 }
 0x257   :  { %v2782_v3 = vadd.f32 %v2781_v54, %v2780_v60  ;;  %v2929_v58 = vrot.slane %v2928_v4, 2 }
 0x258   :  { %v2803_v7 = vadd.f32 %v2802_v59, %v2801_v30  ;;  %v2950_v20 = vrot.slane %v2949_v11, 2 }
 0x259   :  { %v2783_v12 = vrot.slane %v2782_v3, 1  ;;  %v2930_v10 = vadd.f32 %v2929_v58, %v2928_v4 }
 0x25a   :  { %v2804_v2 = vrot.slane %v2803_v7, 1  ;;  %v2951_v57 = vadd.f32 %v2950_v20, %v2949_v11 }
 0x25b   :  { %v11179_v9 = vadd.f32 %v2783_v12, %v2782_v3  ;;  %v2931_v50 = vrot.slane %v2930_v10, 1 }
 0x25c   :  { %v11181_v6 = vadd.f32 %v2804_v2, %v2803_v7  ;;  %v2952_v35 = vrot.slane %v2951_v57, 1 }
 0x25d   :  { %2996 = vrot.lane.b32.xlu0 %v11179_v9, %s9311_s1  ;;  %v11187_v52 = vadd.f32 %v2931_v50, %v2930_v10 }
 0x25e   :  { %2998 = vrot.lane.b32.xlu1 %v11181_v6, %s9311_s1  ;;  %v11189_v53 = vadd.f32 %v2952_v35, %v2951_v57 }
 0x261   :  { %3015 = vrot.lane.b32.xlu0 %v11187_v52, %s9311_s1 }
 0x262   :  { %3017 = vrot.lane.b32.xlu1 %v11189_v53, %s9311_s1 }
 0x279   :  { %v11195_v58 = vpop.f32.mrb[0].mxu1 }
 0x27a   :  { %v11197_v59 = vpop.f32.mrb[1].mxu1  ;;  %v2850_v61 = vmul.f32 %v11195_v58, %v11195_v58 }
 0x27b   :  { %v11199_v60 = vpop.f32.mrb[2].mxu1  ;;  %v2851_v4 = vmul.f32 %v11197_v59, %v11197_v59 }
 0x27c   :  { %v2806_v2 = vadd.f32 %v11199_v60, %v11195_v58  ;;  %v2854_v57 = vmul.f32 %v11199_v60, %v11199_v60  ;;  %v11207_v3 = vpop.f32.mrb[3].mxu1 }
 0x27d   :  { %v2827_v5 = vadd.f32 %v11207_v3, %v11197_v59  ;;  %v2855_v10 = vmul.f32 %v11207_v3, %v11207_v3 }
 0x27e   :  { %v2954_v11 = vadd.f32 %v2854_v57, %v2850_v61 }
 0x27f   :  { %v2975_v55 = vadd.f32 %v2855_v10, %v2851_v4 }
 0x281   :  { %v11215_v48 = vpop.f32.mrb[4].mxu1 }
 0x282   :  { %v2807_v47 = vadd.f32 %v2806_v2, %v11215_v48  ;;  %v2858_v14 = vmul.f32 %v11215_v48, %v11215_v48  ;;  %v11220_v30 = vpop.f32.mrb[5].mxu1 }
 0x283   :  { %v2828_v63 = vadd.f32 %v2827_v5, %v11220_v30  ;;  %v2859_v54 = vmul.f32 %v11220_v30, %v11220_v30  ;;  %v11225_v7 = vpop.f32.mrb[6].mxu1 }
 0x284   :  { %v2955_v20 = vadd.f32 %v2954_v11, %v2858_v14  ;;  %v2808_v12 = vadd.f32 %v2807_v47, %v11225_v7  ;;  %v2862_v50 = vmul.f32 %v11225_v7, %v11225_v7  ;;  %v11230_v35 = vpop.f32.mrb[7].mxu1 }
 0x285   :  { %v2976_v61 = vadd.f32 %v2975_v55, %v2859_v54  ;;  %v2829_v2 = vadd.f32 %v2828_v63, %v11230_v35  ;;  %v2863_v57 = vmul.f32 %v11230_v35, %v11230_v35 }
 0x286   :  { %v2956_v4 = vadd.f32 %v2955_v20, %v2862_v50 }
 0x287   :  { %v2977_v5 = vadd.f32 %v2976_v61, %v2863_v57 }
 0x289   :  { %v11235_v10 = vpop.f32.mrb[8].mxu1 }
 0x28a   :  { %v2809_v1 = vadd.f32 %v2808_v12, %v11235_v10  ;;  %v2866_v11 = vmul.f32 %v11235_v10, %v11235_v10  ;;  %v11240_v47 = vpop.f32.mrb[9].mxu1 }
 0x28b   :  { %v2830_v14 = vadd.f32 %v2829_v2, %v11240_v47  ;;  %v2867_v55 = vmul.f32 %v11240_v47, %v11240_v47  ;;  %v11245_v63 = vpop.f32.mrb[10].mxu1 }
 0x28c   :  { %v2957_v54 = vadd.f32 %v2956_v4, %v2866_v11  ;;  %v2810_v20 = vadd.f32 %v2809_v1, %v11245_v63  ;;  %v2870_v50 = vmul.f32 %v11245_v63, %v11245_v63  ;;  %v11250_v61 = vpop.f32.mrb[11].mxu1 }
 0x28d   :  { %v2978_v12 = vadd.f32 %v2977_v5, %v2867_v55  ;;  %v2831_v57 = vadd.f32 %v2830_v14, %v11250_v61  ;;  %v2871_v56 = vmul.f32 %v11250_v61, %v11250_v61 }
 0x28e   :  { %v2958_v2 = vadd.f32 %v2957_v54, %v2870_v50 }
 0x28f   :  { %v2979_v8 = vadd.f32 %v2978_v12, %v2871_v56 }
 0x291   :  { %v11255_v0 = vpop.f32.mrb[12].mxu1 }
 0x292   :  { %v2811_v17 = vadd.f32 %v2810_v20, %v11255_v0  ;;  %v2874_v1 = vmul.f32 %v11255_v0, %v11255_v0  ;;  %v11260_v4 = vpop.f32.mrb[13].mxu1 }
 0x293   :  { %v2832_v11 = vadd.f32 %v2831_v57, %v11260_v4  ;;  %v2875_v5 = vmul.f32 %v11260_v4, %v11260_v4  ;;  %v11265_v14 = vpop.f32.mrb[14].mxu1 }
 0x294   :  { %13543 = vst [vmem:[#allocation163_spill] sm:$0xff] %v11265_v14  ;;  %v2959_v55 = vadd.f32 %v2958_v2, %v2874_v1  ;;  %v2812_v54 = vadd.f32 %v2811_v17, %v11265_v14  ;;  %v2878_v56 = vmul.f32 %v11265_v14, %v11265_v14  ;;  %v11270_v50 = vpop.f32.mrb[15].mxu1 }
 0x295   :  { %13544 = vst [vmem:[#allocation164_spill] sm:$0xff] %v11270_v50  ;;  %v2980_v20 = vadd.f32 %v2979_v8, %v2875_v5  ;;  %v2833_v12 = vadd.f32 %v2832_v11, %v11270_v50  ;;  %v2879_v42 = vmul.f32 %v11270_v50, %v11270_v50 }
 0x296   :  { %v2960_v57 = vadd.f32 %v2959_v55, %v2878_v56 }
 0x297   :  { %v2981_v62 = vadd.f32 %v2980_v20, %v2879_v42 }
 0x299   :  { %v11275_v43 = vpop.f32.mrb[16].mxu1 }
 0x29a   :  { %13545 = vst [vmem:[#allocation165_spill] sm:$0xff] %v11275_v43  ;;  %v2813_v44 = vadd.f32 %v2812_v54, %v11275_v43  ;;  %v2882_v17 = vmul.f32 %v11275_v43, %v11275_v43  ;;  %v11280_v2 = vpop.f32.mrb[17].mxu1 }
 0x29b   :  { %13546 = vst [vmem:[#allocation166_spill] sm:$0xff] %v11280_v2  ;;  %v2834_v1 = vadd.f32 %v2833_v12, %v11280_v2  ;;  %v2883_v8 = vmul.f32 %v11280_v2, %v11280_v2  ;;  %v11285_v11 = vpop.f32.mrb[18].mxu1 }
 0x29c   :  { %13547 = vst [vmem:[#allocation167_spill] sm:$0xff] %v11285_v11  ;;  %v2961_v5 = vadd.f32 %v2960_v57, %v2882_v17  ;;  %v2814_v55 = vadd.f32 %v2813_v44, %v11285_v11  ;;  %v2886_v42 = vmul.f32 %v11285_v11, %v11285_v11  ;;  %v11290_v56 = vpop.f32.mrb[19].mxu1 }
 0x29d   :  { %13548 = vst [vmem:[#allocation168_spill] sm:$0xff] %v11290_v56  ;;  %v2982_v54 = vadd.f32 %v2981_v62, %v2883_v8  ;;  %v2835_v20 = vadd.f32 %v2834_v1, %v11290_v56  ;;  %v2887_v49 = vmul.f32 %v11290_v56, %v11290_v56 }
 0x29e   :  { %v2962_v12 = vadd.f32 %v2961_v5, %v2886_v42 }
 0x29f   :  { %v2983_v45 = vadd.f32 %v2982_v54, %v2887_v49 }
 0x2a1   :  { %v11295_v23 = vpop.f32.mrb[20].mxu1 }
 0x2a2   :  { %13549 = vst [vmem:[#allocation169_spill] sm:$0xff] %v11295_v23  ;;  %v2815_v43 = vadd.f32 %v2814_v55, %v11295_v23  ;;  %v2890_v44 = vmul.f32 %v11295_v23, %v11295_v23  ;;  %v11300_v57 = vpop.f32.mrb[21].mxu1 }
 0x2a3   :  { %13550 = vst [vmem:[#allocation170_spill] sm:$0xff] %v11300_v57  ;;  %v2836_v17 = vadd.f32 %v2835_v20, %v11300_v57  ;;  %v2891_v62 = vmul.f32 %v11300_v57, %v11300_v57  ;;  %v11305_v1 = vpop.f32.mrb[22].mxu1 }
 0x2a4   :  { %13551 = vst [vmem:[#allocation171_spill] sm:$0xff] %v11305_v1  ;;  %v2963_v8 = vadd.f32 %v2962_v12, %v2890_v44  ;;  %v2816_v5 = vadd.f32 %v2815_v43, %v11305_v1  ;;  %v2894_v49 = vmul.f32 %v11305_v1, %v11305_v1  ;;  %v11310_v42 = vpop.f32.mrb[23].mxu1 }
 0x2a5   :  { %13552 = vst [vmem:[#allocation172_spill] sm:$0xff] %v11310_v42  ;;  %v2984_v55 = vadd.f32 %v2983_v45, %v2891_v62  ;;  %v2837_v54 = vadd.f32 %v2836_v17, %v11310_v42  ;;  %v2895_v23 = vmul.f32 %v11310_v42, %v11310_v42 }
 0x2a6   :  { %v2964_v20 = vadd.f32 %v2963_v8, %v2894_v49 }
 0x2a7   :  { %v2985_v11 = vadd.f32 %v2984_v55, %v2895_v23 }
 0x2a9   :  { %v11315_v56 = vpop.f32.mrb[24].mxu1 }
 0x2aa   :  { %13553 = vst [vmem:[#allocation173_spill] sm:$0xff] %v11315_v56  ;;  %v2817_v57 = vadd.f32 %v2816_v5, %v11315_v56  ;;  %v2898_v43 = vmul.f32 %v11315_v56, %v11315_v56  ;;  %v11320_v12 = vpop.f32.mrb[25].mxu1 }
 0x2ab   :  { %13554 = vst [vmem:[#allocation174_spill] sm:$0xff] %v11320_v12  ;;  %v2838_v44 = vadd.f32 %v2837_v54, %v11320_v12  ;;  %v2899_v45 = vmul.f32 %v11320_v12, %v11320_v12  ;;  %v11325_v17 = vpop.f32.mrb[26].mxu1 }
 0x2ac   :  { %13555 = vst [vmem:[#allocation175_spill] sm:$0xff] %v11325_v17  ;;  %v2965_v62 = vadd.f32 %v2964_v20, %v2898_v43  ;;  %v2818_v8 = vadd.f32 %v2817_v57, %v11325_v17  ;;  %v2902_v23 = vmul.f32 %v11325_v17, %v11325_v17  ;;  %v11330_v49 = vpop.f32.mrb[27].mxu1 }
 0x2ad   :  { %13556 = vst [vmem:[#allocation176_spill] sm:$0xff] %v11330_v49  ;;  %v2986_v5 = vadd.f32 %v2985_v11, %v2899_v45  ;;  %v2839_v55 = vadd.f32 %v2838_v44, %v11330_v49  ;;  %v2903_v56 = vmul.f32 %v11330_v49, %v11330_v49 }
 0x2ae   :  { %v2966_v54 = vadd.f32 %v2965_v62, %v2902_v23 }
 0x2af   :  { %v2987_v1 = vadd.f32 %v2986_v5, %v2903_v56 }
 0x2b1   :  { %v11335_v42 = vpop.f32.mrb[28].mxu1 }
 0x2b2   :  { %13557 = vst [vmem:[#allocation177_spill] sm:$0xff] %v11335_v42  ;;  %v2819_v12 = vadd.f32 %v2818_v8, %v11335_v42  ;;  %v2906_v57 = vmul.f32 %v11335_v42, %v11335_v42  ;;  %v11340_v20 = vpop.f32.mrb[29].mxu1 }
 0x2b3   :  { %13558 = vst [vmem:[#allocation178_spill] sm:$0xff] %v11340_v20  ;;  %v2840_v43 = vadd.f32 %v2839_v55, %v11340_v20  ;;  %v2907_v11 = vmul.f32 %v11340_v20, %v11340_v20  ;;  %v11345_v44 = vpop.f32.mrb[30].mxu1 }
 0x2b4   :  { %13559 = vst [vmem:[#allocation179_spill] sm:$0xff] %v11345_v44  ;;  %v2967_v45 = vadd.f32 %v2966_v54, %v2906_v57  ;;  %v2820_v62 = vadd.f32 %v2819_v12, %v11345_v44  ;;  %v2910_v56 = vmul.f32 %v11345_v44, %v11345_v44  ;;  %v11350_v23 = vpop.f32.mrb[31].mxu1 }
 0x2b5   :  { %13560 = vst [vmem:[#allocation180_spill] sm:$0xff] %v11350_v23  ;;  %v2988_v8 = vadd.f32 %v2987_v1, %v2907_v11  ;;  %v2841_v5 = vadd.f32 %v2840_v43, %v11350_v23  ;;  %v2911_v42 = vmul.f32 %v11350_v23, %v11350_v23 }
 0x2b6   :  { %v2821_v55 = vrot.slane %v2820_v62, 4  ;;  %v2968_v17 = vadd.f32 %v2967_v45, %v2910_v56 }
 0x2b7   :  { %v2842_v49 = vrot.slane %v2841_v5, 4  ;;  %v2989_v20 = vadd.f32 %v2988_v8, %v2911_v42 }
 0x2b8   :  { %v2822_v36 = vadd.f32 %v2821_v55, %v2820_v62  ;;  %v2969_v2 = vrot.slane %v2968_v17, 4 }
 0x2b9   :  { %v2843_v54 = vadd.f32 %v2842_v49, %v2841_v5  ;;  %v2990_v57 = vrot.slane %v2989_v20, 4 }
 0x2ba   :  { %v2823_v12 = vrot.slane %v2822_v36, 2  ;;  %v2970_v26 = vadd.f32 %v2969_v2, %v2968_v17 }
 0x2bb   :  { %v2844_v51 = vrot.slane %v2843_v54, 2  ;;  %v2991_v44 = vadd.f32 %v2990_v57, %v2989_v20 }
 0x2bc   :  { %v2824_v14 = vadd.f32 %v2823_v12, %v2822_v36  ;;  %v2971_v50 = vrot.slane %v2970_v26, 2 }
 0x2bd   :  { %v2845_v1 = vadd.f32 %v2844_v51, %v2843_v54  ;;  %v2992_v11 = vrot.slane %v2991_v44, 2  ;;  %v3004_v51 = vlaneseq }
 0x2be   :  { %v2825_v43 = vrot.slane %v2824_v14, 1  ;;  %v2972_v38 = vadd.f32 %v2971_v50, %v2970_v26 }
 0x2bf   :  { %v2846_v21 = vrot.slane %v2845_v1, 1  ;;  %v2993_v23 = vadd.f32 %v2992_v11, %v2991_v44  ;;  %v11360_v36 = vand.u32 127, %v3004_v51 }
 0x2c0   :  { %v2826_v18 = vadd.f32 %v2825_v43, %v2824_v14  ;;  %v2973_v45 = vrot.slane %v2972_v38, 1 }
 0x2c1   :  { %v2847_v56 = vadd.f32 %v2846_v21, %v2845_v1  ;;  %v2994_v42 = vrot.slane %v2993_v23, 1  ;;  %13561 = vst [vmem:[#allocation181_spill] sm:$0xff] %v11360_v36  ;;  %vm3006_vm3 = vcmp.lt.s32.totalorder %v11360_v36, 32  ;;  %vm3039_vm4 = vcmp.lt.s32.totalorder %v11360_v36, 64 }
 0x2c2   :  { %3000 = vrot.lane.b32.xlu0 %v2826_v18, %s9311_s1  ;;  %v2974_v49 = vadd.f32 %v2973_v45, %v2972_v38 }
 0x2c3   :  { %3002 = vrot.lane.b32.xlu1 %v2847_v56, %s9311_s1  ;;  %v2995_v2 = vadd.f32 %v2994_v42, %v2993_v23 }
 0x2c6   :  { %3019 = vrot.lane.b32.xlu0 %v2974_v49, %s9311_s1 }
 0x2c7   :  { %3021 = vrot.lane.b32.xlu1 %v2995_v2, %s9311_s1 }
 0x2cf   :  { %v2997_v26 = vpop.permute.xlu0 %2996 }
 0x2d0   :  { %v2999_v14 = vpop.permute.xlu1 %2998 }
 0x2d1   :  { %v3009_v21 = vsel %vm3006_vm3, %v2997_v26, %v2999_v14 }
 0x2d2   :  { %v3012_v50 = vadd.f32 %v3009_v21, %v11181_v6 }
 0x2d3   :  { %v3016_v17 = vpop.permute.xlu0 %3015 }
 0x2d4   :  { %3033 = vrot.lane.b32.xlu1 %v3012_v50, %s9312_s30  ;;  %v3018_v38 = vpop.permute.xlu1 %3017 }
 0x2d5   :  { %v3025_v20 = vsel %vm3006_vm3, %v3016_v17, %v3018_v38 }
 0x2d6   :  { %v3028_v44 = vadd.f32 %v3025_v20, %v11189_v53 }
 0x2d8   :  { %3050 = vrot.lane.b32.xlu1 %v3028_v44, %s9312_s30 }
 0x334   :  { %v3001_v62 = vpop.permute.xlu0 %3000 }
 0x335   :  { %v3008_v23 = vsel %vm3006_vm3, %v2999_v14, %v3001_v62  ;;  %v3003_v8 = vpop.permute.xlu1 %3002 }
 0x336   :  { %v3013_v5 = vadd.f32 %v3008_v23, %v2826_v18  ;;  %v3007_v6 = vsel %vm3006_vm3, %v3001_v62, %v3003_v8  ;;  %v3010_v55 = vsel %vm3006_vm3, %v3003_v8, %v2997_v26 }
 0x337   :  { %v3014_v54 = vadd.f32 %v3007_v6, %v2847_v56  ;;  %v3011_v12 = vadd.f32 %v3010_v55, %v11179_v9 }
 0x338   :  { %v3020_v57 = vpop.permute.xlu0 %3019  ;;  %3035 = vrot.lane.b32.xlu0 %v3013_v5, %s9312_s30 }
 0x339   :  { %3037 = vrot.lane.b32.xlu1 %v3014_v54, %s9312_s30  ;;  %v3022_v53 = vpop.permute.xlu1 %3021  ;;  %v3024_v18 = vsel %vm3006_vm3, %v3018_v38, %v3020_v57 }
 0x33a   :  { %v3023_v1 = vsel %vm3006_vm3, %v3020_v57, %v3022_v53  ;;  %v3029_v43 = vadd.f32 %v3024_v18, %v2974_v49  ;;  %v3026_v45 = vsel %vm3006_vm3, %v3022_v53, %v3016_v17 }
 0x33b   :  { %v3030_v11 = vadd.f32 %v3023_v1, %v2995_v2  ;;  %v3027_v56 = vadd.f32 %v3026_v45, %v11187_v52 }
 0x33c   :  { %3031 = vrot.lane.b32.xlu0 %v3011_v12, %s9312_s30 }
 0x33d   :  { %3054 = vrot.lane.b32.xlu1 %v3030_v11, %s9312_s30 }
 0x340   :  { %3052 = vrot.lane.b32.xlu0 %v3029_v43, %s9312_s30 }
 0x344   :  { %3048 = vrot.lane.b32.xlu0 %v3027_v56, %s9312_s30 }
 0x346   :  { %v3034_v9 = vpop.permute.xlu1 %3033 }
 0x34a   :  { %v3051_v42 = vpop.permute.xlu1 %3050 }
 0x3aa   :  { %v3036_v26 = vpop.permute.xlu0 %3035 }
 0x3ab   :  { %v3038_v2 = vpop.permute.xlu1 %3037  ;;  %v3041_v14 = vsel %vm3039_vm4, %v3034_v9, %v3036_v26 }
 0x3ac   :  { %v3040_v49 = vsel %vm3039_vm4, %v3036_v26, %v3038_v2  ;;  %v3046_v17 = vadd.f32 %v3041_v14, %v3013_v5 }
 0x3ad   :  { %v3047_v38 = vadd.f32 %v3040_v49, %v3014_v54 }
 0x3ae   :  { %v3032_v21 = vpop.permute.xlu0 %3031 }
 0x3af   :  { %v3042_v52 = vsel %vm3039_vm4, %v3032_v21, %v3034_v9  ;;  %v3043_v20 = vsel %vm3039_vm4, %v3038_v2, %v3032_v21  ;;  %v3055_v57 = vpop.permute.xlu1 %3054  ;;  %v3067_v1 = vadd.f32 %v3047_v38, %v3046_v17 }
 0x3b0   :  { %v3044_v62 = vadd.f32 %v3043_v20, %v3011_v12  ;;  %v3045_v23 = vadd.f32 %v3042_v52, %v3012_v50 }
 0x3b2   :  { %v3064_v8 = vadd.f32 %v3047_v38, %v3044_v62  ;;  %v3065_v6 = vadd.f32 %v3045_v23, %v3044_v62  ;;  %v3066_v55 = vadd.f32 %v3046_v17, %v3045_v23  ;;  %v3053_v53 = vpop.permute.xlu0 %3052 }
 0x3b3   :  { %v3056_v18 = vsel %vm3039_vm4, %v3053_v53, %v3055_v57  ;;  %v3057_v5 = vsel %vm3039_vm4, %v3051_v42, %v3053_v53 }
 0x3b4   :  { %v3072_v54 = vadd.f32 %v3066_v55, %v3064_v8  ;;  %v3073_v45 = vadd.f32 %v3067_v1, %v3065_v6  ;;  %v3062_v9 = vadd.f32 %v3057_v5, %v3029_v43  ;;  %v3063_v26 = vadd.f32 %v3056_v18, %v3030_v11 }
 0x3b6   :  { %v3049_v14 = vpop.permute.xlu0 %3048  ;;  %v3076_v21 = vmul.f32 0.00048828125, %v3072_v54  ;;  %v3077_v17 = vmul.f32 0.00048828125, %v3073_v45  ;;  %v3071_v38 = vadd.f32 %v3063_v26, %v3062_v9 }
 0x3b7   :  { %v3058_v50 = vsel %vm3039_vm4, %v3049_v14, %v3051_v42  ;;  %v3059_v12 = vsel %vm3039_vm4, %v3055_v57, %v3049_v14  ;;  %v3096_v57 = vshrl.u32 %v3004_v51, 7 }
 0x3b8   :  { %v3060_v2 = vadd.f32 %v3059_v12, %v3027_v56  ;;  %v3061_v49 = vadd.f32 %v3058_v50, %v3028_v44  ;;  %v3080_v11 = vmul.f32 %v3076_v21, %v3076_v21  ;;  %v3081_v55 = vmul.f32 %v3077_v17, %v3077_v17 }
 0x3b9   :  { %v9313_v56 = vmov 1966171168   ;;  %v11412_v12 = vsub.s32 0, %v3096_v57  ;;  %v11421_v51 = vsub.s32 3, %v3096_v57 }
 0x3ba   :  { %v3068_v52 = vadd.f32 %v3063_v26, %v3060_v2  ;;  %v3069_v20 = vadd.f32 %v3061_v49, %v3060_v2  ;;  %v3070_v62 = vadd.f32 %v3062_v9, %v3061_v49  ;;  %v3093_v44 = vunpack.c.l.s4 %v9313_v56  ;;  %v3084_v2 = vld [vmem:[%s13226_s7] ss:$2 sm:$0xf] }
 0x3bb   :  { %13563 = vst [vmem:[#allocation183_spill] sm:$0xff] %v11412_v12  ;;  %v11417_v49 = vsub.s32 1, %v3096_v57 }
 0x3bc   :  { %v3074_v23 = vadd.f32 %v3070_v62, %v3068_v52  ;;  %v3075_v8 = vadd.f32 %v3071_v38, %v3069_v20  ;;  %v3094_v5 = vunpack.c.0.s8 %v3093_v44  ;;  %v11419_v38 = vsub.s32 2, %v3096_v57 }
 0x3bd   :  { %13564 = vst [vmem:[#allocation184_spill] sm:$0xff] %v11417_v49 }
 0x3be   :  { %v3078_v6 = vmul.f32 0.00048828125, %v3074_v23  ;;  %v3079_v43 = vmul.f32 0.00048828125, %v3075_v8  ;;  %v11409_v45 = vsub.s32 %v3094_v5, %v3096_v57  ;;  %v8186_v57 = vld [vmem:[%s13226_s7 + $0x1] ss:$2 sm:$0xf] }
 0x3c0   :  { %v3082_v53 = vsub.f32 %v3078_v6, %v3080_v11  ;;  %v3083_v1 = vsub.f32 %v3079_v43, %v3081_v55  ;;  %13562 = vst [vmem:[#allocation182_spill] sm:$0xff] %v11409_v45 }
 0x3c2   :  { %v3085_v42 = vadd.f32 1e-05, %v3082_v53  ;;  %v3086_v18 = vadd.f32 1e-05, %v3083_v1 }
 0x3c4   :  { %9155 = vrsqrt.f32 %v3085_v42 }
 0x3c5   :  { %9157 = vrsqrt.f32 %v3086_v18 }
 0x3ce   :  { %v9156_v54 = vpop.eup %9155 }
 0x3cf   :  { %v9158_v9 = vpop.eup %9157 }
 0x3d0   :  { %v3091_v26 = vcombine.low %v9156_v54, %v9158_v9 }
 0x3d2   :  { %v3098_v14 = vrot.slane %v3091_v26, %v11409_v45 }
 0x3d4   :  { %v3099_v50 = vcombine.low %v3098_v14, %v3098_v14 }
 0x3d6   :  { %v3106_v52 = vrot.slane %v3099_v50, %v11409_v45 }
 0x3d8   :  { %v3108_v20 = vmul.f32 %v3106_v52, %v3084_v2 }
 0x3da   :  { %v11425_v62 = vrot.slane %v3108_v20, %v11412_v12  ;;  %v11428_v23 = vrot.slane %v3108_v20, %v11417_v49  ;;  %v11431_v8 = vrot.slane %v3108_v20, %v11419_v38  ;;  %v11434_v6 = vrot.slane %v3108_v20, %v11421_v51 }
 0x3dc   :  { %v3132_v43 = vmul.f32 %v11425_v62, %v3076_v21  ;;  %v3133_v11 = vmul.f32 %v11428_v23, %v3077_v17  ;;  %v3134_v55 = vmul.f32 %v11431_v8, %v3076_v21  ;;  %v3135_v53 = vmul.f32 %v11434_v6, %v3077_v17 }
 0x3dd   :  { %v3167_v9 = vmul.f32 %v11428_v23, %v11021_v19  ;;  %v3166_v21 = vmul.f32 %v11425_v62, %v11019_v41  ;;  %v3169_v17 = vmul.f32 %v11434_v6, %v11197_v59  ;;  %v3168_v26 = vmul.f32 %v11431_v8, %v11195_v58 }
 0x3de   :  { %v3140_v1 = vcombine.low %v3132_v43, %v3133_v11  ;;  %v3141_v42 = vcombine.low %v3134_v55, %v3135_v53  ;;  %v3171_v41 = vmul.f32 %v11428_v23, %v11031_v32  ;;  %v3170_v11 = vmul.f32 %v11425_v62, %v11023_v16 }
 0x3df   :  { %v3173_v32 = vmul.f32 %v11434_v6, %v11207_v3  ;;  %v3172_v16 = vmul.f32 %v11431_v8, %v11199_v60  ;;  %v3179_v3 = vmul.f32 %v11428_v23, %v11054_v37 }
 0x3e0   :  { %v3148_v18 = vrot.slane %v3140_v1, %v11409_v45  ;;  %v3155_v56 = vrot.slane %v3141_v42, %v11409_v45 }
 0x3e2   :  { %v3156_v44 = vcombine.low %v3148_v18, %v3155_v56 }
 0x3e4   :  { %v3163_v5 = vrot.slane %v3156_v44, %v11409_v45 }
 0x3e6   :  { %v3165_v54 = vsub.f32 %v8186_v57, %v3163_v5  ;;  %v3175_v57 = vmul.f32 %v11428_v23, %v11044_v13  ;;  %v3174_v13 = vmul.f32 %v11425_v62, %v11039_v46  ;;  %v3176_v46 = vmul.f32 %v11431_v8, %v11215_v48 }
 0x3e7   :  { %v3178_v48 = vmul.f32 %v11425_v62, %v11049_v39  ;;  %v3191_v39 = vmul.f32 %v11428_v23, %v11084_v24  ;;  %v3195_v24 = vmul.f32 %v11428_v23, %v11094_v34  ;;  %v3185_v34 = vmul.f32 %v11434_v6, %v11240_v47 }
 0x3e8   :  { %v11455_v14 = vrot.slane %v3165_v54, %v11412_v12  ;;  %v11458_v50 = vrot.slane %v3165_v54, %v11417_v49  ;;  %v11461_v2 = vrot.slane %v3165_v54, %v11419_v38  ;;  %v11464_v19 = vrot.slane %v3165_v54, %v11421_v51 }
 0x3ea   :  { %v3252_v59 = vadd.f32 %v11458_v50, %v3167_v9  ;;  %v3251_v52 = vadd.f32 %v11455_v14, %v3166_v21  ;;  %v3254_v58 = vadd.f32 %v11464_v19, %v3169_v17  ;;  %v3253_v20 = vadd.f32 %v11461_v2, %v3168_v26 }
 0x3eb   :  { %v3256_v43 = vadd.f32 %v11458_v50, %v3171_v41  ;;  %v3255_v1 = vadd.f32 %v11455_v14, %v3170_v11  ;;  %v3258_v5 = vadd.f32 %v11464_v19, %v3173_v32  ;;  %v3257_v9 = vadd.f32 %v11461_v2, %v3172_v16 }
 0x3ec   :  { %vm3316_vm5 = vcmp.ge.f32.partialorder %v3252_v59, 0.0  ;;  %v3380_v55 = vmul.f32 0.2, %v3252_v59  ;;  %vm3315_vm6 = vcmp.ge.f32.partialorder %v3251_v52, 0.0  ;;  %v3379_v53 = vmul.f32 0.2, %v3251_v52 }
 0x3ed   :  { %v3382_v56 = vmul.f32 0.2, %v3254_v58  ;;  %v3381_v44 = vmul.f32 0.2, %v3253_v20  ;;  %vm3318_vm7 = vcmp.ge.f32.partialorder %v3254_v58, 0.0  ;;  %vm3317_vm8 = vcmp.ge.f32.partialorder %v3253_v20, 0.0 }
 0x3ee   :  { %v3444_v42 = vsel %vm3316_vm5, %v3252_v59, %v3380_v55  ;;  %v3443_v18 = vsel %vm3315_vm6, %v3251_v52, %v3379_v53  ;;  %vm3320_vm9 = vcmp.ge.f32.partialorder %v3256_v43, 0.0  ;;  %v3384_v54 = vmul.f32 0.2, %v3256_v43 }
 0x3ef   :  { %3573 = vrot.lane.b32.xlu1 %v3444_v42, %s9311_s1  ;;  %3571 = vrot.lane.b32.xlu0 %v3443_v18, %s9311_s1  ;;  %v3260_v21 = vadd.f32 %v11458_v50, %v3175_v57  ;;  %v3446_v17 = vsel %vm3318_vm7, %v3254_v58, %v3382_v56  ;;  %v3445_v26 = vsel %vm3317_vm8, %v3253_v20, %v3381_v44  ;;  %v3383_v41 = vmul.f32 0.2, %v3255_v1 }
 0x3f0   :  { %v3264_v59 = vadd.f32 %v11458_v50, %v3179_v3  ;;  %vm3319_vm10 = vcmp.ge.f32.partialorder %v3255_v1, 0.0  ;;  %v3448_v37 = vsel %vm3320_vm9, %v3256_v43, %v3384_v54  ;;  %v3386_v60 = vmul.f32 0.2, %v3258_v5 }
 0x3f1   :  { %v3447_v52 = vsel %vm3319_vm10, %v3255_v1, %v3383_v41  ;;  %vm3322_vm11 = vcmp.ge.f32.partialorder %v3258_v5, 0.0  ;;  %v3385_v11 = vmul.f32 0.2, %v3257_v9  ;;  %v3259_v55 = vadd.f32 %v11455_v14, %v3174_v13 }
 0x3f2   :  { %vm3321_vm12 = vcmp.ge.f32.partialorder %v3257_v9, 0.0  ;;  %v3177_v58 = vmul.f32 %v11434_v6, %v11220_v30  ;;  %v3183_v20 = vmul.f32 %v11428_v23, %v11064_v33  ;;  %v3450_v43 = vsel %vm3322_vm11, %v3258_v5, %v3386_v60 }
 0x3f3   :  { %3577 = vrot.lane.b32.xlu1 %v3446_v17, %s9311_s1  ;;  %3575 = vrot.lane.b32.xlu0 %v3445_v26, %s9311_s1  ;;  %v3449_v32 = vsel %vm3321_vm12, %v3257_v9, %v3385_v11  ;;  %v3388_v42 = vmul.f32 0.2, %v3260_v21  ;;  %v3387_v18 = vmul.f32 0.2, %v3259_v55  ;;  %v3261_v56 = vadd.f32 %v11461_v2, %v3176_v46 }
 0x3f4   :  { %v3262_v53 = vadd.f32 %v11464_v19, %v3177_v58  ;;  %v11505_v1 = vadd.f32 %v11458_v50, %v3183_v20  ;;  %vm3324_vm13 = vcmp.ge.f32.partialorder %v3260_v21, 0.0  ;;  %vm3323_vm14 = vcmp.ge.f32.partialorder %v3259_v55, 0.0 }
 0x3f5   :  { %v3187_v33 = vmul.f32 %v11428_v23, %v11074_v27  ;;  %v3452_v16 = vsel %vm3324_vm13, %v3260_v21, %v3388_v42  ;;  %v3451_v57 = vsel %vm3323_vm14, %v3259_v55, %v3387_v18  ;;  %v3389_v5 = vmul.f32 0.2, %v3261_v56 }
 0x3f6   :  { %v3390_v30 = vmul.f32 0.2, %v3262_v53  ;;  %v3263_v3 = vadd.f32 %v11455_v14, %v3178_v48  ;;  %vm3326_vm15 = vcmp.ge.f32.partialorder %v3262_v53, 0.0  ;;  %vm3325_vm0 = vcmp.ge.f32.partialorder %v3261_v56, 0.0 }
 0x3f7   :  { %3581 = vrot.lane.b32.xlu1 %v3448_v37, %s9311_s1  ;;  %3579 = vrot.lane.b32.xlu0 %v3447_v52, %s9311_s1  ;;  %v11515_v44 = vadd.f32 %v11458_v50, %v3187_v33  ;;  %v3181_v27 = vmul.f32 %v11434_v6, %v11230_v35  ;;  %v3180_v54 = vmul.f32 %v11431_v8, %v11225_v7  ;;  %vm3328_vm1 = vcmp.ge.f32.partialorder %v3264_v59, 0.0 }
 0x3f8   :  { %v3392_v9 = vmul.f32 0.2, %v3264_v59  ;;  %v11528_v17 = vadd.f32 %v11458_v50, %v3191_v39  ;;  %v3454_v26 = vsel %vm3326_vm15, %v3262_v53, %v3390_v30  ;;  %v3453_v41 = vsel %vm3325_vm0, %v3261_v56, %v3389_v5 }
 0x3f9   :  { %v3266_v21 = vadd.f32 %v11464_v19, %v3181_v27  ;;  %v3391_v13 = vmul.f32 0.2, %v3263_v3  ;;  %v3265_v37 = vadd.f32 %v11461_v2, %v3180_v54  ;;  %vm3327_vm2 = vcmp.ge.f32.partialorder %v3263_v3, 0.0 }
 0x3fa   :  { %v3182_v7 = vmul.f32 %v11425_v62, %v11059_v31  ;;  %v3456_v35 = vsel %vm3328_vm1, %v3264_v59, %v3392_v9  ;;  %v11538_v52 = vadd.f32 %v11458_v50, %v3195_v24  ;;  %v3199_v31 = vmul.f32 %v11428_v23, %v11104_v40 }
 0x3fb   :  { %3585 = vrot.lane.b32.xlu1 %v3450_v43, %s9311_s1  ;;  %3583 = vrot.lane.b32.xlu0 %v3449_v32, %s9311_s1  ;;  %v3394_v60 = vmul.f32 0.2, %v3266_v21  ;;  %v3455_v11 = vsel %vm3327_vm2, %v3263_v3, %v3391_v13  ;;  %vm3330_vm3 = vcmp.ge.f32.partialorder %v3266_v21, 0.0  ;;  %v3393_v55 = vmul.f32 0.2, %v3265_v37 }
 0x3fc   :  { %v3267_v58 = vadd.f32 %v11455_v14, %v3182_v7  ;;  %vm3329_vm5 = vcmp.ge.f32.partialorder %v3265_v37, 0.0  ;;  %v3184_v59 = vmul.f32 %v11431_v8, %v11235_v10  ;;  %v3270_v46 = vadd.f32 %v11464_v19, %v3185_v34 }
 0x3fd   :  { %v3458_v20 = vsel %vm3330_vm3, %v3266_v21, %v3394_v60  ;;  %v11551_v43 = vadd.f32 %v11458_v50, %v3199_v31  ;;  %v3457_v53 = vsel %vm3329_vm5, %v3265_v37, %v3393_v55  ;;  %v3396_v32 = vmul.f32 0.2, %v11505_v1 }
 0x3fe   :  { %v3395_v42 = vmul.f32 0.2, %v3267_v58  ;;  %v3269_v18 = vadd.f32 %v11461_v2, %v3184_v59  ;;  %vm3332_vm6 = vcmp.ge.f32.partialorder %v11505_v1, 0.0  ;;  %vm3331_vm7 = vcmp.ge.f32.partialorder %v3267_v58, 0.0 }
 0x3ff   :  { %3589 = vrot.lane.b32.xlu1 %v3452_v16, %s9311_s1  ;;  %3587 = vrot.lane.b32.xlu0 %v3451_v57, %s9311_s1  ;;  %v3203_v40 = vmul.f32 %v11428_v23, %v11114_v22  ;;  %v3186_v10 = vmul.f32 %v11425_v62, %v11069_v29  ;;  %vm3334_vm8 = vcmp.ge.f32.partialorder %v3270_v46, 0.0  ;;  %v3398_v47 = vmul.f32 0.2, %v3270_v46 }
 0x400   :  { %v3460_v33 = vsel %vm3332_vm6, %v11505_v1, %v3396_v32  ;;  %v3459_v48 = vsel %vm3331_vm7, %v3267_v58, %v3395_v42  ;;  %v3397_v30 = vmul.f32 0.2, %v3269_v18  ;;  %vm3333_vm9 = vcmp.ge.f32.partialorder %v3269_v18, 0.0  ;;  %v13566_v58 = vld [vmem:[#allocation150_spill] sm:$0xff] }
 0x401   :  { %v11563_v56 = vadd.f32 %v11458_v50, %v3203_v40  ;;  %v3271_v16 = vadd.f32 %v11455_v14, %v3186_v10  ;;  %v3189_v22 = vmul.f32 %v11434_v6, %v11250_v61  ;;  %v3207_v29 = vmul.f32 %v11428_v23, %v11124_v28  ;;  %v13567_v42 = vld [vmem:[#allocation158_spill] sm:$0xff]  ;;  %v13568_v40 = vld [vmem:[#allocation164_spill] sm:$0xff] }
 0x402   :  { %v3188_v57 = vmul.f32 %v11431_v8, %v11245_v63  ;;  %v3462_v5 = vsel %vm3334_vm8, %v3270_v46, %v3398_v47  ;;  %v3461_v27 = vsel %vm3333_vm9, %v3269_v18, %v3397_v30  ;;  %v3400_v39 = vmul.f32 0.2, %v11515_v44  ;;  %v13569_v47 = vld [vmem:[#allocation163_spill] sm:$0xff] }
 0x403   :  { %3593 = vrot.lane.b32.xlu1 %v3454_v26, %s9311_s1  ;;  %3591 = vrot.lane.b32.xlu0 %v3453_v41, %s9311_s1  ;;  %v3274_v1 = vadd.f32 %v11464_v19, %v3189_v22  ;;  %v11577_v3 = vadd.f32 %v11458_v50, %v3207_v29  ;;  %v3399_v54 = vmul.f32 0.2, %v3271_v16  ;;  %vm3336_vm10 = vcmp.ge.f32.partialorder %v11515_v44, 0.0 }
 0x404   :  { %v3273_v9 = vadd.f32 %v11461_v2, %v3188_v57  ;;  %vm3335_vm11 = vcmp.ge.f32.partialorder %v3271_v16, 0.0  ;;  %v3190_v28 = vmul.f32 %v11425_v62, %v11079_v15  ;;  %v3193_v61 = vmul.f32 %v11434_v6, %v11260_v4 }
 0x405   :  { %vm3338_vm12 = vcmp.ge.f32.partialorder %v3274_v1, 0.0  ;;  %v3402_v63 = vmul.f32 0.2, %v3274_v1  ;;  %v3211_v21 = vmul.f32 %v11428_v23, %v11134_v25  ;;  %v3464_v26 = vsel %vm3336_vm10, %v11515_v44, %v3400_v39 }
 0x406   :  { %v3463_v41 = vsel %vm3335_vm11, %v3271_v16, %v3399_v54  ;;  %v3401_v13 = vmul.f32 0.2, %v3273_v9  ;;  %v3275_v37 = vadd.f32 %v11455_v14, %v3190_v28  ;;  %vm3337_vm13 = vcmp.ge.f32.partialorder %v3273_v9, 0.0 }
 0x407   :  { %3597 = vrot.lane.b32.xlu1 %v3456_v35, %s9311_s1  ;;  %3595 = vrot.lane.b32.xlu0 %v3455_v11, %s9311_s1  ;;  %v3192_v15 = vmul.f32 %v11431_v8, %v11255_v0  ;;  %v11597_v24 = vadd.f32 %v11458_v50, %v3211_v21  ;;  %v13366_v4 = vmov 0.0   ;;  %v3466_v25 = vsel %vm3338_vm12, %v3274_v1, %v3402_v63  ;;  %v13565_v11 = vld [vmem:[#allocation156_spill] sm:$0xff] }
 0x408   :  { %3860 = vst [vmem:[#allocation2] sm:$0xff] %v13366_v4  ;;  %3861 = vst [vmem:[#allocation2 + $0x8] sm:$0xff] %v13366_v4  ;;  %v3404_v44 = vmul.f32 0.2, %v11528_v17  ;;  %v3278_v7 = vadd.f32 %v11464_v19, %v3193_v61  ;;  %v3465_v35 = vsel %vm3337_vm13, %v3273_v9, %v3401_v13  ;;  %vm3340_vm14 = vcmp.ge.f32.partialorder %v11528_v17, 0.0  ;;  %v13573_v13 = vld [vmem:[#allocation162_spill] sm:$0xff] }
 0x409   :  { %3862 = vst [vmem:[#allocation2 + $0x10] sm:$0xff] %v13366_v4  ;;  %3863 = vst [vmem:[#allocation2 + $0x18] sm:$0xff] %v13366_v4  ;;  %v3277_v0 = vadd.f32 %v11461_v2, %v3192_v15  ;;  %v3403_v60 = vmul.f32 0.2, %v3275_v37  ;;  %v3215_v55 = vmul.f32 %v11428_v23, %v13565_v11  ;;  %vm3339_vm15 = vcmp.ge.f32.partialorder %v3275_v37, 0.0 }
 0x40a   :  { %vm3864_vm0 = vcmask 523264   ;;  %v3194_v34 = vmul.f32 %v11425_v62, %v13566_v58  ;;  %v3468_v59 = vsel %vm3340_vm14, %v11528_v17, %v3404_v44  ;;  %vm3342_vm1 = vcmp.ge.f32.partialorder %v3278_v7, 0.0 }
 0x40b   :  { %3601 = vrot.lane.b32.xlu1 %v3458_v20, %s9311_s1  ;;  %3599 = vrot.lane.b32.xlu0 %v3457_v53, %s9311_s1  ;;  %v11615_v31 = vadd.f32 %v11458_v50, %v3215_v55  ;;  %3865 = vst.msk [vmem:[#allocation2 + $0x20] sm:$0xff] %vm3864_vm0, %v13366_v4  ;;  %v3406_v20 = vmul.f32 0.2, %v3278_v7  ;;  %v3467_v46 = vsel %vm3339_vm15, %v3275_v37, %v3403_v60  ;;  %v3405_v53 = vmul.f32 0.2, %v3277_v0  ;;  %v13574_v37 = vld [vmem:[#allocation165_spill] sm:$0xff] }
 0x40c   :  { %v3279_v32 = vadd.f32 %v11455_v14, %v3194_v34  ;;  %v3219_v18 = vmul.f32 %v11428_v23, %v13567_v42  ;;  %vm3341_vm2 = vcmp.ge.f32.partialorder %v3277_v0, 0.0  ;;  %v3197_v10 = vmul.f32 %v11434_v6, %v13568_v40 }
 0x40d   :  { %v3196_v17 = vmul.f32 %v11431_v8, %v13569_v47  ;;  %v3408_v30 = vmul.f32 0.2, %v11538_v52  ;;  %v3469_v22 = vsel %vm3341_vm2, %v3277_v0, %v3405_v53  ;;  %vm3344_vm3 = vcmp.ge.f32.partialorder %v11538_v52, 0.0 }
 0x40e   :  { %v3282_v16 = vadd.f32 %v11464_v19, %v3197_v10  ;;  %v3407_v29 = vmul.f32 0.2, %v3279_v32  ;;  %vm3343_vm5 = vcmp.ge.f32.partialorder %v3279_v32, 0.0  ;;  %v3200_v15 = vmul.f32 %v11431_v8, %v13574_v37 }
 0x40f   :  { %3605 = vrot.lane.b32.xlu1 %v3460_v33, %s9311_s1  ;;  %3603 = vrot.lane.b32.xlu0 %v3459_v48, %s9311_s1  ;;  %v11630_v33 = vadd.f32 %v11458_v50, %v3219_v18  ;;  %v3470_v48 = vsel %vm3342_vm1, %v3278_v7, %v3406_v20  ;;  %v3281_v57 = vadd.f32 %v11461_v2, %v3196_v17  ;;  %vm3348_vm8 = vcmp.ge.f32.partialorder %v11551_v43, 0.0 }
 0x410   :  { %v3472_v54 = vsel %vm3344_vm3, %v11538_v52, %v3408_v30  ;;  %vm3346_vm6 = vcmp.ge.f32.partialorder %v3282_v16, 0.0  ;;  %v3410_v9 = vmul.f32 0.2, %v3282_v16  ;;  %v3471_v28 = vsel %vm3343_vm5, %v3279_v32, %v3407_v29  ;;  %v13577_v32 = vld [vmem:[#allocation167_spill] sm:$0xff] }
 0x411   :  { %v3409_v63 = vmul.f32 0.2, %v3281_v57  ;;  %vm3345_vm7 = vcmp.ge.f32.partialorder %v3281_v57, 0.0  ;;  %v3227_v52 = vmul.f32 %v11428_v23, %v13573_v13  ;;  %v3285_v11 = vadd.f32 %v11461_v2, %v3200_v15 }
 0x412   :  { %v3204_v42 = vmul.f32 %v11431_v8, %v13577_v32  ;;  %vm3352_vm12 = vcmp.ge.f32.partialorder %v11563_v56, 0.0  ;;  %vm3356_vm1 = vcmp.ge.f32.partialorder %v11577_v3, 0.0 }
 0x413   :  { %3609 = vrot.lane.b32.xlu1 %v3462_v5, %s9311_s1  ;;  %3607 = vrot.lane.b32.xlu0 %v3461_v27, %s9311_s1  ;;  %v13570_v5 = vld [vmem:[#allocation151_spill] sm:$0xff]  ;;  %v13571_v27 = vld [vmem:[#allocation160_spill] sm:$0xff]  ;;  %v11657_v7 = vadd.f32 %v11458_v50, %v3227_v52  ;;  %v3473_v0 = vsel %vm3345_vm7, %v3281_v57, %v3409_v63  ;;  %vm3349_vm11 = vcmp.ge.f32.partialorder %v3285_v11, 0.0 }
 0x414   :  { %v3198_v1 = vmul.f32 %v11425_v62, %v13570_v5  ;;  %v3223_v39 = vmul.f32 %v11428_v23, %v13571_v27  ;;  %v13575_v23 = vld [vmem:[#allocation152_spill] sm:$0xff]  ;;  %v3289_v17 = vadd.f32 %v11461_v2, %v3204_v42 }
 0x415   :  { %v3202_v55 = vmul.f32 %v11425_v62, %v13575_v23 }
 0x416   :  { %v3283_v61 = vadd.f32 %v11455_v14, %v3198_v1  ;;  %v11645_v21 = vadd.f32 %v11458_v50, %v3223_v39  ;;  %v3417_v57 = vmul.f32 0.2, %v3289_v17  ;;  %vm3353_vm15 = vcmp.ge.f32.partialorder %v3289_v17, 0.0  ;;  %v13579_v1 = vld [vmem:[#allocation170_spill] sm:$0xff]  ;;  %v13580_v39 = vld [vmem:[#allocation169_spill] sm:$0xff] }
 0x417   :  { %3613 = vrot.lane.b32.xlu1 %v3464_v26, %s9311_s1  ;;  %3611 = vrot.lane.b32.xlu0 %v3463_v41, %s9311_s1  ;;  %v13572_v26 = vld [vmem:[#allocation166_spill] sm:$0xff]  ;;  %v3287_v20 = vadd.f32 %v11455_v14, %v3202_v55  ;;  %v3209_v27 = vmul.f32 %v11434_v6, %v13579_v1 }
 0x418   :  { %v3201_v41 = vmul.f32 %v11434_v6, %v13572_v26  ;;  %v3411_v60 = vmul.f32 0.2, %v3283_v61  ;;  %vm3347_vm9 = vcmp.ge.f32.partialorder %v3283_v61, 0.0  ;;  %v3481_v63 = vsel %vm3353_vm15, %v3289_v17, %v3417_v57 }
 0x419   :  { %v3415_v47 = vmul.f32 0.2, %v3287_v20  ;;  %vm3351_vm13 = vcmp.ge.f32.partialorder %v3287_v20, 0.0 }
 0x41a   :  { %v3286_v44 = vadd.f32 %v11464_v19, %v3201_v41  ;;  %v3475_v34 = vsel %vm3347_vm9, %v3283_v61, %v3411_v60  ;;  %v13581_v41 = vld [vmem:[#allocation154_spill] sm:$0xff]  ;;  %v13583_v60 = vld [vmem:[#allocation171_spill] sm:$0xff] }
 0x41b   :  { %3617 = vrot.lane.b32.xlu1 %v3466_v25, %s9311_s1  ;;  %3615 = vrot.lane.b32.xlu0 %v3465_v35, %s9311_s1  ;;  %v3474_v25 = vsel %vm3346_vm6, %v3282_v16, %v3410_v9  ;;  %v3412_v35 = vmul.f32 0.2, %v11551_v43  ;;  %v3479_v29 = vsel %vm3351_vm13, %v3287_v20, %v3415_v47  ;;  %v3210_v13 = vmul.f32 %v11425_v62, %v13581_v41 }
 0x41c   :  { %vm3350_vm10 = vcmp.ge.f32.partialorder %v3286_v44, 0.0  ;;  %v3414_v58 = vmul.f32 0.2, %v3286_v44  ;;  %vm3360_vm6 = vcmp.ge.f32.partialorder %v11597_v24, 0.0 }
 0x41d   :  { %v3476_v50 = vsel %vm3348_vm8, %v11551_v43, %v3412_v35  ;;  %v3416_v43 = vmul.f32 0.2, %v11563_v56 }
 0x41e   :  { %v3478_v18 = vsel %vm3350_vm10, %v3286_v44, %v3414_v58  ;;  %v3295_v44 = vadd.f32 %v11455_v14, %v3210_v13  ;;  %v3424_v58 = vmul.f32 0.2, %v11597_v24  ;;  %vm3364_vm10 = vcmp.ge.f32.partialorder %v11615_v31, 0.0 }
 0x41f   :  { %3621 = vrot.lane.b32.xlu1 %v3468_v59, %s9311_s1  ;;  %3619 = vrot.lane.b32.xlu0 %v3467_v46, %s9311_s1  ;;  %v3413_v59 = vmul.f32 0.2, %v3285_v11  ;;  %v13576_v46 = vld [vmem:[#allocation168_spill] sm:$0xff] }
 0x420   :  { %v3205_v53 = vmul.f32 %v11434_v6, %v13576_v46  ;;  %vm3359_vm7 = vcmp.ge.f32.partialorder %v3295_v44, 0.0 }
 0x421   :  { %v3477_v10 = vsel %vm3349_vm11, %v3285_v11, %v3413_v59  ;;  %v3212_v11 = vmul.f32 %v11431_v8, %v13583_v60  ;;  %v13584_v59 = vld [vmem:[#allocation155_spill] sm:$0xff] }
 0x422   :  { %v3290_v40 = vadd.f32 %v11464_v19, %v3205_v53  ;;  %v3214_v20 = vmul.f32 %v11425_v62, %v13584_v59  ;;  %v3488_v53 = vsel %vm3360_vm6, %v11597_v24, %v3424_v58  ;;  %v3436_v59 = vmul.f32 0.2, %v11645_v21 }
 0x423   :  { %3625 = vrot.lane.b32.xlu1 %v3470_v48, %s9311_s1  ;;  %3623 = vrot.lane.b32.xlu0 %v3469_v22, %s9311_s1  ;;  %v13578_v48 = vld [vmem:[#allocation153_spill] sm:$0xff]  ;;  %v3480_v22 = vsel %vm3352_vm12, %v11563_v56, %v3416_v43  ;;  %v3294_v56 = vadd.f32 %v11464_v19, %v3209_v27 }
 0x424   :  { %v3206_v30 = vmul.f32 %v11425_v62, %v13578_v48  ;;  %vm3354_vm14 = vcmp.ge.f32.partialorder %v3290_v40, 0.0  ;;  %v3418_v16 = vmul.f32 0.2, %v3290_v40  ;;  %v13586_v43 = vld [vmem:[#allocation173_spill] sm:$0xff]  ;;  %v3428_v48 = vmul.f32 0.2, %v11615_v31 }
 0x425   :  { %v3422_v37 = vmul.f32 0.2, %v3294_v56  ;;  %vm3358_vm3 = vcmp.ge.f32.partialorder %v3294_v56, 0.0  ;;  %v3216_v47 = vmul.f32 %v11431_v8, %v13586_v43  ;;  %v13594_v43 = vld [vmem:[#allocation180_spill] sm:$0xff] }
 0x426   :  { %v3291_v5 = vadd.f32 %v11455_v14, %v3206_v30  ;;  %v3482_v9 = vsel %vm3354_vm14, %v3290_v40, %v3418_v16  ;;  %v13585_v40 = vld [vmem:[#allocation174_spill] sm:$0xff]  ;;  %vm3368_vm14 = vcmp.ge.f32.partialorder %v11630_v33, 0.0 }
 0x427   :  { %3629 = vrot.lane.b32.xlu1 %v3472_v54, %s9311_s1  ;;  %3627 = vrot.lane.b32.xlu0 %v3471_v28, %s9311_s1  ;;  %v3208_v54 = vmul.f32 %v11431_v8, %v13580_v39  ;;  %v3420_v28 = vmul.f32 0.2, %v11577_v3  ;;  %v3486_v23 = vsel %vm3358_vm3, %v3294_v56, %v3422_v37  ;;  %v13589_v56 = vld [vmem:[#allocation175_spill] sm:$0xff]  ;;  %vm3372_vm3 = vcmp.ge.f32.partialorder %v11645_v21, 0.0 }
 0x428   :  { %v3419_v61 = vmul.f32 0.2, %v3291_v5  ;;  %vm3355_vm2 = vcmp.ge.f32.partialorder %v3291_v5, 0.0  ;;  %v13590_v37 = vld [vmem:[#allocation159_spill] sm:$0xff] }
 0x429   :  { %v3293_v26 = vadd.f32 %v11461_v2, %v3208_v54  ;;  %v3484_v52 = vsel %vm3356_vm1, %v11577_v3, %v3420_v28 }
 0x42a   :  { %v3483_v15 = vsel %vm3355_vm2, %v3291_v5, %v3419_v61  ;;  %v3492_v5 = vsel %vm3364_vm10, %v11615_v31, %v3428_v48  ;;  %v3432_v31 = vmul.f32 0.2, %v11630_v33 }
 0x42b   :  { %3633 = vrot.lane.b32.xlu1 %v3474_v25, %s9311_s1  ;;  %3631 = vrot.lane.b32.xlu0 %v3473_v0, %s9311_s1  ;;  %v3421_v25 = vmul.f32 0.2, %v3293_v26  ;;  %vm3357_vm5 = vcmp.ge.f32.partialorder %v3293_v26, 0.0  ;;  %v13582_v0 = vld [vmem:[#allocation172_spill] sm:$0xff] }
 0x42c   :  { %v3213_v35 = vmul.f32 %v11434_v6, %v13582_v0 }
 0x42d   :  { %v3485_v55 = vsel %vm3357_vm5, %v3293_v26, %v3421_v25  ;;  %v3496_v25 = vsel %vm3368_vm14, %v11630_v33, %v3432_v31 }
 0x42e   :  { %v3298_v3 = vadd.f32 %v11464_v19, %v3213_v35 }
 0x42f   :  { %3637 = vrot.lane.b32.xlu1 %v3476_v50, %s9311_s1  ;;  %3635 = vrot.lane.b32.xlu0 %v3475_v34, %s9311_s1  ;;  %v3423_v50 = vmul.f32 0.2, %v3295_v44  ;;  %v3297_v34 = vadd.f32 %v11461_v2, %v3212_v11  ;;  %v13591_v11 = vld [vmem:[#allocation178_spill] sm:$0xff] }
 0x430   :  { %vm3362_vm8 = vcmp.ge.f32.partialorder %v3298_v3, 0.0  ;;  %v3426_v46 = vmul.f32 0.2, %v3298_v3 }
 0x431   :  { %v3487_v32 = vsel %vm3359_vm7, %v3295_v44, %v3423_v50  ;;  %v3425_v42 = vmul.f32 0.2, %v3297_v34  ;;  %vm3361_vm9 = vcmp.ge.f32.partialorder %v3297_v34, 0.0 }
 0x432   :  { %v3490_v17 = vsel %vm3362_vm8, %v3298_v3, %v3426_v46  ;;  %v13592_v3 = vld [vmem:[#allocation177_spill] sm:$0xff]  ;;  %vm3699_vm8 = vcmask 261120  }
 0x433   :  { %3641 = vrot.lane.b32.xlu1 %v3478_v18, %s9311_s1  ;;  %3639 = vrot.lane.b32.xlu0 %v3477_v10, %s9311_s1  ;;  %v3299_v18 = vadd.f32 %v11455_v14, %v3214_v20  ;;  %v3217_v10 = vmul.f32 %v11434_v6, %v13585_v40  ;;  %v3489_v30 = vsel %vm3361_vm9, %v3297_v34, %v3425_v42  ;;  %v13593_v46 = vld [vmem:[#allocation161_spill] sm:$0xff]  ;;  %vm3376_vm9 = vcmp.ge.f32.partialorder %v11657_v7, 0.0 }
 0x434   :  { %v3500_v40 = vsel %vm3372_vm3, %v11645_v21, %v3436_v59 }
 0x435   :  { %v3302_v24 = vadd.f32 %v11464_v19, %v3217_v10  ;;  %v3427_v16 = vmul.f32 0.2, %v3299_v18  ;;  %vm3363_vm11 = vcmp.ge.f32.partialorder %v3299_v18, 0.0 }
 0x437   :  { %3645 = vrot.lane.b32.xlu1 %v3480_v22, %s9311_s1  ;;  %3643 = vrot.lane.b32.xlu0 %v3479_v29, %s9311_s1  ;;  %v3301_v22 = vadd.f32 %v11461_v2, %v3216_v47  ;;  %v13587_v29 = vld [vmem:[#allocation157_spill] sm:$0xff]  ;;  %v3430_v1 = vmul.f32 0.2, %v3302_v24  ;;  %v3491_v27 = vsel %vm3363_vm11, %v3299_v18, %v3427_v16  ;;  %vm3366_vm12 = vcmp.ge.f32.partialorder %v3302_v24, 0.0 }
 0x438   :  { %v3218_v57 = vmul.f32 %v11425_v62, %v13587_v29  ;;  %v3229_v47 = vmul.f32 %v11434_v6, %v13594_v43 }
 0x439   :  { %v3429_v39 = vmul.f32 0.2, %v3301_v22  ;;  %vm3365_vm13 = vcmp.ge.f32.partialorder %v3301_v22, 0.0  ;;  %v3494_v61 = vsel %vm3366_vm12, %v3302_v24, %v3430_v1 }
 0x43a   :  { %v3303_v54 = vadd.f32 %v11455_v14, %v3218_v57 }
 0x43b   :  { %3649 = vrot.lane.b32.xlu1 %v3482_v9, %s9311_s1  ;;  %3647 = vrot.lane.b32.xlu0 %v3481_v63, %s9311_s1  ;;  %v13588_v9 = vld [vmem:[#allocation176_spill] sm:$0xff]  ;;  %v3220_v63 = vmul.f32 %v11431_v8, %v13589_v56  ;;  %v3493_v26 = vsel %vm3365_vm13, %v3301_v22, %v3429_v39  ;;  %v3314_v22 = vadd.f32 %v11464_v19, %v3229_v47 }
 0x43c   :  { %v3221_v28 = vmul.f32 %v11434_v6, %v13588_v9  ;;  %v3431_v41 = vmul.f32 0.2, %v3303_v54  ;;  %vm3367_vm15 = vcmp.ge.f32.partialorder %v3303_v54, 0.0 }
 0x43d   :  { %vm3378_vm11 = vcmp.ge.f32.partialorder %v3314_v22, 0.0 }
 0x43e   :  { %v3306_v13 = vadd.f32 %v11464_v19, %v3221_v28  ;;  %v3495_v44 = vsel %vm3367_vm15, %v3303_v54, %v3431_v41 }
 0x43f   :  { %3653 = vrot.lane.b32.xlu1 %v3484_v52, %s9311_s1  ;;  %3651 = vrot.lane.b32.xlu0 %v3483_v15, %s9311_s1  ;;  %v3305_v52 = vadd.f32 %v11461_v2, %v3220_v63  ;;  %v3222_v15 = vmul.f32 %v11425_v62, %v13590_v37 }
 0x440   :  { %v3434_v0 = vmul.f32 0.2, %v3306_v13  ;;  %vm3370_vm1 = vcmp.ge.f32.partialorder %v3306_v13, 0.0 }
 0x441   :  { %v3433_v35 = vmul.f32 0.2, %v3305_v52  ;;  %v3307_v60 = vadd.f32 %v11455_v14, %v3222_v15  ;;  %vm3369_vm2 = vcmp.ge.f32.partialorder %v3305_v52, 0.0 }
 0x442   :  { %v3498_v50 = vsel %vm3370_vm1, %v3306_v13, %v3434_v0 }
 0x443   :  { %3657 = vrot.lane.b32.xlu1 %v3486_v23, %s9311_s1  ;;  %3655 = vrot.lane.b32.xlu0 %v3485_v55, %s9311_s1  ;;  %v3225_v23 = vmul.f32 %v11434_v6, %v13591_v11  ;;  %v3224_v55 = vmul.f32 %v11431_v8, %v13592_v3  ;;  %v3497_v34 = vsel %vm3369_vm2, %v3305_v52, %v3433_v35  ;;  %v3435_v20 = vmul.f32 0.2, %v3307_v60 }
 0x444   :  { %vm3371_vm5 = vcmp.ge.f32.partialorder %v3307_v60, 0.0 }
 0x445   :  { %v3310_v58 = vadd.f32 %v11464_v19, %v3225_v23  ;;  %v3309_v33 = vadd.f32 %v11461_v2, %v3224_v55  ;;  %v3499_v10 = vsel %vm3371_vm5, %v3307_v60, %v3435_v20 }
 0x447   :  { %3661 = vrot.lane.b32.xlu1 %v3488_v53, %s9311_s1  ;;  %3659 = vrot.lane.b32.xlu0 %v3487_v32, %s9311_s1  ;;  %v3226_v53 = vmul.f32 %v11425_v62, %v13593_v46  ;;  %v3438_v32 = vmul.f32 0.2, %v3310_v58  ;;  %v3437_v42 = vmul.f32 0.2, %v3309_v33  ;;  %vm3374_vm6 = vcmp.ge.f32.partialorder %v3310_v58, 0.0 }
 0x448   :  { %vm3373_vm7 = vcmp.ge.f32.partialorder %v3309_v33, 0.0  ;;  %v3440_v62 = vmul.f32 0.2, %v11657_v7 }
 0x449   :  { %v3311_v18 = vadd.f32 %v11455_v14, %v3226_v53  ;;  %v3502_v24 = vsel %vm3374_vm6, %v3310_v58, %v3438_v32 }
 0x44a   :  { %v3504_v1 = vsel %vm3376_vm9, %v11657_v7, %v3440_v62 }
 0x44b   :  { %3665 = vrot.lane.b32.xlu1 %v3490_v17, %s9311_s1  ;;  %3663 = vrot.lane.b32.xlu0 %v3489_v30, %s9311_s1  ;;  %v13595_v17 = vld [vmem:[#allocation179_spill] sm:$0xff]  ;;  %v3501_v30 = vsel %vm3373_vm7, %v3309_v33, %v3437_v42  ;;  %v3439_v16 = vmul.f32 0.2, %v3311_v18  ;;  %vm3375_vm10 = vcmp.ge.f32.partialorder %v3311_v18, 0.0 }
 0x44c   :  { %v3228_v14 = vmul.f32 %v11431_v8, %v13595_v17 }
 0x44d   :  { %v3503_v19 = vsel %vm3375_vm10, %v3311_v18, %v3439_v16 }
 0x44e   :  { %v3313_v6 = vadd.f32 %v11461_v2, %v3228_v14 }
 0x44f   :  { %3669 = vrot.lane.b32.xlu1 %v3492_v5, %s9311_s1  ;;  %3667 = vrot.lane.b32.xlu0 %v3491_v27, %s9311_s1  ;;  %v3442_v27 = vmul.f32 0.2, %v3314_v22 }
 0x450   :  { %v3441_v9 = vmul.f32 0.2, %v3313_v6  ;;  %vm3377_vm12 = vcmp.ge.f32.partialorder %v3313_v6, 0.0 }
 0x452   :  { %v3505_v31 = vsel %vm3377_vm12, %v3313_v6, %v3441_v9 }
 0x453   :  { %3673 = vrot.lane.b32.xlu1 %v3494_v61, %s9311_s1  ;;  %3671 = vrot.lane.b32.xlu0 %v3493_v26, %s9311_s1  ;;  %v3506_v61 = vsel %vm3378_vm11, %v3314_v22, %v3442_v27 }
 0x457   :  { %3677 = vrot.lane.b32.xlu1 %v3496_v25, %s9311_s1  ;;  %3675 = vrot.lane.b32.xlu0 %v3495_v44, %s9311_s1 }
 0x45b   :  { %3681 = vrot.lane.b32.xlu1 %v3498_v50, %s9311_s1  ;;  %3679 = vrot.lane.b32.xlu0 %v3497_v34, %s9311_s1 }
 0x45f   :  { %3685 = vrot.lane.b32.xlu1 %v3500_v40, %s9311_s1  ;;  %3683 = vrot.lane.b32.xlu0 %v3499_v10, %s9311_s1 }
 0x461   :  { %v3574_v48 = vpop.permute.xlu1 %3573  ;;  %v3572_v21 = vpop.permute.xlu0 %3571 }
 0x462   :  { %v3700_v29 = vsel %vm3699_vm8, %v3572_v21, %v3574_v48  ;;  %v3828_v57 = vsel %vm3699_vm8, 0.0, %v3572_v21 }
 0x463   :  { %3871 = vst [vmem:[#allocation2 + $0x168] sm:$0xff] %v3828_v57  ;;  %3872 = vst [vmem:[#allocation2 + $0x170] sm:$0xff] %v3700_v29  ;;  %3689 = vrot.lane.b32.xlu1 %v3502_v24, %s9311_s1  ;;  %3687 = vrot.lane.b32.xlu0 %v3501_v30, %s9311_s1 }
 0x465   :  { %v3578_v8 = vpop.permute.xlu1 %3577  ;;  %v3576_v5 = vpop.permute.xlu0 %3575 }
 0x466   :  { %v3844_v39 = vsel %vm3699_vm8, %v3578_v8, 0.0  ;;  %v3701_v54 = vsel %vm3699_vm8, %v3574_v48, %v3576_v5  ;;  %v3702_v2 = vsel %vm3699_vm8, %v3576_v5, %v3578_v8 }
 0x467   :  { %3875 = vst.msk [vmem:[#allocation2 + $0x188] sm:$0xff] %vm3864_vm0, %v3844_v39  ;;  %3873 = vst [vmem:[#allocation2 + $0x178] sm:$0xff] %v3701_v54  ;;  %3693 = vrot.lane.b32.xlu1 %v3504_v1, %s9311_s1  ;;  %3691 = vrot.lane.b32.xlu0 %v3503_v19, %s9311_s1 }
 0x468   :  { %3874 = vst [vmem:[#allocation2 + $0x180] sm:$0xff] %v3702_v2 }
 0x469   :  { %v3582_v7 = vpop.permute.xlu1 %3581  ;;  %v3580_v28 = vpop.permute.xlu0 %3579 }
 0x46a   :  { %v3703_v56 = vsel %vm3699_vm8, %v3580_v28, %v3582_v7  ;;  %v3829_v63 = vsel %vm3699_vm8, 0.0, %v3580_v28 }
 0x46b   :  { %3876 = vst [vmem:[#allocation2 + $0x28] sm:$0xff] %v3829_v63  ;;  %3877 = vst [vmem:[#allocation2 + $0x30] sm:$0xff] %v3703_v56  ;;  %3697 = vrot.lane.b32.xlu1 %v3506_v61, %s9311_s1  ;;  %3695 = vrot.lane.b32.xlu0 %v3505_v31, %s9311_s1 }
 0x46d   :  { %v3586_v26 = vpop.permute.xlu1 %3585  ;;  %v3584_v41 = vpop.permute.xlu0 %3583 }
 0x46e   :  { %v3845_v13 = vsel %vm3699_vm8, %v3586_v26, 0.0  ;;  %v3704_v52 = vsel %vm3699_vm8, %v3582_v7, %v3584_v41  ;;  %v3705_v37 = vsel %vm3699_vm8, %v3584_v41, %v3586_v26 }
 0x46f   :  { %3880 = vst.msk [vmem:[#allocation2 + $0x48] sm:$0xff] %vm3864_vm0, %v3845_v13  ;;  %3878 = vst [vmem:[#allocation2 + $0x38] sm:$0xff] %v3704_v52 }
 0x470   :  { %3879 = vst [vmem:[#allocation2 + $0x40] sm:$0xff] %v3705_v37 }
 0x471   :  { %v3590_v15 = vpop.permute.xlu1 %3589  ;;  %v3588_v25 = vpop.permute.xlu0 %3587 }
 0x472   :  { %v3706_v44 = vsel %vm3699_vm8, %v3588_v25, %v3590_v15  ;;  %v3830_v0 = vsel %vm3699_vm8, 0.0, %v3588_v25 }
 0x473   :  { %3881 = vst [vmem:[#allocation2 + $0x190] sm:$0xff] %v3830_v0  ;;  %3882 = vst [vmem:[#allocation2 + $0x198] sm:$0xff] %v3706_v44 }
 0x475   :  { %v3594_v35 = vpop.permute.xlu1 %3593  ;;  %v3592_v60 = vpop.permute.xlu0 %3591 }
 0x476   :  { %v3846_v11 = vsel %vm3699_vm8, %v3594_v35, 0.0  ;;  %v3707_v23 = vsel %vm3699_vm8, %v3590_v15, %v3592_v60  ;;  %v3708_v3 = vsel %vm3699_vm8, %v3592_v60, %v3594_v35 }
 0x477   :  { %3885 = vst.msk [vmem:[#allocation2 + $0x1b0] sm:$0xff] %vm3864_vm0, %v3846_v11  ;;  %3883 = vst [vmem:[#allocation2 + $0x1a0] sm:$0xff] %v3707_v23 }
 0x478   :  { %3884 = vst [vmem:[#allocation2 + $0x1a8] sm:$0xff] %v3708_v3 }
 0x479   :  { %v3598_v55 = vpop.permute.xlu1 %3597  ;;  %v3596_v58 = vpop.permute.xlu0 %3595 }
 0x47a   :  { %v3709_v33 = vsel %vm3699_vm8, %v3596_v58, %v3598_v55  ;;  %v3831_v50 = vsel %vm3699_vm8, 0.0, %v3596_v58 }
 0x47b   :  { %3886 = vst [vmem:[#allocation2 + $0x50] sm:$0xff] %v3831_v50  ;;  %3887 = vst [vmem:[#allocation2 + $0x58] sm:$0xff] %v3709_v33 }
 0x47d   :  { %v3602_v34 = vpop.permute.xlu1 %3601  ;;  %v3600_v59 = vpop.permute.xlu0 %3599 }
 0x47e   :  { %v3847_v20 = vsel %vm3699_vm8, %v3602_v34, 0.0  ;;  %v3710_v46 = vsel %vm3699_vm8, %v3598_v55, %v3600_v59  ;;  %v3711_v53 = vsel %vm3699_vm8, %v3600_v59, %v3602_v34 }
 0x47f   :  { %3890 = vst.msk [vmem:[#allocation2 + $0x70] sm:$0xff] %vm3864_vm0, %v3847_v20  ;;  %3888 = vst [vmem:[#allocation2 + $0x60] sm:$0xff] %v3710_v46 }
 0x480   :  { %3889 = vst [vmem:[#allocation2 + $0x68] sm:$0xff] %v3711_v53 }
 0x481   :  { %v3606_v32 = vpop.permute.xlu1 %3605  ;;  %v3604_v42 = vpop.permute.xlu0 %3603 }
 0x482   :  { %v3712_v18 = vsel %vm3699_vm8, %v3604_v42, %v3606_v32  ;;  %v3832_v40 = vsel %vm3699_vm8, 0.0, %v3604_v42 }
 0x483   :  { %3891 = vst [vmem:[#allocation2 + $0x1b8] sm:$0xff] %v3832_v40  ;;  %3892 = vst [vmem:[#allocation2 + $0x1c0] sm:$0xff] %v3712_v18 }
 0x485   :  { %v3610_v10 = vpop.permute.xlu1 %3609  ;;  %v3608_v43 = vpop.permute.xlu0 %3607 }
 0x486   :  { %v3848_v47 = vsel %vm3699_vm8, %v3610_v10, 0.0  ;;  %v3713_v62 = vsel %vm3699_vm8, %v3606_v32, %v3608_v43  ;;  %v3714_v17 = vsel %vm3699_vm8, %v3608_v43, %v3610_v10 }
 0x487   :  { %3895 = vst.msk [vmem:[#allocation2 + $0x1d8] sm:$0xff] %vm3864_vm0, %v3848_v47  ;;  %3893 = vst [vmem:[#allocation2 + $0x1c8] sm:$0xff] %v3713_v62 }
 0x488   :  { %3894 = vst [vmem:[#allocation2 + $0x1d0] sm:$0xff] %v3714_v17 }
 0x489   :  { %v3614_v14 = vpop.permute.xlu1 %3613  ;;  %v3612_v48 = vpop.permute.xlu0 %3611 }
 0x48a   :  { %v3715_v21 = vsel %vm3699_vm8, %v3612_v48, %v3614_v14  ;;  %v3833_v24 = vsel %vm3699_vm8, 0.0, %v3612_v48 }
 0x48b   :  { %3896 = vst [vmem:[#allocation2 + $0x78] sm:$0xff] %v3833_v24  ;;  %3897 = vst [vmem:[#allocation2 + $0x80] sm:$0xff] %v3715_v21 }
 0x48d   :  { %v3618_v30 = vpop.permute.xlu1 %3617  ;;  %v3616_v16 = vpop.permute.xlu0 %3615 }
 0x48e   :  { %v3849_v22 = vsel %vm3699_vm8, %v3618_v30, 0.0  ;;  %v3716_v29 = vsel %vm3699_vm8, %v3614_v14, %v3616_v16  ;;  %v3717_v57 = vsel %vm3699_vm8, %v3616_v16, %v3618_v30 }
 0x48f   :  { %3900 = vst.msk [vmem:[#allocation2 + $0x98] sm:$0xff] %vm3864_vm0, %v3849_v22  ;;  %3898 = vst [vmem:[#allocation2 + $0x88] sm:$0xff] %v3716_v29 }
 0x490   :  { %3899 = vst [vmem:[#allocation2 + $0x90] sm:$0xff] %v3717_v57 }
 0x491   :  { %v3622_v6 = vpop.permute.xlu1 %3621  ;;  %v3620_v8 = vpop.permute.xlu0 %3619 }
 0x492   :  { %v3718_v5 = vsel %vm3699_vm8, %v3620_v8, %v3622_v6  ;;  %v3834_v1 = vsel %vm3699_vm8, 0.0, %v3620_v8 }
 0x493   :  { %3901 = vst [vmem:[#allocation2 + $0x1e0] sm:$0xff] %v3834_v1  ;;  %3902 = vst [vmem:[#allocation2 + $0x1e8] sm:$0xff] %v3718_v5 }
 0x495   :  { %v3626_v19 = vpop.permute.xlu1 %3625  ;;  %v3624_v27 = vpop.permute.xlu0 %3623 }
 0x496   :  { %v3850_v39 = vsel %vm3699_vm8, %v3626_v19, 0.0  ;;  %v3719_v54 = vsel %vm3699_vm8, %v3622_v6, %v3624_v27  ;;  %v3720_v2 = vsel %vm3699_vm8, %v3624_v27, %v3626_v19 }
 0x497   :  { %3905 = vst.msk [vmem:[#allocation2 + $0x200] sm:$0xff] %vm3864_vm0, %v3850_v39  ;;  %3903 = vst [vmem:[#allocation2 + $0x1f0] sm:$0xff] %v3719_v54 }
 0x498   :  { %3904 = vst [vmem:[#allocation2 + $0x1f8] sm:$0xff] %v3720_v2 }
 0x499   :  { %v3630_v9 = vpop.permute.xlu1 %3629  ;;  %v3628_v7 = vpop.permute.xlu0 %3627 }
 0x49a   :  { %v3721_v28 = vsel %vm3699_vm8, %v3628_v7, %v3630_v9  ;;  %v3835_v56 = vsel %vm3699_vm8, 0.0, %v3628_v7 }
 0x49b   :  { %3906 = vst [vmem:[#allocation2 + $0xa0] sm:$0xff] %v3835_v56  ;;  %3907 = vst [vmem:[#allocation2 + $0xa8] sm:$0xff] %v3721_v28 }
 0x49d   :  { %v3634_v63 = vpop.permute.xlu1 %3633  ;;  %v3632_v61 = vpop.permute.xlu0 %3631 }
 0x49e   :  { %v3851_v31 = vsel %vm3699_vm8, %v3634_v63, 0.0  ;;  %v3722_v26 = vsel %vm3699_vm8, %v3630_v9, %v3632_v61  ;;  %v3723_v41 = vsel %vm3699_vm8, %v3632_v61, %v3634_v63 }
 0x49f   :  { %3910 = vst.msk [vmem:[#allocation2 + $0xc0] sm:$0xff] %vm3864_vm0, %v3851_v31  ;;  %3908 = vst [vmem:[#allocation2 + $0xb0] sm:$0xff] %v3722_v26 }
 0x4a0   :  { %3909 = vst [vmem:[#allocation2 + $0xb8] sm:$0xff] %v3723_v41 }
 0x4a1   :  { %v3638_v13 = vpop.permute.xlu1 %3637  ;;  %v3636_v52 = vpop.permute.xlu0 %3635 }
 0x4a2   :  { %v3724_v37 = vsel %vm3699_vm8, %v3636_v52, %v3638_v13  ;;  %v3836_v15 = vsel %vm3699_vm8, 0.0, %v3636_v52 }
 0x4a3   :  { %3911 = vst [vmem:[#allocation2 + $0x208] sm:$0xff] %v3836_v15  ;;  %3912 = vst [vmem:[#allocation2 + $0x210] sm:$0xff] %v3724_v37 }
 0x4a5   :  { %v3642_v25 = vpop.permute.xlu1 %3641  ;;  %v3640_v44 = vpop.permute.xlu0 %3639 }
 0x4a6   :  { %v3852_v0 = vsel %vm3699_vm8, %v3642_v25, 0.0  ;;  %v3725_v35 = vsel %vm3699_vm8, %v3638_v13, %v3640_v44  ;;  %v3726_v60 = vsel %vm3699_vm8, %v3640_v44, %v3642_v25 }
 0x4a7   :  { %3915 = vst.msk [vmem:[#allocation2 + $0x228] sm:$0xff] %vm3864_vm0, %v3852_v0  ;;  %3913 = vst [vmem:[#allocation2 + $0x218] sm:$0xff] %v3725_v35 }
 0x4a8   :  { %3914 = vst [vmem:[#allocation2 + $0x220] sm:$0xff] %v3726_v60 }
 0x4a9   :  { %v3646_v11 = vpop.permute.xlu1 %3645  ;;  %v3644_v23 = vpop.permute.xlu0 %3643 }
 0x4aa   :  { %v3727_v3 = vsel %vm3699_vm8, %v3644_v23, %v3646_v11  ;;  %v3837_v55 = vsel %vm3699_vm8, 0.0, %v3644_v23 }
 0x4ab   :  { %3916 = vst [vmem:[#allocation2 + $0xc8] sm:$0xff] %v3837_v55  ;;  %3917 = vst [vmem:[#allocation2 + $0xd0] sm:$0xff] %v3727_v3 }
 0x4ad   :  { %v3650_v58 = vpop.permute.xlu1 %3649  ;;  %v3648_v33 = vpop.permute.xlu0 %3647 }
 0x4ae   :  { %v3853_v50 = vsel %vm3699_vm8, %v3650_v58, 0.0  ;;  %v3728_v34 = vsel %vm3699_vm8, %v3646_v11, %v3648_v33  ;;  %v3729_v59 = vsel %vm3699_vm8, %v3648_v33, %v3650_v58 }
 0x4af   :  { %3920 = vst.msk [vmem:[#allocation2 + $0xe8] sm:$0xff] %vm3864_vm0, %v3853_v50  ;;  %3918 = vst [vmem:[#allocation2 + $0xd8] sm:$0xff] %v3728_v34 }
 0x4b0   :  { %3919 = vst [vmem:[#allocation2 + $0xe0] sm:$0xff] %v3729_v59 }
 0x4b1   :  { %v3654_v20 = vpop.permute.xlu1 %3653  ;;  %v3652_v46 = vpop.permute.xlu0 %3651 }
 0x4b2   :  { %v3730_v53 = vsel %vm3699_vm8, %v3652_v46, %v3654_v20  ;;  %v3838_v32 = vsel %vm3699_vm8, 0.0, %v3652_v46 }
 0x4b3   :  { %3921 = vst [vmem:[#allocation2 + $0x230] sm:$0xff] %v3838_v32  ;;  %3922 = vst [vmem:[#allocation2 + $0x238] sm:$0xff] %v3730_v53 }
 0x4b5   :  { %v3658_v42 = vpop.permute.xlu1 %3657  ;;  %v3656_v18 = vpop.permute.xlu0 %3655 }
 0x4b6   :  { %v3854_v40 = vsel %vm3699_vm8, %v3658_v42, 0.0  ;;  %v3731_v10 = vsel %vm3699_vm8, %v3654_v20, %v3656_v18  ;;  %v3732_v43 = vsel %vm3699_vm8, %v3656_v18, %v3658_v42 }
 0x4b7   :  { %3925 = vst.msk [vmem:[#allocation2 + $0x250] sm:$0xff] %vm3864_vm0, %v3854_v40  ;;  %3923 = vst [vmem:[#allocation2 + $0x240] sm:$0xff] %v3731_v10 }
 0x4b8   :  { %3924 = vst [vmem:[#allocation2 + $0x248] sm:$0xff] %v3732_v43 }
 0x4b9   :  { %v3662_v47 = vpop.permute.xlu1 %3661  ;;  %v3660_v62 = vpop.permute.xlu0 %3659 }
 0x4ba   :  { %v3733_v17 = vsel %vm3699_vm8, %v3660_v62, %v3662_v47  ;;  %v3839_v14 = vsel %vm3699_vm8, 0.0, %v3660_v62 }
 0x4bb   :  { %3926 = vst [vmem:[#allocation2 + $0xf0] sm:$0xff] %v3839_v14  ;;  %3927 = vst [vmem:[#allocation2 + $0xf8] sm:$0xff] %v3733_v17 }
 0x4bd   :  { %v3666_v48 = vpop.permute.xlu1 %3665  ;;  %v3664_v21 = vpop.permute.xlu0 %3663 }
 0x4be   :  { %v3855_v24 = vsel %vm3699_vm8, %v3666_v48, 0.0  ;;  %v3734_v30 = vsel %vm3699_vm8, %v3662_v47, %v3664_v21  ;;  %v3735_v16 = vsel %vm3699_vm8, %v3664_v21, %v3666_v48 }
 0x4bf   :  { %3930 = vst.msk [vmem:[#allocation2 + $0x110] sm:$0xff] %vm3864_vm0, %v3855_v24  ;;  %3928 = vst [vmem:[#allocation2 + $0x100] sm:$0xff] %v3734_v30 }
 0x4c0   :  { %3929 = vst [vmem:[#allocation2 + $0x108] sm:$0xff] %v3735_v16 }
 0x4c1   :  { %v3670_v22 = vpop.permute.xlu1 %3669  ;;  %v3668_v29 = vpop.permute.xlu0 %3667 }
 0x4c2   :  { %v3736_v57 = vsel %vm3699_vm8, %v3668_v29, %v3670_v22  ;;  %v3840_v6 = vsel %vm3699_vm8, 0.0, %v3668_v29 }
 0x4c3   :  { %3931 = vst [vmem:[#allocation2 + $0x258] sm:$0xff] %v3840_v6  ;;  %3932 = vst [vmem:[#allocation2 + $0x260] sm:$0xff] %v3736_v57 }
 0x4c5   :  { %v3674_v8 = vpop.permute.xlu1 %3673  ;;  %v3672_v5 = vpop.permute.xlu0 %3671 }
 0x4c6   :  { %v3856_v1 = vsel %vm3699_vm8, %v3674_v8, 0.0  ;;  %v3737_v19 = vsel %vm3699_vm8, %v3670_v22, %v3672_v5  ;;  %v3738_v27 = vsel %vm3699_vm8, %v3672_v5, %v3674_v8 }
 0x4c7   :  { %3935 = vst.msk [vmem:[#allocation2 + $0x278] sm:$0xff] %vm3864_vm0, %v3856_v1  ;;  %3933 = vst [vmem:[#allocation2 + $0x268] sm:$0xff] %v3737_v19 }
 0x4c8   :  { %3934 = vst [vmem:[#allocation2 + $0x270] sm:$0xff] %v3738_v27 }
 0x4c9   :  { %v3678_v39 = vpop.permute.xlu1 %3677  ;;  %v3676_v54 = vpop.permute.xlu0 %3675 }
 0x4ca   :  { %v3739_v2 = vsel %vm3699_vm8, %v3676_v54, %v3678_v39  ;;  %v3841_v9 = vsel %vm3699_vm8, 0.0, %v3676_v54 }
 0x4cb   :  { %3936 = vst [vmem:[#allocation2 + $0x118] sm:$0xff] %v3841_v9  ;;  %3937 = vst [vmem:[#allocation2 + $0x120] sm:$0xff] %v3739_v2 }
 0x4cd   :  { %v3682_v7 = vpop.permute.xlu1 %3681  ;;  %v3680_v28 = vpop.permute.xlu0 %3679 }
 0x4ce   :  { %v3857_v56 = vsel %vm3699_vm8, %v3682_v7, 0.0  ;;  %v3740_v63 = vsel %vm3699_vm8, %v3678_v39, %v3680_v28  ;;  %v3741_v61 = vsel %vm3699_vm8, %v3680_v28, %v3682_v7 }
 0x4cf   :  { %3940 = vst.msk [vmem:[#allocation2 + $0x138] sm:$0xff] %vm3864_vm0, %v3857_v56  ;;  %3938 = vst [vmem:[#allocation2 + $0x128] sm:$0xff] %v3740_v63 }
 0x4d0   :  { %3939 = vst [vmem:[#allocation2 + $0x130] sm:$0xff] %v3741_v61 }
 0x4d1   :  { %v3686_v31 = vpop.permute.xlu1 %3685  ;;  %v3684_v26 = vpop.permute.xlu0 %3683 }
 0x4d2   :  { %v3742_v41 = vsel %vm3699_vm8, %v3684_v26, %v3686_v31  ;;  %v3842_v13 = vsel %vm3699_vm8, 0.0, %v3684_v26 }
 0x4d3   :  { %3941 = vst [vmem:[#allocation2 + $0x280] sm:$0xff] %v3842_v13  ;;  %3942 = vst [vmem:[#allocation2 + $0x288] sm:$0xff] %v3742_v41 }
 0x4d5   :  { %v3690_v52 = vpop.permute.xlu1 %3689  ;;  %v3688_v37 = vpop.permute.xlu0 %3687 }
 0x4d6   :  { %v3858_v15 = vsel %vm3699_vm8, %v3690_v52, 0.0  ;;  %v3743_v25 = vsel %vm3699_vm8, %v3686_v31, %v3688_v37  ;;  %v3744_v44 = vsel %vm3699_vm8, %v3688_v37, %v3690_v52 }
 0x4d7   :  { %3945 = vst.msk [vmem:[#allocation2 + $0x2a0] sm:$0xff] %vm3864_vm0, %v3858_v15  ;;  %3943 = vst [vmem:[#allocation2 + $0x290] sm:$0xff] %v3743_v25 }
 0x4d8   :  { %3944 = vst [vmem:[#allocation2 + $0x298] sm:$0xff] %v3744_v44 }
 0x4d9   :  { %v3694_v0 = vpop.permute.xlu1 %3693  ;;  %v3692_v35 = vpop.permute.xlu0 %3691 }
 0x4da   :  { %v3745_v60 = vsel %vm3699_vm8, %v3692_v35, %v3694_v0  ;;  %v3843_v11 = vsel %vm3699_vm8, 0.0, %v3692_v35 }
 0x4db   :  { %3946 = vst [vmem:[#allocation2 + $0x140] sm:$0xff] %v3843_v11  ;;  %3947 = vst [vmem:[#allocation2 + $0x148] sm:$0xff] %v3745_v60 }
 0x4dd   :  { %v3698_v23 = vpop.permute.xlu1 %3697  ;;  %v3696_v3 = vpop.permute.xlu0 %3695 }
 0x4de   :  { %v3859_v55 = vsel %vm3699_vm8, %v3698_v23, 0.0  ;;  %v3746_v58 = vsel %vm3699_vm8, %v3694_v0, %v3696_v3  ;;  %v3747_v33 = vsel %vm3699_vm8, %v3696_v3, %v3698_v23 }
 0x4df   :  { %3950 = vst.msk [vmem:[#allocation2 + $0x160] sm:$0xff] %vm3864_vm0, %v3859_v55  ;;  %3948 = vst [vmem:[#allocation2 + $0x150] sm:$0xff] %v3746_v58 }
 0x4e0   :  { %3949 = vst [vmem:[#allocation2 + $0x158] sm:$0xff] %v3747_v33 }
 0x4e1   :  { %9298 = dma.done.wait [#allocation10], 13824 }
 0x4e2   :  { %9299 = vsyncadd [#allocation10], 4294953472  ;;  %v4066_v50 = vld [vmem:[#allocation5 + $0x128] sm:$0xff]  ;;  %v4065_v34 = vld [vmem:[#allocation5 + $0x120] sm:$0xff] }
 0x4e3   :  { %v4068_v59 = vld [vmem:[#allocation5 + $0x138] sm:$0xff]  ;;  %4113 = vmatprep.subr.bf16.mxu0 %v4066_v50  ;;  %4748 = vmatprep.subr.bf16.mxu1 %v4066_v50  ;;  %v4067_v20 = vld [vmem:[#allocation5 + $0x130] sm:$0xff]  ;;  %v4070_v46 = vld [vmem:[#allocation5 + $0x148] sm:$0xff] }
 0x4e4   :  { %4114 = vmatpush1.bf16.msra.mxu0 %v4065_v34  ;;  %4749 = vmatpush1.bf16.msra.mxu1 %v4065_v34  ;;  %v4069_v53 = vld [vmem:[#allocation5 + $0x140] sm:$0xff]  ;;  %v4072_v32 = vld [vmem:[#allocation5 + $0x158] sm:$0xff]  ;;  %v4071_v42 = vld [vmem:[#allocation5 + $0x150] sm:$0xff] }
 0x4e5   :  { %4115 = vmatprep.subr.bf16.mxu0 %v4068_v59  ;;  %4750 = vmatprep.subr.bf16.mxu1 %v4068_v59  ;;  %v4029_v18 = vld [vmem:[#allocation2 + $0x170] sm:$0xff]  ;;  %v4032_v40 = vld [vmem:[#allocation2 + $0x198] sm:$0xff]  ;;  %v4701_v10 = vld [vmem:[#allocation2 + $0x180] sm:$0xff] }
 0x4e6   :  { %v4704_v43 = vld [vmem:[#allocation2 + $0x1a8] sm:$0xff]  ;;  %v4074_v47 = vld [vmem:[#allocation5 + $0x168] sm:$0xff]  ;;  %v4053_v62 = vpack.c.bf16 %v4032_v40, %v4029_v18  ;;  %v4073_v14 = vld [vmem:[#allocation5 + $0x160] sm:$0xff] }
 0x4e7   :  { %v4725_v17 = vpack.c.bf16 %v4704_v43, %v4701_v10  ;;  %v4076_v48 = vld [vmem:[#allocation5 + $0x178] sm:$0xff]  ;;  %v4075_v21 = vld [vmem:[#allocation5 + $0x170] sm:$0xff]  ;;  %v4078_v24 = vld [vmem:[#allocation5 + $0x188] sm:$0xff] }
 0x4e8   :  { %4116 = vmatpush1.bf16.msra.mxu0 %v4067_v20  ;;  %4751 = vmatpush1.bf16.msra.mxu1 %v4067_v20  ;;  %v4077_v30 = vld [vmem:[#allocation5 + $0x180] sm:$0xff]  ;;  %v4080_v16 = vld [vmem:[#allocation5 + $0x198] sm:$0xff]  ;;  %v4079_v22 = vld [vmem:[#allocation5 + $0x190] sm:$0xff] }
 0x4e9   :  { %4117 = vmatprep.subr.bf16.mxu0 %v4070_v46  ;;  %4752 = vmatprep.subr.bf16.mxu1 %v4070_v46  ;;  %v4082_v29 = vld [vmem:[#allocation5 + $0x1a8] sm:$0xff]  ;;  %v4081_v57 = vld [vmem:[#allocation5 + $0x1a0] sm:$0xff]  ;;  %v4084_v6 = vld [vmem:[#allocation5 + $0x1b8] sm:$0xff] }
 0x4ea   :  { %4145 = vmatprep.mubr.bf16.mxu0 %v4053_v62  ;;  %4780 = vmatprep.mubr.bf16.mxu1 %v4725_v17  ;;  %v4083_v8 = vld [vmem:[#allocation5 + $0x1b0] sm:$0xff]  ;;  %v4086_v5 = vld [vmem:[#allocation5 + $0x1c8] sm:$0xff]  ;;  %v4085_v1 = vld [vmem:[#allocation5 + $0x1c0] sm:$0xff] }
 0x4eb   :  { %v4088_v19 = vld [vmem:[#allocation5 + $0x1d8] sm:$0xff]  ;;  %v4087_v27 = vld [vmem:[#allocation5 + $0x1d0] sm:$0xff]  ;;  %v4090_v39 = vld [vmem:[#allocation5 + $0x1e8] sm:$0xff] }
 0x4ec   :  { %4118 = vmatpush1.bf16.msra.mxu0 %v4069_v53  ;;  %4753 = vmatpush1.bf16.msra.mxu1 %v4069_v53  ;;  %v4089_v54 = vld [vmem:[#allocation5 + $0x1e0] sm:$0xff]  ;;  %v4092_v2 = vld [vmem:[#allocation5 + $0x1f8] sm:$0xff]  ;;  %v4091_v9 = vld [vmem:[#allocation5 + $0x1f0] sm:$0xff] }
 0x4ed   :  { %4119 = vmatprep.subr.bf16.mxu0 %v4072_v32  ;;  %4754 = vmatprep.subr.bf16.mxu1 %v4072_v32  ;;  %v4094_v7 = vld [vmem:[#allocation5 + $0x208] sm:$0xff]  ;;  %v4093_v28 = vld [vmem:[#allocation5 + $0x200] sm:$0xff]  ;;  %v4096_v56 = vld [vmem:[#allocation5 + $0x218] sm:$0xff] }
 0x4ee   :  { %v4028_v63 = vld [vmem:[#allocation2 + $0x168] sm:$0xff]  ;;  %v4031_v61 = vld [vmem:[#allocation2 + $0x190] sm:$0xff]  ;;  %v4700_v31 = vld [vmem:[#allocation2 + $0x178] sm:$0xff] }
 0x4ef   :  { %v4703_v26 = vld [vmem:[#allocation2 + $0x1a0] sm:$0xff]  ;;  %v4098_v13 = vld [vmem:[#allocation5 + $0x228] sm:$0xff]  ;;  %v4038_v37 = vld [vmem:[#allocation2 + $0x1e8] sm:$0xff]  ;;  %v4052_v44 = vpack.c.bf16 %v4031_v61, %v4028_v63 }
 0x4f0   :  { %4120 = vmatpush1.bf16.msra.mxu0 %v4071_v42  ;;  %4755 = vmatpush1.bf16.msra.mxu1 %v4071_v42  ;;  %v4095_v41 = vld [vmem:[#allocation5 + $0x210] sm:$0xff]  ;;  %v4707_v15 = vld [vmem:[#allocation2 + $0x1d0] sm:$0xff]  ;;  %v4710_v25 = vld [vmem:[#allocation2 + $0x1f8] sm:$0xff]  ;;  %v11879_v0 = vpack.c.bf16 %v4703_v26, %v4700_v31 }
 0x4f1   :  { %4121 = vmatprep.subr.bf16.mxu0 %v4074_v47  ;;  %4756 = vmatprep.subr.bf16.mxu1 %v4074_v47  ;;  %v4035_v52 = vld [vmem:[#allocation2 + $0x1c0] sm:$0xff]  ;;  %v4097_v35 = vld [vmem:[#allocation5 + $0x220] sm:$0xff]  ;;  %v4728_v11 = vpack.c.bf16 %v4710_v25, %v4707_v15  ;;  %v4034_v23 = vld [vmem:[#allocation2 + $0x1b8] sm:$0xff] }
 0x4f2   :  { %v4056_v60 = vpack.c.bf16 %v4038_v37, %v4035_v52  ;;  %v4037_v3 = vld [vmem:[#allocation2 + $0x1e0] sm:$0xff]  ;;  %v4706_v55 = vld [vmem:[#allocation2 + $0x1c8] sm:$0xff]  ;;  %v4709_v33 = vld [vmem:[#allocation2 + $0x1f0] sm:$0xff] }
 0x4f3   :  { %v4100_v58 = vld [vmem:[#allocation5 + $0x238] sm:$0xff]  ;;  %v4041_v50 = vld [vmem:[#allocation2 + $0x210] sm:$0xff]  ;;  %v4044_v34 = vld [vmem:[#allocation2 + $0x238] sm:$0xff]  ;;  %v4055_v32 = vpack.c.bf16 %v4037_v3, %v4034_v23  ;;  %v4727_v42 = vpack.c.bf16 %v4709_v33, %v4706_v55 }
 0x4f4   :  { %4122 = vmatpush1.bf16.msra.mxu0 %v4073_v14  ;;  %4757 = vmatpush1.bf16.msra.mxu1 %v4073_v14  ;;  %v4713_v59 = vld [vmem:[#allocation2 + $0x220] sm:$0xff]  ;;  %v4716_v20 = vld [vmem:[#allocation2 + $0x248] sm:$0xff]  ;;  %v3993_v53 = vld [vmem:[#allocation5 + $0x8] sm:$0xff]  ;;  %v4059_v18 = vpack.c.bf16 %v4044_v34, %v4041_v50 }
 0x4f5   :  { %4123 = vmatprep.subr.bf16.mxu0 %v4076_v48  ;;  %4758 = vmatprep.subr.bf16.mxu1 %v4076_v48  ;;  %v4099_v46 = vld [vmem:[#allocation5 + $0x230] sm:$0xff]  ;;  %v4731_v40 = vpack.c.bf16 %v4716_v20, %v4713_v59  ;;  %v4040_v10 = vld [vmem:[#allocation2 + $0x208] sm:$0xff]  ;;  %v4043_v43 = vld [vmem:[#allocation2 + $0x230] sm:$0xff] }
 0x4f6   :  { %v4712_v47 = vld [vmem:[#allocation2 + $0x218] sm:$0xff]  ;;  %v4715_v62 = vld [vmem:[#allocation2 + $0x240] sm:$0xff]  ;;  %v4050_v14 = vld [vmem:[#allocation2 + $0x288] sm:$0xff] }
 0x4f7   :  { %v4047_v17 = vld [vmem:[#allocation2 + $0x260] sm:$0xff]  ;;  %v4719_v48 = vld [vmem:[#allocation2 + $0x270] sm:$0xff]  ;;  %v3997_v63 = vld [vmem:[#allocation5 + $0x28] sm:$0xff] }
 0x4f8   :  { %4124 = vmatpush1.bf16.msra.mxu0 %v4075_v21  ;;  %4759 = vmatpush1.bf16.msra.mxu1 %v4075_v21  ;;  %v4722_v21 = vld [vmem:[#allocation2 + $0x298] sm:$0xff]  ;;  %v3996_v31 = vld [vmem:[#allocation5 + $0x20] sm:$0xff]  ;;  %v3999_v26 = vld [vmem:[#allocation5 + $0x38] sm:$0xff] }
 0x4f9   :  { %4125 = vmatprep.subr.bf16.mxu0 %v4078_v24  ;;  %4760 = vmatprep.subr.bf16.mxu1 %v4078_v24  ;;  %v4058_v24 = vpack.c.bf16 %v4043_v43, %v4040_v10  ;;  %v3998_v52 = vld [vmem:[#allocation5 + $0x30] sm:$0xff]  ;;  %v4001_v37 = vld [vmem:[#allocation5 + $0x48] sm:$0xff]  ;;  %v4000_v25 = vld [vmem:[#allocation5 + $0x40] sm:$0xff] }
 0x4fa   :  { %v3957_v23 = vld [vmem:[#allocation2 + $0x8] sm:$0xff]  ;;  %v11900_v55 = vld [vmem:[#allocation2 + $0x30] sm:$0xff]  ;;  %v11902_v33 = vld [vmem:[#allocation2 + $0x40] sm:$0xff] }
 0x4fb   :  { %v4004_v50 = vld [vmem:[#allocation5 + $0x60] sm:$0xff]  ;;  %v4007_v34 = vld [vmem:[#allocation5 + $0x78] sm:$0xff]  ;;  %v3981_v59 = vpack.c.bf16 %v11900_v55, %v3957_v23  ;;  %v11958_v23 = vld [vmem:[#allocation2 + $0xc0] sm:$0xff] }
 0x4fc   :  { %4126 = vmatpush1.bf16.msra.mxu0 %v4077_v30  ;;  %4761 = vmatpush1.bf16.msra.mxu1 %v4077_v30  ;;  %v4730_v30 = vpack.c.bf16 %v4715_v62, %v4712_v47  ;;  %v4012_v10 = vld [vmem:[#allocation5 + $0xa0] sm:$0xff]  ;;  %v4015_v43 = vld [vmem:[#allocation5 + $0xb8] sm:$0xff]  ;;  %v4014_v47 = vld [vmem:[#allocation5 + $0xb0] sm:$0xff] }
 0x4fd   :  { %4127 = vmatprep.subr.bf16.mxu0 %v4080_v16  ;;  %4762 = vmatprep.subr.bf16.mxu1 %v4080_v16  ;;  %v4062_v16 = vpack.c.bf16 %v4050_v14, %v4047_v17  ;;  %v4017_v62 = vld [vmem:[#allocation5 + $0xc8] sm:$0xff]  ;;  %v4016_v17 = vld [vmem:[#allocation5 + $0xc0] sm:$0xff]  ;;  %v4019_v14 = vld [vmem:[#allocation5 + $0xd8] sm:$0xff] }
 0x500   :  { %4128 = vmatpush1.bf16.msra.mxu0 %v4079_v22  ;;  %4763 = vmatpush1.bf16.msra.mxu1 %v4079_v22  ;;  %v4734_v22 = vpack.c.bf16 %v4722_v21, %v4719_v48  ;;  %v4018_v48 = vld [vmem:[#allocation5 + $0xd0] sm:$0xff]  ;;  %v4021_v21 = vld [vmem:[#allocation5 + $0xe8] sm:$0xff] }
 0x501   :  { %4129 = vmatprep.subr.bf16.mxu0 %v4082_v29  ;;  %4764 = vmatprep.subr.bf16.mxu1 %v4082_v29  ;;  %v4046_v29 = vld [vmem:[#allocation2 + $0x258] sm:$0xff] }
 0x504   :  { %4130 = vmatpush1.bf16.msra.mxu0 %v4081_v57  ;;  %4765 = vmatpush1.bf16.msra.mxu1 %v4081_v57  ;;  %v4049_v57 = vld [vmem:[#allocation2 + $0x280] sm:$0xff] }
 0x505   :  { %4131 = vmatprep.subr.bf16.mxu0 %v4084_v6  ;;  %4766 = vmatprep.subr.bf16.mxu1 %v4084_v6  ;;  %v4718_v6 = vld [vmem:[#allocation2 + $0x268] sm:$0xff] }
 0x508   :  { %4132 = vmatpush1.bf16.msra.mxu0 %v4083_v8  ;;  %4767 = vmatpush1.bf16.msra.mxu1 %v4083_v8  ;;  %v4721_v8 = vld [vmem:[#allocation2 + $0x290] sm:$0xff] }
 0x509   :  { %4133 = vmatprep.subr.bf16.mxu0 %v4086_v5  ;;  %4768 = vmatprep.subr.bf16.mxu1 %v4086_v5  ;;  %v4061_v5 = vpack.c.bf16 %v4049_v57, %v4046_v29  ;;  %v4664_v29 = vld [vmem:[#allocation2 + $0x10] sm:$0xff]  ;;  %v11911_v57 = vld [vmem:[#allocation2 + $0x38] sm:$0xff] }
 0x50c   :  { %4134 = vmatpush1.bf16.msra.mxu0 %v4085_v1  ;;  %4769 = vmatpush1.bf16.msra.mxu1 %v4085_v1  ;;  %v11882_v1 = vpack.c.bf16 %v4721_v8, %v4718_v6  ;;  %v4022_v6 = vld [vmem:[#allocation5 + $0xf0] sm:$0xff]  ;;  %v4025_v8 = vld [vmem:[#allocation5 + $0x108] sm:$0xff] }
 0x50d   :  { %4135 = vmatprep.subr.bf16.mxu0 %v4088_v19  ;;  %4770 = vmatprep.subr.bf16.mxu1 %v4088_v19  ;;  %v13596_v19 = vmov 0  }
 0x510   :  { %4136 = vmatpush1.bf16.msra.mxu0 %v4087_v27  ;;  %4771 = vmatpush1.bf16.msra.mxu1 %v4087_v27  ;;  %v4702_v27 = vld [vmem:[#allocation2 + $0x188] sm:$0xff] }
 0x511   :  { %4137 = vmatprep.subr.bf16.mxu0 %v4090_v39  ;;  %4772 = vmatprep.subr.bf16.mxu1 %v4090_v39  ;;  %v4705_v39 = vld [vmem:[#allocation2 + $0x1b0] sm:$0xff] }
 0x514   :  { %4138 = vmatpush1.bf16.msra.mxu0 %v4089_v54  ;;  %4773 = vmatpush1.bf16.msra.mxu1 %v4089_v54  ;;  %v4726_v54 = vpack.c.bf16 %v4705_v39, %v4702_v27  ;;  %v11917_v27 = vld [vmem:[#allocation2 + $0x68] sm:$0xff]  ;;  %v11919_v39 = vld [vmem:[#allocation2 + $0x90] sm:$0xff] }
 0x515   :  { %4139 = vmatprep.subr.bf16.mxu0 %v4092_v2  ;;  %4774 = vmatprep.subr.bf16.mxu1 %v4092_v2  ;;  %v3992_v2 = vld [vmem:[#allocation5] sm:$0xff] }
 0x518   :  { %4140 = vmatpush1.bf16.msra.mxu0 %v4091_v9  ;;  %4775 = vmatpush1.bf16.msra.mxu1 %v4091_v9  ;;  %v3995_v9 = vld [vmem:[#allocation5 + $0x18] sm:$0xff] }
 0x519   :  { %4141 = vmatprep.subr.bf16.mxu0 %v4094_v7  ;;  %4776 = vmatprep.subr.bf16.mxu1 %v4094_v7  ;;  %v4708_v7 = vld [vmem:[#allocation2 + $0x1d8] sm:$0xff] }
 0x51c   :  { %4142 = vmatpush1.bf16.msra.mxu0 %v4093_v28  ;;  %4777 = vmatpush1.bf16.msra.mxu1 %v4093_v28  ;;  %v4711_v28 = vld [vmem:[#allocation2 + $0x200] sm:$0xff] }
 0x51d   :  { %4143 = vmatprep.subr.bf16.mxu0 %v4096_v56  ;;  %4778 = vmatprep.subr.bf16.mxu1 %v4096_v56  ;;  %v3994_v56 = vld [vmem:[#allocation5 + $0x10] sm:$0xff]  ;;  %v4729_v61 = vpack.c.bf16 %v4711_v28, %v4708_v7  ;;  %v4692_v28 = vpack.c.bf16 %v11919_v39, %v11917_v27 }
 0x520   :  { %4144 = vmatpush1.bf16.msra.mxu0 %v4095_v41  ;;  %4779 = vmatpush1.bf16.msra.mxu1 %v4095_v41  ;;  %v4714_v41 = vld [vmem:[#allocation2 + $0x228] sm:$0xff] }
 0x521   :  { %4186 = vmatprep.subr.bf16.mxu0 %v4098_v13  ;;  %4821 = vmatprep.subr.bf16.mxu1 %v4098_v13  ;;  %v4717_v13 = vld [vmem:[#allocation2 + $0x250] sm:$0xff] }
 0x522   :  { %v4732_v15 = vpack.c.bf16 %v4717_v13, %v4714_v41  ;;  %v11938_v41 = vld [vmem:[#allocation2 + $0xa8] sm:$0xff]  ;;  %v11940_v13 = vld [vmem:[#allocation2 + $0xd0] sm:$0xff] }
 0x523   :  { %4146 = vmatmul.mubr.bf16.vlgmr.msra.gmra.mrb[32].mxu0 %v4052_v44  ;;  %4781 = vmatmul.mubr.bf16.vlgmr.msra.gmra.mrb[32].mxu1 %v11879_v0  ;;  %v4003_v44 = vld [vmem:[#allocation5 + $0x58] sm:$0xff] }
 0x524   :  { %4187 = vmatpush1.bf16.msra.mxu0 %v4097_v35  ;;  %4822 = vmatpush1.bf16.msra.mxu1 %v4097_v35  ;;  %v4723_v35 = vld [vmem:[#allocation2 + $0x2a0] sm:$0xff] }
 0x525   :  { %4155 = vmatprep.mubr.bf16.mxu0 %v4056_v60  ;;  %4790 = vmatprep.mubr.bf16.mxu1 %v4728_v11  ;;  %v4002_v60 = vld [vmem:[#allocation5 + $0x50] sm:$0xff]  ;;  %v4005_v11 = vld [vmem:[#allocation5 + $0x68] sm:$0xff] }
 0x526   :  { %4188 = vmatprep.subr.bf16.mxu0 %v4100_v58  ;;  %4823 = vmatprep.subr.bf16.mxu1 %v4100_v58  ;;  %v4665_v58 = vld [vmem:[#allocation2 + $0x18] sm:$0xff] }
 0x527   :  { %v4689_v20 = vpack.c.bf16 %v11902_v33, %v4665_v58  ;;  %v11963_v58 = vld [vmem:[#allocation2 + $0xa0] sm:$0xff] }
 0x528   :  { %4189 = vmatpush1.bf16.msra.mxu0 %v4099_v46  ;;  %4824 = vmatpush1.bf16.msra.mxu1 %v4099_v46  ;;  %v4006_v46 = vld [vmem:[#allocation5 + $0x70] sm:$0xff] }
 0x529   :  { %4271 = vmatprep.subr.bf16.mxu0 %v3993_v53  ;;  %4906 = vmatprep.subr.bf16.mxu1 %v3993_v53  ;;  %v4009_v53 = vld [vmem:[#allocation5 + $0x88] sm:$0xff] }
 0x52b   :  { %4156 = vmatmul.mubr.bf16.gmra.mrb[36].mxu0 %v4055_v32  ;;  %4791 = vmatmul.mubr.bf16.gmra.mrb[36].mxu1 %v4727_v42  ;;  %v4008_v32 = vld [vmem:[#allocation5 + $0x80] sm:$0xff] }
 0x52c   :  { %4165 = vmatprep.mubr.bf16.mxu0 %v4059_v18  ;;  %4800 = vmatprep.mubr.bf16.mxu1 %v4731_v40  ;;  %v4010_v18 = vld [vmem:[#allocation5 + $0x90] sm:$0xff]  ;;  %v4013_v40 = vld [vmem:[#allocation5 + $0xa8] sm:$0xff] }
 0x533   :  { %4166 = vmatmul.mubr.bf16.gmra.mrb[40].mxu0 %v4058_v24  ;;  %4801 = vmatmul.mubr.bf16.gmra.mrb[40].mxu1 %v4730_v30  ;;  %v4020_v24 = vld [vmem:[#allocation5 + $0xe0] sm:$0xff] }
 0x534   :  { %4175 = vmatprep.mubr.bf16.mxu0 %v4062_v16  ;;  %4810 = vmatprep.mubr.bf16.mxu1 %v4734_v22  ;;  %v3956_v16 = vld [vmem:[#allocation2] sm:$0xff]  ;;  %v11909_v22 = vld [vmem:[#allocation2 + $0x28] sm:$0xff] }
 0x53b   :  { %4176 = vmatmul.mubr.bf16.gmra.mrb[44].mxu0 %v4061_v5  ;;  %4811 = vmatmul.mubr.bf16.gmra.mrb[44].mxu1 %v11882_v1  ;;  %v11913_v5 = vld [vmem:[#allocation2 + $0x58] sm:$0xff] }
 0x53c   :  { %4218 = vmatprep.mubr.bf16.mxu0 %v13596_v19  ;;  %4853 = vmatprep.mubr.bf16.mxu1 %v13596_v19 }
 0x543   :  { %8187 = vmatmul.mubr.msk.bf16.vlgmr.msra.gmra.mrb[32].mxu0 %vm3699_vm8, %v11879_v0  ;;  %8199 = vmatmul.mubr.msk.bf16.vlgmr.msra.gmra.mrb[32].mxu1 %vm3699_vm8, %v4726_v54  ;;  %v4720_v0 = vld [vmem:[#allocation2 + $0x278] sm:$0xff]  ;;  %v3980_v54 = vpack.c.bf16 %v11909_v22, %v3956_v16  ;;  %v4666_v16 = vld [vmem:[#allocation2 + $0x20] sm:$0xff] }
 0x544   :  { %4272 = vmatpush1.bf16.msra.mxu0 %v3992_v2  ;;  %4907 = vmatpush1.bf16.msra.mxu1 %v3992_v2  ;;  %v4735_v3 = vpack.c.bf16 %v4723_v35, %v4720_v0  ;;  %v11923_v2 = vpack.c.bf16 %v11911_v57, %v4664_v29  ;;  %v3987_v35 = vpack.c.bf16 %v11940_v13, %v11938_v41  ;;  %v12010_v29 = vld [vmem:[#allocation2 + $0x48] sm:$0xff] }
 0x545   :  { %4273 = vmatprep.subr.bf16.mxu0 %v3995_v9  ;;  %4908 = vmatprep.subr.bf16.mxu1 %v3995_v9  ;;  %v4024_v9 = vld [vmem:[#allocation5 + $0x100] sm:$0xff] }
 0x546   :  { %4228 = vmatprep.mubr.bf16.mxu0 %v13596_v19  ;;  %4863 = vmatprep.mubr.bf16.mxu1 %v13596_v19 }
 0x548   :  { %4274 = vmatpush1.bf16.msra.mxu0 %v3994_v56  ;;  %4909 = vmatpush1.bf16.msra.mxu1 %v3994_v56  ;;  %v11929_v56 = vld [vmem:[#allocation2 + $0x50] sm:$0xff] }
 0x549   :  { %4275 = vmatprep.subr.bf16.mxu0 %v3997_v63  ;;  %4910 = vmatprep.subr.bf16.mxu1 %v3997_v63  ;;  %v11932_v63 = vld [vmem:[#allocation2 + $0x78] sm:$0xff] }
 0x54b   :  { %8188 = vmatmul.mubr.msk.bf16.gmra.mrb[36].mxu0 %vm3699_vm8, %v4727_v42  ;;  %8200 = vmatmul.mubr.msk.bf16.gmra.mrb[36].mxu1 %vm3699_vm8, %v4729_v61  ;;  %v4011_v42 = vld [vmem:[#allocation5 + $0x98] sm:$0xff]  ;;  %v11934_v61 = vld [vmem:[#allocation2 + $0x60] sm:$0xff] }
 0x54c   :  { %4276 = vmatpush1.bf16.msra.mxu0 %v3996_v31  ;;  %4911 = vmatpush1.bf16.msra.mxu1 %v3996_v31  ;;  %v4027_v31 = vld [vmem:[#allocation5 + $0x118] sm:$0xff] }
 0x54d   :  { %4277 = vmatprep.subr.bf16.mxu0 %v3999_v26  ;;  %4912 = vmatprep.subr.bf16.mxu1 %v3999_v26  ;;  %v11936_v26 = vld [vmem:[#allocation2 + $0x88] sm:$0xff] }
 0x54e   :  { %4238 = vmatprep.mubr.bf16.mxu0 %v13596_v19  ;;  %4873 = vmatprep.mubr.bf16.mxu1 %v13596_v19  ;;  %v11950_v0 = vpack.c.bf16 %v11936_v26, %v11934_v61 }
 0x550   :  { %4278 = vmatpush1.bf16.msra.mxu0 %v3998_v52  ;;  %4913 = vmatpush1.bf16.msra.mxu1 %v3998_v52  ;;  %v11942_v52 = vld [vmem:[#allocation2 + $0xb8] sm:$0xff] }
 0x551   :  { %4279 = vmatprep.subr.bf16.mxu0 %v4001_v37  ;;  %4914 = vmatprep.subr.bf16.mxu1 %v4001_v37  ;;  %v11944_v37 = vld [vmem:[#allocation2 + $0xe0] sm:$0xff] }
 0x553   :  { %8189 = vmatmul.mubr.msk.bf16.gmra.mrb[40].mxu0 %vm3699_vm8, %v4730_v30  ;;  %8201 = vmatmul.mubr.msk.bf16.gmra.mrb[40].mxu1 %vm3699_vm8, %v4732_v15  ;;  %v4023_v30 = vld [vmem:[#allocation5 + $0xf8] sm:$0xff]  ;;  %v4026_v15 = vld [vmem:[#allocation5 + $0x110] sm:$0xff] }
 0x554   :  { %4280 = vmatpush1.bf16.msra.mxu0 %v4000_v25  ;;  %4915 = vmatpush1.bf16.msra.mxu1 %v4000_v25  ;;  %v4455_v25 = vld [vmem:[#allocation5 + $0x248] sm:$0xff] }
 0x555   :  { %4281 = vmatprep.subr.bf16.mxu0 %v4003_v44  ;;  %4916 = vmatprep.subr.bf16.mxu1 %v4003_v44  ;;  %v3983_v44 = vpack.c.bf16 %v11932_v63, %v11929_v56 }
 0x556   :  { %4248 = vmatprep.mubr.bf16.mxu0 %v13596_v19  ;;  %4883 = vmatprep.mubr.bf16.mxu1 %v13596_v19 }
 0x558   :  { %4282 = vmatpush1.bf16.msra.mxu0 %v4002_v60  ;;  %4917 = vmatpush1.bf16.msra.mxu1 %v4002_v60  ;;  %v4695_v60 = vpack.c.bf16 %v11944_v37, %v11942_v52 }
 0x559   :  { %4283 = vmatprep.subr.bf16.mxu0 %v4005_v11  ;;  %4918 = vmatprep.subr.bf16.mxu1 %v4005_v11  ;;  %v11956_v11 = vld [vmem:[#allocation2 + $0x98] sm:$0xff] }
 0x55b   :  { %8190 = vmatmul.mubr.msk.bf16.gmra.mrb[44].mxu0 %vm3699_vm8, %v11882_v1  ;;  %8202 = vmatmul.mubr.msk.bf16.gmra.mrb[44].mxu1 %vm3699_vm8, %v4735_v3  ;;  %v11915_v1 = vld [vmem:[#allocation2 + $0x80] sm:$0xff]  ;;  %v5081_v3 = vpack.c.bf16 %v11958_v23, %v11956_v11 }
 0x55c   :  { %4284 = vmatpush1.bf16.msra.mxu0 %v4004_v50  ;;  %4919 = vmatpush1.bf16.msra.mxu1 %v4004_v50  ;;  %v3984_v7 = vpack.c.bf16 %v11915_v1, %v11913_v5  ;;  %v11965_v50 = vld [vmem:[#allocation2 + $0xc8] sm:$0xff] }
 0x55d   :  { %4285 = vmatprep.subr.bf16.mxu0 %v4007_v34  ;;  %4920 = vmatprep.subr.bf16.mxu1 %v4007_v34  ;;  %v11967_v34 = vld [vmem:[#allocation2 + $0xb0] sm:$0xff] }
 0x55e   :  { %4303 = vmatprep.mubr.bf16.mxu0 %v3981_v59  ;;  %4938 = vmatprep.mubr.bf16.mxu1 %v4689_v20  ;;  %v11969_v59 = vld [vmem:[#allocation2 + $0xd8] sm:$0xff] }
 0x55f   :  { %v11971_v20 = vld [vmem:[#allocation2 + $0xf8] sm:$0xff] }
 0x560   :  { %4286 = vmatpush1.bf16.msra.mxu0 %v4006_v46  ;;  %4921 = vmatpush1.bf16.msra.mxu1 %v4006_v46  ;;  %v11973_v46 = vld [vmem:[#allocation2 + $0x120] sm:$0xff] }
 0x561   :  { %4287 = vmatprep.subr.bf16.mxu0 %v4009_v53  ;;  %4922 = vmatprep.subr.bf16.mxu1 %v4009_v53  ;;  %v11975_v53 = vld [vmem:[#allocation2 + $0x108] sm:$0xff] }
 0x564   :  { %4288 = vmatpush1.bf16.msra.mxu0 %v4008_v32  ;;  %4923 = vmatpush1.bf16.msra.mxu1 %v4008_v32  ;;  %v11977_v32 = vld [vmem:[#allocation2 + $0x130] sm:$0xff] }
 0x565   :  { %4289 = vmatprep.subr.bf16.mxu0 %v4011_v42  ;;  %4924 = vmatprep.subr.bf16.mxu1 %v4011_v42  ;;  %v3986_v42 = vpack.c.bf16 %v11965_v50, %v11963_v58 }
 0x568   :  { %4290 = vmatpush1.bf16.msra.mxu0 %v4010_v18  ;;  %4925 = vmatpush1.bf16.msra.mxu1 %v4010_v18  ;;  %v4694_v18 = vpack.c.bf16 %v11969_v59, %v11967_v34 }
 0x569   :  { %4291 = vmatprep.subr.bf16.mxu0 %v4013_v40  ;;  %4926 = vmatprep.subr.bf16.mxu1 %v4013_v40  ;;  %v3990_v40 = vpack.c.bf16 %v11973_v46, %v11971_v20 }
 0x56c   :  { %4292 = vmatpush1.bf16.msra.mxu0 %v4012_v10  ;;  %4927 = vmatpush1.bf16.msra.mxu1 %v4012_v10  ;;  %v4698_v10 = vpack.c.bf16 %v11977_v32, %v11975_v53 }
 0x56d   :  { %4293 = vmatprep.subr.bf16.mxu0 %v4015_v43  ;;  %4928 = vmatprep.subr.bf16.mxu1 %v4015_v43  ;;  %v11987_v43 = vld [vmem:[#allocation2 + $0xe8] sm:$0xff] }
 0x570   :  { %4294 = vmatpush1.bf16.msra.mxu0 %v4014_v47  ;;  %4929 = vmatpush1.bf16.msra.mxu1 %v4014_v47  ;;  %v11989_v47 = vld [vmem:[#allocation2 + $0x110] sm:$0xff] }
 0x571   :  { %4295 = vmatprep.subr.bf16.mxu0 %v4017_v62  ;;  %4930 = vmatprep.subr.bf16.mxu1 %v4017_v62  ;;  %v5084_v62 = vpack.c.bf16 %v11989_v47, %v11987_v43 }
 0x574   :  { %4296 = vmatpush1.bf16.msra.mxu0 %v4016_v17  ;;  %4931 = vmatpush1.bf16.msra.mxu1 %v4016_v17  ;;  %v11993_v17 = vld [vmem:[#allocation2 + $0xf0] sm:$0xff] }
 0x575   :  { %4297 = vmatprep.subr.bf16.mxu0 %v4019_v14  ;;  %4932 = vmatprep.subr.bf16.mxu1 %v4019_v14  ;;  %v11995_v14 = vld [vmem:[#allocation2 + $0x118] sm:$0xff] }
 0x578   :  { %4298 = vmatpush1.bf16.msra.mxu0 %v4018_v48  ;;  %4933 = vmatpush1.bf16.msra.mxu1 %v4018_v48  ;;  %v11997_v48 = vld [vmem:[#allocation2 + $0x100] sm:$0xff] }
 0x579   :  { %4299 = vmatprep.subr.bf16.mxu0 %v4021_v21  ;;  %4934 = vmatprep.subr.bf16.mxu1 %v4021_v21  ;;  %v11999_v21 = vld [vmem:[#allocation2 + $0x128] sm:$0xff] }
 0x57c   :  { %4300 = vmatpush1.bf16.msra.mxu0 %v4020_v24  ;;  %4935 = vmatpush1.bf16.msra.mxu1 %v4020_v24  ;;  %v3989_v24 = vpack.c.bf16 %v11995_v14, %v11993_v17 }
 0x57d   :  { %4301 = vmatprep.subr.bf16.mxu0 %v4023_v30  ;;  %4936 = vmatprep.subr.bf16.mxu1 %v4023_v30  ;;  %v12005_v30 = vpack.c.bf16 %v11999_v21, %v11997_v48 }
 0x580   :  { %4302 = vmatpush1.bf16.msra.mxu0 %v4022_v6  ;;  %4937 = vmatpush1.bf16.msra.mxu1 %v4022_v6  ;;  %v4690_v6 = vpack.c.bf16 %v12010_v29, %v4666_v16  ;;  %v4469_v16 = vld [vmem:[#allocation5 + $0x2b8] sm:$0xff] }
 0x581   :  { %4344 = vmatprep.subr.bf16.mxu0 %v4025_v8  ;;  %4979 = vmatprep.subr.bf16.mxu1 %v4025_v8  ;;  %v4454_v8 = vld [vmem:[#allocation5 + $0x240] sm:$0xff] }
 0x583   :  { %4304 = vmatmul.mubr.bf16.vlgmr.msra.gmra.mrb[32].mxu0 %v3980_v54  ;;  %4939 = vmatmul.mubr.bf16.vlgmr.msra.gmra.mrb[32].mxu1 %v11923_v2  ;;  %v4457_v54 = vld [vmem:[#allocation5 + $0x258] sm:$0xff] }
 0x584   :  { %4345 = vmatpush1.bf16.msra.mxu0 %v4024_v9  ;;  %4980 = vmatpush1.bf16.msra.mxu1 %v4024_v9  ;;  %v12016_v9 = vld [vmem:[#allocation2 + $0x70] sm:$0xff] }
 0x585   :  { %4313 = vmatprep.mubr.bf16.mxu0 %v3984_v7  ;;  %4948 = vmatprep.mubr.bf16.mxu1 %v4692_v28  ;;  %v4456_v7 = vld [vmem:[#allocation5 + $0x250] sm:$0xff]  ;;  %v4459_v28 = vld [vmem:[#allocation5 + $0x268] sm:$0xff] }
 0x586   :  { %4346 = vmatprep.subr.bf16.mxu0 %v4027_v31  ;;  %4981 = vmatprep.subr.bf16.mxu1 %v4027_v31  ;;  %v4693_v31 = vpack.c.bf16 %v11956_v11, %v12016_v9 }
 0x588   :  { %4347 = vmatpush1.bf16.msra.mxu0 %v4026_v15  ;;  %4982 = vmatpush1.bf16.msra.mxu1 %v4026_v15  ;;  %v4461_v15 = vld [vmem:[#allocation5 + $0x278] sm:$0xff] }
 0x589   :  { %4502 = vmatprep.subr.bf16.mxu0 %v4455_v25  ;;  %5100 = vmatprep.subr.bf16.mxu1 %v4455_v25  ;;  %v4460_v25 = vld [vmem:[#allocation5 + $0x270] sm:$0xff] }
 0x58b   :  { %4314 = vmatmul.mubr.bf16.gmra.mrb[36].mxu0 %v3983_v44  ;;  %4949 = vmatmul.mubr.bf16.gmra.mrb[36].mxu1 %v11950_v0  ;;  %v4463_v44 = vld [vmem:[#allocation5 + $0x288] sm:$0xff] }
 0x58c   :  { %4323 = vmatprep.mubr.bf16.mxu0 %v3987_v35  ;;  %4958 = vmatprep.mubr.bf16.mxu1 %v4695_v60  ;;  %v4696_v35 = vpack.c.bf16 %v11987_v43, %v11958_v23  ;;  %v4465_v60 = vld [vmem:[#allocation5 + $0x298] sm:$0xff] }
 0x593   :  { %4324 = vmatmul.mubr.bf16.gmra.mrb[40].mxu0 %v3986_v42  ;;  %4959 = vmatmul.mubr.bf16.gmra.mrb[40].mxu1 %v4694_v18  ;;  %v12031_v42 = vld [vmem:[#allocation2 + $0x138] sm:$0xff] }
 0x594   :  { %4333 = vmatprep.mubr.bf16.mxu0 %v3990_v40  ;;  %4968 = vmatprep.mubr.bf16.mxu1 %v4698_v10  ;;  %v4464_v40 = vld [vmem:[#allocation5 + $0x290] sm:$0xff]  ;;  %v4467_v10 = vld [vmem:[#allocation5 + $0x2a8] sm:$0xff] }
 0x59b   :  { %4334 = vmatmul.mubr.bf16.gmra.mrb[44].mxu0 %v3989_v24  ;;  %4969 = vmatmul.mubr.bf16.gmra.mrb[44].mxu1 %v12005_v30  ;;  %v4699_v24 = vpack.c.bf16 %v12031_v42, %v11989_v47 }
 0x59c   :  { %4376 = vmatprep.mubr.bf16.mxu0 %v13596_v19  ;;  %5011 = vmatprep.mubr.bf16.mxu1 %v13596_v19 }
 0x5a3   :  { %8191 = vmatmul.mubr.msk.bf16.vlgmr.msra.gmra.mrb[32].mxu0 %vm3699_vm8, %v11923_v2  ;;  %8203 = vmatmul.mubr.msk.bf16.vlgmr.msra.gmra.mrb[32].mxu1 %vm3699_vm8, %v4690_v6  ;;  %v4458_v2 = vld [vmem:[#allocation5 + $0x260] sm:$0xff]  ;;  %v4442_v6 = vpack.c.bf16 %v11913_v5, %v11900_v55  ;;  %v4473_v5 = vld [vmem:[#allocation5 + $0x2d8] sm:$0xff] }
 0x5a4   :  { %4503 = vmatpush1.bf16.msra.mxu0 %v4454_v8  ;;  %5101 = vmatpush1.bf16.msra.mxu1 %v4454_v8  ;;  %v5077_v8 = vpack.c.bf16 %v11917_v27, %v11902_v33  ;;  %v4470_v55 = vld [vmem:[#allocation5 + $0x2c0] sm:$0xff]  ;;  %v4472_v33 = vld [vmem:[#allocation5 + $0x2d0] sm:$0xff]  ;;  %v4475_v27 = vld [vmem:[#allocation5 + $0x2e8] sm:$0xff] }
 0x5a5   :  { %4504 = vmatprep.subr.bf16.mxu0 %v4457_v54  ;;  %5102 = vmatprep.subr.bf16.mxu1 %v4457_v54  ;;  %v4468_v54 = vld [vmem:[#allocation5 + $0x2b0] sm:$0xff] }
 0x5a6   :  { %4386 = vmatprep.mubr.bf16.mxu0 %v13596_v19  ;;  %5021 = vmatprep.mubr.bf16.mxu1 %v13596_v19 }
 0x5a8   :  { %4505 = vmatpush1.bf16.msra.mxu0 %v4456_v7  ;;  %5103 = vmatpush1.bf16.msra.mxu1 %v4456_v7  ;;  %v4471_v7 = vld [vmem:[#allocation5 + $0x2c8] sm:$0xff] }
 0x5a9   :  { %4506 = vmatprep.subr.bf16.mxu0 %v4459_v28  ;;  %5104 = vmatprep.subr.bf16.mxu1 %v4459_v28  ;;  %v4477_v28 = vld [vmem:[#allocation5 + $0x2f8] sm:$0xff] }
 0x5ab   :  { %8192 = vmatmul.mubr.msk.bf16.gmra.mrb[36].mxu0 %vm3699_vm8, %v11950_v0  ;;  %8204 = vmatmul.mubr.msk.bf16.gmra.mrb[36].mxu1 %vm3699_vm8, %v4693_v31  ;;  %v4462_v0 = vld [vmem:[#allocation5 + $0x280] sm:$0xff]  ;;  %v4476_v31 = vld [vmem:[#allocation5 + $0x2f0] sm:$0xff] }
 0x5ac   :  { %4507 = vmatpush1.bf16.msra.mxu0 %v4458_v2  ;;  %5105 = vmatpush1.bf16.msra.mxu1 %v4458_v2  ;;  %v4479_v2 = vld [vmem:[#allocation5 + $0x308] sm:$0xff] }
 0x5ad   :  { %4508 = vmatprep.subr.bf16.mxu0 %v4461_v15  ;;  %5106 = vmatprep.subr.bf16.mxu1 %v4461_v15  ;;  %v4478_v15 = vld [vmem:[#allocation5 + $0x300] sm:$0xff] }
 0x5ae   :  { %4396 = vmatprep.mubr.bf16.mxu0 %v13596_v19  ;;  %5031 = vmatprep.mubr.bf16.mxu1 %v13596_v19 }
 0x5b0   :  { %4509 = vmatpush1.bf16.msra.mxu0 %v4460_v25  ;;  %5107 = vmatpush1.bf16.msra.mxu1 %v4460_v25  ;;  %v4481_v25 = vld [vmem:[#allocation5 + $0x318] sm:$0xff] }
 0x5b1   :  { %4510 = vmatprep.subr.bf16.mxu0 %v4463_v44  ;;  %5108 = vmatprep.subr.bf16.mxu1 %v4463_v44  ;;  %v4480_v44 = vld [vmem:[#allocation5 + $0x310] sm:$0xff] }
 0x5b3   :  { %8193 = vmatmul.mubr.msk.bf16.gmra.mrb[40].mxu0 %vm3699_vm8, %v4694_v18  ;;  %8205 = vmatmul.mubr.msk.bf16.gmra.mrb[40].mxu1 %vm3699_vm8, %v4696_v35  ;;  %v4466_v18 = vld [vmem:[#allocation5 + $0x2a0] sm:$0xff]  ;;  %v4483_v35 = vld [vmem:[#allocation5 + $0x328] sm:$0xff] }
 0x5b4   :  { %4511 = vmatpush1.bf16.msra.mxu0 %v4462_v0  ;;  %5109 = vmatpush1.bf16.msra.mxu1 %v4462_v0  ;;  %v4482_v0 = vld [vmem:[#allocation5 + $0x320] sm:$0xff] }
 0x5b5   :  { %4512 = vmatprep.subr.bf16.mxu0 %v4465_v60  ;;  %5110 = vmatprep.subr.bf16.mxu1 %v4465_v60  ;;  %v4485_v60 = vld [vmem:[#allocation5 + $0x338] sm:$0xff] }
 0x5b6   :  { %4406 = vmatprep.mubr.bf16.mxu0 %v13596_v19  ;;  %5041 = vmatprep.mubr.bf16.mxu1 %v13596_v19 }
 0x5b8   :  { %4513 = vmatpush1.bf16.msra.mxu0 %v4464_v40  ;;  %5111 = vmatpush1.bf16.msra.mxu1 %v4464_v40  ;;  %v4484_v40 = vld [vmem:[#allocation5 + $0x330] sm:$0xff] }
 0x5b9   :  { %4514 = vmatprep.subr.bf16.mxu0 %v4467_v10  ;;  %5112 = vmatprep.subr.bf16.mxu1 %v4467_v10  ;;  %v4487_v10 = vld [vmem:[#allocation5 + $0x348] sm:$0xff] }
 0x5bb   :  { %8194 = vmatmul.mubr.msk.bf16.gmra.mrb[44].mxu0 %vm3699_vm8, %v12005_v30  ;;  %8206 = vmatmul.mubr.msk.bf16.gmra.mrb[44].mxu1 %vm3699_vm8, %v4699_v24  ;;  %v4474_v30 = vld [vmem:[#allocation5 + $0x2e0] sm:$0xff]  ;;  %v4441_v24 = vpack.c.bf16 %v11929_v56, %v11909_v22  ;;  %v4488_v22 = vld [vmem:[#allocation5 + $0x350] sm:$0xff]  ;;  %v5079_v56 = vpack.c.bf16 %v11967_v34, %v11936_v26  ;;  %v5082_v26 = vpack.c.bf16 %v11997_v48, %v11969_v59 }
 0x5bc   :  { %4515 = vmatpush1.bf16.msra.mxu0 %v4466_v18  ;;  %5113 = vmatpush1.bf16.msra.mxu1 %v4466_v18  ;;  %v5076_v18 = vpack.c.bf16 %v11934_v61, %v11911_v57  ;;  %v4444_v57 = vpack.c.bf16 %v11963_v58, %v11932_v63  ;;  %v4439_v61 = vld [vmem:[#allocation2 + $0x148] sm:$0xff]  ;;  %v4447_v63 = vpack.c.bf16 %v11993_v17, %v11965_v50  ;;  %v5073_v58 = vld [vmem:[#allocation2 + $0x150] sm:$0xff]  ;;  %v5075_v59 = vld [vmem:[#allocation2 + $0x160] sm:$0xff] }
 0x5bd   :  { %4516 = vmatprep.subr.bf16.mxu0 %v4469_v16  ;;  %5114 = vmatprep.subr.bf16.mxu1 %v4469_v16  ;;  %v4486_v16 = vld [vmem:[#allocation5 + $0x340] sm:$0xff]  ;;  %v5078_v50 = vpack.c.bf16 %v12016_v9, %v12010_v29  ;;  %v5087_v11 = vpack.c.bf16 %v5075_v59, %v12031_v42 }
 0x5be   :  { %4534 = vmatprep.mubr.bf16.mxu0 %v4442_v6  ;;  %5132 = vmatprep.mubr.bf16.mxu1 %v5077_v8  ;;  %v4445_v6 = vpack.c.bf16 %v11938_v41, %v11915_v1  ;;  %v5080_v8 = vpack.c.bf16 %v11942_v52, %v11919_v39  ;;  %v4448_v1 = vpack.c.bf16 %v11971_v20, %v11940_v13  ;;  %v5074_v41 = vld [vmem:[#allocation2 + $0x158] sm:$0xff] }
 0x5bf   :  { %v5083_v39 = vpack.c.bf16 %v11975_v53, %v11944_v37  ;;  %v4451_v52 = vpack.c.bf16 %v4439_v61, %v11973_v46  ;;  %v5086_v13 = vpack.c.bf16 %v5074_v41, %v11977_v32  ;;  %v4438_v37 = vld [vmem:[#allocation2 + $0x140] sm:$0xff]  ;;  %v5085_v20 = vpack.c.bf16 %v5073_v58, %v11999_v21 }
 0x5c0   :  { %4517 = vmatpush1.bf16.msra.mxu0 %v4468_v54  ;;  %5115 = vmatpush1.bf16.msra.mxu1 %v4468_v54  ;;  %v4489_v54 = vld [vmem:[#allocation5 + $0x358] sm:$0xff]  ;;  %v4450_v34 = vpack.c.bf16 %v4438_v37, %v11995_v14 }
 0x5c1   :  { %4518 = vmatprep.subr.bf16.mxu0 %v4471_v7  ;;  %5116 = vmatprep.subr.bf16.mxu1 %v4471_v7 }
 0x5c4   :  { %4519 = vmatpush1.bf16.msra.mxu0 %v4470_v55  ;;  %5117 = vmatpush1.bf16.msra.mxu1 %v4470_v55 }
 0x5c5   :  { %4520 = vmatprep.subr.bf16.mxu0 %v4473_v5  ;;  %5118 = vmatprep.subr.bf16.mxu1 %v4473_v5 }
 0x5c8   :  { %4521 = vmatpush1.bf16.msra.mxu0 %v4472_v33  ;;  %5119 = vmatpush1.bf16.msra.mxu1 %v4472_v33 }
 0x5c9   :  { %4522 = vmatprep.subr.bf16.mxu0 %v4475_v27  ;;  %5120 = vmatprep.subr.bf16.mxu1 %v4475_v27 }
 0x5cc   :  { %4523 = vmatpush1.bf16.msra.mxu0 %v4474_v30  ;;  %5121 = vmatpush1.bf16.msra.mxu1 %v4474_v30 }
 0x5cd   :  { %4524 = vmatprep.subr.bf16.mxu0 %v4477_v28  ;;  %5122 = vmatprep.subr.bf16.mxu1 %v4477_v28 }
 0x5d0   :  { %4525 = vmatpush1.bf16.msra.mxu0 %v4476_v31  ;;  %5123 = vmatpush1.bf16.msra.mxu1 %v4476_v31 }
 0x5d1   :  { %4526 = vmatprep.subr.bf16.mxu0 %v4479_v2  ;;  %5124 = vmatprep.subr.bf16.mxu1 %v4479_v2 }
 0x5d4   :  { %4527 = vmatpush1.bf16.msra.mxu0 %v4478_v15  ;;  %5125 = vmatpush1.bf16.msra.mxu1 %v4478_v15 }
 0x5d5   :  { %4528 = vmatprep.subr.bf16.mxu0 %v4481_v25  ;;  %5126 = vmatprep.subr.bf16.mxu1 %v4481_v25 }
 0x5d8   :  { %4529 = vmatpush1.bf16.msra.mxu0 %v4480_v44  ;;  %5127 = vmatpush1.bf16.msra.mxu1 %v4480_v44 }
 0x5d9   :  { %4530 = vmatprep.subr.bf16.mxu0 %v4483_v35  ;;  %5128 = vmatprep.subr.bf16.mxu1 %v4483_v35 }
 0x5dc   :  { %4531 = vmatpush1.bf16.msra.mxu0 %v4482_v0  ;;  %5129 = vmatpush1.bf16.msra.mxu1 %v4482_v0 }
 0x5dd   :  { %4532 = vmatprep.subr.bf16.mxu0 %v4485_v60  ;;  %5130 = vmatprep.subr.bf16.mxu1 %v4485_v60 }
 0x5e0   :  { %4533 = vmatpush1.bf16.msra.mxu0 %v4484_v40  ;;  %5131 = vmatpush1.bf16.msra.mxu1 %v4484_v40 }
 0x5e1   :  { %4575 = vmatprep.subr.bf16.mxu0 %v4487_v10  ;;  %5173 = vmatprep.subr.bf16.mxu1 %v4487_v10 }
 0x5e3   :  { %4535 = vmatmul.mubr.bf16.vlgmr.msra.gmra.mrb[32].mxu0 %v4441_v24  ;;  %5133 = vmatmul.mubr.bf16.vlgmr.msra.gmra.mrb[32].mxu1 %v5076_v18 }
 0x5e4   :  { %4576 = vmatpush1.bf16.msra.mxu0 %v4486_v16  ;;  %5174 = vmatpush1.bf16.msra.mxu1 %v4486_v16 }
 0x5e5   :  { %4544 = vmatprep.mubr.bf16.mxu0 %v4445_v6  ;;  %5142 = vmatprep.mubr.bf16.mxu1 %v5080_v8 }
 0x5e6   :  { %4577 = vmatprep.subr.bf16.mxu0 %v4489_v54  ;;  %5175 = vmatprep.subr.bf16.mxu1 %v4489_v54 }
 0x5e8   :  { %4578 = vmatpush1.bf16.msra.mxu0 %v4488_v22  ;;  %5176 = vmatpush1.bf16.msra.mxu1 %v4488_v22 }
 0x5eb   :  { %4545 = vmatmul.mubr.bf16.gmra.mrb[36].mxu0 %v4444_v57  ;;  %5143 = vmatmul.mubr.bf16.gmra.mrb[36].mxu1 %v5079_v56 }
 0x5ec   :  { %4554 = vmatprep.mubr.bf16.mxu0 %v4448_v1  ;;  %5152 = vmatprep.mubr.bf16.mxu1 %v5083_v39 }
 0x5f3   :  { %4555 = vmatmul.mubr.bf16.gmra.mrb[40].mxu0 %v4447_v63  ;;  %5153 = vmatmul.mubr.bf16.gmra.mrb[40].mxu1 %v5082_v26 }
 0x5f4   :  { %4564 = vmatprep.mubr.bf16.mxu0 %v4451_v52  ;;  %5162 = vmatprep.mubr.bf16.mxu1 %v5086_v13 }
 0x5fb   :  { %4565 = vmatmul.mubr.bf16.gmra.mrb[44].mxu0 %v4450_v34  ;;  %5163 = vmatmul.mubr.bf16.gmra.mrb[44].mxu1 %v5085_v20 }
 0x5fc   :  { %4607 = vmatprep.mubr.bf16.mxu0 %v13596_v19  ;;  %5205 = vmatprep.mubr.bf16.mxu1 %v13596_v19 }
 0x603   :  { %8195 = vmatmul.mubr.msk.bf16.vlgmr.msra.gmra.mrb[32].mxu0 %vm3699_vm8, %v5076_v18  ;;  %8207 = vmatmul.mubr.msk.bf16.vlgmr.msra.gmra.mrb[32].mxu1 %vm3699_vm8, %v5078_v50 }
 0x604   :  { %4617 = vmatprep.mubr.bf16.mxu0 %v13596_v19  ;;  %5215 = vmatprep.mubr.bf16.mxu1 %v13596_v19 }
 0x60b   :  { %8196 = vmatmul.mubr.msk.bf16.gmra.mrb[36].mxu0 %vm3699_vm8, %v5079_v56  ;;  %8208 = vmatmul.mubr.msk.bf16.gmra.mrb[36].mxu1 %vm3699_vm8, %v5081_v3 }
 0x60c   :  { %4627 = vmatprep.mubr.bf16.mxu0 %v13596_v19  ;;  %5225 = vmatprep.mubr.bf16.mxu1 %v13596_v19 }
 0x613   :  { %8197 = vmatmul.mubr.msk.bf16.gmra.mrb[40].mxu0 %vm3699_vm8, %v5082_v26  ;;  %8209 = vmatmul.mubr.msk.bf16.gmra.mrb[40].mxu1 %vm3699_vm8, %v5084_v62 }
 0x614   :  { %4637 = vmatprep.mubr.bf16.mxu0 %v13596_v19  ;;  %5235 = vmatprep.mubr.bf16.mxu1 %v13596_v19 }
 0x61b   :  { %8198 = vmatmul.mubr.msk.bf16.gmra.mrb[44].mxu0 %vm3699_vm8, %v5085_v20  ;;  %8210 = vmatmul.mubr.msk.bf16.gmra.mrb[44].mxu1 %vm3699_vm8, %v5087_v11 }
 0x6d6   :  { %v12093_v23 = vpop.f32.mrb[32].mxu0  ;;  %v12095_v3 = vpop.f32.mrb[32].mxu1 }
 0x6d7   :  { %v12097_v46 = vpop.f32.mrb[33].mxu0  ;;  %v12099_v53 = vpop.f32.mrb[33].mxu1  ;;  %v5314_v32 = vmul.f32 %v12093_v23, %v12093_v23  ;;  %v5316_v43 = vmul.f32 %v12095_v3, %v12095_v3 }
 0x6d8   :  { %v5315_v47 = vmul.f32 %v12097_v46, %v12097_v46  ;;  %v5317_v62 = vmul.f32 %v12099_v53, %v12099_v53  ;;  %v12109_v17 = vpop.f32.mrb[34].mxu0  ;;  %v12111_v14 = vpop.f32.mrb[34].mxu1 }
 0x6d9   :  { %v5262_v48 = vadd.f32 %v12109_v17, %v12093_v23  ;;  %v5318_v21 = vmul.f32 %v12109_v17, %v12109_v17  ;;  %v5288_v29 = vadd.f32 %v12111_v14, %v12095_v3  ;;  %v5320_v9 = vmul.f32 %v12111_v14, %v12111_v14  ;;  %v12121_v42 = vpop.f32.mrb[35].mxu0  ;;  %v12123_v7 = vpop.f32.mrb[35].mxu1 }
 0x6da   :  { %v5275_v55 = vadd.f32 %v12121_v42, %v12097_v46  ;;  %v5319_v5 = vmul.f32 %v12121_v42, %v12121_v42  ;;  %v5301_v33 = vadd.f32 %v12123_v7, %v12099_v53  ;;  %v5321_v27 = vmul.f32 %v12123_v7, %v12123_v7 }
 0x6db   :  { %v5346_v30 = vadd.f32 %v5318_v21, %v5314_v32  ;;  %v5372_v28 = vadd.f32 %v5320_v9, %v5316_v43 }
 0x6dc   :  { %v5359_v31 = vadd.f32 %v5319_v5, %v5315_v47  ;;  %v5385_v2 = vadd.f32 %v5321_v27, %v5317_v62 }
 0x6de   :  { %v12133_v15 = vpop.f32.mrb[36].mxu0  ;;  %v12135_v25 = vpop.f32.mrb[36].mxu1 }
 0x6df   :  { %v5263_v44 = vadd.f32 %v5262_v48, %v12133_v15  ;;  %v5322_v35 = vmul.f32 %v12133_v15, %v12133_v15  ;;  %v5289_v0 = vadd.f32 %v5288_v29, %v12135_v25  ;;  %v5324_v60 = vmul.f32 %v12135_v25, %v12135_v25  ;;  %v12143_v40 = vpop.f32.mrb[37].mxu0  ;;  %v12145_v10 = vpop.f32.mrb[37].mxu1 }
 0x6e0   :  { %v5276_v24 = vadd.f32 %v5275_v55, %v12143_v40  ;;  %v5323_v18 = vmul.f32 %v12143_v40, %v12143_v40  ;;  %v5302_v16 = vadd.f32 %v5301_v33, %v12145_v10  ;;  %v5325_v6 = vmul.f32 %v12145_v10, %v12145_v10  ;;  %v12153_v8 = vpop.f32.mrb[38].mxu0  ;;  %v12155_v54 = vpop.f32.mrb[38].mxu1 }
 0x6e1   :  { %v5347_v22 = vadd.f32 %v5346_v30, %v5322_v35  ;;  %v5373_v57 = vadd.f32 %v5372_v28, %v5324_v60  ;;  %v5264_v56 = vadd.f32 %v5263_v44, %v12153_v8  ;;  %v5326_v1 = vmul.f32 %v12153_v8, %v12153_v8  ;;  %v12160_v39 = vpop.f32.mrb[39].mxu0  ;;  %v12162_v61 = vpop.f32.mrb[39].mxu1 }
 0x6e2   :  { %v5360_v41 = vadd.f32 %v5359_v31, %v5323_v18  ;;  %v5386_v63 = vadd.f32 %v5385_v2, %v5325_v6  ;;  %v5290_v26 = vadd.f32 %v5289_v0, %v12155_v54  ;;  %v5328_v52 = vmul.f32 %v12155_v54, %v12155_v54 }
 0x6e3   :  { %v5348_v13 = vadd.f32 %v5347_v22, %v5326_v1  ;;  %v5277_v37 = vadd.f32 %v5276_v24, %v12160_v39  ;;  %v5327_v58 = vmul.f32 %v12160_v39, %v12160_v39  ;;  %v5303_v34 = vadd.f32 %v5302_v16, %v12162_v61 }
 0x6e4   :  { %v5374_v20 = vadd.f32 %v5373_v57, %v5328_v52  ;;  %v5329_v50 = vmul.f32 %v12162_v61, %v12162_v61 }
 0x6e5   :  { %v5361_v59 = vadd.f32 %v5360_v41, %v5327_v58 }
 0x6e6   :  { %v5387_v11 = vadd.f32 %v5386_v63, %v5329_v50  ;;  %v12173_v32 = vpop.f32.mrb[40].mxu0  ;;  %v12175_v43 = vpop.f32.mrb[40].mxu1 }
 0x6e7   :  { %v5265_v47 = vadd.f32 %v5264_v56, %v12173_v32  ;;  %v5330_v62 = vmul.f32 %v12173_v32, %v12173_v32  ;;  %v5291_v48 = vadd.f32 %v5290_v26, %v12175_v43  ;;  %v5332_v21 = vmul.f32 %v12175_v43, %v12175_v43  ;;  %v12183_v29 = vpop.f32.mrb[41].mxu0  ;;  %v12185_v9 = vpop.f32.mrb[41].mxu1 }
 0x6e8   :  { %v5278_v55 = vadd.f32 %v5277_v37, %v12183_v29  ;;  %v5331_v5 = vmul.f32 %v12183_v29, %v12183_v29  ;;  %v5304_v33 = vadd.f32 %v5303_v34, %v12185_v9  ;;  %v5333_v27 = vmul.f32 %v12185_v9, %v12185_v9  ;;  %v12193_v30 = vpop.f32.mrb[42].mxu0  ;;  %v12195_v28 = vpop.f32.mrb[42].mxu1 }
 0x6e9   :  { %v5349_v31 = vadd.f32 %v5348_v13, %v5330_v62  ;;  %v5375_v2 = vadd.f32 %v5374_v20, %v5332_v21  ;;  %v5266_v44 = vadd.f32 %v5265_v47, %v12193_v30  ;;  %v5334_v35 = vmul.f32 %v12193_v30, %v12193_v30  ;;  %v12200_v0 = vpop.f32.mrb[43].mxu0  ;;  %v12202_v60 = vpop.f32.mrb[43].mxu1 }
 0x6ea   :  { %v5362_v24 = vadd.f32 %v5361_v59, %v5331_v5  ;;  %v5388_v18 = vadd.f32 %v5387_v11, %v5333_v27  ;;  %v5292_v16 = vadd.f32 %v5291_v48, %v12195_v28  ;;  %v5336_v6 = vmul.f32 %v12195_v28, %v12195_v28 }
 0x6eb   :  { %v5350_v22 = vadd.f32 %v5349_v31, %v5334_v35  ;;  %v5279_v57 = vadd.f32 %v5278_v55, %v12200_v0  ;;  %v5335_v56 = vmul.f32 %v12200_v0, %v12200_v0  ;;  %v5305_v1 = vadd.f32 %v5304_v33, %v12202_v60 }
 0x6ec   :  { %v5376_v41 = vadd.f32 %v5375_v2, %v5336_v6  ;;  %v5337_v63 = vmul.f32 %v12202_v60, %v12202_v60 }
 0x6ed   :  { %v5363_v26 = vadd.f32 %v5362_v24, %v5335_v56 }
 0x6ee   :  { %v5389_v52 = vadd.f32 %v5388_v18, %v5337_v63  ;;  %v12213_v13 = vpop.f32.mrb[44].mxu0  ;;  %v12215_v37 = vpop.f32.mrb[44].mxu1 }
 0x6ef   :  { %13597 = vst [vmem:[#allocation156_spill] sm:$0xff] %v12213_v13  ;;  %v5267_v58 = vadd.f32 %v5266_v44, %v12213_v13  ;;  %v5338_v34 = vmul.f32 %v12213_v13, %v12213_v13  ;;  %v5293_v20 = vadd.f32 %v5292_v16, %v12215_v37  ;;  %v5340_v50 = vmul.f32 %v12215_v37, %v12215_v37  ;;  %v12223_v59 = vpop.f32.mrb[45].mxu0  ;;  %v12225_v11 = vpop.f32.mrb[45].mxu1 }
 0x6f0   :  { %13598 = vst [vmem:[#allocation150_spill] sm:$0xff] %v12223_v59  ;;  %13599 = vst [vmem:[#allocation158_spill] sm:$0xff] %v12225_v11  ;;  %v5280_v47 = vadd.f32 %v5279_v57, %v12223_v59  ;;  %v5339_v62 = vmul.f32 %v12223_v59, %v12223_v59  ;;  %v5306_v48 = vadd.f32 %v5305_v1, %v12225_v11  ;;  %v12233_v55 = vpop.f32.mrb[46].mxu0  ;;  %v12235_v5 = vpop.f32.mrb[46].mxu1 }
 0x6f1   :  { %v5341_v21 = vmul.f32 %v12225_v11, %v12225_v11  ;;  %13600 = vst [vmem:[#allocation164_spill] sm:$0xff] %v12233_v55  ;;  %13601 = vst [vmem:[#allocation163_spill] sm:$0xff] %v12235_v5  ;;  %v5351_v33 = vadd.f32 %v5350_v22, %v5338_v34  ;;  %v5377_v27 = vadd.f32 %v5376_v41, %v5340_v50  ;;  %v12240_v44 = vpop.f32.mrb[47].mxu0  ;;  %v12242_v35 = vpop.f32.mrb[47].mxu1 }
 0x6f2   :  { %v5268_v31 = vadd.f32 %v5267_v58, %v12233_v55  ;;  %v5342_v2 = vmul.f32 %v12233_v55, %v12233_v55  ;;  %13602 = vst [vmem:[#allocation151_spill] sm:$0xff] %v12240_v44  ;;  %13603 = vst [vmem:[#allocation160_spill] sm:$0xff] %v12242_v35  ;;  %v5364_v24 = vadd.f32 %v5363_v26, %v5339_v62 }
 0x6f3   :  { %v5390_v18 = vadd.f32 %v5389_v52, %v5341_v21  ;;  %v5294_v16 = vadd.f32 %v5293_v20, %v12235_v5  ;;  %v5344_v6 = vmul.f32 %v12235_v5, %v12235_v5  ;;  %v5281_v22 = vadd.f32 %v5280_v47, %v12240_v44 }
 0x6f4   :  { %v5269_v57 = vrot.slane %v5268_v31, 4  ;;  %v5352_v56 = vadd.f32 %v5351_v33, %v5342_v2  ;;  %v5343_v1 = vmul.f32 %v12240_v44, %v12240_v44  ;;  %v5307_v58 = vadd.f32 %v5306_v48, %v12242_v35 }
 0x6f5   :  { %v5295_v41 = vrot.slane %v5294_v16, 4  ;;  %v5378_v63 = vadd.f32 %v5377_v27, %v5344_v6  ;;  %v5345_v26 = vmul.f32 %v12242_v35, %v12242_v35  ;;  %v5282_v52 = vrot.slane %v5281_v22, 4 }
 0x6f6   :  { %v5365_v34 = vadd.f32 %v5364_v24, %v5343_v1  ;;  %v5270_v20 = vadd.f32 %v5269_v57, %v5268_v31  ;;  %v5353_v50 = vrot.slane %v5352_v56, 4  ;;  %v5308_v62 = vrot.slane %v5307_v58, 4 }
 0x6f7   :  { %v5391_v21 = vadd.f32 %v5390_v18, %v5345_v26  ;;  %v5296_v4 = vadd.f32 %v5295_v41, %v5294_v16  ;;  %v5379_v33 = vrot.slane %v5378_v63, 4  ;;  %v5283_v2 = vadd.f32 %v5282_v52, %v5281_v22 }
 0x6f8   :  { %v5366_v47 = vrot.slane %v5365_v34, 4  ;;  %v5271_v19 = vrot.slane %v5270_v20, 2  ;;  %v5354_v55 = vadd.f32 %v5353_v50, %v5352_v56  ;;  %v5309_v44 = vadd.f32 %v5308_v62, %v5307_v58 }
 0x6f9   :  { %v5392_v5 = vrot.slane %v5391_v21, 4  ;;  %v5297_v27 = vrot.slane %v5296_v4, 2  ;;  %v5380_v6 = vadd.f32 %v5379_v33, %v5378_v63  ;;  %v5284_v59 = vrot.slane %v5283_v2, 2 }
 0x6fa   :  { %v5272_v48 = vadd.f32 %v5271_v19, %v5270_v20  ;;  %v5367_v13 = vadd.f32 %v5366_v47, %v5365_v34  ;;  %v5355_v35 = vrot.slane %v5354_v55, 2  ;;  %v5310_v24 = vrot.slane %v5309_v44, 2 }
 0x6fb   :  { %v5298_v11 = vadd.f32 %v5297_v27, %v5296_v4  ;;  %v5393_v31 = vadd.f32 %v5392_v5, %v5391_v21  ;;  %v5285_v1 = vadd.f32 %v5284_v59, %v5283_v2  ;;  %v5381_v56 = vrot.slane %v5380_v6, 2 }
 0x6fc   :  { %v5273_v57 = vrot.slane %v5272_v48, 1  ;;  %v5368_v18 = vrot.slane %v5367_v13, 2  ;;  %v5311_v41 = vadd.f32 %v5310_v24, %v5309_v44  ;;  %v5356_v52 = vadd.f32 %v5355_v35, %v5354_v55 }
 0x6fd   :  { %v5299_v16 = vrot.slane %v5298_v11, 1  ;;  %v5286_v26 = vrot.slane %v5285_v1, 1  ;;  %v5394_v63 = vrot.slane %v5393_v31, 2  ;;  %v5382_v5 = vadd.f32 %v5381_v56, %v5380_v6 }
 0x6fe   :  { %v5274_v22 = vadd.f32 %v5273_v57, %v5272_v48  ;;  %v5312_v50 = vrot.slane %v5311_v41, 1  ;;  %v5369_v62 = vadd.f32 %v5368_v18, %v5367_v13  ;;  %v5357_v19 = vrot.slane %v5356_v52, 1 }
 0x6ff   :  { %v5300_v58 = vadd.f32 %v5299_v16, %v5298_v11  ;;  %v5287_v4 = vadd.f32 %v5286_v26, %v5285_v1  ;;  %v5395_v20 = vadd.f32 %v5394_v63, %v5393_v31  ;;  %v5383_v44 = vrot.slane %v5382_v5, 1 }
 0x700   :  { %5398 = vrot.lane.b32.xlu0 %v5274_v22, %s9312_s30  ;;  %v5313_v34 = vadd.f32 %v5312_v50, %v5311_v41  ;;  %v5370_v59 = vrot.slane %v5369_v62, 1  ;;  %v5358_v55 = vadd.f32 %v5357_v19, %v5356_v52 }
 0x701   :  { %5402 = vrot.lane.b32.xlu1 %v5300_v58, %s9312_s30  ;;  %v5396_v35 = vrot.slane %v5395_v20, 1  ;;  %v5384_v13 = vadd.f32 %v5383_v44, %v5382_v5 }
 0x702   :  { %v5371_v11 = vadd.f32 %v5370_v59, %v5369_v62 }
 0x703   :  { %v5397_v21 = vadd.f32 %v5396_v35, %v5395_v20 }
 0x704   :  { %5400 = vrot.lane.b32.xlu0 %v5287_v4, %s9312_s30 }
 0x705   :  { %5404 = vrot.lane.b32.xlu1 %v5313_v34, %s9312_s30 }
 0x708   :  { %5414 = vrot.lane.b32.xlu0 %v5358_v55, %s9312_s30 }
 0x709   :  { %5416 = vrot.lane.b32.xlu1 %v5371_v11, %s9312_s30 }
 0x70c   :  { %5418 = vrot.lane.b32.xlu0 %v5384_v13, %s9312_s30 }
 0x70d   :  { %5420 = vrot.lane.b32.xlu1 %v5397_v21, %s9312_s30 }
 0x772   :  { %v5399_v33 = vpop.permute.xlu0 %5398 }
 0x773   :  { %v5403_v2 = vpop.permute.xlu1 %5402 }
 0x776   :  { %v5401_v47 = vpop.permute.xlu0 %5400 }
 0x777   :  { %v5405_v27 = vpop.permute.xlu1 %5404  ;;  %v5407_v6 = vsel %vm3039_vm4, %v5401_v47, %v5403_v2  ;;  %v5408_v48 = vsel %vm3039_vm4, %v5399_v33, %v5401_v47 }
 0x778   :  { %v5406_v24 = vsel %vm3039_vm4, %v5403_v2, %v5405_v27  ;;  %v5409_v31 = vsel %vm3039_vm4, %v5405_v27, %v5399_v33  ;;  %v5411_v57 = vadd.f32 %v5408_v48, %v5287_v4  ;;  %v5412_v1 = vadd.f32 %v5407_v6, %v5300_v58 }
 0x779   :  { %v5410_v18 = vadd.f32 %v5409_v31, %v5274_v22  ;;  %v5413_v16 = vadd.f32 %v5406_v24, %v5313_v34 }
 0x77a   :  { %v5432_v41 = vadd.f32 %v5412_v1, %v5411_v57  ;;  %v5415_v26 = vpop.permute.xlu0 %5414 }
 0x77b   :  { %v5430_v52 = vadd.f32 %v5413_v16, %v5410_v18  ;;  %v5431_v56 = vadd.f32 %v5411_v57, %v5410_v18  ;;  %v5433_v50 = vadd.f32 %v5413_v16, %v5412_v1  ;;  %v5417_v62 = vpop.permute.xlu1 %5416 }
 0x77c   :  { %v5424_v63 = vsel %vm3039_vm4, %v5415_v26, %v5417_v62 }
 0x77d   :  { %v5438_v19 = vadd.f32 %v5432_v41, %v5430_v52  ;;  %v5439_v59 = vadd.f32 %v5433_v50, %v5431_v56  ;;  %v5427_v4 = vadd.f32 %v5424_v63, %v5371_v11  ;;  %v5450_v63 = vld [vmem:[%s13227_s8] ss:$2 sm:$0xf] }
 0x77e   :  { %v5419_v5 = vpop.permute.xlu0 %5418 }
 0x77f   :  { %v5421_v20 = vpop.permute.xlu1 %5420  ;;  %v5423_v44 = vsel %vm3039_vm4, %v5417_v62, %v5419_v5  ;;  %v5442_v2 = vmul.f32 0.001953125, %v5438_v19  ;;  %v5443_v27 = vmul.f32 0.001953125, %v5439_v59 }
 0x780   :  { %v5425_v22 = vsel %vm3039_vm4, %v5421_v20, %v5415_v26  ;;  %v5422_v58 = vsel %vm3039_vm4, %v5419_v5, %v5421_v20  ;;  %v5428_v34 = vadd.f32 %v5423_v44, %v5384_v13 }
 0x781   :  { %v5426_v35 = vadd.f32 %v5425_v22, %v5358_v55  ;;  %v5429_v33 = vadd.f32 %v5422_v58, %v5397_v21  ;;  %v5446_v1 = vmul.f32 %v5442_v2, %v5442_v2  ;;  %v5447_v18 = vmul.f32 %v5443_v27, %v5443_v27 }
 0x782   :  { %v5436_v47 = vadd.f32 %v5428_v34, %v5427_v4 }
 0x783   :  { %v5435_v6 = vadd.f32 %v5427_v4, %v5426_v35  ;;  %v5434_v48 = vadd.f32 %v5429_v33, %v5426_v35  ;;  %v5437_v24 = vadd.f32 %v5429_v33, %v5428_v34 }
 0x785   :  { %v5440_v31 = vadd.f32 %v5436_v47, %v5434_v48  ;;  %v5441_v57 = vadd.f32 %v5437_v24, %v5435_v6 }
 0x787   :  { %v5444_v11 = vmul.f32 0.001953125, %v5440_v31  ;;  %v5445_v16 = vmul.f32 0.001953125, %v5441_v57 }
 0x789   :  { %v5448_v41 = vsub.f32 %v5444_v11, %v5446_v1  ;;  %v5449_v26 = vsub.f32 %v5445_v16, %v5447_v18 }
 0x78b   :  { %v5451_v52 = vadd.f32 1e-05, %v5448_v41  ;;  %v5452_v56 = vadd.f32 1e-05, %v5449_v26 }
 0x78d   :  { %9239 = vrsqrt.f32 %v5451_v52 }
 0x78e   :  { %9241 = vrsqrt.f32 %v5452_v56 }
 0x797   :  { %v9240_v55 = vpop.eup %9239 }
 0x798   :  { %v9242_v13 = vpop.eup %9241 }
 0x799   :  { %v5457_v21 = vcombine.low %v9240_v55, %v9242_v13  ;;  %v13607_v13 = vld [vmem:[#allocation163_spill] sm:$0xff] }
 0x79b   :  { %v5464_v50 = vrot.slane %v5457_v21, %v11409_v45 }
 0x79d   :  { %v5465_v62 = vcombine.low %v5464_v50, %v5464_v50  ;;  %v13608_v50 = vld [vmem:[#allocation160_spill] sm:$0xff] }
 0x79f   :  { %v5472_v19 = vrot.slane %v5465_v62, %v11409_v45 }
 0x7a1   :  { %v5474_v5 = vmul.f32 %v5472_v19, %v5450_v63  ;;  %v13609_v63 = vld [vmem:[#allocation164_spill] sm:$0xff] }
 0x7a3   :  { %v5481_v59 = vrot.slane %v5474_v5, %v11412_v12  ;;  %v5485_v20 = vrot.slane %v5474_v5, %v11417_v49  ;;  %v5489_v44 = vrot.slane %v5474_v5, %v11419_v38  ;;  %v5493_v4 = vrot.slane %v5474_v5, %v11421_v51 }
 0x7a5   :  { %v5498_v22 = vmul.f32 %v5481_v59, %v5442_v2  ;;  %v5499_v58 = vmul.f32 %v5485_v20, %v5443_v27  ;;  %v5500_v34 = vmul.f32 %v5489_v44, %v5442_v2  ;;  %v5501_v35 = vmul.f32 %v5493_v4, %v5443_v27 }
 0x7a6   :  { %v5534_v6 = vmul.f32 %v5489_v44, %v12095_v3  ;;  %v5535_v31 = vmul.f32 %v5493_v4, %v12099_v53  ;;  %v5532_v57 = vmul.f32 %v5481_v59, %v12093_v23  ;;  %v5533_v1 = vmul.f32 %v5485_v20, %v12097_v46  ;;  %v8211_v23 = vld [vmem:[%s13227_s8 + $0x1] ss:$2 sm:$0xf] }
 0x7a7   :  { %v5506_v33 = vcombine.low %v5498_v22, %v5499_v58  ;;  %v5507_v47 = vcombine.low %v5500_v34, %v5501_v35  ;;  %v5538_v18 = vmul.f32 %v5489_v44, %v12111_v14  ;;  %v5539_v11 = vmul.f32 %v5493_v4, %v12123_v7 }
 0x7a8   :  { %v5536_v2 = vmul.f32 %v5481_v59, %v12109_v17  ;;  %v5537_v16 = vmul.f32 %v5485_v20, %v12121_v42  ;;  %v12297_v3 = vmul.f32 %v5489_v44, %v12135_v25  ;;  %v12300_v41 = vmul.f32 %v5493_v4, %v12145_v10 }
 0x7a9   :  { %v5514_v48 = vrot.slane %v5506_v33, %v11409_v45  ;;  %v5521_v24 = vrot.slane %v5507_v47, %v11409_v45  ;;  %v12306_v46 = vmul.f32 %v5481_v59, %v12133_v15  ;;  %v12309_v53 = vmul.f32 %v5485_v20, %v12143_v40 }
 0x7aa   :  { %v12312_v17 = vmul.f32 %v5489_v44, %v12155_v54  ;;  %v12315_v14 = vmul.f32 %v5493_v4, %v12162_v61  ;;  %v12319_v7 = vmul.f32 %v5481_v59, %v12153_v8  ;;  %v12322_v25 = vmul.f32 %v5485_v20, %v12160_v39 }
 0x7ab   :  { %v5522_v27 = vcombine.low %v5514_v48, %v5521_v24  ;;  %v12325_v15 = vmul.f32 %v5489_v44, %v12175_v43  ;;  %v12328_v40 = vmul.f32 %v5493_v4, %v12185_v9  ;;  %v12331_v10 = vmul.f32 %v5481_v59, %v12173_v32  ;;  %v13604_v32 = vld [vmem:[#allocation158_spill] sm:$0xff] }
 0x7ac   :  { %v12334_v54 = vmul.f32 %v5485_v20, %v12183_v29  ;;  %v12337_v61 = vmul.f32 %v5489_v44, %v12195_v28  ;;  %v12340_v26 = vmul.f32 %v5493_v4, %v12202_v60  ;;  %v12343_v39 = vmul.f32 %v5481_v59, %v12193_v30  ;;  %v13605_v29 = vld [vmem:[#allocation156_spill] sm:$0xff]  ;;  %v13606_v28 = vld [vmem:[#allocation150_spill] sm:$0xff] }
 0x7ad   :  { %v5529_v42 = vrot.slane %v5522_v27, %v11409_v45  ;;  %v12346_v43 = vmul.f32 %v5485_v20, %v12200_v0  ;;  %v12349_v9 = vmul.f32 %v5489_v44, %v12215_v37  ;;  %v12352_v52 = vmul.f32 %v5493_v4, %v13604_v32 }
 0x7ae   :  { %v12355_v56 = vmul.f32 %v5481_v59, %v13605_v29  ;;  %v12358_v55 = vmul.f32 %v5485_v20, %v13606_v28  ;;  %v12373_v21 = vmul.f32 %v5489_v44, %v13607_v13  ;;  %v12376_v62 = vmul.f32 %v5493_v4, %v13608_v50 }
 0x7af   :  { %v5531_v8 = vsub.f32 %v8211_v23, %v5529_v42  ;;  %v12379_v19 = vmul.f32 %v5481_v59, %v13609_v63 }
 0x7b1   :  { %v12361_v60 = vrot.slane %v5531_v8, %v11419_v38  ;;  %v12364_v30 = vrot.slane %v5531_v8, %v11421_v51  ;;  %v12367_v0 = vrot.slane %v5531_v8, %v11412_v12  ;;  %v12370_v37 = vrot.slane %v5531_v8, %v11417_v49  ;;  %v13610_v38 = vld [vmem:[#allocation151_spill] sm:$0xff] }
 0x7b2   :  { %v12382_v5 = vmul.f32 %v5485_v20, %v13610_v38 }
 0x7b3   :  { %v5587_v51 = vadd.f32 %v12361_v60, %v5534_v6  ;;  %v5588_v22 = vadd.f32 %v12364_v30, %v5535_v31  ;;  %v5585_v58 = vadd.f32 %v12367_v0, %v5532_v57  ;;  %v5586_v34 = vadd.f32 %v12370_v37, %v5533_v1 }
 0x7b4   :  { %v5591_v44 = vadd.f32 %v12361_v60, %v5538_v18  ;;  %v5592_v35 = vadd.f32 %v12364_v30, %v5539_v11  ;;  %v5589_v4 = vadd.f32 %v12367_v0, %v5536_v2  ;;  %v5590_v59 = vadd.f32 %v12370_v37, %v5537_v16 }
 0x7b5   :  { %vm5619_vm13 = vcmp.ge.f32.partialorder %v5587_v51, 0.0  ;;  %vm5620_vm14 = vcmp.ge.f32.partialorder %v5588_v22, 0.0  ;;  %v5651_v20 = vmul.f32 0.2, %v5587_v51  ;;  %v5652_v33 = vmul.f32 0.2, %v5588_v22 }
 0x7b6   :  { %vm5617_vm15 = vcmp.ge.f32.partialorder %v5585_v58, 0.0  ;;  %vm5618_vm1 = vcmp.ge.f32.partialorder %v5586_v34, 0.0  ;;  %v5649_v47 = vmul.f32 0.2, %v5585_v58  ;;  %v5650_v6 = vmul.f32 0.2, %v5586_v34 }
 0x7b7   :  { %v5683_v48 = vsel %vm5619_vm13, %v5587_v51, %v5651_v20  ;;  %v5684_v24 = vsel %vm5620_vm14, %v5588_v22, %v5652_v33  ;;  %vm5623_vm2 = vcmp.ge.f32.partialorder %v5591_v44, 0.0  ;;  %vm5624_vm3 = vcmp.ge.f32.partialorder %v5592_v35, 0.0 }
 0x7b8   :  { %v9164_v31 = vpack.i.bf16 %v5684_v24, %v5683_v48  ;;  %v5681_v57 = vsel %vm5617_vm15, %v5585_v58, %v5649_v47  ;;  %v5682_v1 = vsel %vm5618_vm1, %v5586_v34, %v5650_v6  ;;  %v5655_v18 = vmul.f32 0.2, %v5591_v44 }
 0x7b9   :  { %v9159_v11 = vpack.i.bf16 %v5682_v1, %v5681_v57  ;;  %v5656_v2 = vmul.f32 0.2, %v5592_v35  ;;  %vm5621_vm5 = vcmp.ge.f32.partialorder %v5589_v4, 0.0  ;;  %vm5622_vm6 = vcmp.ge.f32.partialorder %v5590_v59, 0.0 }
 0x7ba   :  { %9165 = vrot.lane.b32.xlu1 %v9164_v31, %s9312_s30  ;;  %v5687_v27 = vsel %vm5623_vm2, %v5591_v44, %v5655_v18  ;;  %v5653_v16 = vmul.f32 0.2, %v5589_v4  ;;  %v5654_v23 = vmul.f32 0.2, %v5590_v59  ;;  %v5595_v42 = vadd.f32 %v12361_v60, %v12297_v3 }
 0x7bb   :  { %9160 = vrot.lane.b32.xlu0 %v9159_v11, %s9312_s30  ;;  %v5688_v8 = vsel %vm5624_vm3, %v5592_v35, %v5656_v2  ;;  %v5596_v32 = vadd.f32 %v12364_v30, %v12300_v41  ;;  %v5593_v29 = vadd.f32 %v12367_v0, %v12306_v46  ;;  %v5594_v28 = vadd.f32 %v12370_v37, %v12309_v53 }
 0x7bc   :  { %v9174_v13 = vpack.i.bf16 %v5688_v8, %v5687_v27  ;;  %v5685_v50 = vsel %vm5621_vm5, %v5589_v4, %v5653_v16  ;;  %v5686_v63 = vsel %vm5622_vm6, %v5590_v59, %v5654_v23  ;;  %vm5627_vm7 = vcmp.ge.f32.partialorder %v5595_v42, 0.0 }
 0x7bd   :  { %v9169_v38 = vpack.i.bf16 %v5686_v63, %v5685_v50  ;;  %vm5628_vm8 = vcmp.ge.f32.partialorder %v5596_v32, 0.0  ;;  %v5659_v51 = vmul.f32 0.2, %v5595_v42  ;;  %v5660_v3 = vmul.f32 0.2, %v5596_v32 }
 0x7be   :  { %9175 = vrot.lane.b32.xlu1 %v9174_v13, %s9312_s30  ;;  %vm5625_vm9 = vcmp.ge.f32.partialorder %v5593_v29, 0.0  ;;  %vm5626_vm10 = vcmp.ge.f32.partialorder %v5594_v28, 0.0  ;;  %v5657_v22 = vmul.f32 0.2, %v5593_v29  ;;  %v5658_v41 = vmul.f32 0.2, %v5594_v28 }
 0x7bf   :  { %9170 = vrot.lane.b32.xlu0 %v9169_v38, %s9312_s30  ;;  %v5691_v46 = vsel %vm5627_vm7, %v5595_v42, %v5659_v51  ;;  %v5692_v58 = vsel %vm5628_vm8, %v5596_v32, %v5660_v3  ;;  %v5599_v53 = vadd.f32 %v12361_v60, %v12312_v17  ;;  %v5600_v34 = vadd.f32 %v12364_v30, %v12315_v14 }
 0x7c0   :  { %v9184_v44 = vpack.i.bf16 %v5692_v58, %v5691_v46  ;;  %v5689_v35 = vsel %vm5625_vm9, %v5593_v29, %v5657_v22  ;;  %v5690_v4 = vsel %vm5626_vm10, %v5594_v28, %v5658_v41  ;;  %v5597_v59 = vadd.f32 %v12367_v0, %v12319_v7 }
 0x7c1   :  { %v9179_v20 = vpack.i.bf16 %v5690_v4, %v5689_v35  ;;  %vm5631_vm11 = vcmp.ge.f32.partialorder %v5599_v53, 0.0  ;;  %vm5632_vm12 = vcmp.ge.f32.partialorder %v5600_v34, 0.0  ;;  %v5663_v33 = vmul.f32 0.2, %v5599_v53 }
 0x7c2   :  { %9185 = vrot.lane.b32.xlu1 %v9184_v44, %s9312_s30  ;;  %v5664_v47 = vmul.f32 0.2, %v5600_v34  ;;  %v5598_v6 = vadd.f32 %v12370_v37, %v12322_v25  ;;  %vm5629_vm13 = vcmp.ge.f32.partialorder %v5597_v59, 0.0  ;;  %v5661_v17 = vmul.f32 0.2, %v5597_v59 }
 0x7c3   :  { %9180 = vrot.lane.b32.xlu0 %v9179_v20, %s9312_s30  ;;  %v5695_v14 = vsel %vm5631_vm11, %v5599_v53, %v5663_v33  ;;  %v5603_v48 = vadd.f32 %v12361_v60, %v12325_v15  ;;  %v5604_v7 = vadd.f32 %v12364_v30, %v12328_v40  ;;  %v5601_v24 = vadd.f32 %v12367_v0, %v12331_v10 }
 0x7c4   :  { %v5696_v31 = vsel %vm5632_vm12, %v5600_v34, %v5664_v47  ;;  %vm5630_vm14 = vcmp.ge.f32.partialorder %v5598_v6, 0.0  ;;  %v5662_v57 = vmul.f32 0.2, %v5598_v6  ;;  %v5693_v1 = vsel %vm5629_vm13, %v5597_v59, %v5661_v17 }
 0x7c5   :  { %v9194_v18 = vpack.i.bf16 %v5696_v31, %v5695_v14  ;;  %vm5635_vm15 = vcmp.ge.f32.partialorder %v5603_v48, 0.0  ;;  %vm5636_vm1 = vcmp.ge.f32.partialorder %v5604_v7, 0.0  ;;  %v5667_v25 = vmul.f32 0.2, %v5603_v48 }
 0x7c6   :  { %v5694_v11 = vsel %vm5630_vm14, %v5598_v6, %v5662_v57  ;;  %v5668_v2 = vmul.f32 0.2, %v5604_v7  ;;  %v5602_v27 = vadd.f32 %v12370_v37, %v12334_v54  ;;  %vm5633_vm2 = vcmp.ge.f32.partialorder %v5601_v24, 0.0 }
 0x7c7   :  { %9195 = vrot.lane.b32.xlu1 %v9194_v18, %s9312_s30  ;;  %v9189_v15 = vpack.i.bf16 %v5694_v11, %v5693_v1  ;;  %v5699_v40 = vsel %vm5635_vm15, %v5603_v48, %v5667_v25  ;;  %v5665_v16 = vmul.f32 0.2, %v5601_v24  ;;  %v5607_v10 = vadd.f32 %v12361_v60, %v12337_v61 }
 0x7c8   :  { %v5700_v23 = vsel %vm5636_vm1, %v5604_v7, %v5668_v2  ;;  %vm5634_vm3 = vcmp.ge.f32.partialorder %v5602_v27, 0.0  ;;  %v5666_v42 = vmul.f32 0.2, %v5602_v27  ;;  %v5608_v8 = vadd.f32 %v12364_v30, %v12340_v26 }
 0x7c9   :  { %9190 = vrot.lane.b32.xlu0 %v9189_v15, %s9312_s30  ;;  %v9204_v32 = vpack.i.bf16 %v5700_v23, %v5699_v40  ;;  %v5697_v29 = vsel %vm5633_vm2, %v5601_v24, %v5665_v16  ;;  %vm5639_vm5 = vcmp.ge.f32.partialorder %v5607_v10, 0.0  ;;  %v5671_v54 = vmul.f32 0.2, %v5607_v10 }
 0x7ca   :  { %v5698_v28 = vsel %vm5634_vm3, %v5602_v27, %v5666_v42  ;;  %vm5640_vm6 = vcmp.ge.f32.partialorder %v5608_v8, 0.0  ;;  %v5672_v13 = vmul.f32 0.2, %v5608_v8  ;;  %v5605_v50 = vadd.f32 %v12367_v0, %v12343_v39 }
 0x7cb   :  { %9205 = vrot.lane.b32.xlu1 %v9204_v32, %s9312_s30  ;;  %v9199_v61 = vpack.i.bf16 %v5698_v28, %v5697_v29  ;;  %v5703_v63 = vsel %vm5639_vm5, %v5607_v10, %v5671_v54  ;;  %v5606_v38 = vadd.f32 %v12370_v37, %v12346_v43  ;;  %v5611_v26 = vadd.f32 %v12361_v60, %v12349_v9 }
 0x7cc   :  { %v5704_v51 = vsel %vm5640_vm6, %v5608_v8, %v5672_v13  ;;  %vm5637_vm7 = vcmp.ge.f32.partialorder %v5605_v50, 0.0  ;;  %v5669_v3 = vmul.f32 0.2, %v5605_v50  ;;  %v5612_v22 = vadd.f32 %v12364_v30, %v12352_v52 }
 0x7cd   :  { %9200 = vrot.lane.b32.xlu0 %v9199_v61, %s9312_s30  ;;  %v9214_v41 = vpack.i.bf16 %v5704_v51, %v5703_v63  ;;  %vm5638_vm8 = vcmp.ge.f32.partialorder %v5606_v38, 0.0  ;;  %v5670_v39 = vmul.f32 0.2, %v5606_v38  ;;  %vm5643_vm9 = vcmp.ge.f32.partialorder %v5611_v26, 0.0 }
 0x7ce   :  { %v5701_v46 = vsel %vm5637_vm7, %v5605_v50, %v5669_v3  ;;  %vm5644_vm10 = vcmp.ge.f32.partialorder %v5612_v22, 0.0  ;;  %v5675_v58 = vmul.f32 0.2, %v5611_v26  ;;  %v5676_v53 = vmul.f32 0.2, %v5612_v22 }
 0x7cf   :  { %9215 = vrot.lane.b32.xlu1 %v9214_v41, %s9312_s30  ;;  %v5702_v43 = vsel %vm5638_vm8, %v5606_v38, %v5670_v39  ;;  %v5609_v9 = vadd.f32 %v12367_v0, %v12355_v56  ;;  %v5610_v34 = vadd.f32 %v12370_v37, %v12358_v55  ;;  %v5615_v52 = vadd.f32 %v12361_v60, %v12373_v21 }
 0x7d0   :  { %v9209_v44 = vpack.i.bf16 %v5702_v43, %v5701_v46  ;;  %v5707_v35 = vsel %vm5643_vm9, %v5611_v26, %v5675_v58  ;;  %v5708_v4 = vsel %vm5644_vm10, %v5612_v22, %v5676_v53  ;;  %v5616_v59 = vadd.f32 %v12364_v30, %v12376_v62 }
 0x7d1   :  { %v9224_v20 = vpack.i.bf16 %v5708_v4, %v5707_v35  ;;  %vm5641_vm11 = vcmp.ge.f32.partialorder %v5609_v9, 0.0  ;;  %vm5642_vm12 = vcmp.ge.f32.partialorder %v5610_v34, 0.0  ;;  %v5673_v33 = vmul.f32 0.2, %v5609_v9 }
 0x7d2   :  { %9210 = vrot.lane.b32.xlu0 %v9209_v44, %s9312_s30  ;;  %v5674_v47 = vmul.f32 0.2, %v5610_v34  ;;  %vm5647_vm13 = vcmp.ge.f32.partialorder %v5615_v52, 0.0  ;;  %vm5648_vm14 = vcmp.ge.f32.partialorder %v5616_v59, 0.0  ;;  %v5679_v56 = vmul.f32 0.2, %v5615_v52 }
 0x7d3   :  { %9225 = vrot.lane.b32.xlu1 %v9224_v20, %s9312_s30  ;;  %v5705_v55 = vsel %vm5641_vm11, %v5609_v9, %v5673_v33  ;;  %v5680_v60 = vmul.f32 0.2, %v5616_v59  ;;  %v5613_v21 = vadd.f32 %v12367_v0, %v12379_v19  ;;  %v5614_v30 = vadd.f32 %v12370_v37, %v12382_v5 }
 0x7d4   :  { %v5706_v62 = vsel %vm5642_vm12, %v5610_v34, %v5674_v47  ;;  %v5711_v6 = vsel %vm5647_vm13, %v5615_v52, %v5679_v56 }
 0x7d5   :  { %v9219_v17 = vpack.i.bf16 %v5706_v62, %v5705_v55  ;;  %v5712_v14 = vsel %vm5648_vm14, %v5616_v59, %v5680_v60  ;;  %vm5645_vm15 = vcmp.ge.f32.partialorder %v5613_v21, 0.0  ;;  %vm5646_vm1 = vcmp.ge.f32.partialorder %v5614_v30, 0.0 }
 0x7d6   :  { %v9234_v48 = vpack.i.bf16 %v5712_v14, %v5711_v6  ;;  %v5677_v7 = vmul.f32 0.2, %v5613_v21  ;;  %v5678_v24 = vmul.f32 0.2, %v5614_v30 }
 0x7d7   :  { %9220 = vrot.lane.b32.xlu0 %v9219_v17, %s9312_s30 }
 0x7d8   :  { %9235 = vrot.lane.b32.xlu1 %v9234_v48, %s9312_s30  ;;  %v5709_v31 = vsel %vm5645_vm15, %v5613_v21, %v5677_v7  ;;  %v5710_v57 = vsel %vm5646_vm1, %v5614_v30, %v5678_v24 }
 0x7d9   :  { %v9229_v1 = vpack.i.bf16 %v5710_v57, %v5709_v31 }
 0x7db   :  { %9230 = vrot.lane.b32.xlu0 %v9229_v1, %s9312_s30 }
 0x82c   :  { %v9166_v0 = vpop.permute.xlu1 %9165 }
 0x82d   :  { %v9168_v37 = vunpack.i.h.bf16 %v9166_v0  ;;  %v9167_v19 = vunpack.i.l.bf16 %v9166_v0  ;;  %v12456_v5 = vpop.permute.xlu0 %9160 }
 0x82e   :  { %v9163_v18 = vunpack.i.h.bf16 %v12456_v5  ;;  %v13380_v25 = vunpack.i.l.bf16 %v12456_v5 }
 0x82f   :  { %v12461_v11 = vsel %vm3864_vm0, %v9168_v37, 0.0  ;;  %v12464_v2 = vsel %vm3864_vm0, %v9167_v19, %v9168_v37 }
 0x830   :  { %v12467_v27 = vsel %vm3864_vm0, %v9163_v18, %v9167_v19  ;;  %v12472_v15 = vsel %vm3864_vm0, %v13380_v25, %v9163_v18  ;;  %v9176_v40 = vpop.permute.xlu1 %9175 }
 0x831   :  { %v9178_v16 = vunpack.i.h.bf16 %v9176_v40  ;;  %v9177_v10 = vunpack.i.l.bf16 %v9176_v40  ;;  %v9171_v23 = vpop.permute.xlu0 %9170 }
 0x832   :  { %v9173_v42 = vunpack.i.h.bf16 %v9171_v23  ;;  %v12474_v8 = vunpack.i.l.bf16 %v9171_v23 }
 0x833   :  { %v12477_v32 = vsel %vm3864_vm0, %v9178_v16, 0.0  ;;  %v12480_v29 = vsel %vm3864_vm0, %v9177_v10, %v9178_v16 }
 0x834   :  { %13611 = vst [vmem:[#allocation166_spill] sm:$0xff] %v12477_v32  ;;  %v12483_v54 = vsel %vm3864_vm0, %v9173_v42, %v9177_v10  ;;  %v12487_v28 = vsel %vm3864_vm0, %v12474_v8, %v9173_v42  ;;  %v9186_v13 = vpop.permute.xlu1 %9185 }
 0x835   :  { %v9188_v50 = vunpack.i.h.bf16 %v9186_v13  ;;  %v9187_v61 = vunpack.i.l.bf16 %v9186_v13  ;;  %v12489_v63 = vpop.permute.xlu0 %9180 }
 0x836   :  { %v9183_v38 = vunpack.i.h.bf16 %v12489_v63  ;;  %v13379_v26 = vunpack.i.l.bf16 %v12489_v63 }
 0x837   :  { %v12494_v51 = vsel %vm3864_vm0, %v9188_v50, 0.0  ;;  %v12497_v3 = vsel %vm3864_vm0, %v9187_v61, %v9188_v50 }
 0x838   :  { %v5816_v22 = vsel %vm3864_vm0, %v9183_v38, %v9187_v61  ;;  %v5815_v41 = vsel %vm3864_vm0, %v13379_v26, %v9183_v38 }
 0x839   :  { %v9196_v39 = vpop.permute.xlu1 %9195 }
 0x83a   :  { %v9198_v46 = vunpack.i.h.bf16 %v9196_v39  ;;  %v9197_v58 = vunpack.i.l.bf16 %v9196_v39 }
 0x83b   :  { %v9191_v53 = vpop.permute.xlu0 %9190 }
 0x83c   :  { %v12504_v43 = vsel %vm3864_vm0, %v9198_v46, 0.0  ;;  %v12507_v9 = vsel %vm3864_vm0, %v9197_v58, %v9198_v46  ;;  %v9193_v34 = vunpack.i.h.bf16 %v9191_v53  ;;  %v12509_v52 = vunpack.i.l.bf16 %v9191_v53 }
 0x83d   :  { %13612 = vst [vmem:[#allocation162_spill] sm:$0xff] %v12504_v43  ;;  %13613 = vst [vmem:[#allocation165_spill] sm:$0xff] %v12507_v9  ;;  %v9206_v44 = vpop.permute.xlu1 %9205 }
 0x83e   :  { %v12512_v35 = vsel %vm3864_vm0, %v9193_v34, %v9197_v58  ;;  %v12516_v4 = vsel %vm3864_vm0, %v12509_v52, %v9193_v34  ;;  %v9208_v59 = vunpack.i.h.bf16 %v9206_v44  ;;  %v9207_v20 = vunpack.i.l.bf16 %v9206_v44 }
 0x83f   :  { %v12518_v33 = vpop.permute.xlu0 %9200 }
 0x840   :  { %v12521_v47 = vsel %vm3864_vm0, %v9208_v59, 0.0  ;;  %v12524_v56 = vsel %vm3864_vm0, %v9207_v20, %v9208_v59  ;;  %v9203_v55 = vunpack.i.h.bf16 %v12518_v33  ;;  %v13378_v60 = vunpack.i.l.bf16 %v12518_v33 }
 0x841   :  { %13614 = vst [vmem:[#allocation152_spill] sm:$0xff] %v12521_v47  ;;  %v9216_v21 = vpop.permute.xlu1 %9215 }
 0x842   :  { %v5822_v30 = vsel %vm3864_vm0, %v9203_v55, %v9207_v20  ;;  %v12532_v62 = vsel %vm3864_vm0, %v13378_v60, %v9203_v55  ;;  %v9218_v6 = vunpack.i.h.bf16 %v9216_v21  ;;  %v9217_v17 = vunpack.i.l.bf16 %v9216_v21  ;;  %v13620_v20 = vld [vmem:[#allocation50_spill] sm:$0xff] }
 0x843   :  { %8297 = vmatprep.subr.bf16.mxu0 %v13620_v20  ;;  %v13621_v55 = vld [vmem:[#allocation58_spill] sm:$0xff]  ;;  %v12586_v21 = vpack.c.bf16 %v5816_v22, %v12467_v27 }
 0x844   :  { %v12535_v14 = vsel %vm3864_vm0, %v9218_v6, 0.0  ;;  %v12538_v48 = vsel %vm3864_vm0, %v9217_v17, %v9218_v6  ;;  %v9211_v7 = vpop.permute.xlu0 %9210  ;;  %8665 = vmatprep.subr.bf16.mxu1 %v13621_v55  ;;  %v5994_v6 = vpack.c.bf16 %v5815_v41, %v12472_v15 }
 0x845   :  { %13615 = vst [vmem:[#allocation168_spill] sm:$0xff] %v12535_v14  ;;  %13616 = vst [vmem:[#allocation167_spill] sm:$0xff] %v12538_v48  ;;  %v9213_v24 = vunpack.i.h.bf16 %v9211_v7  ;;  %v12540_v31 = vunpack.i.l.bf16 %v9211_v7  ;;  %v9226_v57 = vpop.permute.xlu1 %9225  ;;  %8666 = vmatpush3.bf16.msra.mxu1 %v13621_v55  ;;  %v13623_v7 = vld [vmem:[#allocation51_spill] sm:$0xff]  ;;  %8673 = vmatprep.mubr.msk.bf16.mxu1 %vm3864_vm0, %v12586_v21 }
 0x846   :  { %v9228_v1 = vunpack.i.h.bf16 %v9226_v57  ;;  %v9227_v0 = vunpack.i.l.bf16 %v9226_v57  ;;  %6058 = vmatprep.mubr.bf16.mxu0 %v5994_v6 }
 0x847   :  { %v12543_v37 = vsel %vm3864_vm0, %v9213_v24, %v9217_v17  ;;  %v12547_v19 = vsel %vm3864_vm0, %v12540_v31, %v9213_v24  ;;  %v13622_v17 = vld [vmem:[#allocation42_spill] sm:$0xff]  ;;  %v13624_v24 = vld [vmem:[#allocation59_spill] sm:$0xff] }
 0x848   :  { %v12550_v18 = vsel %vm3864_vm0, %v9228_v1, 0.0  ;;  %v12553_v40 = vsel %vm3864_vm0, %v9227_v0, %v9228_v1  ;;  %8298 = vmatpush3.bf16.msra.mxu0 %v13622_v17  ;;  %8667 = vmatprep.subr.bf16.mxu1 %v13624_v24 }
 0x849   :  { %13617 = vst [vmem:[#allocation153_spill] sm:$0xff] %v12550_v18  ;;  %v12555_v16 = vpop.permute.xlu0 %9220  ;;  %8299 = vmatprep.subr.bf16.mxu0 %v13623_v7 }
 0x84a   :  { %v9223_v10 = vunpack.i.h.bf16 %v12555_v16  ;;  %v13377_v23 = vunpack.i.l.bf16 %v12555_v16  ;;  %v9236_v42 = vpop.permute.xlu1 %9235 }
 0x84b   :  { %v9238_v13 = vunpack.i.h.bf16 %v9236_v42  ;;  %v9237_v50 = vunpack.i.l.bf16 %v9236_v42 }
 0x84c   :  { %v5828_v61 = vsel %vm3864_vm0, %v9223_v10, %v9227_v0  ;;  %v12563_v38 = vsel %vm3864_vm0, %v13377_v23, %v9223_v10 }
 0x84d   :  { %v12566_v39 = vsel %vm3864_vm0, %v9238_v13, 0.0  ;;  %v12569_v46 = vsel %vm3864_vm0, %v9237_v50, %v9238_v13  ;;  %v12571_v58 = vpop.permute.xlu0 %9230 }
 0x84e   :  { %13618 = vst [vmem:[#allocation170_spill] sm:$0xff] %v12566_v39  ;;  %13619 = vst [vmem:[#allocation169_spill] sm:$0xff] %v12569_v46  ;;  %v9233_v53 = vunpack.i.h.bf16 %v12571_v58  ;;  %v13376_v34 = vunpack.i.l.bf16 %v12571_v58 }
 0x850   :  { %v12576_v44 = vsel %vm3864_vm0, %v9233_v53, %v9237_v50  ;;  %v12581_v59 = vsel %vm3864_vm0, %v13376_v34, %v9233_v53 }
 0x851   :  { %9300 = dma.done.wait [#allocation10 + $0x1], 7680 }
 0x852   :  { %9301 = vsyncadd [#allocation10 + $0x1], 4294959616  ;;  %v13625_v57 = vld [vmem:[#allocation43_spill] sm:$0xff]  ;;  %8668 = vmatpush3.bf16.msra.mxu1 %v13624_v24  ;;  %v13626_v27 = vld [vmem:[#allocation52_spill] sm:$0xff]  ;;  %v12603_v0 = vpack.c.bf16 %v5828_v61, %v5822_v30  ;;  %v13634_v50 = vmov 0.0   ;;  %v13645_v12 = vmov 0  ;;  %v13648_v45 = vunpack.i.l.bf16 %v12456_v5 }
 0x853   :  { %8300 = vmatpush3.bf16.msra.mxu0 %v13625_v57  ;;  %v13627_v15 = vld [vmem:[#allocation60_spill] sm:$0xff]  ;;  %v13629_v41 = vld [vmem:[#allocation53_spill] sm:$0xff]  ;;  %v13632_v42 = vld [vmem:[#allocation54_spill] sm:$0xff]  ;;  %v12611_v53 = vpack.c.bf16 %v12483_v54, %v13634_v50  ;;  %v13649_v36 = vunpack.i.l.bf16 %v12489_v63  ;;  %v12640_v46 = vpack.c.bf16 %v12543_v37, %v12512_v35  ;;  %vm9315_vm5 = vmmov 1  }
 0x854   :  { %8301 = vmatprep.subr.bf16.mxu0 %v13626_v27  ;;  %8669 = vmatprep.subr.bf16.mxu1 %v13627_v15  ;;  %v13628_v22 = vld [vmem:[#allocation44_spill] sm:$0xff]  ;;  %v13630_v1 = vld [vmem:[#allocation61_spill] sm:$0xff]  ;;  %v13633_v13 = vld [vmem:[#allocation38_spill] sm:$0xff] }
 0x855   :  { %v13631_v10 = vld [vmem:[#allocation45_spill] sm:$0xff]  ;;  %13635 = vst [vmem:[#allocation154_spill] sm:$0xff] %v12611_v53  ;;  %v13636_v6 = vld [vmem:[#allocation46_spill] sm:$0xff]  ;;  %v13637_v30 = vld [vmem:[#allocation55_spill] sm:$0xff]  ;;  %v8254_v39 = vpack.c.bf16 %v13649_v36, %v13648_v45  ;;  %v5997_v36 = vpack.c.bf16 %v12563_v38, %v12532_v62  ;;  %v6241_v45 = vpack.c.bf16 %v12516_v4, %v12487_v28  ;;  %v13660_v62 = vunpack.i.l.bf16 %v12518_v33 }
 0x856   :  { %8670 = vmatpush3.bf16.msra.mxu1 %v13627_v15  ;;  %v13638_v61 = vld [vmem:[#allocation39_spill] sm:$0xff]  ;;  %v13640_v23 = vld [vmem:[#allocation56_spill] sm:$0xff]  ;;  %v13643_v25 = vld [vmem:[#allocation57_spill] sm:$0xff]  ;;  %13650 = vst [vmem:[#allocation171_spill] sm:$0xff] %v12640_v46  ;;  %v13661_v38 = vunpack.i.l.bf16 %v12555_v16 }
 0x857   :  { %8302 = vmatpush3.bf16.msra.mxu0 %v13628_v22  ;;  %8671 = vmatprep.subr.bf16.mxu1 %v13630_v1  ;;  %v13639_v34 = vld [vmem:[#allocation47_spill] sm:$0xff]  ;;  %v13641_v60 = vld [vmem:[#allocation40_spill] sm:$0xff]  ;;  %v13644_v49 = vld [vmem:[#allocation41_spill] sm:$0xff] }
 0x858   :  { %8303 = vmatprep.subr.bf16.mxu0 %v13629_v41  ;;  %v13642_v26 = vld [vmem:[#allocation48_spill] sm:$0xff]  ;;  %vm12630_vm2 = vmneg %vm3864_vm0  ;;  %v13651_v14 = vld [vmem:[#allocation49_spill] sm:$0xff] }
 0x859   :  { %v13646_v12 = vsel %vm12630_vm2, 4294967295, %v13645_v12  ;;  %vm12647_vm3 = vmpackc.low %vm12630_vm2, %vm12630_vm2  ;;  %v13655_v5 = vld [vmem:[#allocation70_spill] sm:$0xff]  ;;  %v13662_v32 = vld [vmem:[#allocation23_spill] sm:$0xff] }
 0x85a   :  { %8672 = vmatpush3.bf16.msra.mxu1 %v13630_v1  ;;  %13647 = vst [vmem:[#allocation172_spill] sm:$0xff] %v13646_v12  ;;  %v13656_v63 = vld [vmem:[#allocation22_spill] sm:$0xff]  ;;  %v13667_v33 = vld [vmem:[#allocation64_spill] sm:$0xff]  ;;  %v13668_v16 = vld [vmem:[#allocation33_spill] sm:$0xff] }
 0x85b   :  { %8304 = vmatpush3.bf16.msra.mxu0 %v13631_v10  ;;  %8677 = vmatprep.subr.bf16.mxu1 %v13633_v13  ;;  %v13678_v48 = vld [vmem:[#allocation27_spill] sm:$0xff]  ;;  %v13681_v9 = vld [vmem:[#allocation76_spill] sm:$0xff]  ;;  %v13685_v47 = vld [vmem:[#allocation77_spill] sm:$0xff] }
 0x85c   :  { %8305 = vmatprep.subr.bf16.mxu0 %v13632_v42  ;;  %v13683_v18 = vld [vmem:[#allocation68_spill] sm:$0xff]  ;;  %vm12704_vm6 = vmpackc.low %vm12630_vm2, %vm9315_vm5  ;;  %v13691_v12 = vld [vmem:[#allocation79_spill] sm:$0xff] }
 0x85d   :  { %8674 = vmatmul.mubr.msk.bf16.vlgmr.msra.gmra.mrb[48].mxu1 %vm3864_vm0, %v12603_v0 }
 0x85e   :  { %8678 = vmatpush3.bf16.msra.mxu1 %v13633_v13  ;;  %8685 = vmatprep.mubr.msk.bf16.mxu1 %vm3864_vm0, %v12611_v53  ;;  %v13659_v53 = vld [vmem:[#allocation71_spill] sm:$0xff]  ;;  %v13665_v13 = vld [vmem:[#allocation72_spill] sm:$0xff] }
 0x85f   :  { %8306 = vmatpush3.bf16.msra.mxu0 %v13636_v6  ;;  %8679 = vmatprep.subr.bf16.mxu1 %v13638_v61 }
 0x860   :  { %8307 = vmatprep.subr.bf16.mxu0 %v13637_v30 }
 0x862   :  { %8680 = vmatpush3.bf16.msra.mxu1 %v13638_v61  ;;  %v13658_v61 = vld [vmem:[#allocation31_spill] sm:$0xff] }
 0x863   :  { %8308 = vmatpush3.bf16.msra.mxu0 %v13639_v34  ;;  %8681 = vmatprep.subr.bf16.mxu1 %v13641_v60 }
 0x864   :  { %8309 = vmatprep.subr.bf16.mxu0 %v13640_v23 }
 0x866   :  { %8682 = vmatpush3.bf16.msra.mxu1 %v13641_v60  ;;  %v13654_v60 = vld [vmem:[#allocation30_spill] sm:$0xff] }
 0x867   :  { %8310 = vmatpush3.bf16.msra.mxu0 %v13642_v26  ;;  %8683 = vmatprep.subr.bf16.mxu1 %v13644_v49 }
 0x868   :  { %8311 = vmatprep.subr.bf16.mxu0 %v13643_v25 }
 0x86a   :  { %8684 = vmatpush3.bf16.msra.mxu1 %v13644_v49  ;;  %v13657_v49 = vld [vmem:[#allocation62_spill] sm:$0xff] }
 0x86b   :  { %8312 = vmatpush3.bf16.msra.mxu0 %v13651_v14  ;;  %8365 = vmatprep.subr.bf16.mxu1 %v13655_v5  ;;  %v8259_v5 = vpack.c.bf16 %v13661_v38, %v13660_v62  ;;  %v13670_v62 = vld [vmem:[#allocation25_spill] sm:$0xff] }
 0x86c   :  { %8331 = vmatprep.subr.bf16.mxu0 %v13654_v60  ;;  %v13671_v38 = vld [vmem:[#allocation65_spill] sm:$0xff] }
 0x86d   :  { %8686 = vmatmul.mubr.msk.bf16.vlgmr.msra.gmra.mrb[48].mxu1 %vm3864_vm0, %v12640_v46  ;;  %v13664_v46 = vld [vmem:[#allocation32_spill] sm:$0xff] }
 0x86e   :  { %8255 = vmatmul.mubr.msk.bf16.vlgmr.msra.gmra.mrb[48].mxu0 %vm12647_vm3, %v8254_v39  ;;  %8366 = vmatpush3.bf16.msra.mxu1 %v13657_v49  ;;  %v13663_v39 = vld [vmem:[#allocation63_spill] sm:$0xff]  ;;  %v5956_v49 = vpack.c.bf16 %v12487_v28, %v13634_v50  ;;  %v13674_v28 = vld [vmem:[#allocation26_spill] sm:$0xff] }
 0x86f   :  { %8332 = vmatpush3.bf16.msra.mxu0 %v13656_v63  ;;  %8367 = vmatprep.subr.bf16.mxu1 %v13659_v53  ;;  %v13676_v53 = vld [vmem:[#allocation35_spill] sm:$0xff] }
 0x870   :  { %8333 = vmatprep.subr.bf16.mxu0 %v13658_v61  ;;  %6066 = vmatprep.mubr.bf16.mxu0 %v5997_v36  ;;  %v13666_v36 = vld [vmem:[#allocation24_spill] sm:$0xff] }
 0x871   :  { %6305 = vmatprep.mubr.bf16.mxu1 %v6241_v45  ;;  %v13669_v45 = vld [vmem:[#allocation73_spill] sm:$0xff] }
 0x872   :  { %8368 = vmatpush3.bf16.msra.mxu1 %v13663_v39  ;;  %v13673_v39 = vld [vmem:[#allocation74_spill] sm:$0xff] }
 0x873   :  { %8334 = vmatpush3.bf16.msra.mxu0 %v13662_v32  ;;  %8369 = vmatprep.subr.bf16.mxu1 %v13665_v13  ;;  %v13672_v13 = vld [vmem:[#allocation34_spill] sm:$0xff] }
 0x874   :  { %8335 = vmatprep.subr.bf16.mxu0 %v13664_v46 }
 0x876   :  { %8260 = vmatmul.mubr.msk.bf16.gmra.mrb[52].mxu0 %vm12647_vm3, %v8259_v5  ;;  %8370 = vmatpush3.bf16.msra.mxu1 %v13667_v33  ;;  %v13675_v5 = vld [vmem:[#allocation66_spill] sm:$0xff]  ;;  %v13677_v33 = vld [vmem:[#allocation75_spill] sm:$0xff] }
 0x877   :  { %8336 = vmatpush3.bf16.msra.mxu0 %v13666_v36  ;;  %8371 = vmatprep.subr.bf16.mxu1 %v13669_v45  ;;  %v13679_v45 = vld [vmem:[#allocation67_spill] sm:$0xff] }
 0x878   :  { %8337 = vmatprep.subr.bf16.mxu0 %v13668_v16  ;;  %6162 = vmatprep.mubr.bf16.mxu0 %v5956_v49  ;;  %v13680_v49 = vld [vmem:[#allocation36_spill] sm:$0xff] }
 0x87a   :  { %8372 = vmatpush3.bf16.msra.mxu1 %v13671_v38  ;;  %v13682_v38 = vld [vmem:[#allocation28_spill] sm:$0xff] }
 0x87b   :  { %8338 = vmatpush3.bf16.msra.mxu0 %v13670_v62  ;;  %8373 = vmatprep.subr.bf16.mxu1 %v13673_v39  ;;  %v13684_v39 = vld [vmem:[#allocation37_spill] sm:$0xff] }
 0x87c   :  { %8339 = vmatprep.subr.bf16.mxu0 %v13672_v13 }
 0x87e   :  { %8374 = vmatpush3.bf16.msra.mxu1 %v13675_v5  ;;  %v8263_v5 = vpack.c.bf16 %v12474_v8, %v13634_v50 }
 0x87f   :  { %8340 = vmatpush3.bf16.msra.mxu0 %v13674_v28  ;;  %8375 = vmatprep.subr.bf16.mxu1 %v13677_v33  ;;  %v8273_v33 = vpack.c.bf16 %v12509_v52, %v12474_v8  ;;  %v6244_v8 = vpack.c.bf16 %v12581_v59, %v12547_v19 }
 0x880   :  { %8341 = vmatprep.subr.bf16.mxu0 %v13676_v53 }
 0x882   :  { %8376 = vmatpush3.bf16.msra.mxu1 %v13679_v45  ;;  %v13688_v45 = vld [vmem:[#allocation29_spill] sm:$0xff] }
 0x883   :  { %8342 = vmatpush3.bf16.msra.mxu0 %v13678_v48  ;;  %8377 = vmatprep.subr.bf16.mxu1 %v13681_v9 }
 0x884   :  { %8343 = vmatprep.subr.bf16.mxu0 %v13680_v49 }
 0x886   :  { %8378 = vmatpush3.bf16.msra.mxu1 %v13683_v18  ;;  %v13689_v18 = vld [vmem:[#allocation69_spill] sm:$0xff] }
 0x887   :  { %8344 = vmatpush3.bf16.msra.mxu0 %v13682_v38  ;;  %8379 = vmatprep.subr.bf16.mxu1 %v13685_v47  ;;  %v5959_v47 = vpack.c.bf16 %v12547_v19, %v12516_v4  ;;  %v8268_v4 = vpack.c.bf16 %v12540_v31, %v12509_v52  ;;  %v13692_v19 = vunpack.i.l.bf16 %v12571_v58  ;;  %v13694_v52 = vld [vmem:[#allocation81_spill] sm:$0xff] }
 0x888   :  { %8345 = vmatprep.subr.bf16.mxu0 %v13684_v39  ;;  %v13690_v39 = vld [vmem:[#allocation78_spill] sm:$0xff]  ;;  %v13706_v58 = vld [vmem:[#allocation41_spill] sm:$0xff] }
 0x889   :  { %v8278_v59 = vpack.c.bf16 %v13692_v19, %v12540_v31 }
 0x88a   :  { %8380 = vmatpush3.bf16.msra.mxu1 %v13689_v18 }
 0x88b   :  { %8346 = vmatpush3.bf16.msra.mxu0 %v13688_v45  ;;  %8689 = vmatprep.subr.bf16.mxu1 %v13690_v39 }
 0x88c   :  { %8399 = vmatprep.subr.bf16.mxu0 %v13620_v20  ;;  %v13693_v20 = vld [vmem:[#allocation80_spill] sm:$0xff] }
 0x88d   :  { %8274 = vmatmul.mubr.msk.bf16.vlgmr.msra.gmra.mrb[52].mxu1 %vm12647_vm3, %v8273_v33 }
 0x88e   :  { %8264 = vmatmul.mubr.msk.bf16.vlgmr.msra.gmra.mrb[56].mxu0 %vm12704_vm6, %v8263_v5  ;;  %8690 = vmatpush3.bf16.msra.mxu1 %v13690_v39 }
 0x88f   :  { %8400 = vmatpush3.bf16.msra.mxu0 %v13622_v17  ;;  %8691 = vmatprep.subr.bf16.mxu1 %v13691_v12  ;;  %v12735_v17 = vpack.c.bf16 %v12512_v35, %v12483_v54  ;;  %v6388_v54 = vpack.c.bf16 %v12480_v29, %v13634_v50  ;;  %v13697_v35 = vld [vmem:[#allocation153_spill] sm:$0xff] }
 0x890   :  { %8401 = vmatprep.subr.bf16.mxu0 %v13623_v7  ;;  %6170 = vmatprep.mubr.bf16.mxu0 %v5959_v47  ;;  %v6406_v47 = vpack.c.bf16 %v12497_v3, %v12464_v2  ;;  %v12751_v2 = vpack.c.bf16 %v12576_v44, %v12543_v37  ;;  %v13696_v3 = vld [vmem:[#allocation152_spill] sm:$0xff]  ;;  %v13702_v37 = vld [vmem:[#allocation154_spill] sm:$0xff] }
 0x891   :  { %6313 = vmatprep.mubr.bf16.mxu1 %v6244_v8  ;;  %v13708_v44 = vld [vmem:[#allocation168_spill] sm:$0xff]  ;;  %v13709_v7 = vld [vmem:[#allocation70_spill] sm:$0xff] }
 0x892   :  { %8692 = vmatpush3.bf16.msra.mxu1 %v13691_v12 }
 0x893   :  { %8402 = vmatpush3.bf16.msra.mxu0 %v13625_v57  ;;  %8693 = vmatprep.subr.bf16.mxu1 %v13693_v20  ;;  %v13711_v57 = vld [vmem:[#allocation71_spill] sm:$0xff] }
 0x894   :  { %8403 = vmatprep.subr.bf16.mxu0 %v13626_v27  ;;  %v13712_v27 = vld [vmem:[#allocation63_spill] sm:$0xff] }
 0x895   :  { %8279 = vmatmul.mubr.msk.bf16.gmra.mrb[56].mxu1 %vm12647_vm3, %v8278_v59 }
 0x896   :  { %8269 = vmatmul.mubr.msk.bf16.gmra.mrb[60].mxu0 %vm12647_vm3, %v8268_v4  ;;  %8694 = vmatpush3.bf16.msra.mxu1 %v13693_v20 }
 0x897   :  { %8404 = vmatpush3.bf16.msra.mxu0 %v13628_v22  ;;  %8695 = vmatprep.subr.bf16.mxu1 %v13694_v52  ;;  %v13714_v22 = vld [vmem:[#allocation64_spill] sm:$0xff] }
 0x898   :  { %8405 = vmatprep.subr.bf16.mxu0 %v13629_v41  ;;  %8697 = vmatprep.mubr.msk.bf16.mxu1 %vm3864_vm0, %v12735_v17  ;;  %v13715_v41 = vld [vmem:[#allocation73_spill] sm:$0xff] }
 0x899   :  { %6449 = vmatprep.mubr.bf16.mxu0 %v6406_v47 }
 0x89a   :  { %8696 = vmatpush3.bf16.msra.mxu1 %v13694_v52 }
 0x89b   :  { %8406 = vmatpush3.bf16.msra.mxu0 %v13631_v10  ;;  %8433 = vmatprep.subr.bf16.mxu1 %v13654_v60  ;;  %v13719_v10 = vld [vmem:[#allocation75_spill] sm:$0xff] }
 0x89c   :  { %8407 = vmatprep.subr.bf16.mxu0 %v13632_v42  ;;  %v13720_v42 = vld [vmem:[#allocation67_spill] sm:$0xff] }
 0x89d   :  { %8698 = vmatmul.mubr.msk.bf16.vlgmr.msra.gmra.mrb[48].mxu1 %vm3864_vm0, %v12751_v2 }
 0x89e   :  { %8434 = vmatpush3.bf16.msra.mxu1 %v13656_v63  ;;  %6553 = vmatprep.mubr.bf16.mxu1 %v6388_v54 }
 0x89f   :  { %8408 = vmatpush3.bf16.msra.mxu0 %v13636_v6  ;;  %8435 = vmatprep.subr.bf16.mxu1 %v13658_v61  ;;  %v13723_v6 = vld [vmem:[#allocation77_spill] sm:$0xff] }
 0x8a0   :  { %8409 = vmatprep.subr.bf16.mxu0 %v13637_v30  ;;  %v13724_v30 = vld [vmem:[#allocation169_spill] sm:$0xff] }
 0x8a2   :  { %8436 = vmatpush3.bf16.msra.mxu1 %v13662_v32  ;;  %v6409_v32 = vpack.c.bf16 %v12553_v40, %v12524_v56  ;;  %v6410_v56 = vpack.c.bf16 %v13697_v35, %v13696_v3  ;;  %v13703_v40 = vld [vmem:[#allocation39_spill] sm:$0xff] }
 0x8a3   :  { %8410 = vmatpush3.bf16.msra.mxu0 %v13639_v34  ;;  %8437 = vmatprep.subr.bf16.mxu1 %v13664_v46  ;;  %v13705_v46 = vld [vmem:[#allocation171_spill] sm:$0xff]  ;;  %v13707_v34 = vld [vmem:[#allocation162_spill] sm:$0xff] }
 0x8a4   :  { %8411 = vmatprep.subr.bf16.mxu0 %v13640_v23  ;;  %v13704_v23 = vld [vmem:[#allocation40_spill] sm:$0xff] }
 0x8a6   :  { %8438 = vmatpush3.bf16.msra.mxu1 %v13666_v36 }
 0x8a7   :  { %8412 = vmatpush3.bf16.msra.mxu0 %v13642_v26  ;;  %8439 = vmatprep.subr.bf16.mxu1 %v13668_v16  ;;  %v13695_v26 = vld [vmem:[#allocation37_spill] sm:$0xff] }
 0x8a8   :  { %8413 = vmatprep.subr.bf16.mxu0 %v13643_v25  ;;  %v6407_v25 = vpack.c.bf16 %v12494_v51, %v12461_v11  ;;  %v13698_v11 = vld [vmem:[#allocation165_spill] sm:$0xff]  ;;  %v13699_v51 = vld [vmem:[#allocation167_spill] sm:$0xff] }
 0x8a9   :  { %v6391_v60 = vpack.c.bf16 %v13699_v51, %v13698_v11  ;;  %v6635_v61 = vpack.c.bf16 %v13724_v30, %v13699_v51 }
 0x8aa   :  { %8440 = vmatpush3.bf16.msra.mxu1 %v13670_v62 }
 0x8ab   :  { %8414 = vmatpush3.bf16.msra.mxu0 %v13651_v14  ;;  %8441 = vmatprep.subr.bf16.mxu1 %v13672_v13  ;;  %v13700_v14 = vld [vmem:[#allocation38_spill] sm:$0xff]  ;;  %v13721_v13 = vld [vmem:[#allocation76_spill] sm:$0xff] }
 0x8ac   :  { %8701 = vmatprep.subr.bf16.mxu0 %v13621_v55 }
 0x8ae   :  { %6450 = vmatmul.mubr.bf16.vlgmr.msra.gmra.mrb[64].mxu0 %v12586_v21  ;;  %8442 = vmatpush3.bf16.msra.mxu1 %v13674_v28  ;;  %v6632_v21 = vpack.c.bf16 %v13698_v11, %v12480_v29  ;;  %v13717_v29 = vld [vmem:[#allocation74_spill] sm:$0xff] }
 0x8af   :  { %8702 = vmatpush3.bf16.msra.mxu0 %v13621_v55  ;;  %8443 = vmatprep.subr.bf16.mxu1 %v13676_v53  ;;  %v6392_v55 = vpack.c.bf16 %v13708_v44, %v13707_v34  ;;  %v13722_v53 = vld [vmem:[#allocation68_spill] sm:$0xff] }
 0x8b0   :  { %8703 = vmatprep.subr.bf16.mxu0 %v13624_v24  ;;  %6457 = vmatprep.mubr.bf16.mxu0 %v6409_v32 }
 0x8b2   :  { %8444 = vmatpush3.bf16.msra.mxu1 %v13678_v48  ;;  %v13701_v48 = vld [vmem:[#allocation166_spill] sm:$0xff] }
 0x8b3   :  { %8704 = vmatpush3.bf16.msra.mxu0 %v13624_v24  ;;  %8445 = vmatprep.subr.bf16.mxu1 %v13680_v49  ;;  %v6389_v31 = vpack.c.bf16 %v13701_v48, %v13634_v50  ;;  %v13710_v24 = vld [vmem:[#allocation62_spill] sm:$0xff]  ;;  %v6633_v63 = vpack.c.bf16 %v13707_v34, %v13701_v48 }
 0x8b4   :  { %8705 = vmatprep.subr.bf16.mxu0 %v13627_v15 }
 0x8b6   :  { %6458 = vmatmul.mubr.bf16.gmra.mrb[68].mxu0 %v12603_v0  ;;  %8446 = vmatpush3.bf16.msra.mxu1 %v13682_v38  ;;  %v13718_v0 = vld [vmem:[#allocation66_spill] sm:$0xff] }
 0x8b7   :  { %8706 = vmatpush3.bf16.msra.mxu0 %v13627_v15  ;;  %8447 = vmatprep.subr.bf16.mxu1 %v13695_v26  ;;  %v13713_v15 = vld [vmem:[#allocation72_spill] sm:$0xff] }
 0x8b8   :  { %8707 = vmatprep.subr.bf16.mxu0 %v13630_v1  ;;  %8709 = vmatprep.mubr.msk.bf16.mxu0 %vm3864_vm0, %v6407_v25 }
 0x8ba   :  { %8448 = vmatpush3.bf16.msra.mxu1 %v13688_v45 }
 0x8bb   :  { %8708 = vmatpush3.bf16.msra.mxu0 %v13630_v1  ;;  %v13716_v1 = vld [vmem:[#allocation65_spill] sm:$0xff] }
 0x8bc   :  { %8713 = vmatprep.subr.bf16.mxu0 %v13700_v14 }
 0x8bd   :  { %6554 = vmatmul.mubr.bf16.vlgmr.msra.gmra.mrb[60].mxu1 %v13702_v37 }
 0x8be   :  { %8710 = vmatmul.mubr.msk.bf16.vlgmr.msra.gmra.mrb[72].mxu0 %vm3864_vm0, %v6410_v56  ;;  %6561 = vmatprep.mubr.bf16.mxu1 %v6391_v60 }
 0x8bf   :  { %8714 = vmatpush3.bf16.msra.mxu0 %v13700_v14  ;;  %8721 = vmatprep.mubr.msk.bf16.mxu0 %vm3864_vm0, %v6389_v31 }
 0x8c0   :  { %8715 = vmatprep.subr.bf16.mxu0 %v13703_v40 }
 0x8c3   :  { %8716 = vmatpush3.bf16.msra.mxu0 %v13703_v40 }
 0x8c4   :  { %8717 = vmatprep.subr.bf16.mxu0 %v13704_v23 }
 0x8c5   :  { %6562 = vmatmul.mubr.bf16.gmra.mrb[64].mxu1 %v13705_v46 }
 0x8c7   :  { %8718 = vmatpush3.bf16.msra.mxu0 %v13704_v23 }
 0x8c8   :  { %8719 = vmatprep.subr.bf16.mxu0 %v13706_v58 }
 0x8cb   :  { %8720 = vmatpush3.bf16.msra.mxu0 %v13706_v58 }
 0x8cc   :  { %8467 = vmatprep.subr.bf16.mxu0 %v13709_v7 }
 0x8ce   :  { %8722 = vmatmul.mubr.msk.bf16.vlgmr.msra.gmra.mrb[72].mxu0 %vm3864_vm0, %v6392_v55 }
 0x8cf   :  { %8468 = vmatpush3.bf16.msra.mxu0 %v13710_v24  ;;  %6675 = vmatprep.mubr.bf16.mxu0 %v6632_v21 }
 0x8d0   :  { %8469 = vmatprep.subr.bf16.mxu0 %v13711_v57 }
 0x8d3   :  { %8470 = vmatpush3.bf16.msra.mxu0 %v13712_v27 }
 0x8d4   :  { %8471 = vmatprep.subr.bf16.mxu0 %v13713_v15 }
 0x8d7   :  { %8472 = vmatpush3.bf16.msra.mxu0 %v13714_v22 }
 0x8d8   :  { %8473 = vmatprep.subr.bf16.mxu0 %v13715_v41 }
 0x8db   :  { %8474 = vmatpush3.bf16.msra.mxu0 %v13716_v1 }
 0x8dc   :  { %8475 = vmatprep.subr.bf16.mxu0 %v13717_v29 }
 0x8df   :  { %8476 = vmatpush3.bf16.msra.mxu0 %v13718_v0 }
 0x8e0   :  { %8477 = vmatprep.subr.bf16.mxu0 %v13719_v10 }
 0x8e3   :  { %8478 = vmatpush3.bf16.msra.mxu0 %v13720_v42 }
 0x8e4   :  { %8479 = vmatprep.subr.bf16.mxu0 %v13721_v13 }
 0x8e7   :  { %8480 = vmatpush3.bf16.msra.mxu0 %v13722_v53 }
 0x8e8   :  { %8481 = vmatprep.subr.bf16.mxu0 %v13723_v6 }
 0x8eb   :  { %8482 = vmatpush3.bf16.msra.mxu0 %v13689_v18  ;;  %v13725_v18 = vld [vmem:[#allocation170_spill] sm:$0xff] }
 0x8ec   :  { %8725 = vmatprep.subr.bf16.mxu0 %v13690_v39 }
 0x8ee   :  { %6676 = vmatmul.mubr.bf16.vlgmr.msra.gmra.mrb[76].mxu0 %v12735_v17 }
 0x8ef   :  { %8726 = vmatpush3.bf16.msra.mxu0 %v13690_v39  ;;  %6683 = vmatprep.mubr.bf16.mxu0 %v6635_v61  ;;  %v6636_v39 = vpack.c.bf16 %v13725_v18, %v13708_v44 }
 0x8f0   :  { %8727 = vmatprep.subr.bf16.mxu0 %v13691_v12 }
 0x8f3   :  { %8728 = vmatpush3.bf16.msra.mxu0 %v13691_v12 }
 0x8f4   :  { %8729 = vmatprep.subr.bf16.mxu0 %v13693_v20 }
 0x8f6   :  { %6684 = vmatmul.mubr.bf16.gmra.mrb[80].mxu0 %v12751_v2 }
 0x8f7   :  { %8730 = vmatpush3.bf16.msra.mxu0 %v13693_v20  ;;  %8733 = vmatprep.mubr.msk.bf16.mxu0 %vm3864_vm0, %v6633_v63 }
 0x8f8   :  { %8731 = vmatprep.subr.bf16.mxu0 %v13694_v52 }
 0x8fb   :  { %8732 = vmatpush3.bf16.msra.mxu0 %v13694_v52 }
 0x8fc   :  { %8737 = vmatprep.subr.bf16.mxu0 %v13634_v50 }
 0x8fe   :  { %8734 = vmatmul.mubr.msk.bf16.vlgmr.msra.gmra.mrb[72].mxu0 %vm3864_vm0, %v6636_v39 }
 0x941   :  { %v8313_v12 = vpop.f32.mrb[48].mxu0 }
 0x942   :  { %v8314_v36 = vpop.f32.mrb[49].mxu0 }
 0x943   :  { %v8315_v33 = vadd.f32 %v8314_v36, %v8313_v12  ;;  %v8316_v16 = vpop.f32.mrb[50].mxu0 }
 0x944   :  { %v8317_v45 = vpop.f32.mrb[51].mxu0 }
 0x945   :  { %v8318_v62 = vadd.f32 %v8317_v45, %v8316_v16 }
 0x949   :  { %v8319_v38 = vpop.f32.mrb[52].mxu0 }
 0x94a   :  { %v8320_v28 = vpop.f32.mrb[53].mxu0 }
 0x94b   :  { %v8321_v5 = vadd.f32 %v8320_v28, %v8319_v38  ;;  %v8322_v49 = vpop.f32.mrb[54].mxu0 }
 0x94c   :  { %v8323_v8 = vpop.f32.mrb[55].mxu0 }
 0x94d   :  { %v8324_v4 = vadd.f32 %v8323_v8, %v8322_v49 }
 0x960   :  { %v8381_v59 = vpop.f32.mrb[52].mxu1 }
 0x961   :  { %v8347_v19 = vpop.f32.mrb[56].mxu0  ;;  %v8382_v17 = vpop.f32.mrb[53].mxu1 }
 0x962   :  { %v8348_v20 = vpop.f32.mrb[57].mxu0  ;;  %v8383_v2 = vadd.f32 %v8382_v17, %v8381_v59  ;;  %v8384_v54 = vpop.f32.mrb[54].mxu1 }
 0x963   :  { %v8349_v47 = vadd.f32 %v8348_v20, %v8347_v19  ;;  %v8350_v52 = vpop.f32.mrb[58].mxu0  ;;  %v8385_v25 = vpop.f32.mrb[55].mxu1 }
 0x964   :  { %v8351_v32 = vpop.f32.mrb[59].mxu0  ;;  %v8386_v35 = vadd.f32 %v8385_v25, %v8384_v54 }
 0x965   :  { %v8764_v26 = vadd.f32 %v8349_v47, %v8315_v33  ;;  %v8352_v3 = vadd.f32 %v8351_v32, %v8350_v52 }
 0x967   :  { %v8770_v56 = vadd.f32 %v8352_v3, %v8318_v62  ;;  %v8765_v11 = vadd.f32 %v8764_v26, %v8383_v2 }
 0x968   :  { %v8387_v60 = vpop.f32.mrb[56].mxu1 }
 0x969   :  { %v8353_v51 = vpop.f32.mrb[60].mxu0  ;;  %v8771_v14 = vadd.f32 %v8770_v56, %v8386_v35  ;;  %v8388_v31 = vpop.f32.mrb[57].mxu1 }
 0x96a   :  { %v8354_v48 = vpop.f32.mrb[61].mxu0  ;;  %v8389_v23 = vadd.f32 %v8388_v31, %v8387_v60  ;;  %v8390_v46 = vpop.f32.mrb[58].mxu1 }
 0x96b   :  { %v8355_v37 = vadd.f32 %v8354_v48, %v8353_v51  ;;  %v8356_v40 = vpop.f32.mrb[62].mxu0  ;;  %v8391_v34 = vpop.f32.mrb[59].mxu1 }
 0x96c   :  { %v8357_v58 = vpop.f32.mrb[63].mxu0  ;;  %v8392_v21 = vadd.f32 %v8391_v34, %v8390_v46 }
 0x96d   :  { %v8761_v44 = vadd.f32 %v8355_v37, %v8321_v5  ;;  %v8358_v55 = vadd.f32 %v8357_v58, %v8356_v40 }
 0x96f   :  { %v8767_v7 = vadd.f32 %v8358_v55, %v8324_v4  ;;  %v8762_v24 = vadd.f32 %v8761_v44, %v8389_v23 }
 0x970   :  { %v8699_v57 = vpop.f32.mrb[48].mxu1 }
 0x971   :  { %v8768_v27 = vadd.f32 %v8767_v7, %v8392_v21  ;;  %v12855_v15 = vadd.f32 %v8762_v24, %v8699_v57  ;;  %v6356_v22 = vpop.f32.mrb[49].mxu1 }
 0x972   :  { %v12857_v41 = vadd.f32 %v8765_v11, %v6356_v22  ;;  %v8700_v1 = vpop.f32.mrb[50].mxu1 }
 0x973   :  { %v12859_v29 = vadd.f32 %v8768_v27, %v8700_v1  ;;  %v6359_v0 = vpop.f32.mrb[51].mxu1  ;;  %v6767_v6 = vmul.f32 %v12855_v15, %v12855_v15 }
 0x974   :  { %v12861_v10 = vadd.f32 %v8771_v14, %v6359_v0  ;;  %v6763_v42 = vmul.f32 %v12857_v41, %v12857_v41 }
 0x975   :  { %v6769_v63 = vmul.f32 %v12859_v29, %v12859_v29 }
 0x976   :  { %v6745_v13 = vadd.f32 %v12861_v10, %v12857_v41  ;;  %v6765_v53 = vmul.f32 %v12861_v10, %v12861_v10 }
 0x978   :  { %v6746_v30 = vadd.f32 %v12855_v15, %v6745_v13  ;;  %v6771_v61 = vadd.f32 %v6765_v53, %v6763_v42 }
 0x97a   :  { %v6772_v18 = vadd.f32 %v6771_v61, %v6767_v6  ;;  %v6747_v39 = vadd.f32 %v12859_v29, %v6746_v30 }
 0x97c   :  { %v6748_v12 = vrot.slane %v6747_v39, 4  ;;  %v6773_v36 = vadd.f32 %v6772_v18, %v6769_v63 }
 0x97e   :  { %v6749_v33 = vadd.f32 %v6748_v12, %v6747_v39  ;;  %v6774_v16 = vrot.slane %v6773_v36, 4 }
 0x980   :  { %v6750_v62 = vrot.slane %v6749_v33, 2  ;;  %v6775_v38 = vadd.f32 %v6774_v16, %v6773_v36 }
 0x981   :  { %v8415_v45 = vpop.f32.mrb[64].mxu0 }
 0x982   :  { %v8416_v28 = vpop.f32.mrb[65].mxu0  ;;  %v6751_v8 = vadd.f32 %v6750_v62, %v6749_v33  ;;  %v6776_v4 = vrot.slane %v6775_v38, 2 }
 0x983   :  { %v8417_v5 = vadd.f32 %v8416_v28, %v8415_v45  ;;  %v8418_v49 = vpop.f32.mrb[66].mxu0 }
 0x984   :  { %v8419_v19 = vpop.f32.mrb[67].mxu0  ;;  %v6752_v20 = vrot.slane %v6751_v8, 1  ;;  %v6777_v17 = vadd.f32 %v6776_v4, %v6775_v38 }
 0x985   :  { %v8420_v59 = vadd.f32 %v8419_v19, %v8418_v49 }
 0x986   :  { %v12875_v47 = vadd.f32 %v6752_v20, %v6751_v8  ;;  %v6778_v52 = vrot.slane %v6777_v17, 1 }
 0x988   :  { %6789 = vrot.lane.b32.xlu0 %v12875_v47, %s9312_s30  ;;  %v12879_v54 = vadd.f32 %v6778_v52, %v6777_v17 }
 0x989   :  { %v8421_v2 = vpop.f32.mrb[68].mxu0 }
 0x98a   :  { %v8422_v32 = vpop.f32.mrb[69].mxu0  ;;  %6797 = vrot.lane.b32.xlu1 %v12879_v54, %s9312_s30 }
 0x98b   :  { %v8423_v25 = vadd.f32 %v8422_v32, %v8421_v2  ;;  %v8424_v26 = vpop.f32.mrb[70].mxu0 }
 0x98c   :  { %v8425_v3 = vpop.f32.mrb[71].mxu0 }
 0x98d   :  { %v8426_v35 = vadd.f32 %v8425_v3, %v8424_v26 }
 0x990   :  { %v8449_v56 = vpop.f32.mrb[60].mxu1 }
 0x991   :  { %v8450_v11 = vpop.f32.mrb[61].mxu1 }
 0x992   :  { %v8451_v51 = vadd.f32 %v8450_v11, %v8449_v56  ;;  %v8452_v60 = vpop.f32.mrb[62].mxu1 }
 0x993   :  { %v8453_v14 = vpop.f32.mrb[63].mxu1 }
 0x994   :  { %v8776_v48 = vadd.f32 %v8451_v51, %v8417_v5  ;;  %v8454_v31 = vadd.f32 %v8453_v14, %v8452_v60 }
 0x996   :  { %v8782_v37 = vadd.f32 %v8454_v31, %v8420_v59 }
 0x998   :  { %v8455_v40 = vpop.f32.mrb[64].mxu1 }
 0x999   :  { %v8456_v23 = vpop.f32.mrb[65].mxu1 }
 0x99a   :  { %v8457_v46 = vadd.f32 %v8456_v23, %v8455_v40  ;;  %v8458_v58 = vpop.f32.mrb[66].mxu1 }
 0x99b   :  { %v8459_v34 = vpop.f32.mrb[67].mxu1 }
 0x99c   :  { %v8773_v44 = vadd.f32 %v8457_v46, %v8423_v25  ;;  %v8460_v55 = vadd.f32 %v8459_v34, %v8458_v58 }
 0x99e   :  { %v8779_v21 = vadd.f32 %v8460_v55, %v8426_v35 }
 0x9c1   :  { %v8483_v7 = vpop.f32.mrb[76].mxu0 }
 0x9c2   :  { %v8484_v24 = vpop.f32.mrb[77].mxu0 }
 0x9c3   :  { %v8485_v57 = vadd.f32 %v8484_v24, %v8483_v7  ;;  %v8486_v27 = vpop.f32.mrb[78].mxu0 }
 0x9c4   :  { %v8487_v22 = vpop.f32.mrb[79].mxu0 }
 0x9c5   :  { %v8488_v1 = vadd.f32 %v8487_v22, %v8486_v27  ;;  %v8777_v0 = vadd.f32 %v8776_v48, %v8485_v57 }
 0x9c7   :  { %v8783_v42 = vadd.f32 %v8782_v37, %v8488_v1 }
 0x9c9   :  { %v8489_v13 = vpop.f32.mrb[80].mxu0 }
 0x9ca   :  { %v8490_v53 = vpop.f32.mrb[81].mxu0 }
 0x9cb   :  { %v8491_v6 = vadd.f32 %v8490_v53, %v8489_v13  ;;  %v8492_v30 = vpop.f32.mrb[82].mxu0 }
 0x9cc   :  { %v8493_v61 = vpop.f32.mrb[83].mxu0 }
 0x9cd   :  { %v8494_v63 = vadd.f32 %v8493_v61, %v8492_v30  ;;  %v8774_v18 = vadd.f32 %v8773_v44, %v8491_v6  ;;  %v13727_v61 = vld [vmem:[#allocation182_spill] sm:$0xff] }
 0x9cf   :  { %v8780_v39 = vadd.f32 %v8779_v21, %v8494_v63 }
 0x9d1   :  { %v8735_v12 = vpop.f32.mrb[72].mxu0 }
 0x9d2   :  { %v12883_v36 = vadd.f32 %v8774_v18, %v8735_v12  ;;  %v6726_v33 = vpop.f32.mrb[73].mxu0  ;;  %v6811_v18 = vld [vmem:[%s13228_s9] ss:$2 sm:$0x3] }
 0x9d3   :  { %v12885_v16 = vadd.f32 %v8777_v0, %v6726_v33  ;;  %v8736_v45 = vpop.f32.mrb[74].mxu0 }
 0x9d4   :  { %v12887_v62 = vadd.f32 %v8780_v39, %v8736_v45  ;;  %v6729_v38 = vpop.f32.mrb[75].mxu0  ;;  %v6768_v4 = vmul.f32 %v12883_v36, %v12883_v36  ;;  %v13729_v45 = vld [vmem:[#allocation184_spill] sm:$0xff] }
 0x9d5   :  { %v12889_v28 = vadd.f32 %v8783_v42, %v6729_v38  ;;  %v6764_v5 = vmul.f32 %v12885_v16, %v12885_v16 }
 0x9d6   :  { %v6770_v20 = vmul.f32 %v12887_v62, %v12887_v62 }
 0x9d7   :  { %v6754_v49 = vadd.f32 %v12889_v28, %v12885_v16  ;;  %v6766_v8 = vmul.f32 %v12889_v28, %v12889_v28 }
 0x9d9   :  { %v6755_v19 = vadd.f32 %v12883_v36, %v6754_v49  ;;  %v6780_v59 = vadd.f32 %v6766_v8, %v6764_v5 }
 0x9db   :  { %v6781_v17 = vadd.f32 %v6780_v59, %v6768_v4  ;;  %v6756_v52 = vadd.f32 %v12887_v62, %v6755_v19  ;;  %v8224_v19 = vld [vmem:[%s13228_s9 + $0x1] ss:$2 sm:$0x3] }
 0x9dd   :  { %v6757_v2 = vrot.slane %v6756_v52, 4  ;;  %v6782_v32 = vadd.f32 %v6781_v17, %v6770_v20 }
 0x9df   :  { %v6758_v25 = vadd.f32 %v6757_v2, %v6756_v52  ;;  %v6783_v26 = vrot.slane %v6782_v32, 4 }
 0x9e1   :  { %v6759_v3 = vrot.slane %v6758_v25, 2  ;;  %v6784_v35 = vadd.f32 %v6783_v26, %v6782_v32 }
 0x9e3   :  { %v6760_v56 = vadd.f32 %v6759_v3, %v6758_v25  ;;  %v6785_v11 = vrot.slane %v6784_v35, 2 }
 0x9e5   :  { %v6761_v51 = vrot.slane %v6760_v56, 1  ;;  %v6786_v60 = vadd.f32 %v6785_v11, %v6784_v35 }
 0x9e7   :  { %v6762_v14 = vadd.f32 %v6761_v51, %v6760_v56  ;;  %v6787_v48 = vrot.slane %v6786_v60, 1 }
 0x9e9   :  { %6791 = vrot.lane.b32.xlu0 %v6762_v14, %s9312_s30  ;;  %v6788_v31 = vadd.f32 %v6787_v48, %v6786_v60 }
 0x9eb   :  { %6799 = vrot.lane.b32.xlu1 %v6788_v31, %s9312_s30 }
 0x9fa   :  { %v6790_v37 = vpop.permute.xlu0 %6789 }
 0x9fc   :  { %v6798_v40 = vpop.permute.xlu1 %6797 }
 0xa5b   :  { %v6792_v23 = vpop.permute.xlu0 %6791 }
 0xa5c   :  { %v6793_v58 = vsel %vm3039_vm4, %v6790_v37, %v6792_v23  ;;  %v6794_v34 = vsel %vm3039_vm4, %v6792_v23, %v6790_v37 }
 0xa5d   :  { %v6795_v44 = vadd.f32 %v6794_v34, %v12875_v47  ;;  %v6796_v55 = vadd.f32 %v6793_v58, %v6762_v14  ;;  %v6800_v21 = vpop.permute.xlu1 %6799 }
 0xa5e   :  { %v6801_v7 = vsel %vm3039_vm4, %v6798_v40, %v6800_v21  ;;  %v6802_v24 = vsel %vm3039_vm4, %v6800_v21, %v6798_v40 }
 0xa5f   :  { %v6805_v57 = vadd.f32 %v6796_v55, %v6795_v44  ;;  %v6803_v27 = vadd.f32 %v6802_v24, %v12879_v54  ;;  %v6804_v22 = vadd.f32 %v6801_v7, %v6788_v31  ;;  %v13728_v54 = vld [vmem:[#allocation183_spill] sm:$0xff] }
 0xa61   :  { %v6807_v1 = vmul.f32 0.0078125, %v6805_v57  ;;  %v6806_v0 = vadd.f32 %v6804_v22, %v6803_v27 }
 0xa63   :  { %v6808_v42 = vmul.f32 0.0078125, %v6806_v0  ;;  %v6809_v13 = vmul.f32 %v6807_v1, %v6807_v1 }
 0xa65   :  { %v6810_v53 = vsub.f32 %v6808_v42, %v6809_v13 }
 0xa67   :  { %v6812_v6 = vadd.f32 1e-05, %v6810_v53 }
 0xa69   :  { %9248 = vrsqrt.f32 %v6812_v6 }
 0xa73   :  { %v9249_v47 = vpop.eup %9248 }
 0xa74   :  { %v6815_v30 = vcombine.low %v9249_v47, %v9249_v47 }
 0xa76   :  { %v6822_v63 = vrot.slane %v6815_v30, %v13727_v61 }
 0xa78   :  { %v6829_v39 = vrot.slane %v6822_v63, %v13727_v61 }
 0xa7a   :  { %v6831_v12 = vmul.f32 %v6829_v39, %v6811_v18 }
 0xa7c   :  { %v6838_v33 = vrot.slane %v6831_v12, %v13728_v54  ;;  %v6842_v38 = vrot.slane %v6831_v12, %v13729_v45 }
 0xa7e   :  { %v6845_v5 = vmul.f32 %v6838_v33, %v6807_v1  ;;  %v6846_v49 = vmul.f32 %v6842_v38, %v6807_v1  ;;  %v6867_v17 = vmul.f32 %v12885_v16, %v6842_v38  ;;  %v6866_v52 = vmul.f32 %v12857_v41, %v6838_v33 }
 0xa7f   :  { %v6869_v25 = vmul.f32 %v12889_v28, %v6842_v38  ;;  %v6868_v26 = vmul.f32 %v12861_v10, %v6838_v33  ;;  %v6871_v3 = vmul.f32 %v12883_v36, %v6842_v38  ;;  %v6870_v14 = vmul.f32 %v12855_v15, %v6838_v33 }
 0xa80   :  { %v6849_v8 = vcombine.low %v6845_v5, %v6846_v49  ;;  %v6872_v16 = vmul.f32 %v12859_v29, %v6838_v33  ;;  %v6873_v41 = vmul.f32 %v12887_v62, %v6842_v38 }
 0xa82   :  { %v6856_v4 = vrot.slane %v6849_v8, %v13727_v61 }
 0xa84   :  { %v6863_v59 = vrot.slane %v6856_v4, %v13727_v61 }
 0xa86   :  { %v6865_v20 = vsub.f32 %v8224_v19, %v6863_v59  ;;  %v13730_v59 = vld [vmem:[#allocation90_spill] sm:$0xff] }
 0xa87   :  { %8501 = vmatprep.subr.bf16.mxu1 %v13730_v59 }
 0xa88   :  { %v6878_v2 = vrot.slane %v6865_v20, %v13728_v54  ;;  %v6882_v32 = vrot.slane %v6865_v20, %v13729_v45  ;;  %v13731_v20 = vld [vmem:[#allocation82_spill] sm:$0xff] }
 0xa89   :  { %8502 = vmatpush3.bf16.msra.mxu1 %v13731_v20 }
 0xa8a   :  { %v6886_v35 = vadd.f32 %v6882_v32, %v6867_v17  ;;  %v6885_v56 = vadd.f32 %v6878_v2, %v6866_v52  ;;  %v6888_v11 = vadd.f32 %v6882_v32, %v6869_v25  ;;  %v6887_v51 = vadd.f32 %v6878_v2, %v6868_v26 }
 0xa8b   :  { %v6890_v60 = vadd.f32 %v6882_v32, %v6871_v3  ;;  %v6889_v37 = vadd.f32 %v6878_v2, %v6870_v14  ;;  %v6891_v10 = vadd.f32 %v6878_v2, %v6872_v16  ;;  %v6892_v40 = vadd.f32 %v6882_v32, %v6873_v41 }
 0xa8c   :  { %vm6894_vm4 = vcmp.ge.f32.partialorder %v6886_v35, 0.0  ;;  %v6902_v48 = vmul.f32 0.2, %v6886_v35  ;;  %vm6893_vm7 = vcmp.ge.f32.partialorder %v6885_v56, 0.0  ;;  %v6901_v31 = vmul.f32 0.2, %v6885_v56 }
 0xa8d   :  { %v6904_v28 = vmul.f32 0.2, %v6888_v11  ;;  %vm6896_vm8 = vcmp.ge.f32.partialorder %v6888_v11, 0.0  ;;  %v6903_v46 = vmul.f32 0.2, %v6887_v51  ;;  %vm6895_vm9 = vcmp.ge.f32.partialorder %v6887_v51, 0.0 }
 0xa8e   :  { %v6910_v36 = vsel %vm6894_vm4, %v6886_v35, %v6902_v48  ;;  %v6909_v23 = vsel %vm6893_vm7, %v6885_v56, %v6901_v31  ;;  %v6906_v29 = vmul.f32 0.2, %v6890_v60  ;;  %v6905_v58 = vmul.f32 0.2, %v6889_v37 }
 0xa8f   :  { %6927 = vrot.lane.b32.xlu1 %v6910_v36, %s9312_s30  ;;  %6925 = vrot.lane.b32.xlu0 %v6909_v23, %s9312_s30  ;;  %v6912_v15 = vsel %vm6896_vm8, %v6888_v11, %v6904_v28  ;;  %v6911_v62 = vsel %vm6895_vm9, %v6887_v51, %v6903_v46  ;;  %v6907_v34 = vmul.f32 0.2, %v6891_v10  ;;  %v6908_v44 = vmul.f32 0.2, %v6892_v40 }
 0xa90   :  { %vm6898_vm10 = vcmp.ge.f32.partialorder %v6890_v60, 0.0  ;;  %vm6897_vm11 = vcmp.ge.f32.partialorder %v6889_v37, 0.0  ;;  %vm6899_vm12 = vcmp.ge.f32.partialorder %v6891_v10, 0.0  ;;  %vm6900_vm13 = vcmp.ge.f32.partialorder %v6892_v40, 0.0 }
 0xa91   :  { %v6914_v55 = vsel %vm6898_vm10, %v6890_v60, %v6906_v29  ;;  %v6913_v21 = vsel %vm6897_vm11, %v6889_v37, %v6905_v58  ;;  %v6915_v7 = vsel %vm6899_vm12, %v6891_v10, %v6907_v34  ;;  %v6916_v24 = vsel %vm6900_vm13, %v6892_v40, %v6908_v44 }
 0xa92   :  { %v9243_v57 = vpack.i.bf16 %v6916_v24, %v6915_v7 }
 0xa93   :  { %6931 = vrot.lane.b32.xlu1 %v6912_v15, %s9312_s30  ;;  %6929 = vrot.lane.b32.xlu0 %v6911_v62, %s9312_s30 }
 0xa97   :  { %6935 = vrot.lane.b32.xlu1 %v6914_v55, %s9312_s30  ;;  %6933 = vrot.lane.b32.xlu0 %v6913_v21, %s9312_s30 }
 0xa9b   :  { %9244 = vrot.lane.b32.xlu0 %v9243_v57, %s9312_s30 }
 0xb01   :  { %v6928_v27 = vpop.permute.xlu1 %6927  ;;  %v6926_v22 = vpop.permute.xlu0 %6925 }
 0xb02   :  { %v6961_v1 = vsel %vm3864_vm0, %v6928_v27, 0.0  ;;  %v6941_v0 = vsel %vm3864_vm0, %v6926_v22, %v6928_v27  ;;  %v6957_v42 = vsel %vm3864_vm0, 0.0, %v6926_v22 }
 0xb05   :  { %v6932_v13 = vpop.permute.xlu1 %6931  ;;  %v12947_v53 = vpop.permute.xlu0 %6929 }
 0xb06   :  { %v12950_v6 = vsel %vm3864_vm0, %v6932_v13, 0.0  ;;  %v12954_v47 = vsel %vm3864_vm0, %v12947_v53, %v6932_v13 }
 0xb09   :  { %v6936_v30 = vpop.permute.xlu1 %6935  ;;  %v6934_v63 = vpop.permute.xlu0 %6933 }
 0xb0a   :  { %v6963_v18 = vsel %vm3864_vm0, %v6936_v30, 0.0  ;;  %v6943_v39 = vsel %vm3864_vm0, %v6934_v63, %v6936_v30  ;;  %v6959_v12 = vsel %vm3864_vm0, 0.0, %v6934_v63 }
 0xb0b   :  { %v9250_v4 = vpack.i.bf16 %v6957_v42, %v6959_v12  ;;  %v9260_v19 = vpack.i.bf16 %v6941_v0, %v6943_v39 }
 0xb0d   :  { %v12959_v33 = vpop.permute.xlu0 %9244 }
 0xb0e   :  { %v9247_v38 = vunpack.i.h.bf16 %v12959_v33  ;;  %v9246_v5 = vunpack.i.l.bf16 %v12959_v33 }
 0xb10   :  { %v12964_v49 = vsel %vm3864_vm0, %v9247_v38, 0.0  ;;  %v6944_v8 = vsel %vm3864_vm0, %v9246_v5, %v9247_v38 }
 0xb11   :  { %9302 = dma.done.wait [#allocation10 + $0x2], 4608 }
 0xb12   :  { %9303 = vsyncadd [#allocation10 + $0x2], 4294962688  ;;  %9251 = vrot.lane.b32.xlu0 %v9250_v4, %s9312_s30  ;;  %v9255_v17 = vpack.i.bf16 %v6943_v39, %v6941_v0  ;;  %9261 = vrot.lane.b32.xlu1 %v9260_v19, %s9312_s30  ;;  %v9265_v52 = vpack.i.bf16 %v6963_v18, %v6961_v1  ;;  %v13732_v2 = vld [vmem:[#allocation91_spill] sm:$0xff]  ;;  %v13733_v32 = vld [vmem:[#allocation114_spill] sm:$0xff]  ;;  %vm9316_vm14 = vmmov 0   ;;  %v12992_v14 = vpack.c.bf16 %v6944_v8, %v12954_v47 }
 0xb13   :  { %8503 = vmatprep.subr.bf16.mxu1 %v13732_v2  ;;  %8738 = vmatpush3.bf16.msra.mxu0 %v13733_v32  ;;  %v13734_v25 = vld [vmem:[#allocation83_spill] sm:$0xff]  ;;  %v13735_v26 = vld [vmem:[#allocation92_spill] sm:$0xff]  ;;  %v13738_v56 = vld [vmem:[#allocation93_spill] sm:$0xff]  ;;  %v8286_v55 = vpack.c.bf16 %v12947_v53, %v13634_v50  ;;  %v8291_v24 = vpack.c.bf16 %v9246_v5, %v12947_v53  ;;  %v7214_v0 = vpack.c.bf16 %v12954_v47, %v13634_v50 }
 0xb14   :  { %8739 = vmatprep.subr.bf16.mxu0 %v13634_v50  ;;  %8504 = vmatpush3.bf16.msra.mxu1 %v13734_v25  ;;  %v13736_v3 = vld [vmem:[#allocation115_spill] sm:$0xff]  ;;  %v13737_v35 = vld [vmem:[#allocation84_spill] sm:$0xff]  ;;  %v13740_v51 = vld [vmem:[#allocation85_spill] sm:$0xff]  ;;  %v7218_v33 = vpack.c.bf16 %v12964_v49, %v12950_v6 }
 0xb15   :  { %8505 = vmatprep.subr.bf16.mxu1 %v13735_v26  ;;  %v13739_v11 = vld [vmem:[#allocation116_spill] sm:$0xff]  ;;  %8745 = vmatprep.mubr.msk.bf16.mxu0 %vm9316_vm14, %v13634_v50  ;;  %v13741_v60 = vld [vmem:[#allocation94_spill] sm:$0xff]  ;;  %v13742_v16 = vld [vmem:[#allocation117_spill] sm:$0xff] }
 0xb16   :  { %9256 = vrot.lane.b32.xlu0 %v9255_v17, %s9312_s30  ;;  %9266 = vrot.lane.b32.xlu1 %v9265_v52, %s9312_s30  ;;  %v13743_v41 = vld [vmem:[#allocation86_spill] sm:$0xff]  ;;  %v13744_v48 = vld [vmem:[#allocation95_spill] sm:$0xff]  ;;  %v13746_v28 = vld [vmem:[#allocation96_spill] sm:$0xff] }
 0xb17   :  { %8740 = vmatpush3.bf16.msra.mxu0 %v13736_v3  ;;  %v13745_v31 = vld [vmem:[#allocation87_spill] sm:$0xff]  ;;  %v13747_v37 = vld [vmem:[#allocation88_spill] sm:$0xff]  ;;  %v13748_v10 = vld [vmem:[#allocation97_spill] sm:$0xff] }
 0xb18   :  { %8741 = vmatprep.subr.bf16.mxu0 %v13634_v50  ;;  %8506 = vmatpush3.bf16.msra.mxu1 %v13737_v35  ;;  %v13749_v40 = vld [vmem:[#allocation89_spill] sm:$0xff]  ;;  %v13750_v36 = vld [vmem:[#allocation106_spill] sm:$0xff]  ;;  %vm8281_vm15 = vmpackc.low %vm9315_vm5, %vm12630_vm2 }
 0xb19   :  { %8507 = vmatprep.subr.bf16.mxu1 %v13738_v56  ;;  %v13752_v30 = vld [vmem:[#allocation98_spill] sm:$0xff]  ;;  %v13753_v63 = vld [vmem:[#allocation107_spill] sm:$0xff]  ;;  %v13756_v43 = vld [vmem:[#allocation100_spill] sm:$0xff] }
 0xb1a   :  { %v13754_v9 = vld [vmem:[#allocation99_spill] sm:$0xff]  ;;  %v13757_v18 = vld [vmem:[#allocation109_spill] sm:$0xff]  ;;  %v13759_v12 = vld [vmem:[#allocation110_spill] sm:$0xff] }
 0xb1b   :  { %8742 = vmatpush3.bf16.msra.mxu0 %v13739_v11  ;;  %v13758_v39 = vld [vmem:[#allocation101_spill] sm:$0xff]  ;;  %v13760_v38 = vld [vmem:[#allocation102_spill] sm:$0xff]  ;;  %v13761_v5 = vld [vmem:[#allocation111_spill] sm:$0xff] }
 0xb1c   :  { %8743 = vmatprep.subr.bf16.mxu0 %v13634_v50  ;;  %8508 = vmatpush3.bf16.msra.mxu1 %v13740_v51  ;;  %v13762_v4 = vld [vmem:[#allocation103_spill] sm:$0xff]  ;;  %v13763_v19 = vld [vmem:[#allocation112_spill] sm:$0xff]  ;;  %v13765_v17 = vld [vmem:[#allocation113_spill] sm:$0xff] }
 0xb1d   :  { %8509 = vmatprep.subr.bf16.mxu1 %v13741_v60  ;;  %v13766_v52 = vld [vmem:[#allocation105_spill] sm:$0xff] }
 0xb1f   :  { %8744 = vmatpush3.bf16.msra.mxu0 %v13742_v16 }
 0xb20   :  { %8550 = vmatprep.subr.bf16.mxu0 %v13730_v59  ;;  %8510 = vmatpush3.bf16.msra.mxu1 %v13743_v41 }
 0xb21   :  { %8511 = vmatprep.subr.bf16.mxu1 %v13744_v48 }
 0xb22   :  { %8746 = vmatmul.mubr.msk.bf16.vlgmr.msra.gmra.mrb[84].mxu0 %vm3864_vm0, %v12992_v14 }
 0xb23   :  { %8551 = vmatpush3.bf16.msra.mxu0 %v13731_v20  ;;  %v13764_v20 = vld [vmem:[#allocation104_spill] sm:$0xff] }
 0xb24   :  { %8552 = vmatprep.subr.bf16.mxu0 %v13732_v2  ;;  %8512 = vmatpush3.bf16.msra.mxu1 %v13745_v31 }
 0xb25   :  { %8513 = vmatprep.subr.bf16.mxu1 %v13746_v28 }
 0xb27   :  { %8553 = vmatpush3.bf16.msra.mxu0 %v13734_v25 }
 0xb28   :  { %8554 = vmatprep.subr.bf16.mxu0 %v13735_v26  ;;  %8514 = vmatpush3.bf16.msra.mxu1 %v13747_v37 }
 0xb29   :  { %8515 = vmatprep.subr.bf16.mxu1 %v13748_v10 }
 0xb2b   :  { %8555 = vmatpush3.bf16.msra.mxu0 %v13737_v35 }
 0xb2c   :  { %8556 = vmatprep.subr.bf16.mxu0 %v13738_v56  ;;  %8516 = vmatpush3.bf16.msra.mxu1 %v13749_v40 }
 0xb2d   :  { %8523 = vmatprep.subr.bf16.mxu1 %v13750_v36 }
 0xb2f   :  { %8557 = vmatpush3.bf16.msra.mxu0 %v13740_v51 }
 0xb30   :  { %8558 = vmatprep.subr.bf16.mxu0 %v13741_v60 }
 0xb33   :  { %8559 = vmatpush3.bf16.msra.mxu0 %v13743_v41 }
 0xb34   :  { %8560 = vmatprep.subr.bf16.mxu0 %v13744_v48 }
 0xb37   :  { %8561 = vmatpush3.bf16.msra.mxu0 %v13745_v31 }
 0xb38   :  { %8562 = vmatprep.subr.bf16.mxu0 %v13746_v28 }
 0xb3b   :  { %8563 = vmatpush3.bf16.msra.mxu0 %v13747_v37 }
 0xb3c   :  { %8564 = vmatprep.subr.bf16.mxu0 %v13748_v10 }
 0xb3f   :  { %8565 = vmatpush3.bf16.msra.mxu0 %v13749_v40 }
 0xb40   :  { %8749 = vmatprep.subr.bf16.mxu0 %v13634_v50 }
 0xb84   :  { %v9252_v23 = vpop.permute.xlu0 %9251  ;;  %v9262_v46 = vpop.permute.xlu1 %9261 }
 0xb85   :  { %v9254_v15 = vunpack.i.h.bf16 %v9252_v23  ;;  %v9253_v29 = vunpack.i.l.bf16 %v9252_v23  ;;  %v9264_v62 = vunpack.i.h.bf16 %v9262_v46  ;;  %v9263_v58 = vunpack.i.l.bf16 %v9262_v46 }
 0xb87   :  { %v7016_v34 = vsel %vm3864_vm0, %v12954_v47, %v9253_v29  ;;  %v7213_v21 = vsel %vm3864_vm0, %v12950_v6, %v9263_v58  ;;  %v13755_v47 = vld [vmem:[#allocation108_spill] sm:$0xff] }
 0xb88   :  { %v8282_v7 = vpack.c.bf16 %v7016_v34, %v9254_v15  ;;  %v8295_v57 = vpack.c.bf16 %v7213_v21, %v9264_v62  ;;  %v9267_v27 = vpop.permute.xlu1 %9266  ;;  %v9257_v8 = vpop.permute.xlu0 %9256 }
 0xb89   :  { %v9269_v22 = vunpack.i.h.bf16 %v9267_v27  ;;  %v9268_v1 = vunpack.i.l.bf16 %v9267_v27  ;;  %v9258_v59 = vunpack.i.l.bf16 %v9257_v8 }
 0xb8a   :  { %8283 = vmatprep.mubr.msk.bf16.mxu1 %vm8281_vm15, %v8282_v7  ;;  %8296 = vmatprep.mubr.msk.bf16.mxu0 %vm8281_vm15, %v8295_v57 }
 0xb8b   :  { %8287 = vmatmul.mubr.msk.bf16.vlgmr.msra.gmra.mrb[68].mxu1 %vm12704_vm6, %v8286_v55  ;;  %v7206_v42 = vsel %vm3864_vm0, %v9264_v62, %v9268_v1  ;;  %v7207_v13 = vsel %vm3864_vm0, %v9263_v58, %v9269_v22  ;;  %7255 = vmatmul.mubr.bf16.vlgmr.msra.gmra.mrb[88].mxu0 %v7214_v0  ;;  %v7009_v6 = vsel %vm3864_vm0, %v9254_v15, %v9258_v59 }
 0xb8c   :  { %8524 = vmatpush3.bf16.msra.mxu1 %v13752_v30  ;;  %8292 = vmatprep.mubr.msk.bf16.mxu1 %vm12647_vm3, %v8291_v24  ;;  %v7216_v53 = vpack.c.bf16 %v7207_v13, %v7206_v42 }
 0xb8d   :  { %8525 = vmatprep.subr.bf16.mxu1 %v13753_v63  ;;  %8750 = vmatpush3.bf16.msra.mxu0 %v13733_v32 }
 0xb8e   :  { %8757 = vmatprep.mubr.msk.bf16.mxu0 %vm9316_vm14, %v13634_v50  ;;  %8751 = vmatprep.subr.bf16.mxu0 %v13634_v50 }
 0xb90   :  { %8526 = vmatpush3.bf16.msra.mxu1 %v13754_v9 }
 0xb91   :  { %8527 = vmatprep.subr.bf16.mxu1 %v13755_v47  ;;  %8752 = vmatpush3.bf16.msra.mxu0 %v13736_v3 }
 0xb92   :  { %8753 = vmatprep.subr.bf16.mxu0 %v13634_v50 }
 0xb94   :  { %8528 = vmatpush3.bf16.msra.mxu1 %v13756_v43 }
 0xb95   :  { %8529 = vmatprep.subr.bf16.mxu1 %v13757_v18  ;;  %8754 = vmatpush3.bf16.msra.mxu0 %v13739_v11 }
 0xb96   :  { %8755 = vmatprep.subr.bf16.mxu0 %v13634_v50  ;;  %v9259_v50 = vunpack.i.h.bf16 %v9257_v8 }
 0xb98   :  { %8530 = vmatpush3.bf16.msra.mxu1 %v13758_v39  ;;  %v7010_v49 = vsel %vm3864_vm0, %v9253_v29, %v9259_v50 }
 0xb99   :  { %8531 = vmatprep.subr.bf16.mxu1 %v13759_v12  ;;  %8756 = vmatpush3.bf16.msra.mxu0 %v13742_v16  ;;  %v7019_v2 = vpack.c.bf16 %v7010_v49, %v7009_v6 }
 0xb9c   :  { %8532 = vmatpush3.bf16.msra.mxu1 %v13760_v38  ;;  %8758 = vmatmul.mubr.msk.bf16.vlgmr.msra.gmra.mrb[92].mxu0 %vm3864_vm0, %v7218_v33 }
 0xb9d   :  { %8533 = vmatprep.subr.bf16.mxu1 %v13761_v5 }
 0xba0   :  { %8534 = vmatpush3.bf16.msra.mxu1 %v13762_v4 }
 0xba1   :  { %8535 = vmatprep.subr.bf16.mxu1 %v13763_v19 }
 0xba4   :  { %8536 = vmatpush3.bf16.msra.mxu1 %v13764_v20 }
 0xba5   :  { %8537 = vmatprep.subr.bf16.mxu1 %v13765_v17 }
 0xba8   :  { %8538 = vmatpush3.bf16.msra.mxu1 %v13766_v52 }
 0xba9   :  { %8572 = vmatprep.subr.bf16.mxu1 %v13750_v36 }
 0xbab   :  { %7135 = vmatmul.mubr.bf16.vlgmr.msra.gmra.mrb[72].mxu1 %v7019_v2 }
 0xbac   :  { %8573 = vmatpush3.bf16.msra.mxu1 %v13752_v30  ;;  %7295 = vmatprep.mubr.bf16.mxu1 %v12992_v14 }
 0xbad   :  { %8574 = vmatprep.subr.bf16.mxu1 %v13753_v63 }
 0xbb0   :  { %8575 = vmatpush3.bf16.msra.mxu1 %v13754_v9 }
 0xbb1   :  { %8576 = vmatprep.subr.bf16.mxu1 %v13755_v47 }
 0xbb4   :  { %8577 = vmatpush3.bf16.msra.mxu1 %v13756_v43 }
 0xbb5   :  { %8578 = vmatprep.subr.bf16.mxu1 %v13757_v18 }
 0xbb8   :  { %8579 = vmatpush3.bf16.msra.mxu1 %v13758_v39 }
 0xbb9   :  { %8580 = vmatprep.subr.bf16.mxu1 %v13759_v12 }
 0xbbc   :  { %8581 = vmatpush3.bf16.msra.mxu1 %v13760_v38 }
 0xbbd   :  { %8582 = vmatprep.subr.bf16.mxu1 %v13761_v5 }
 0xbc0   :  { %8583 = vmatpush3.bf16.msra.mxu1 %v13762_v4 }
 0xbc1   :  { %8584 = vmatprep.subr.bf16.mxu1 %v13763_v19 }
 0xbc4   :  { %8585 = vmatpush3.bf16.msra.mxu1 %v13764_v20 }
 0xbc5   :  { %8586 = vmatprep.subr.bf16.mxu1 %v13765_v17 }
 0xbc8   :  { %8587 = vmatpush3.bf16.msra.mxu1 %v13766_v52 }
 0xbcb   :  { %7296 = vmatmul.mubr.bf16.vlgmr.msra.gmra.mrb[76].mxu1 %v7216_v53 }
 0xbf5   :  { %v7177_v32 = vpop.f32.mrb[84].mxu0 }
 0xbf6   :  { %v8747_v25 = vpop.f32.mrb[85].mxu0 }
 0xbf7   :  { %v7180_v26 = vpop.f32.mrb[86].mxu0 }
 0xbf8   :  { %v8748_v3 = vpop.f32.mrb[87].mxu0 }
 0xc5e   :  { %v8517_v35 = vpop.f32.mrb[68].mxu1  ;;  %v8566_v60 = vpop.f32.mrb[88].mxu0 }
 0xc5f   :  { %v8518_v56 = vpop.f32.mrb[69].mxu1  ;;  %v8567_v16 = vpop.f32.mrb[89].mxu0 }
 0xc60   :  { %v8519_v11 = vadd.f32 %v8518_v56, %v8517_v35  ;;  %v8520_v51 = vpop.f32.mrb[70].mxu1  ;;  %v8568_v48 = vadd.f32 %v8567_v16, %v8566_v60  ;;  %v8569_v31 = vpop.f32.mrb[90].mxu0 }
 0xc61   :  { %v8521_v14 = vpop.f32.mrb[71].mxu1  ;;  %v8570_v28 = vpop.f32.mrb[91].mxu0 }
 0xc62   :  { %v8522_v41 = vadd.f32 %v8521_v14, %v8520_v51  ;;  %v8571_v37 = vadd.f32 %v8570_v28, %v8569_v31 }
 0xc6f   :  { %v7338_v10 = vpop.f32.mrb[92].mxu0 }
 0xc70   :  { %v8759_v40 = vpop.f32.mrb[93].mxu0 }
 0xc71   :  { %v7341_v36 = vpop.f32.mrb[94].mxu0 }
 0xc72   :  { %v8760_v23 = vpop.f32.mrb[95].mxu0 }
 0xc7e   :  { %v8539_v46 = vpop.f32.mrb[72].mxu1 }
 0xc7f   :  { %v8540_v15 = vpop.f32.mrb[73].mxu1 }
 0xc80   :  { %v8541_v29 = vadd.f32 %v8540_v15, %v8539_v46  ;;  %v8542_v62 = vpop.f32.mrb[74].mxu1  ;;  %v7383_v15 = vld [vmem:[%s13229_s10] ss:$2 sm:$0x3] }
 0xc81   :  { %v8543_v58 = vpop.f32.mrb[75].mxu1 }
 0xc82   :  { %v7137_v34 = vadd.f32 %v8541_v29, %v8519_v11  ;;  %v8544_v44 = vadd.f32 %v8543_v58, %v8542_v62 }
 0xc84   :  { %v13088_v55 = vadd.f32 %v7177_v32, %v7137_v34  ;;  %v7140_v21 = vadd.f32 %v8544_v44, %v8522_v41 }
 0xc86   :  { %v13090_v7 = vadd.f32 %v7180_v26, %v7140_v21  ;;  %v7359_v24 = vmul.f32 %v13088_v55, %v13088_v55 }
 0xc88   :  { %v7345_v57 = vadd.f32 %v13090_v7, %v13088_v55  ;;  %v7361_v27 = vmul.f32 %v13090_v7, %v13090_v7 }
 0xc8a   :  { %v7363_v22 = vadd.f32 %v7361_v27, %v7359_v24  ;;  %v7346_v42 = vrot.slane %v7345_v57, 4 }
 0xc8c   :  { %v7364_v63 = vrot.slane %v7363_v22, 4  ;;  %v7347_v43 = vadd.f32 %v7346_v42, %v7345_v57  ;;  %v8227_v42 = vld [vmem:[%s13229_s10 + $0x1] ss:$2 sm:$0x3] }
 0xc8e   :  { %v7365_v12 = vadd.f32 %v7364_v63, %v7363_v22  ;;  %v7348_v38 = vrot.slane %v7347_v43, 2 }
 0xc90   :  { %v7366_v19 = vrot.slane %v7365_v12, 2  ;;  %v7349_v20 = vadd.f32 %v7348_v38, %v7347_v43 }
 0xc92   :  { %v7367_v49 = vadd.f32 %v7366_v19, %v7365_v12  ;;  %v7350_v32 = vrot.slane %v7349_v20, 1  ;;  %v13768_v19 = vld [vmem:[#allocation142_spill] sm:$0xff] }
 0xc93   :  { %8621 = vmatprep.subr.bf16.mxu0 %v13768_v19 }
 0xc94   :  { %v7368_v3 = vrot.slane %v7367_v49, 1  ;;  %v7351_v11 = vadd.f32 %v7350_v32, %v7349_v20 }
 0xc96   :  { %v7369_v14 = vadd.f32 %v7368_v3, %v7367_v49 }
 0xc9e   :  { %v8588_v1 = vpop.f32.mrb[76].mxu1 }
 0xc9f   :  { %v8589_v0 = vpop.f32.mrb[77].mxu1 }
 0xca0   :  { %v8590_v13 = vadd.f32 %v8589_v0, %v8588_v1  ;;  %v8591_v30 = vpop.f32.mrb[78].mxu1 }
 0xca1   :  { %v8592_v53 = vpop.f32.mrb[79].mxu1 }
 0xca2   :  { %v7298_v9 = vadd.f32 %v8590_v13, %v8568_v48  ;;  %v8593_v47 = vadd.f32 %v8592_v53, %v8591_v30 }
 0xca4   :  { %v7339_v18 = vadd.f32 %v7338_v10, %v7298_v9  ;;  %v7301_v39 = vadd.f32 %v8593_v47, %v8571_v37 }
 0xca6   :  { %v7342_v33 = vadd.f32 %v7341_v36, %v7301_v39  ;;  %v7360_v5 = vmul.f32 %v7339_v18, %v7339_v18 }
 0xca8   :  { %v7352_v8 = vadd.f32 %v7342_v33, %v7339_v18  ;;  %v7362_v4 = vmul.f32 %v7342_v33, %v7342_v33 }
 0xcaa   :  { %v7353_v50 = vrot.slane %v7352_v8, 4  ;;  %v7370_v59 = vadd.f32 %v7362_v4, %v7360_v5  ;;  %v13767_v4 = vld [vmem:[#allocation126_spill] sm:$0xff] }
 0xcab   :  { %8599 = vmatprep.subr.bf16.mxu1 %v13767_v4 }
 0xcac   :  { %v7354_v17 = vadd.f32 %v7353_v50, %v7352_v8  ;;  %v7371_v6 = vrot.slane %v7370_v59, 4 }
 0xcae   :  { %v7355_v52 = vrot.slane %v7354_v17, 2  ;;  %v7372_v2 = vadd.f32 %v7371_v6, %v7370_v59 }
 0xcb0   :  { %v7356_v25 = vadd.f32 %v7355_v52, %v7354_v17  ;;  %v7373_v26 = vrot.slane %v7372_v2, 2 }
 0xcb2   :  { %v7357_v35 = vrot.slane %v7356_v25, 1  ;;  %v7374_v56 = vadd.f32 %v7373_v26, %v7372_v2 }
 0xcb4   :  { %v7358_v51 = vadd.f32 %v7357_v35, %v7356_v25  ;;  %v7375_v60 = vrot.slane %v7374_v56, 1 }
 0xcb6   :  { %v7376_v16 = vadd.f32 %v7375_v60, %v7374_v56  ;;  %v7377_v41 = vadd.f32 %v7358_v51, %v7351_v11 }
 0xcb8   :  { %v7378_v48 = vadd.f32 %v7376_v16, %v7369_v14  ;;  %v7379_v31 = vmul.f32 0.03125, %v7377_v41 }
 0xcba   :  { %v7380_v28 = vmul.f32 0.03125, %v7378_v48  ;;  %v7381_v37 = vmul.f32 %v7379_v31, %v7379_v31 }
 0xcbc   :  { %v7382_v10 = vsub.f32 %v7380_v28, %v7381_v37 }
 0xcbe   :  { %v7384_v40 = vadd.f32 1e-05, %v7382_v10 }
 0xcc0   :  { %9270 = vrsqrt.f32 %v7384_v40 }
 0xcca   :  { %v9271_v36 = vpop.eup %9270 }
 0xccb   :  { %v7387_v23 = vcombine.low %v9271_v36, %v9271_v36 }
 0xccd   :  { %v7394_v46 = vrot.slane %v7387_v23, %v13727_v61 }
 0xccf   :  { %v7401_v29 = vrot.slane %v7394_v46, %v13727_v61 }
 0xcd1   :  { %v7403_v62 = vmul.f32 %v7401_v29, %v7383_v15 }
 0xcd3   :  { %v7410_v58 = vrot.slane %v7403_v62, %v13728_v54  ;;  %v7414_v34 = vrot.slane %v7403_v62, %v13729_v45 }
 0xcd5   :  { %v7417_v44 = vmul.f32 %v7410_v58, %v7379_v31  ;;  %v7418_v21 = vmul.f32 %v7414_v34, %v7379_v31  ;;  %v7438_v24 = vmul.f32 %v7410_v58, %v13088_v55  ;;  %v7439_v57 = vmul.f32 %v7414_v34, %v7339_v18 }
 0xcd6   :  { %v7440_v27 = vmul.f32 %v7410_v58, %v13090_v7  ;;  %v7441_v22 = vmul.f32 %v7414_v34, %v7342_v33 }
 0xcd7   :  { %v7421_v1 = vcombine.low %v7417_v44, %v7418_v21 }
 0xcd9   :  { %v7428_v0 = vrot.slane %v7421_v1, %v13727_v61 }
 0xcdb   :  { %v7435_v13 = vrot.slane %v7428_v0, %v13727_v61 }
 0xcdd   :  { %v7437_v30 = vsub.f32 %v8227_v42, %v7435_v13 }
 0xcdf   :  { %v7446_v53 = vrot.slane %v7437_v30, %v13728_v54  ;;  %v7450_v63 = vrot.slane %v7437_v30, %v13729_v45 }
 0xce1   :  { %v7453_v9 = vadd.f32 %v7446_v53, %v7438_v24  ;;  %v7454_v55 = vadd.f32 %v7450_v63, %v7439_v57  ;;  %v7455_v47 = vadd.f32 %v7446_v53, %v7440_v27  ;;  %v7456_v43 = vadd.f32 %v7450_v63, %v7441_v22 }
 0xce3   :  { %vm7457_vm0 = vcmp.ge.f32.partialorder %v7453_v9, 0.0  ;;  %vm7458_vm1 = vcmp.ge.f32.partialorder %v7454_v55, 0.0  ;;  %vm7459_vm2 = vcmp.ge.f32.partialorder %v7455_v47, 0.0  ;;  %vm7460_vm3 = vcmp.ge.f32.partialorder %v7456_v43, 0.0 }
 0xce4   :  { %v7461_v7 = vmul.f32 0.2, %v7453_v9  ;;  %v7462_v18 = vmul.f32 0.2, %v7454_v55  ;;  %v7463_v39 = vmul.f32 0.2, %v7455_v47 }
 0xce5   :  { %v7464_v12 = vmul.f32 0.2, %v7456_v43 }
 0xce6   :  { %v7465_v33 = vsel %vm7457_vm0, %v7453_v9, %v7461_v7  ;;  %v7466_v38 = vsel %vm7458_vm1, %v7454_v55, %v7462_v18  ;;  %v7467_v5 = vsel %vm7459_vm2, %v7455_v47, %v7463_v39 }
 0xce7   :  { %v7468_v8 = vsel %vm7460_vm3, %v7456_v43, %v7464_v12  ;;  %v7474_v50 = vpack.c.bf16 %v7466_v38, %v7466_v38 }
 0xce8   :  { %v7476_v59 = vpack.c.bf16 %v7468_v8, %v7468_v8 }
 0xce9   :  { %9304 = dma.done.wait [#allocation10 + $0x3], 4096 }
 0xcea   :  { %9305 = vsyncadd [#allocation10 + $0x3], 4294963200  ;;  %v13769_v20 = vld [vmem:[#allocation118_spill] sm:$0xff]  ;;  %v13771_v6 = vld [vmem:[#allocation127_spill] sm:$0xff]  ;;  %7541 = vmatprep.mubr.bf16.mxu1 %v7474_v50  ;;  %7581 = vmatprep.mubr.bf16.mxu0 %v7476_v59  ;;  %v7473_v29 = vpack.c.bf16 %v7465_v33, %v7465_v33  ;;  %v7475_v62 = vpack.c.bf16 %v7467_v5, %v7467_v5 }
 0xceb   :  { %8600 = vmatpush3.bf16.msra.mxu1 %v13769_v20  ;;  %v13770_v17 = vld [vmem:[#allocation134_spill] sm:$0xff]  ;;  %v13772_v49 = vld [vmem:[#allocation143_spill] sm:$0xff]  ;;  %v13775_v32 = vld [vmem:[#allocation128_spill] sm:$0xff] }
 0xcec   :  { %8622 = vmatpush3.bf16.msra.mxu0 %v13770_v17  ;;  %8601 = vmatprep.subr.bf16.mxu1 %v13771_v6  ;;  %v13773_v52 = vld [vmem:[#allocation119_spill] sm:$0xff]  ;;  %v13776_v25 = vld [vmem:[#allocation144_spill] sm:$0xff]  ;;  %v13779_v35 = vld [vmem:[#allocation129_spill] sm:$0xff] }
 0xced   :  { %8623 = vmatprep.subr.bf16.mxu0 %v13772_v49  ;;  %v13774_v2 = vld [vmem:[#allocation135_spill] sm:$0xff]  ;;  %v13777_v26 = vld [vmem:[#allocation120_spill] sm:$0xff]  ;;  %v13780_v56 = vld [vmem:[#allocation145_spill] sm:$0xff] }
 0xcee   :  { %v13778_v3 = vld [vmem:[#allocation136_spill] sm:$0xff]  ;;  %v13781_v11 = vld [vmem:[#allocation121_spill] sm:$0xff]  ;;  %v13783_v60 = vld [vmem:[#allocation130_spill] sm:$0xff] }
 0xcef   :  { %8602 = vmatpush3.bf16.msra.mxu1 %v13773_v52  ;;  %v13782_v51 = vld [vmem:[#allocation137_spill] sm:$0xff]  ;;  %v13784_v14 = vld [vmem:[#allocation146_spill] sm:$0xff]  ;;  %v13787_v48 = vld [vmem:[#allocation131_spill] sm:$0xff] }
 0xcf0   :  { %8624 = vmatpush3.bf16.msra.mxu0 %v13774_v2  ;;  %8603 = vmatprep.subr.bf16.mxu1 %v13775_v32  ;;  %v13785_v16 = vld [vmem:[#allocation122_spill] sm:$0xff]  ;;  %v13788_v31 = vld [vmem:[#allocation147_spill] sm:$0xff]  ;;  %v13791_v10 = vld [vmem:[#allocation132_spill] sm:$0xff] }
 0xcf1   :  { %8625 = vmatprep.subr.bf16.mxu0 %v13776_v25  ;;  %v13786_v41 = vld [vmem:[#allocation138_spill] sm:$0xff]  ;;  %v13789_v28 = vld [vmem:[#allocation123_spill] sm:$0xff]  ;;  %v13792_v40 = vld [vmem:[#allocation148_spill] sm:$0xff] }
 0xcf2   :  { %v13790_v37 = vld [vmem:[#allocation139_spill] sm:$0xff]  ;;  %v13793_v36 = vld [vmem:[#allocation124_spill] sm:$0xff]  ;;  %v13795_v46 = vld [vmem:[#allocation133_spill] sm:$0xff] }
 0xcf3   :  { %8604 = vmatpush3.bf16.msra.mxu1 %v13777_v26  ;;  %v13794_v23 = vld [vmem:[#allocation140_spill] sm:$0xff]  ;;  %v13796_v15 = vld [vmem:[#allocation149_spill] sm:$0xff]  ;;  %v7606_v20 = vld [vmem:[%s13230_s11] sm:$0x1] }
 0xcf4   :  { %8626 = vmatpush3.bf16.msra.mxu0 %v13778_v3  ;;  %8605 = vmatprep.subr.bf16.mxu1 %v13779_v35  ;;  %v13797_v58 = vld [vmem:[#allocation125_spill] sm:$0xff]  ;;  %v7610_v49 = vld [vmem:[%s13230_s11 + $0x1] sm:$0x1] }
 0xcf5   :  { %8627 = vmatprep.subr.bf16.mxu0 %v13780_v56  ;;  %v13798_v34 = vld [vmem:[#allocation141_spill] sm:$0xff] }
 0xcf7   :  { %8606 = vmatpush3.bf16.msra.mxu1 %v13781_v11 }
 0xcf8   :  { %8628 = vmatpush3.bf16.msra.mxu0 %v13782_v51  ;;  %8607 = vmatprep.subr.bf16.mxu1 %v13783_v60 }
 0xcf9   :  { %8629 = vmatprep.subr.bf16.mxu0 %v13784_v14 }
 0xcfb   :  { %8608 = vmatpush3.bf16.msra.mxu1 %v13785_v16 }
 0xcfc   :  { %8630 = vmatpush3.bf16.msra.mxu0 %v13786_v41  ;;  %8609 = vmatprep.subr.bf16.mxu1 %v13787_v48 }
 0xcfd   :  { %8631 = vmatprep.subr.bf16.mxu0 %v13788_v31 }
 0xcff   :  { %8610 = vmatpush3.bf16.msra.mxu1 %v13789_v28 }
 0xd00   :  { %8632 = vmatpush3.bf16.msra.mxu0 %v13790_v37  ;;  %8611 = vmatprep.subr.bf16.mxu1 %v13791_v10 }
 0xd01   :  { %8633 = vmatprep.subr.bf16.mxu0 %v13792_v40 }
 0xd03   :  { %8612 = vmatpush3.bf16.msra.mxu1 %v13793_v36 }
 0xd04   :  { %8634 = vmatpush3.bf16.msra.mxu0 %v13794_v23  ;;  %8613 = vmatprep.subr.bf16.mxu1 %v13795_v46 }
 0xd05   :  { %8635 = vmatprep.subr.bf16.mxu0 %v13796_v15 }
 0xd07   :  { %8614 = vmatpush3.bf16.msra.mxu1 %v13797_v58 }
 0xd08   :  { %8636 = vmatpush3.bf16.msra.mxu0 %v13798_v34 }
 0xd0a   :  { %7542 = vmatmul.mubr.bf16.vlgmr.msra.gmra.mrb[80].mxu1 %v7473_v29 }
 0xd0b   :  { %7582 = vmatmul.mubr.bf16.vlgmr.msra.gmra.mrb[96].mxu0 %v7475_v62 }
 0xddd   :  { %v8615_v44 = vpop.f32.mrb[80].mxu1 }
 0xdde   :  { %v8637_v21 = vpop.f32.mrb[96].mxu0  ;;  %v8616_v24 = vpop.f32.mrb[81].mxu1 }
 0xddf   :  { %v8638_v57 = vpop.f32.mrb[97].mxu0  ;;  %v8617_v27 = vadd.f32 %v8616_v24, %v8615_v44  ;;  %v8618_v1 = vpop.f32.mrb[82].mxu1 }
 0xde0   :  { %v8639_v22 = vadd.f32 %v8638_v57, %v8637_v21  ;;  %v8640_v0 = vpop.f32.mrb[98].mxu0  ;;  %v8619_v42 = vpop.f32.mrb[83].mxu1 }
 0xde1   :  { %v8641_v13 = vpop.f32.mrb[99].mxu0 }
 0xde2   :  { %v7584_v30 = vadd.f32 %v8639_v22, %v8617_v27 }
 0xde4   :  { %v7589_v53 = vrot.slane %v7584_v30, 4  ;;  %v7595_v63 = vmul.f32 %v7584_v30, %v7584_v30 }
 0xde6   :  { %v7590_v9 = vadd.f32 %v7589_v53, %v7584_v30  ;;  %v7596_v55 = vrot.slane %v7595_v63, 4 }
 0xde8   :  { %v7591_v47 = vrot.slane %v7590_v9, 2  ;;  %v7597_v43 = vadd.f32 %v7596_v55, %v7595_v63 }
 0xdea   :  { %v7592_v7 = vadd.f32 %v7591_v47, %v7590_v9  ;;  %v7598_v18 = vrot.slane %v7597_v43, 2 }
 0xdec   :  { %v7599_v39 = vadd.f32 %v7598_v18, %v7597_v43  ;;  %v7593_v12 = vrot.slane %v7592_v7, 1 }
 0xdee   :  { %v7600_v33 = vrot.slane %v7599_v39, 1  ;;  %v7594_v38 = vadd.f32 %v7593_v12, %v7592_v7 }
 0xdf0   :  { %v7601_v5 = vadd.f32 %v7600_v33, %v7599_v39  ;;  %v7602_v8 = vmul.f32 0.125, %v7594_v38 }
 0xdf2   :  { %v7603_v4 = vmul.f32 0.125, %v7601_v5  ;;  %v7604_v19 = vmul.f32 %v7602_v8, %v7602_v8 }
 0xdf4   :  { %v7605_v50 = vsub.f32 %v7603_v4, %v7604_v19 }
 0xdf6   :  { %v7607_v59 = vadd.f32 1e-05, %v7605_v50 }
 0xdf8   :  { %9272 = vrsqrt.f32 %v7607_v59 }
 0xe02   :  { %v9273_v17 = vpop.eup %9272 }
 0xe03   :  { %v7609_v6 = vmul.f32 %v9273_v17, %v7606_v20 }
 0xe05   :  { %v7611_v52 = vmul.f32 %v7609_v6, %v7602_v8  ;;  %v7616_v2 = vrot.slane %v7609_v6, %v13728_v54 }
 0xe07   :  { %v7612_v32 = vsub.f32 %v7610_v49, %v7611_v52  ;;  %v7617_v25 = vmul.f32 %v7616_v2, %v7584_v30 }
 0xe09   :  { %v7621_v26 = vrot.slane %v7612_v32, %v13728_v54 }
 0xe0b   :  { %v7622_v3 = vadd.f32 %v7621_v26, %v7617_v25 }
 0xe0d   :  { %vm7623_vm5 = vcmp.ge.f32.partialorder %v7622_v3, 0.0  ;;  %v7624_v35 = vmul.f32 0.2, %v7622_v3 }
 0xe0f   :  { %v7625_v56 = vsel %vm7623_vm5, %v7622_v3, %v7624_v35 }
 0xe10   :  { %9306 = dma.done.wait [#allocation10 + $0x4], 2048 }
 0xe11   :  { %9307 = vsyncadd [#allocation10 + $0x4], 4294965248  ;;  %v13799_v11 = vmov 0   ;;  %v7632_v51 = vld [vmem:[#allocation9 + $0x8] sm:$0xff]  ;;  %v7631_v60 = vld [vmem:[#allocation9] sm:$0xff]  ;;  %v7630_v62 = vpack.c.bf16 %v7625_v56, %v7625_v56  ;;  %vm7984_vm7 = vcmask 7168  }
 0xe12   :  { %7679 = vmatprep.mubr.bf16.mxu1 %v13799_v11  ;;  %v7634_v14 = vld [vmem:[#allocation9 + $0x18] sm:$0xff]  ;;  %7647 = vmatprep.subr.bf16.mxu1 %v7632_v51  ;;  %v7633_v16 = vld [vmem:[#allocation9 + $0x10] sm:$0xff]  ;;  %v7636_v41 = vld [vmem:[#allocation9 + $0x28] sm:$0xff] }
 0xe13   :  { %7648 = vmatpush1.bf16.msra.mxu1 %v7631_v60  ;;  %v7635_v48 = vld [vmem:[#allocation9 + $0x20] sm:$0xff]  ;;  %v7638_v31 = vld [vmem:[#allocation9 + $0x38] sm:$0xff]  ;;  %v7637_v28 = vld [vmem:[#allocation9 + $0x30] sm:$0xff] }
 0xe14   :  { %7649 = vmatprep.subr.bf16.mxu1 %v7634_v14  ;;  %v7640_v37 = vld [vmem:[#allocation9 + $0x48] sm:$0xff]  ;;  %v7639_v10 = vld [vmem:[#allocation9 + $0x40] sm:$0xff]  ;;  %v7642_v40 = vld [vmem:[#allocation9 + $0x58] sm:$0xff] }
 0xe15   :  { %v7641_v36 = vld [vmem:[#allocation9 + $0x50] sm:$0xff]  ;;  %v7644_v23 = vld [vmem:[#allocation9 + $0x68] sm:$0xff]  ;;  %v7643_v46 = vld [vmem:[#allocation9 + $0x60] sm:$0xff] }
 0xe16   :  { %v7646_v15 = vld [vmem:[#allocation9 + $0x78] sm:$0xff]  ;;  %v7645_v29 = vld [vmem:[#allocation9 + $0x70] sm:$0xff]  ;;  %v9278_v24 = vld [vmem:[%s13232_s13 + $0x50] sm:$0xff]  }
 0xe17   :  { %7650 = vmatpush1.bf16.msra.mxu1 %v7633_v16  ;;  %v9274_v58 = vld [vmem:[%s13232_s13 + $0x40] sm:$0xff]   ;;  %v9276_v44 = vld [vmem:[%s13232_s13 + $0x48] sm:$0xff]   ;;  %v9279_v57 = vld [vmem:[%s13232_s13 + $0x10] sm:$0xff]  }
 0xe18   :  { %7651 = vmatprep.subr.bf16.mxu1 %v7636_v41  ;;  %v9275_v34 = vld [vmem:[%s13232_s13] sm:$0xff]   ;;  %8643 = vmatprep.subr.bf16.mxu0 %v9274_v58  ;;  %v9277_v21 = vld [vmem:[%s13232_s13 + $0x8] sm:$0xff]   ;;  %v9280_v27 = vld [vmem:[%s13232_s13 + $0x58] sm:$0xff]  }
 0xe19   :  { %8644 = vmatpush3.bf16.msra.mxu0 %v9275_v34  ;;  %v9281_v22 = vld [vmem:[%s13232_s13 + $0x18] sm:$0xff]   ;;  %v9282_v1 = vld [vmem:[%s13232_s13 + $0x60] sm:$0xff]   ;;  %v9284_v42 = vld [vmem:[%s13232_s13 + $0x68] sm:$0xff]  }
 0xe1a   :  { %8645 = vmatprep.subr.bf16.mxu0 %v9276_v44  ;;  %v9283_v0 = vld [vmem:[%s13232_s13 + $0x20] sm:$0xff]   ;;  %v9285_v13 = vld [vmem:[%s13232_s13 + $0x28] sm:$0xff]   ;;  %v9286_v30 = vld [vmem:[%s13232_s13 + $0x70] sm:$0xff]  }
 0xe1b   :  { %7652 = vmatpush1.bf16.msra.mxu1 %v7635_v48  ;;  %v9287_v53 = vld [vmem:[%s13232_s13 + $0x30] sm:$0xff]   ;;  %v9288_v63 = vld [vmem:[%s13232_s13 + $0x78] sm:$0xff]  }
 0xe1c   :  { %7653 = vmatprep.subr.bf16.mxu1 %v7638_v31  ;;  %v9289_v9 = vld [vmem:[%s13232_s13 + $0x38] sm:$0xff]  }
 0xe1d   :  { %8646 = vmatpush3.bf16.msra.mxu0 %v9277_v21 }
 0xe1e   :  { %8647 = vmatprep.subr.bf16.mxu0 %v9278_v24 }
 0xe1f   :  { %7654 = vmatpush1.bf16.msra.mxu1 %v7637_v28 }
 0xe20   :  { %7655 = vmatprep.subr.bf16.mxu1 %v7640_v37 }
 0xe21   :  { %8648 = vmatpush3.bf16.msra.mxu0 %v9279_v57 }
 0xe22   :  { %8649 = vmatprep.subr.bf16.mxu0 %v9280_v27 }
 0xe23   :  { %7656 = vmatpush1.bf16.msra.mxu1 %v7639_v10 }
 0xe24   :  { %7657 = vmatprep.subr.bf16.mxu1 %v7642_v40 }
 0xe25   :  { %8650 = vmatpush3.bf16.msra.mxu0 %v9281_v22 }
 0xe26   :  { %8651 = vmatprep.subr.bf16.mxu0 %v9282_v1 }
 0xe27   :  { %7658 = vmatpush1.bf16.msra.mxu1 %v7641_v36 }
 0xe28   :  { %7659 = vmatprep.subr.bf16.mxu1 %v7644_v23 }
 0xe29   :  { %8652 = vmatpush3.bf16.msra.mxu0 %v9283_v0 }
 0xe2a   :  { %8653 = vmatprep.subr.bf16.mxu0 %v9284_v42  ;;  %v8228_v42 = vld [vmem:[%s13231_s12 + $0x1] ss:$2 sm:$0x3] }
 0xe2b   :  { %7660 = vmatpush1.bf16.msra.mxu1 %v7643_v46 }
 0xe2c   :  { %7661 = vmatprep.subr.bf16.mxu1 %v7646_v15 }
 0xe2d   :  { %8654 = vmatpush3.bf16.msra.mxu0 %v9285_v13 }
 0xe2e   :  { %8655 = vmatprep.subr.bf16.mxu0 %v9286_v30 }
 0xe2f   :  { %7662 = vmatpush1.bf16.msra.mxu1 %v7645_v29 }
 0xe31   :  { %8656 = vmatpush3.bf16.msra.mxu0 %v9287_v53 }
 0xe32   :  { %7680 = vmatmul.mubr.bf16.vlgmr.msra.gmra.mrb[84].mxu1 %v7630_v62  ;;  %8657 = vmatprep.subr.bf16.mxu0 %v9288_v63  ;;  %v7722_v62 = vld [vmem:[%s13231_s12] ss:$2 sm:$0x3] }
 0xe35   :  { %8658 = vmatpush3.bf16.msra.mxu0 %v9289_v9 }
 0xf05   :  { %v7681_v55 = vpop.f32.mrb[84].mxu1 }
 0xf06   :  { %v7688_v47 = vrot.slane %v7681_v55, 4  ;;  %v7700_v43 = vmul.f32 %v7681_v55, %v7681_v55  ;;  %v7683_v7 = vpop.f32.mrb[85].mxu1 }
 0xf07   :  { %v7694_v18 = vrot.slane %v7683_v7, 4  ;;  %v7701_v39 = vmul.f32 %v7683_v7, %v7683_v7  ;;  %v7685_v12 = vpop.f32.mrb[86].mxu1 }
 0xf08   :  { %v7689_v33 = vadd.f32 %v7688_v47, %v7681_v55  ;;  %v7702_v38 = vrot.slane %v7700_v43, 4  ;;  %v7686_v5 = vpop.f32.mrb[87].mxu1 }
 0xf09   :  { %v7695_v8 = vadd.f32 %v7694_v18, %v7683_v7  ;;  %v7708_v4 = vrot.slane %v7701_v39, 4 }
 0xf0a   :  { %v7690_v19 = vrot.slane %v7689_v33, 2  ;;  %v7703_v50 = vadd.f32 %v7702_v38, %v7700_v43  ;;  %v8229_v38 = vld [vmem:[#allocation11] ss:$0 sm:$0xff] }
 0xf0b   :  { %v7696_v59 = vrot.slane %v7695_v8, 2  ;;  %v7709_v20 = vadd.f32 %v7708_v4, %v7701_v39 }
 0xf0c   :  { %v7691_v17 = vadd.f32 %v7690_v19, %v7689_v33  ;;  %v7704_v6 = vrot.slane %v7703_v50, 2 }
 0xf0d   :  { %v7697_v49 = vadd.f32 %v7696_v59, %v7695_v8  ;;  %v7710_v52 = vrot.slane %v7709_v20, 2 }
 0xf0e   :  { %v7692_v2 = vrot.slane %v7691_v17, 1  ;;  %v7705_v32 = vadd.f32 %v7704_v6, %v7703_v50 }
 0xf0f   :  { %v7698_v25 = vrot.slane %v7697_v49, 1  ;;  %v7711_v26 = vadd.f32 %v7710_v52, %v7709_v20 }
 0xf10   :  { %v7693_v3 = vadd.f32 %v7692_v2, %v7691_v17  ;;  %v7706_v35 = vrot.slane %v7705_v32, 1 }
 0xf11   :  { %v7699_v56 = vadd.f32 %v7698_v25, %v7697_v49  ;;  %v7712_v11 = vrot.slane %v7711_v26, 1 }
 0xf12   :  { %v7707_v51 = vadd.f32 %v7706_v35, %v7705_v32  ;;  %v7714_v60 = vmul.f32 0.125, %v7693_v3 }
 0xf13   :  { %v7713_v14 = vadd.f32 %v7712_v11, %v7711_v26  ;;  %v7715_v16 = vmul.f32 0.125, %v7699_v56 }
 0xf14   :  { %v7716_v41 = vmul.f32 0.125, %v7707_v51  ;;  %v7718_v48 = vmul.f32 %v7714_v60, %v7714_v60 }
 0xf15   :  { %v7717_v31 = vmul.f32 0.125, %v7713_v14  ;;  %v7719_v28 = vmul.f32 %v7715_v16, %v7715_v16 }
 0xf16   :  { %v7720_v37 = vsub.f32 %v7716_v41, %v7718_v48 }
 0xf17   :  { %v7721_v10 = vsub.f32 %v7717_v31, %v7719_v28 }
 0xf18   :  { %v7723_v40 = vadd.f32 1e-05, %v7720_v37 }
 0xf19   :  { %v7724_v36 = vadd.f32 1e-05, %v7721_v10 }
 0xf1a   :  { %9290 = vrsqrt.f32 %v7723_v40 }
 0xf1b   :  { %9292 = vrsqrt.f32 %v7724_v36 }
 0xf24   :  { %v9291_v23 = vpop.eup %9290 }
 0xf25   :  { %v9293_v46 = vpop.eup %9292 }
 0xf26   :  { %v7729_v15 = vcombine.low %v9291_v23, %v9293_v46 }
 0xf28   :  { %v7736_v29 = vrot.slane %v7729_v15, %v13727_v61 }
 0xf2a   :  { %v7743_v58 = vrot.slane %v7736_v29, %v13727_v61 }
 0xf2c   :  { %v7745_v34 = vmul.f32 %v7743_v58, %v7722_v62 }
 0xf2e   :  { %v7752_v44 = vrot.slane %v7745_v34, %v13728_v54  ;;  %v7756_v21 = vrot.slane %v7745_v34, %v13729_v45 }
 0xf30   :  { %v7760_v24 = vmul.f32 %v7756_v21, %v7715_v16  ;;  %v7781_v57 = vmul.f32 %v7756_v21, %v7683_v7  ;;  %v7759_v27 = vmul.f32 %v7752_v44, %v7714_v60  ;;  %v7780_v22 = vmul.f32 %v7752_v44, %v7681_v55 }
 0xf32   :  { %v7763_v1 = vcombine.low %v7759_v27, %v7760_v24 }
 0xf34   :  { %v7770_v0 = vrot.slane %v7763_v1, %v13727_v61 }
 0xf36   :  { %v7777_v13 = vrot.slane %v7770_v0, %v13727_v61 }
 0xf38   :  { %v7779_v30 = vsub.f32 %v8228_v42, %v7777_v13 }
 0xf3a   :  { %v7790_v53 = vrot.slane %v7779_v30, %v13729_v45  ;;  %v7786_v63 = vrot.slane %v7779_v30, %v13728_v54 }
 0xf3c   :  { %v7794_v9 = vadd.f32 %v7790_v53, %v7781_v57  ;;  %v7793_v47 = vadd.f32 %v7786_v63, %v7780_v22 }
 0xf3e   :  { %vm7796_vm6 = vcmp.ge.f32.partialorder %v7794_v9, 0.0  ;;  %v7798_v43 = vmul.f32 0.2, %v7794_v9  ;;  %vm7795_vm4 = vcmp.ge.f32.partialorder %v7793_v47, 0.0  ;;  %v7797_v55 = vmul.f32 0.2, %v7793_v47 }
 0xf40   :  { %v7800_v7 = vsel %vm7796_vm6, %v7794_v9, %v7798_v43  ;;  %v7799_v18 = vsel %vm7795_vm4, %v7793_v47, %v7797_v55 }
 0xf41   :  { %v7802_v39 = vpack.c.bf16 %v7800_v7, %v7800_v7  ;;  %v7801_v12 = vpack.c.bf16 %v7799_v18, %v7799_v18 }
 0xf43   :  { %7970 = vmatprep.mubr.bf16.mxu0 %v7802_v39 }
 0xf44   :  { %7971 = vmatmul.mubr.bf16.vlgmr.msra.gmra.mrb[100].mxu0 %v7801_v12 }
0x1017   :  { %v8659_v33 = vpop.f32.mrb[100].mxu0 }
0x1018   :  { %v8660_v61 = vpop.f32.mrb[101].mxu0 }
0x1019   :  { %v8661_v5 = vadd.f32 %v8660_v61, %v8659_v33  ;;  %v8662_v8 = vpop.f32.mrb[102].mxu0 }
0x101a   :  { %v8663_v45 = vpop.f32.mrb[103].mxu0 }
0x101b   :  { %v7973_v4 = vadd.f32 %v8661_v5, %v8229_v38 }
0x101d   :  { %v7978_v54 = vsub.f32 0.0, %v7973_v4 }
0x101f   :  { %v7979_v19 = vmul.f32 1.442695, %v7978_v54 }
0x1021   :  { %9294 = vpow2.f32 %v7979_v19 }
0x102b   :  { %v9295_v50 = vpop.eup %9294 }
0x102c   :  { %v7981_v59 = vadd.f32 1.0, %v9295_v50 }
0x102e   :  { %9296 = vrcp.f32 %v7981_v59 }
0x1038   :  { %v9297_v20 = vpop.eup %9296 }
0x1039   :  { %7985 = vst.msk [vmem:[%s13234_s15] sm:$0xff] %vm7984_vm7, %v9297_v20 }
0x103a   :  { %7990 = vsyncmov [#allocation10] }
0x103d   :  { %s7991_s16 = vpop.sfrf %7990 }
0x103e   :  { %p8246_p0 = scmp.ne.s32.totalorder %s7991_s16, 0 }
0x1040   :  { %7995 = shalt.err (%p8246_p0)  }
0x1041   :  { %7997 = vsyncmov [#allocation10 + $0x1] }
0x1044   :  { %s7998_s2 = vpop.sfrf %7997 }
0x1045   :  { %p8247_p1 = scmp.ne.s32.totalorder %s7998_s2, 0 }
0x1047   :  { %8002 = shalt.err (%p8247_p1)  }
0x1048   :  { %8004 = vsyncmov [#allocation10 + $0x2] }
0x104b   :  { %s8005_s4 = vpop.sfrf %8004 }
0x104c   :  { %p8248_p2 = scmp.ne.s32.totalorder %s8005_s4, 0 }
0x104e   :  { %8009 = shalt.err (%p8248_p2)  }
0x104f   :  { %8011 = vsyncmov [#allocation10 + $0x3] }
0x1052   :  { %s8012_s3 = vpop.sfrf %8011 }
0x1053   :  { %p8249_p3 = scmp.ne.s32.totalorder %s8012_s3, 0 }
0x1055   :  { %8016 = shalt.err (%p8249_p3)  }
0x1056   :  { %8018 = vsyncmov [#allocation10 + $0x4] }
0x1059   :  { %s8019_s7 = vpop.sfrf %8018 }
0x105a   :  { %p8250_p4 = scmp.ne.s32.totalorder %s8019_s7, 0 }
0x105c   :  { %8023 = shalt.err (%p8250_p4)  }

</bundles_post_ra>
